<compile_context>
chip_gen: v5e
topology: v5e:2x2
jax: 0.10.0
libtpu: 0.0.40
codegen_flags: <defaults>
</compile_context>

<pallas_src>
import numpy as np
import jax
import jax.numpy as jnp
from jax.experimental import pallas as pl
from jax.experimental.pallas import tpu as pltpu

CONFIG = dict(
    num_filters=8, filters_org=1, size_filters=[3, 3, 3, 3, 3],
    activation="ReLU", batch_norm=False, dense_layer_size=32,
    dropout=0.0, num_classes=10,
)

H_IN = 32          # per-image spatial size (stand-in for 256; must be 32 * final_spatial)
NUM_LAYERS = 5
C_PAD = 4          # input channels padded 3 -> 4 so the layer-0 slab is a dense 128 lanes
B_TILE = 8         # images per grid step: M = 8*32 = 256 rows (matches 256x256 MXU)
LANE_OUT = 128     # logits padded to a full 128-lane store (lane-dense out_spec)


# ------------------------------ fused kernel ---------------------------------
def _cnn_fused_kernel(*refs):
    """refs = [x, (Bstack, bias) x 5, psel, fc1_w, fc1_b, fc2_w, fc2_b, out]."""
    x_ref, o_ref = refs[0], refs[-1]
    w = refs[1:-1]
    psel_ref, fc1w_ref, fc1b_ref, fc2w_ref, fc2b_ref = w[2 * NUM_LAYERS:]

    # Lane-dense activation slab: B_TILE images stacked on the sublane axis,
    # (B_TILE*32 rows, W*C lanes).  Valid data lives at row stride 2**l and
    # every other 8-lane channel block after l pools; the Toeplitz B matrices
    # encode those strides, so the slab is never reshaped/compacted in-kernel.
    v = x_ref[0]                                    # (B_TILE*32, 128) f32
    bh = v.shape[0]
    rmod = jax.lax.broadcasted_iota(jnp.int32, (bh, 1), 0) % H_IN  # row within image

    for l in range(NUM_LAYERS):
        b_ref, bias_ref = w[2 * l], w[2 * l + 1]
        s = 1 << l                                  # row stride of valid data
        win = H_IN >> l                             # logical spatial size at this layer
        n_out = bias_ref.shape[1]
        co = n_out // win                           # output channels

        vb = v.astype(jnp.bfloat16)                 # bf16 MXU operands, f32 accumulate
        # 3x3 'same' conv: horizontal taps folded into the Toeplitz B matrices
        # (MXU); vertical taps via sublane roll (XLU) + per-image zero-pad mask
        # (VPU).  Sequential accumulation keeps one live intermediate.
        c = jnp.dot(vb, b_ref[1], preferred_element_type=jnp.float32)        # row y tap
        up = pltpu.roll(jnp.dot(vb, b_ref[0], preferred_element_type=jnp.float32),
                        s, 0)                                                # row y-1 tap
        c = c + jnp.where(rmod >= s, up, 0.0)
        dn = pltpu.roll(jnp.dot(vb, b_ref[2], preferred_element_type=jnp.float32),
                        bh - s, 0)                                           # row y+1 tap
        c = c + jnp.where(rmod < H_IN - s, dn, 0.0)
        c = jnp.maximum(c + bias_ref[...], 0.0)     # bias + ReLU; batch_norm=False -> Identity
        # 2x2 max pool: column partner = lane roll, row partner = sublane roll.
        # Wrapped/cross-image values are never read downstream (valid pooled
        # data keeps stride 2*s rows / 2*co lanes), so no mask is needed here.
        c = jnp.maximum(c, pltpu.roll(c, n_out - co, 1))
        v = jnp.maximum(c, pltpu.roll(c, bh - s, 0))

    # MLP head (final spatial 1x1): image b's 8 features live at row b*32,
    # lanes 0..7.  A tiny selection matmul gathers all B_TILE feature rows so
    # fc1/fc2 are single (B_TILE, .) matmuls; fc1_w is zero-padded to the final
    # 16-lane slab width, fc2 is padded to a dense 128-lane output.
    vb = v.astype(jnp.bfloat16)
    feat = jnp.dot(psel_ref[...], vb, preferred_element_type=jnp.float32)    # (B_TILE, 16)
    h = jnp.dot(feat.astype(jnp.bfloat16), fc1w_ref[...],
                preferred_element_type=jnp.float32) + fc1b_ref[...]
    h = jnp.maximum(h, 0.0)
    # TODO(synk): nn.Dropout is identity in eval mode; train-mode masking not implemented.
    logits = jnp.dot(h.astype(jnp.bfloat16), fc2w_ref[...],
                     preferred_element_type=jnp.float32) + fc2b_ref[...]
    o_ref[0] = logits.astype(o_ref.dtype)


# ----------------------- host-side operand packing ----------------------------
def _pack_operands(params):
    """One-time packing of conv/fc weights into lane-dense bf16 matmul operands."""
    ops = []
    n_out = 0
    for l in range(NUM_LAYERS):
        w = np.asarray(params[f"conv{l}_w"], np.float32)   # (3, 3, Ci, Co) HWIO
        b = np.asarray(params[f"conv{l}_b"], np.float32)   # (Co,)
        kh, kw, ci, co = w.shape
        win = H_IN >> l                    # spatial size at this layer's input
        cstride = C_PAD if l == 0 else 2 * ci   # lane stride between valid x positions
        k_in = win * cstride
        n_out = win * co
        bmats = np.zeros((kh, k_in, n_out), np.float32)
        for ky in range(kh):
            for xo in range(win):
                for kx in range(kw):
                    xi = xo + kx - (kw - 1) // 2
                    if 0 <= xi < win:
                        r0 = xi * cstride
                        bmats[ky, r0:r0 + ci, xo * co:(xo + 1) * co] = w[ky, kx]
        ops.append(jnp.asarray(bmats, dtype=jnp.bfloat16))                  # (3, K, N)
        ops.append(jnp.asarray(np.tile(b, win)[None, :], dtype=jnp.float32))  # (1, N)

    # Selection matrix: row b picks sublane b*32 (each image's pooled 1x1 row).
    psel = np.zeros((B_TILE, B_TILE * H_IN), np.float32)
    psel[np.arange(B_TILE), np.arange(B_TILE) * H_IN] = 1.0

    # Final spatial is 1x1, so torch's NCHW flatten == channel order; fc1_w is
    # zero-padded to the final 16-lane slab width (lanes 8..15 are pool junk).
    fc1_w = np.asarray(params["fc1_w"], np.float32)
    fc1_eff = np.zeros((n_out, fc1_w.shape[1]), np.float32)
    fc1_eff[:fc1_w.shape[0]] = fc1_w
    fc2_w = np.asarray(params["fc2_w"], np.float32)
    nc = fc2_w.shape[1]
    fc2_pad = np.zeros((fc2_w.shape[0], LANE_OUT), np.float32)
    fc2_pad[:, :nc] = fc2_w
    fc2_b_pad = np.zeros((1, LANE_OUT), np.float32)
    fc2_b_pad[0, :nc] = np.asarray(params["fc2_b"], np.float32)

    ops += [jnp.asarray(psel, dtype=jnp.bfloat16),
            jnp.asarray(fc1_eff, dtype=jnp.bfloat16),
            jnp.asarray(np.asarray(params["fc1_b"], np.float32)[None, :]),
            jnp.asarray(fc2_pad, dtype=jnp.bfloat16),
            jnp.asarray(fc2_b_pad)]
    return ops, nc


# --------------------------------- forward ------------------------------------
def cnn_forward(params, x_nchw):
    n, c, h, w = x_nchw.shape
    assert h == H_IN and w == H_IN, "demo wrapper assumes 32x32 inputs"
    assert c <= C_PAD
    ops, nc = _pack_operands(params)

    # Pad batch to a multiple of B_TILE (grid length stays even for v7x megacore).
    n_pad = (-n) % B_TILE
    if n_pad:
        x_nchw = jnp.concatenate(
            [x_nchw, jnp.zeros((n_pad,) + x_nchw.shape[1:], x_nchw.dtype)], axis=0)
    nt = n + n_pad
    g = nt // B_TILE

    # NCHW -> NHWC, pad channels to C_PAD, fold B_TILE images onto the sublane
    # axis: (G, B_TILE*H, W*C_PAD) lane-dense slabs (pure layout, once, in XLA).
    x = jnp.transpose(x_nchw, (0, 2, 3, 1)).astype(jnp.float32)
    x = jnp.pad(x, ((0, 0), (0, 0), (0, 0), (0, C_PAD - c)))
    x = x.reshape(g, B_TILE * h, w * C_PAD)

    in_specs = [pl.BlockSpec((1, B_TILE * h, w * C_PAD), lambda i: (i, 0, 0))]
    # Constant weight operands: full-array blocks, fetched once (constant index).
    in_specs += [pl.BlockSpec(o.shape, lambda i, nd=o.ndim: (0,) * nd) for o in ops]

    out = pl.pallas_call(
        _cnn_fused_kernel,
        grid=(g,),
        in_specs=in_specs,
        out_specs=pl.BlockSpec((1, B_TILE, LANE_OUT), lambda i: (i, 0, 0)),
        out_shape=jax.ShapeDtypeStruct((g, B_TILE, LANE_OUT), jnp.float32),
        compiler_params=pltpu.CompilerParams(
            dimension_semantics=("parallel",)),   # batch tiles split across TCs on v7x
    )(x, *ops)
    return out.reshape(nt, LANE_OUT)[:n, :nc]


# ------------------------------ parameter init ---------------------------------
def init_params(key, config, in_channels=3, final_spatial=1):
    list_filters = []
    for i in range(5):
        if config["filters_org"] == 1:
            list_filters.append(config["num_filters"])
        elif config["filters_org"] == 0.5:
            list_filters.append(int(config["num_filters"] / 2 ** i))
        else:
            list_filters.append(int(config["num_filters"] * 2 ** i))

    params = {}
    keys = jax.random.split(key, 8)
    cin = in_channels
    for i in range(5):
        cout = list_filters[i]
        ks = config["size_filters"][i]
        fan_in = cin * ks * ks
        params[f"conv{i}_w"] = (jax.random.normal(keys[i], (ks, ks, cin, cout),
                                                  jnp.float32)
                                * (2.0 / fan_in) ** 0.5)
        params[f"conv{i}_b"] = jnp.zeros((cout,), jnp.float32)
        cin = cout

    flat = list_filters[4] * final_spatial ** 2
    d = config["dense_layer_size"]
    params["fc1_w"] = jax.random.normal(keys[5], (flat, d), jnp.float32) * (2.0 / flat) ** 0.5
    params["fc1_b"] = jnp.zeros((d,), jnp.float32)
    params["fc2_w"] = jax.random.normal(keys[6], (d, config["num_classes"]),
                                        jnp.float32) * (2.0 / d) ** 0.5
    params["fc2_b"] = jnp.zeros((config["num_classes"],), jnp.float32)
    return params


# ------------------------- pure-JAX reference (check) --------------------------
def reference_forward(params, x_nchw):
    x = jnp.transpose(x_nchw, (0, 2, 3, 1)).astype(jnp.float32)
    for i in range(5):
        x = jax.lax.conv_general_dilated(
            x, params[f"conv{i}_w"], window_strides=(1, 1), padding="SAME",
            dimension_numbers=("NHWC", "HWIO", "NHWC"),
            precision=jax.lax.Precision.HIGHEST)
        x = jnp.maximum(x + params[f"conv{i}_b"], 0.0)
        x = jax.lax.reduce_window(x, -jnp.inf, jax.lax.max,
                                  (1, 2, 2, 1), (1, 2, 2, 1), "VALID")
    x = jnp.transpose(x, (0, 3, 1, 2)).reshape(x.shape[0], -1)
    h = jnp.maximum(x @ params["fc1_w"] + params["fc1_b"], 0.0)
    return h @ params["fc2_w"] + params["fc2_b"]


if __name__ == "__main__":
    key = jax.random.PRNGKey(0)
    k_param, k_x = jax.random.split(key)
    # Small stand-in for 3x256x256 iNaturalist crops (spatial divisible by 2^5);
    # N=16 -> 2 grid steps of B_TILE=8 images each (even grid, both v7x cores busy).
    N, C, H, W = 16, 3, 32, 32
    params = init_params(k_param, CONFIG, in_channels=C, final_spatial=H // 32)
    x = jax.random.normal(k_x, (N, C, H, W), jnp.float32)

    logits = jax.block_until_ready(cnn_forward(params, x))
    assert logits.shape == (N, CONFIG["num_classes"]), logits.shape
    assert bool(jnp.all(jnp.isfinite(logits)))

    ref = jax.block_until_ready(reference_forward(params, x))
    # bf16 MXU operands vs Precision.HIGHEST f32 reference -> slightly looser tol.
    assert bool(jnp.allclose(logits, ref, rtol=6e-2, atol=6e-2)), (
        float(jnp.max(jnp.abs(logits - ref))))
    print("KERNEL_OK")
</pallas_src>

<mosaic_0001>
module attributes {stable_mosaic.version = 11 : i64} {
  func.func @_cnn_fused_kernel(%arg0: i32, %arg1: memref<1x256x128xf32, #tpu.memory_space<vmem>>, %arg2: memref<3x128x256xbf16, #tpu.memory_space<vmem>>, %arg3: memref<1x256xf32, #tpu.memory_space<vmem>>, %arg4: memref<3x256x128xbf16, #tpu.memory_space<vmem>>, %arg5: memref<1x128xf32, #tpu.memory_space<vmem>>, %arg6: memref<3x128x64xbf16, #tpu.memory_space<vmem>>, %arg7: memref<1x64xf32, #tpu.memory_space<vmem>>, %arg8: memref<3x64x32xbf16, #tpu.memory_space<vmem>>, %arg9: memref<1x32xf32, #tpu.memory_space<vmem>>, %arg10: memref<3x32x16xbf16, #tpu.memory_space<vmem>>, %arg11: memref<1x16xf32, #tpu.memory_space<vmem>>, %arg12: memref<8x256xbf16, #tpu.memory_space<vmem>>, %arg13: memref<16x32xbf16, #tpu.memory_space<vmem>>, %arg14: memref<1x32xf32, #tpu.memory_space<vmem>>, %arg15: memref<32x128xbf16, #tpu.memory_space<vmem>>, %arg16: memref<1x128xf32, #tpu.memory_space<vmem>>, %arg17: memref<1x8x128xf32, #tpu.memory_space<vmem>>) attributes {dimension_semantics = [#tpu.dimension_semantics<parallel>], iteration_bounds = array<i64: 2>, scalar_prefetch = 0 : i64, scratch_operands = 0 : i64, tpu.core_type = #tpu.core_type<tc>, window_params = [{transform_indices = @transform_0, window_bounds = array<i64: 1, 256, 128>}, {pipeline_mode = #tpu.pipeline_mode<synchronous>, transform_indices = @transform_1, window_bounds = array<i64: 3, 128, 256>}, {pipeline_mode = #tpu.pipeline_mode<synchronous>, transform_indices = @transform_2, window_bounds = array<i64: 1, 256>}, {pipeline_mode = #tpu.pipeline_mode<synchronous>, transform_indices = @transform_3, window_bounds = array<i64: 3, 256, 128>}, {pipeline_mode = #tpu.pipeline_mode<synchronous>, transform_indices = @transform_4, window_bounds = array<i64: 1, 128>}, {pipeline_mode = #tpu.pipeline_mode<synchronous>, transform_indices = @transform_5, window_bounds = array<i64: 3, 128, 64>}, {pipeline_mode = #tpu.pipeline_mode<synchronous>, transform_indices = @transform_6, window_bounds = array<i64: 1, 64>}, {pipeline_mode = #tpu.pipeline_mode<synchronous>, transform_indices = @transform_7, window_bounds = array<i64: 3, 64, 32>}, {pipeline_mode = #tpu.pipeline_mode<synchronous>, transform_indices = @transform_8, window_bounds = array<i64: 1, 32>}, {pipeline_mode = #tpu.pipeline_mode<synchronous>, transform_indices = @transform_9, window_bounds = array<i64: 3, 32, 16>}, {pipeline_mode = #tpu.pipeline_mode<synchronous>, transform_indices = @transform_10, window_bounds = array<i64: 1, 16>}, {pipeline_mode = #tpu.pipeline_mode<synchronous>, transform_indices = @transform_11, window_bounds = array<i64: 8, 256>}, {pipeline_mode = #tpu.pipeline_mode<synchronous>, transform_indices = @transform_12, window_bounds = array<i64: 16, 32>}, {pipeline_mode = #tpu.pipeline_mode<synchronous>, transform_indices = @transform_13, window_bounds = array<i64: 1, 32>}, {pipeline_mode = #tpu.pipeline_mode<synchronous>, transform_indices = @transform_14, window_bounds = array<i64: 32, 128>}, {pipeline_mode = #tpu.pipeline_mode<synchronous>, transform_indices = @transform_15, window_bounds = array<i64: 1, 128>}, {transform_indices = @transform_16, window_bounds = array<i64: 1, 8, 128>}]} {
    %c0 = arith.constant 0 : index
    %c0_0 = arith.constant 0 : index
    %c0_1 = arith.constant 0 : index
    %0 = vector.load %arg1[%c0, %c0_0, %c0_1] : memref<1x256x128xf32, #tpu.memory_space<vmem>>, vector<1x256x128xf32>
    %1 = vector.shape_cast %0 : vector<1x256x128xf32> to vector<256x128xf32>
    %2 = tpu.iota {dimensions = array<i32: 0>} : vector<256x1xi32>
    %c32_i32 = arith.constant 32 : i32
    %c0_i32 = arith.constant 0 : i32
    %3 = arith.cmpi eq, %c32_i32, %c0_i32 : i32
    %c1_i32 = arith.constant 1 : i32
    %4 = arith.select %3, %c1_i32, %c32_i32 : i32
    %5 = vector.broadcast %4 : i32 to vector<256x1xi32>
    %6 = arith.remsi %2, %5 : vector<256x1xi32>
    %c0_i32_2 = arith.constant 0 : i32
    %7 = vector.broadcast %c0_i32_2 : i32 to vector<256x1xi32>
    %8 = arith.cmpi ne, %6, %7 : vector<256x1xi32>
    %c0_i32_3 = arith.constant 0 : i32
    %9 = vector.broadcast %c0_i32_3 : i32 to vector<256x1xi32>
    %10 = arith.cmpi slt, %6, %9 : vector<256x1xi32>
    %c0_i32_4 = arith.constant 0 : i32
    %11 = arith.cmpi slt, %4, %c0_i32_4 : i32
    %12 = vector.broadcast %11 : i1 to vector<256x1xi1>
    %13 = vector.broadcast %12 : vector<256x1xi1> to vector<256x1xi1>
    %14 = arith.xori %10, %13 : vector<256x1xi1>
    %15 = arith.andi %14, %8 : vector<256x1xi1>
    %16 = vector.broadcast %4 : i32 to vector<256x1xi32>
    %17 = arith.addi %6, %16 : vector<256x1xi32>
    %18 = arith.select %15, %17, %6 : vector<256x1xi1>, vector<256x1xi32>
    %19 = arith.truncf %1 : vector<256x128xf32> to vector<256x128xbf16>
    %c1 = arith.constant 1 : index
    %c0_5 = arith.constant 0 : index
    %c0_6 = arith.constant 0 : index
    %20 = vector.load %arg2[%c1, %c0_5, %c0_6] : memref<3x128x256xbf16, #tpu.memory_space<vmem>>, vector<1x128x256xbf16>
    %21 = vector.shape_cast %20 : vector<1x128x256xbf16> to vector<128x256xbf16>
    %cst = arith.constant dense<0.000000e+00> : vector<256x256xf32>
    %22 = tpu.matmul %19, %21, %cst {dimension_numbers = #tpu.dot_dimension_numbers<[1], [0], [0], [1], [0, 0, 1, 1], [], []>} : vector<256x128xbf16>, vector<128x256xbf16>, vector<256x256xf32> -> vector<256x256xf32>
    %c0_7 = arith.constant 0 : index
    %c0_8 = arith.constant 0 : index
    %c0_9 = arith.constant 0 : index
    %23 = vector.load %arg2[%c0_7, %c0_8, %c0_9] : memref<3x128x256xbf16, #tpu.memory_space<vmem>>, vector<1x128x256xbf16>
    %24 = vector.shape_cast %23 : vector<1x128x256xbf16> to vector<128x256xbf16>
    %cst_10 = arith.constant dense<0.000000e+00> : vector<256x256xf32>
    %25 = tpu.matmul %19, %24, %cst_10 {dimension_numbers = #tpu.dot_dimension_numbers<[1], [0], [0], [1], [0, 0, 1, 1], [], []>} : vector<256x128xbf16>, vector<128x256xbf16>, vector<256x256xf32> -> vector<256x256xf32>
    %c1_i32_11 = arith.constant 1 : i32
    %26 = tpu.dynamic_rotate %25 by %c1_i32_11 dim 0 : vector<256x256xf32>, i32 -> vector<256x256xf32>
    %c1_i32_12 = arith.constant 1 : i32
    %27 = vector.broadcast %c1_i32_12 : i32 to vector<256x1xi32>
    %28 = arith.cmpi sge, %18, %27 : vector<256x1xi32>
    %cst_13 = arith.constant 0.000000e+00 : f32
    %29 = vector.shape_cast %28 : vector<256x1xi1> to vector<256x1xi1>
    %30 = vector.broadcast %29 : vector<256x1xi1> to vector<256x256xi1>
    %31 = vector.broadcast %cst_13 : f32 to vector<256x256xf32>
    %32 = arith.select %30, %26, %31 : vector<256x256xi1>, vector<256x256xf32>
    %33 = arith.addf %22, %32 : vector<256x256xf32>
    %c2 = arith.constant 2 : index
    %c0_14 = arith.constant 0 : index
    %c0_15 = arith.constant 0 : index
    %34 = vector.load %arg2[%c2, %c0_14, %c0_15] : memref<3x128x256xbf16, #tpu.memory_space<vmem>>, vector<1x128x256xbf16>
    %35 = vector.shape_cast %34 : vector<1x128x256xbf16> to vector<128x256xbf16>
    %cst_16 = arith.constant dense<0.000000e+00> : vector<256x256xf32>
    %36 = tpu.matmul %19, %35, %cst_16 {dimension_numbers = #tpu.dot_dimension_numbers<[1], [0], [0], [1], [0, 0, 1, 1], [], []>} : vector<256x128xbf16>, vector<128x256xbf16>, vector<256x256xf32> -> vector<256x256xf32>
    %c255_i32 = arith.constant 255 : i32
    %37 = tpu.dynamic_rotate %36 by %c255_i32 dim 0 : vector<256x256xf32>, i32 -> vector<256x256xf32>
    %c31_i32 = arith.constant 31 : i32
    %38 = vector.broadcast %c31_i32 : i32 to vector<256x1xi32>
    %39 = arith.cmpi slt, %18, %38 : vector<256x1xi32>
    %cst_17 = arith.constant 0.000000e+00 : f32
    %40 = vector.shape_cast %39 : vector<256x1xi1> to vector<256x1xi1>
    %41 = vector.broadcast %40 : vector<256x1xi1> to vector<256x256xi1>
    %42 = vector.broadcast %cst_17 : f32 to vector<256x256xf32>
    %43 = arith.select %41, %37, %42 : vector<256x256xi1>, vector<256x256xf32>
    %44 = arith.addf %33, %43 : vector<256x256xf32>
    %c0_18 = arith.constant 0 : index
    %c0_19 = arith.constant 0 : index
    %45 = vector.load %arg3[%c0_18, %c0_19] : memref<1x256xf32, #tpu.memory_space<vmem>>, vector<1x256xf32>
    %46 = vector.broadcast %45 : vector<1x256xf32> to vector<256x256xf32>
    %47 = arith.addf %44, %46 : vector<256x256xf32>
    %cst_20 = arith.constant 0.000000e+00 : f32
    %48 = vector.broadcast %cst_20 : f32 to vector<256x256xf32>
    %49 = arith.maximumf %47, %48 : vector<256x256xf32>
    %c248_i32 = arith.constant 248 : i32
    %50 = tpu.dynamic_rotate %49 by %c248_i32 dim 1 : vector<256x256xf32>, i32 -> vector<256x256xf32>
    %51 = arith.maximumf %49, %50 : vector<256x256xf32>
    %c255_i32_21 = arith.constant 255 : i32
    %52 = tpu.dynamic_rotate %51 by %c255_i32_21 dim 0 : vector<256x256xf32>, i32 -> vector<256x256xf32>
    %53 = arith.maximumf %51, %52 : vector<256x256xf32>
    %54 = arith.truncf %53 : vector<256x256xf32> to vector<256x256xbf16>
    %c1_22 = arith.constant 1 : index
    %c0_23 = arith.constant 0 : index
    %c0_24 = arith.constant 0 : index
    %55 = vector.load %arg4[%c1_22, %c0_23, %c0_24] : memref<3x256x128xbf16, #tpu.memory_space<vmem>>, vector<1x256x128xbf16>
    %56 = vector.shape_cast %55 : vector<1x256x128xbf16> to vector<256x128xbf16>
    %cst_25 = arith.constant dense<0.000000e+00> : vector<256x128xf32>
    %57 = tpu.matmul %54, %56, %cst_25 {dimension_numbers = #tpu.dot_dimension_numbers<[1], [0], [0], [1], [0, 0, 1, 1], [], []>} : vector<256x256xbf16>, vector<256x128xbf16>, vector<256x128xf32> -> vector<256x128xf32>
    %c0_26 = arith.constant 0 : index
    %c0_27 = arith.constant 0 : index
    %c0_28 = arith.constant 0 : index
    %58 = vector.load %arg4[%c0_26, %c0_27, %c0_28] : memref<3x256x128xbf16, #tpu.memory_space<vmem>>, vector<1x256x128xbf16>
    %59 = vector.shape_cast %58 : vector<1x256x128xbf16> to vector<256x128xbf16>
    %cst_29 = arith.constant dense<0.000000e+00> : vector<256x128xf32>
    %60 = tpu.matmul %54, %59, %cst_29 {dimension_numbers = #tpu.dot_dimension_numbers<[1], [0], [0], [1], [0, 0, 1, 1], [], []>} : vector<256x256xbf16>, vector<256x128xbf16>, vector<256x128xf32> -> vector<256x128xf32>
    %c2_i32 = arith.constant 2 : i32
    %61 = tpu.dynamic_rotate %60 by %c2_i32 dim 0 : vector<256x128xf32>, i32 -> vector<256x128xf32>
    %c2_i32_30 = arith.constant 2 : i32
    %62 = vector.broadcast %c2_i32_30 : i32 to vector<256x1xi32>
    %63 = arith.cmpi sge, %18, %62 : vector<256x1xi32>
    %cst_31 = arith.constant 0.000000e+00 : f32
    %64 = vector.shape_cast %63 : vector<256x1xi1> to vector<256x1xi1>
    %65 = vector.broadcast %64 : vector<256x1xi1> to vector<256x128xi1>
    %66 = vector.broadcast %cst_31 : f32 to vector<256x128xf32>
    %67 = arith.select %65, %61, %66 : vector<256x128xi1>, vector<256x128xf32>
    %68 = arith.addf %57, %67 : vector<256x128xf32>
    %c2_32 = arith.constant 2 : index
    %c0_33 = arith.constant 0 : index
    %c0_34 = arith.constant 0 : index
    %69 = vector.load %arg4[%c2_32, %c0_33, %c0_34] : memref<3x256x128xbf16, #tpu.memory_space<vmem>>, vector<1x256x128xbf16>
    %70 = vector.shape_cast %69 : vector<1x256x128xbf16> to vector<256x128xbf16>
    %cst_35 = arith.constant dense<0.000000e+00> : vector<256x128xf32>
    %71 = tpu.matmul %54, %70, %cst_35 {dimension_numbers = #tpu.dot_dimension_numbers<[1], [0], [0], [1], [0, 0, 1, 1], [], []>} : vector<256x256xbf16>, vector<256x128xbf16>, vector<256x128xf32> -> vector<256x128xf32>
    %c254_i32 = arith.constant 254 : i32
    %72 = tpu.dynamic_rotate %71 by %c254_i32 dim 0 : vector<256x128xf32>, i32 -> vector<256x128xf32>
    %c30_i32 = arith.constant 30 : i32
    %73 = vector.broadcast %c30_i32 : i32 to vector<256x1xi32>
    %74 = arith.cmpi slt, %18, %73 : vector<256x1xi32>
    %cst_36 = arith.constant 0.000000e+00 : f32
    %75 = vector.shape_cast %74 : vector<256x1xi1> to vector<256x1xi1>
    %76 = vector.broadcast %75 : vector<256x1xi1> to vector<256x128xi1>
    %77 = vector.broadcast %cst_36 : f32 to vector<256x128xf32>
    %78 = arith.select %76, %72, %77 : vector<256x128xi1>, vector<256x128xf32>
    %79 = arith.addf %68, %78 : vector<256x128xf32>
    %c0_37 = arith.constant 0 : index
    %c0_38 = arith.constant 0 : index
    %80 = vector.load %arg5[%c0_37, %c0_38] : memref<1x128xf32, #tpu.memory_space<vmem>>, vector<1x128xf32>
    %81 = vector.broadcast %80 : vector<1x128xf32> to vector<256x128xf32>
    %82 = arith.addf %79, %81 : vector<256x128xf32>
    %cst_39 = arith.constant 0.000000e+00 : f32
    %83 = vector.broadcast %cst_39 : f32 to vector<256x128xf32>
    %84 = arith.maximumf %82, %83 : vector<256x128xf32>
    %c120_i32 = arith.constant 120 : i32
    %85 = tpu.dynamic_rotate %84 by %c120_i32 dim 1 : vector<256x128xf32>, i32 -> vector<256x128xf32>
    %86 = arith.maximumf %84, %85 : vector<256x128xf32>
    %c254_i32_40 = arith.constant 254 : i32
    %87 = tpu.dynamic_rotate %86 by %c254_i32_40 dim 0 : vector<256x128xf32>, i32 -> vector<256x128xf32>
    %88 = arith.maximumf %86, %87 : vector<256x128xf32>
    %89 = arith.truncf %88 : vector<256x128xf32> to vector<256x128xbf16>
    %c1_41 = arith.constant 1 : index
    %c0_42 = arith.constant 0 : index
    %c0_43 = arith.constant 0 : index
    %90 = vector.load %arg6[%c1_41, %c0_42, %c0_43] : memref<3x128x64xbf16, #tpu.memory_space<vmem>>, vector<1x128x64xbf16>
    %91 = vector.shape_cast %90 : vector<1x128x64xbf16> to vector<128x64xbf16>
    %cst_44 = arith.constant dense<0.000000e+00> : vector<256x64xf32>
    %92 = tpu.matmul %89, %91, %cst_44 {dimension_numbers = #tpu.dot_dimension_numbers<[1], [0], [0], [1], [0, 0, 1, 1], [], []>} : vector<256x128xbf16>, vector<128x64xbf16>, vector<256x64xf32> -> vector<256x64xf32>
    %c0_45 = arith.constant 0 : index
    %c0_46 = arith.constant 0 : index
    %c0_47 = arith.constant 0 : index
    %93 = vector.load %arg6[%c0_45, %c0_46, %c0_47] : memref<3x128x64xbf16, #tpu.memory_space<vmem>>, vector<1x128x64xbf16>
    %94 = vector.shape_cast %93 : vector<1x128x64xbf16> to vector<128x64xbf16>
    %cst_48 = arith.constant dense<0.000000e+00> : vector<256x64xf32>
    %95 = tpu.matmul %89, %94, %cst_48 {dimension_numbers = #tpu.dot_dimension_numbers<[1], [0], [0], [1], [0, 0, 1, 1], [], []>} : vector<256x128xbf16>, vector<128x64xbf16>, vector<256x64xf32> -> vector<256x64xf32>
    %c4_i32 = arith.constant 4 : i32
    %96 = tpu.dynamic_rotate %95 by %c4_i32 dim 0 : vector<256x64xf32>, i32 -> vector<256x64xf32>
    %c4_i32_49 = arith.constant 4 : i32
    %97 = vector.broadcast %c4_i32_49 : i32 to vector<256x1xi32>
    %98 = arith.cmpi sge, %18, %97 : vector<256x1xi32>
    %cst_50 = arith.constant 0.000000e+00 : f32
    %99 = vector.shape_cast %98 : vector<256x1xi1> to vector<256x1xi1>
    %100 = vector.broadcast %99 : vector<256x1xi1> to vector<256x64xi1>
    %101 = vector.broadcast %cst_50 : f32 to vector<256x64xf32>
    %102 = arith.select %100, %96, %101 : vector<256x64xi1>, vector<256x64xf32>
    %103 = arith.addf %92, %102 : vector<256x64xf32>
    %c2_51 = arith.constant 2 : index
    %c0_52 = arith.constant 0 : index
    %c0_53 = arith.constant 0 : index
    %104 = vector.load %arg6[%c2_51, %c0_52, %c0_53] : memref<3x128x64xbf16, #tpu.memory_space<vmem>>, vector<1x128x64xbf16>
    %105 = vector.shape_cast %104 : vector<1x128x64xbf16> to vector<128x64xbf16>
    %cst_54 = arith.constant dense<0.000000e+00> : vector<256x64xf32>
    %106 = tpu.matmul %89, %105, %cst_54 {dimension_numbers = #tpu.dot_dimension_numbers<[1], [0], [0], [1], [0, 0, 1, 1], [], []>} : vector<256x128xbf16>, vector<128x64xbf16>, vector<256x64xf32> -> vector<256x64xf32>
    %c252_i32 = arith.constant 252 : i32
    %107 = tpu.dynamic_rotate %106 by %c252_i32 dim 0 : vector<256x64xf32>, i32 -> vector<256x64xf32>
    %c28_i32 = arith.constant 28 : i32
    %108 = vector.broadcast %c28_i32 : i32 to vector<256x1xi32>
    %109 = arith.cmpi slt, %18, %108 : vector<256x1xi32>
    %cst_55 = arith.constant 0.000000e+00 : f32
    %110 = vector.shape_cast %109 : vector<256x1xi1> to vector<256x1xi1>
    %111 = vector.broadcast %110 : vector<256x1xi1> to vector<256x64xi1>
    %112 = vector.broadcast %cst_55 : f32 to vector<256x64xf32>
    %113 = arith.select %111, %107, %112 : vector<256x64xi1>, vector<256x64xf32>
    %114 = arith.addf %103, %113 : vector<256x64xf32>
    %c0_56 = arith.constant 0 : index
    %c0_57 = arith.constant 0 : index
    %115 = vector.load %arg7[%c0_56, %c0_57] : memref<1x64xf32, #tpu.memory_space<vmem>>, vector<1x64xf32>
    %116 = vector.broadcast %115 : vector<1x64xf32> to vector<256x64xf32>
    %117 = arith.addf %114, %116 : vector<256x64xf32>
    %cst_58 = arith.constant 0.000000e+00 : f32
    %118 = vector.broadcast %cst_58 : f32 to vector<256x64xf32>
    %119 = arith.maximumf %117, %118 : vector<256x64xf32>
    %c56_i32 = arith.constant 56 : i32
    %120 = tpu.dynamic_rotate %119 by %c56_i32 dim 1 : vector<256x64xf32>, i32 -> vector<256x64xf32>
    %121 = arith.maximumf %119, %120 : vector<256x64xf32>
    %c252_i32_59 = arith.constant 252 : i32
    %122 = tpu.dynamic_rotate %121 by %c252_i32_59 dim 0 : vector<256x64xf32>, i32 -> vector<256x64xf32>
    %123 = arith.maximumf %121, %122 : vector<256x64xf32>
    %124 = arith.truncf %123 : vector<256x64xf32> to vector<256x64xbf16>
    %c1_60 = arith.constant 1 : index
    %c0_61 = arith.constant 0 : index
    %c0_62 = arith.constant 0 : index
    %125 = vector.load %arg8[%c1_60, %c0_61, %c0_62] : memref<3x64x32xbf16, #tpu.memory_space<vmem>>, vector<1x64x32xbf16>
    %126 = vector.shape_cast %125 : vector<1x64x32xbf16> to vector<64x32xbf16>
    %cst_63 = arith.constant dense<0.000000e+00> : vector<256x32xf32>
    %127 = tpu.matmul %124, %126, %cst_63 {dimension_numbers = #tpu.dot_dimension_numbers<[1], [0], [0], [1], [0, 0, 1, 1], [], []>} : vector<256x64xbf16>, vector<64x32xbf16>, vector<256x32xf32> -> vector<256x32xf32>
    %c0_64 = arith.constant 0 : index
    %c0_65 = arith.constant 0 : index
    %c0_66 = arith.constant 0 : index
    %128 = vector.load %arg8[%c0_64, %c0_65, %c0_66] : memref<3x64x32xbf16, #tpu.memory_space<vmem>>, vector<1x64x32xbf16>
    %129 = vector.shape_cast %128 : vector<1x64x32xbf16> to vector<64x32xbf16>
    %cst_67 = arith.constant dense<0.000000e+00> : vector<256x32xf32>
    %130 = tpu.matmul %124, %129, %cst_67 {dimension_numbers = #tpu.dot_dimension_numbers<[1], [0], [0], [1], [0, 0, 1, 1], [], []>} : vector<256x64xbf16>, vector<64x32xbf16>, vector<256x32xf32> -> vector<256x32xf32>
    %c8_i32 = arith.constant 8 : i32
    %131 = tpu.dynamic_rotate %130 by %c8_i32 dim 0 : vector<256x32xf32>, i32 -> vector<256x32xf32>
    %c8_i32_68 = arith.constant 8 : i32
    %132 = vector.broadcast %c8_i32_68 : i32 to vector<256x1xi32>
    %133 = arith.cmpi sge, %18, %132 : vector<256x1xi32>
    %cst_69 = arith.constant 0.000000e+00 : f32
    %134 = vector.shape_cast %133 : vector<256x1xi1> to vector<256x1xi1>
    %135 = vector.broadcast %134 : vector<256x1xi1> to vector<256x32xi1>
    %136 = vector.broadcast %cst_69 : f32 to vector<256x32xf32>
    %137 = arith.select %135, %131, %136 : vector<256x32xi1>, vector<256x32xf32>
    %138 = arith.addf %127, %137 : vector<256x32xf32>
    %c2_70 = arith.constant 2 : index
    %c0_71 = arith.constant 0 : index
    %c0_72 = arith.constant 0 : index
    %139 = vector.load %arg8[%c2_70, %c0_71, %c0_72] : memref<3x64x32xbf16, #tpu.memory_space<vmem>>, vector<1x64x32xbf16>
    %140 = vector.shape_cast %139 : vector<1x64x32xbf16> to vector<64x32xbf16>
    %cst_73 = arith.constant dense<0.000000e+00> : vector<256x32xf32>
    %141 = tpu.matmul %124, %140, %cst_73 {dimension_numbers = #tpu.dot_dimension_numbers<[1], [0], [0], [1], [0, 0, 1, 1], [], []>} : vector<256x64xbf16>, vector<64x32xbf16>, vector<256x32xf32> -> vector<256x32xf32>
    %c248_i32_74 = arith.constant 248 : i32
    %142 = tpu.dynamic_rotate %141 by %c248_i32_74 dim 0 : vector<256x32xf32>, i32 -> vector<256x32xf32>
    %c24_i32 = arith.constant 24 : i32
    %143 = vector.broadcast %c24_i32 : i32 to vector<256x1xi32>
    %144 = arith.cmpi slt, %18, %143 : vector<256x1xi32>
    %cst_75 = arith.constant 0.000000e+00 : f32
    %145 = vector.shape_cast %144 : vector<256x1xi1> to vector<256x1xi1>
    %146 = vector.broadcast %145 : vector<256x1xi1> to vector<256x32xi1>
    %147 = vector.broadcast %cst_75 : f32 to vector<256x32xf32>
    %148 = arith.select %146, %142, %147 : vector<256x32xi1>, vector<256x32xf32>
    %149 = arith.addf %138, %148 : vector<256x32xf32>
    %c0_76 = arith.constant 0 : index
    %c0_77 = arith.constant 0 : index
    %150 = vector.load %arg9[%c0_76, %c0_77] : memref<1x32xf32, #tpu.memory_space<vmem>>, vector<1x32xf32>
    %151 = vector.broadcast %150 : vector<1x32xf32> to vector<256x32xf32>
    %152 = arith.addf %149, %151 : vector<256x32xf32>
    %cst_78 = arith.constant 0.000000e+00 : f32
    %153 = vector.broadcast %cst_78 : f32 to vector<256x32xf32>
    %154 = arith.maximumf %152, %153 : vector<256x32xf32>
    %c24_i32_79 = arith.constant 24 : i32
    %155 = tpu.dynamic_rotate %154 by %c24_i32_79 dim 1 : vector<256x32xf32>, i32 -> vector<256x32xf32>
    %156 = arith.maximumf %154, %155 : vector<256x32xf32>
    %c248_i32_80 = arith.constant 248 : i32
    %157 = tpu.dynamic_rotate %156 by %c248_i32_80 dim 0 : vector<256x32xf32>, i32 -> vector<256x32xf32>
    %158 = arith.maximumf %156, %157 : vector<256x32xf32>
    %159 = arith.truncf %158 : vector<256x32xf32> to vector<256x32xbf16>
    %c1_81 = arith.constant 1 : index
    %c0_82 = arith.constant 0 : index
    %c0_83 = arith.constant 0 : index
    %160 = vector.load %arg10[%c1_81, %c0_82, %c0_83] : memref<3x32x16xbf16, #tpu.memory_space<vmem>>, vector<1x32x16xbf16>
    %161 = vector.shape_cast %160 : vector<1x32x16xbf16> to vector<32x16xbf16>
    %cst_84 = arith.constant dense<0.000000e+00> : vector<256x16xf32>
    %162 = tpu.matmul %159, %161, %cst_84 {dimension_numbers = #tpu.dot_dimension_numbers<[1], [0], [0], [1], [0, 0, 1, 1], [], []>} : vector<256x32xbf16>, vector<32x16xbf16>, vector<256x16xf32> -> vector<256x16xf32>
    %c0_85 = arith.constant 0 : index
    %c0_86 = arith.constant 0 : index
    %c0_87 = arith.constant 0 : index
    %163 = vector.load %arg10[%c0_85, %c0_86, %c0_87] : memref<3x32x16xbf16, #tpu.memory_space<vmem>>, vector<1x32x16xbf16>
    %164 = vector.shape_cast %163 : vector<1x32x16xbf16> to vector<32x16xbf16>
    %cst_88 = arith.constant dense<0.000000e+00> : vector<256x16xf32>
    %165 = tpu.matmul %159, %164, %cst_88 {dimension_numbers = #tpu.dot_dimension_numbers<[1], [0], [0], [1], [0, 0, 1, 1], [], []>} : vector<256x32xbf16>, vector<32x16xbf16>, vector<256x16xf32> -> vector<256x16xf32>
    %c16_i32 = arith.constant 16 : i32
    %166 = tpu.dynamic_rotate %165 by %c16_i32 dim 0 : vector<256x16xf32>, i32 -> vector<256x16xf32>
    %c16_i32_89 = arith.constant 16 : i32
    %167 = vector.broadcast %c16_i32_89 : i32 to vector<256x1xi32>
    %168 = arith.cmpi sge, %18, %167 : vector<256x1xi32>
    %cst_90 = arith.constant 0.000000e+00 : f32
    %169 = vector.shape_cast %168 : vector<256x1xi1> to vector<256x1xi1>
    %170 = vector.broadcast %169 : vector<256x1xi1> to vector<256x16xi1>
    %171 = vector.broadcast %cst_90 : f32 to vector<256x16xf32>
    %172 = arith.select %170, %166, %171 : vector<256x16xi1>, vector<256x16xf32>
    %173 = arith.addf %162, %172 : vector<256x16xf32>
    %c2_91 = arith.constant 2 : index
    %c0_92 = arith.constant 0 : index
    %c0_93 = arith.constant 0 : index
    %174 = vector.load %arg10[%c2_91, %c0_92, %c0_93] : memref<3x32x16xbf16, #tpu.memory_space<vmem>>, vector<1x32x16xbf16>
    %175 = vector.shape_cast %174 : vector<1x32x16xbf16> to vector<32x16xbf16>
    %cst_94 = arith.constant dense<0.000000e+00> : vector<256x16xf32>
    %176 = tpu.matmul %159, %175, %cst_94 {dimension_numbers = #tpu.dot_dimension_numbers<[1], [0], [0], [1], [0, 0, 1, 1], [], []>} : vector<256x32xbf16>, vector<32x16xbf16>, vector<256x16xf32> -> vector<256x16xf32>
    %c240_i32 = arith.constant 240 : i32
    %177 = tpu.dynamic_rotate %176 by %c240_i32 dim 0 : vector<256x16xf32>, i32 -> vector<256x16xf32>
    %c16_i32_95 = arith.constant 16 : i32
    %178 = vector.broadcast %c16_i32_95 : i32 to vector<256x1xi32>
    %179 = arith.cmpi slt, %18, %178 : vector<256x1xi32>
    %cst_96 = arith.constant 0.000000e+00 : f32
    %180 = vector.shape_cast %179 : vector<256x1xi1> to vector<256x1xi1>
    %181 = vector.broadcast %180 : vector<256x1xi1> to vector<256x16xi1>
    %182 = vector.broadcast %cst_96 : f32 to vector<256x16xf32>
    %183 = arith.select %181, %177, %182 : vector<256x16xi1>, vector<256x16xf32>
    %184 = arith.addf %173, %183 : vector<256x16xf32>
    %c0_97 = arith.constant 0 : index
    %c0_98 = arith.constant 0 : index
    %185 = vector.load %arg11[%c0_97, %c0_98] : memref<1x16xf32, #tpu.memory_space<vmem>>, vector<1x16xf32>
    %186 = vector.broadcast %185 : vector<1x16xf32> to vector<256x16xf32>
    %187 = arith.addf %184, %186 : vector<256x16xf32>
    %cst_99 = arith.constant 0.000000e+00 : f32
    %188 = vector.broadcast %cst_99 : f32 to vector<256x16xf32>
    %189 = arith.maximumf %187, %188 : vector<256x16xf32>
    %c8_i32_100 = arith.constant 8 : i32
    %190 = tpu.dynamic_rotate %189 by %c8_i32_100 dim 1 : vector<256x16xf32>, i32 -> vector<256x16xf32>
    %191 = arith.maximumf %189, %190 : vector<256x16xf32>
    %c240_i32_101 = arith.constant 240 : i32
    %192 = tpu.dynamic_rotate %191 by %c240_i32_101 dim 0 : vector<256x16xf32>, i32 -> vector<256x16xf32>
    %193 = arith.maximumf %191, %192 : vector<256x16xf32>
    %194 = arith.truncf %193 : vector<256x16xf32> to vector<256x16xbf16>
    %c0_102 = arith.constant 0 : index
    %c0_103 = arith.constant 0 : index
    %195 = vector.load %arg12[%c0_102, %c0_103] : memref<8x256xbf16, #tpu.memory_space<vmem>>, vector<8x256xbf16>
    %cst_104 = arith.constant dense<0.000000e+00> : vector<8x16xf32>
    %196 = tpu.matmul %195, %194, %cst_104 {dimension_numbers = #tpu.dot_dimension_numbers<[1], [0], [0], [1], [0, 0, 1, 1], [], []>} : vector<8x256xbf16>, vector<256x16xbf16>, vector<8x16xf32> -> vector<8x16xf32>
    %197 = arith.truncf %196 : vector<8x16xf32> to vector<8x16xbf16>
    %c0_105 = arith.constant 0 : index
    %c0_106 = arith.constant 0 : index
    %198 = vector.load %arg13[%c0_105, %c0_106] : memref<16x32xbf16, #tpu.memory_space<vmem>>, vector<16x32xbf16>
    %cst_107 = arith.constant dense<0.000000e+00> : vector<8x32xf32>
    %199 = tpu.matmul %197, %198, %cst_107 {dimension_numbers = #tpu.dot_dimension_numbers<[1], [0], [0], [1], [0, 0, 1, 1], [], []>} : vector<8x16xbf16>, vector<16x32xbf16>, vector<8x32xf32> -> vector<8x32xf32>
    %c0_108 = arith.constant 0 : index
    %c0_109 = arith.constant 0 : index
    %200 = vector.load %arg14[%c0_108, %c0_109] : memref<1x32xf32, #tpu.memory_space<vmem>>, vector<1x32xf32>
    %201 = vector.broadcast %200 : vector<1x32xf32> to vector<8x32xf32>
    %202 = arith.addf %199, %201 : vector<8x32xf32>
    %cst_110 = arith.constant 0.000000e+00 : f32
    %203 = vector.broadcast %cst_110 : f32 to vector<8x32xf32>
    %204 = arith.maximumf %202, %203 : vector<8x32xf32>
    %205 = arith.truncf %204 : vector<8x32xf32> to vector<8x32xbf16>
    %c0_111 = arith.constant 0 : index
    %c0_112 = arith.constant 0 : index
    %206 = vector.load %arg15[%c0_111, %c0_112] : memref<32x128xbf16, #tpu.memory_space<vmem>>, vector<32x128xbf16>
    %cst_113 = arith.constant dense<0.000000e+00> : vector<8x128xf32>
    %207 = tpu.matmul %205, %206, %cst_113 {dimension_numbers = #tpu.dot_dimension_numbers<[1], [0], [0], [1], [0, 0, 1, 1], [], []>} : vector<8x32xbf16>, vector<32x128xbf16>, vector<8x128xf32> -> vector<8x128xf32>
    %c0_114 = arith.constant 0 : index
    %c0_115 = arith.constant 0 : index
    %208 = vector.load %arg16[%c0_114, %c0_115] : memref<1x128xf32, #tpu.memory_space<vmem>>, vector<1x128xf32>
    %209 = vector.broadcast %208 : vector<1x128xf32> to vector<8x128xf32>
    %210 = arith.addf %207, %209 : vector<8x128xf32>
    %c0_116 = arith.constant 0 : index
    %c0_117 = arith.constant 0 : index
    %c0_118 = arith.constant 0 : index
    %211 = vector.load %arg17[%c0_116, %c0_117, %c0_118] : memref<1x8x128xf32, #tpu.memory_space<vmem>>, vector<1x8x128xf32>
    %212 = vector.shape_cast %211 : vector<1x8x128xf32> to vector<8x128xf32>
    %213 = vector.shape_cast %210 : vector<8x128xf32> to vector<1x8x128xf32>
    tpu.vector_store %arg17[%c0_116, %c0_117, %c0_118], %213 {strides = array<i32>} : memref<1x8x128xf32, #tpu.memory_space<vmem>>, vector<1x8x128xf32>,
    return
  }
  func.func @transform_0(%arg0: i32) -> (i32, i32, i32) {
    %c0_i32 = arith.constant 0 : i32
    %c0_i32_0 = arith.constant 0 : i32
    %c0_i32_1 = arith.constant 0 : i32
    return %arg0, %c0_i32, %c0_i32_0 : i32, i32, i32
  }
  func.func @transform_1(%arg0: i32) -> (i32, i32, i32) {
    %c0_i32 = arith.constant 0 : i32
    %c0_i32_0 = arith.constant 0 : i32
    %c0_i32_1 = arith.constant 0 : i32
    %c0_i32_2 = arith.constant 0 : i32
    return %c0_i32, %c0_i32_0, %c0_i32_1 : i32, i32, i32
  }
  func.func @transform_2(%arg0: i32) -> (i32, i32) {
    %c0_i32 = arith.constant 0 : i32
    %c0_i32_0 = arith.constant 0 : i32
    %c0_i32_1 = arith.constant 0 : i32
    return %c0_i32, %c0_i32_0 : i32, i32
  }
  func.func @transform_3(%arg0: i32) -> (i32, i32, i32) {
    %c0_i32 = arith.constant 0 : i32
    %c0_i32_0 = arith.constant 0 : i32
    %c0_i32_1 = arith.constant 0 : i32
    %c0_i32_2 = arith.constant 0 : i32
    return %c0_i32, %c0_i32_0, %c0_i32_1 : i32, i32, i32
  }
  func.func @transform_4(%arg0: i32) -> (i32, i32) {
    %c0_i32 = arith.constant 0 : i32
    %c0_i32_0 = arith.constant 0 : i32
    %c0_i32_1 = arith.constant 0 : i32
    return %c0_i32, %c0_i32_0 : i32, i32
  }
  func.func @transform_5(%arg0: i32) -> (i32, i32, i32) {
    %c0_i32 = arith.constant 0 : i32
    %c0_i32_0 = arith.constant 0 : i32
    %c0_i32_1 = arith.constant 0 : i32
    %c0_i32_2 = arith.constant 0 : i32
    return %c0_i32, %c0_i32_0, %c0_i32_1 : i32, i32, i32
  }
  func.func @transform_6(%arg0: i32) -> (i32, i32) {
    %c0_i32 = arith.constant 0 : i32
    %c0_i32_0 = arith.constant 0 : i32
    %c0_i32_1 = arith.constant 0 : i32
    return %c0_i32, %c0_i32_0 : i32, i32
  }
  func.func @transform_7(%arg0: i32) -> (i32, i32, i32) {
    %c0_i32 = arith.constant 0 : i32
    %c0_i32_0 = arith.constant 0 : i32
    %c0_i32_1 = arith.constant 0 : i32
    %c0_i32_2 = arith.constant 0 : i32
    return %c0_i32, %c0_i32_0, %c0_i32_1 : i32, i32, i32
  }
  func.func @transform_8(%arg0: i32) -> (i32, i32) {
    %c0_i32 = arith.constant 0 : i32
    %c0_i32_0 = arith.constant 0 : i32
    %c0_i32_1 = arith.constant 0 : i32
    return %c0_i32, %c0_i32_0 : i32, i32
  }
  func.func @transform_9(%arg0: i32) -> (i32, i32, i32) {
    %c0_i32 = arith.constant 0 : i32
    %c0_i32_0 = arith.constant 0 : i32
    %c0_i32_1 = arith.constant 0 : i32
    %c0_i32_2 = arith.constant 0 : i32
    return %c0_i32, %c0_i32_0, %c0_i32_1 : i32, i32, i32
  }
  func.func @transform_10(%arg0: i32) -> (i32, i32) {
    %c0_i32 = arith.constant 0 : i32
    %c0_i32_0 = arith.constant 0 : i32
    %c0_i32_1 = arith.constant 0 : i32
    return %c0_i32, %c0_i32_0 : i32, i32
  }
  func.func @transform_11(%arg0: i32) -> (i32, i32) {
    %c0_i32 = arith.constant 0 : i32
    %c0_i32_0 = arith.constant 0 : i32
    %c0_i32_1 = arith.constant 0 : i32
    return %c0_i32, %c0_i32_0 : i32, i32
  }
  func.func @transform_12(%arg0: i32) -> (i32, i32) {
    %c0_i32 = arith.constant 0 : i32
    %c0_i32_0 = arith.constant 0 : i32
    %c0_i32_1 = arith.constant 0 : i32
    return %c0_i32, %c0_i32_0 : i32, i32
  }
  func.func @transform_13(%arg0: i32) -> (i32, i32) {
    %c0_i32 = arith.constant 0 : i32
    %c0_i32_0 = arith.constant 0 : i32
    %c0_i32_1 = arith.constant 0 : i32
    return %c0_i32, %c0_i32_0 : i32, i32
  }
  func.func @transform_14(%arg0: i32) -> (i32, i32) {
    %c0_i32 = arith.constant 0 : i32
    %c0_i32_0 = arith.constant 0 : i32
    %c0_i32_1 = arith.constant 0 : i32
    return %c0_i32, %c0_i32_0 : i32, i32
  }
  func.func @transform_15(%arg0: i32) -> (i32, i32) {
    %c0_i32 = arith.constant 0 : i32
    %c0_i32_0 = arith.constant 0 : i32
    %c0_i32_1 = arith.constant 0 : i32
    return %c0_i32, %c0_i32_0 : i32, i32
  }
  func.func @transform_16(%arg0: i32) -> (i32, i32, i32) {
    %c0_i32 = arith.constant 0 : i32
    %c0_i32_0 = arith.constant 0 : i32
    %c0_i32_1 = arith.constant 0 : i32
    return %arg0, %c0_i32, %c0_i32_0 : i32, i32, i32
  }
}

</mosaic_0001>

<bundles_post_ra>
// kernel: tpu_custom_call.1
= control target key start
LH: loop header
LB: loop body
LE: loop exit
PB: predicated region body
PF: predicated region fallthrough
CT: control target
= control target key end

     0   :  { %s15980_s0 = inlined_call_operand.hbm [shape: f32[2,256,128], index: 0, kind: input, shape index: {}]   ;;  %s15981_s1 = inlined_call_operand.hbm [shape: bf16[3,128,256], index: 1, kind: input, shape index: {}]   ;;  %s15982_s2 = inlined_call_operand.vmem [shape: f32[1,256], index: 2, kind: input, shape index: {}]   ;;  %s15983_s3 = inlined_call_operand.hbm [shape: bf16[3,256,128], index: 3, kind: input, shape index: {}]   ;;  %s15984_s4 = inlined_call_operand.vmem [shape: f32[1,128], index: 4, kind: input, shape index: {}]   ;;  %s15985_s5 = inlined_call_operand.vmem [shape: bf16[3,128,64], index: 5, kind: input, shape index: {}]   ;;  %s15986_s6 = inlined_call_operand.vmem [shape: f32[1,64], index: 6, kind: input, shape index: {}]   ;;  %s15987_s7 = inlined_call_operand.vmem [shape: bf16[3,64,32], index: 7, kind: input, shape index: {}]   ;;  %s15988_s8 = inlined_call_operand.vmem [shape: f32[1,32], index: 8, kind: input, shape index: {}]   ;;  %s15989_s9 = inlined_call_operand.vmem [shape: bf16[3,32,16], index: 9, kind: input, shape index: {}]   ;;  %s15990_s10 = inlined_call_operand.vmem [shape: f32[1,16], index: 10, kind: input, shape index: {}]   ;;  %s15991_s11 = inlined_call_operand.vmem [shape: bf16[8,256], index: 11, kind: input, shape index: {}]   ;;  %s15992_s12 = inlined_call_operand.vmem [shape: bf16[16,32], index: 12, kind: input, shape index: {}]   ;;  %s15993_s13 = inlined_call_operand.vmem [shape: f32[1,32], index: 13, kind: input, shape index: {}]   ;;  %s15994_s14 = inlined_call_operand.vmem [shape: bf16[32,128], index: 14, kind: input, shape index: {}]   ;;  %s15995_s15 = inlined_call_operand.vmem [shape: f32[1,128], index: 15, kind: input, shape index: {}]   ;;  %s15996_s16 = inlined_call_operand.hbm [shape: f32[2,8,128], index: 16, kind: output, shape index: {}]  }
   0x1   :  { %16194 = sst [smem:[#allocation76_spill]] %s15980_s0 }
   0x2   :  { %16195 = sst [smem:[#allocation77_spill]] %s15981_s1 }
   0x3   :  { %16196 = sst [smem:[#allocation78_spill]] %s15982_s2 }
   0x4   :  { %16197 = sst [smem:[#allocation79_spill]] %s15983_s3 }
   0x5   :  { %16198 = sst [smem:[#allocation80_spill]] %s15995_s15 }
   0x6   :  { %16199 = sst [smem:[#allocation81_spill]] %s15996_s16 }
   0x7   :  { %21 = vsyncpa [#allocation3], 0 }
   0x8   :  { %23 = vsyncpa [#allocation3 + $0x1], 0 }
   0x9   :  { %24 = vsyncpa [#allocation6], 0 }
   0xa   :  { %25 = vsyncpa [#allocation4], 0 }
   0xb   :  { %27 = vsyncpa [#allocation4 + $0x1], 0  ;;  %s10832_s21 = smov 0   ;;  %s10834_s22 = smov 0  }
   0xc   :  { %s10836_s23 = smov 0   ;;  %s10838_s24 = smov 0  }
   0xd LB: > { %16200 = sst [smem:[#allocation12_spill]] %s10723_s21  ;;  %s10853_s25 = sadd.s32 4294967295, %s10735_s24   ;;  %s10735_s24 = sphi %s10838_s24, %s16645_s24   ;;  %s10731_s23 = sphi %s10836_s23, %s16647_s23   ;;  %s10727_s22 = sphi %s10834_s22, %s16649_s22   ;;  %s10723_s21 = sphi %s10832_s21, %s16648_s21  }
   0xe   : > { %16201 = sst [smem:[#allocation13_spill]] %s10731_s23  ;;  %s8651_s26 = sadd.s32 4294967294, %s10735_s24  }
   0xf   : > { %p53_p0 = scmp.ne.s32.totalorder %s10727_s22, %s10723_s21  ;;  %p54_p1 = scmp.eq.s32.totalorder %s10853_s25, 0 }
  0x10   : > { %p392_p2 = scmp.eq.s32.totalorder %s10853_s25, 1  ;;  %p398_p3 = scmp.eq.s32.totalorder %s8651_s26, 1 }
  0x11   : > { %p10862_p4 = por %p54_p1, %p53_p0  ;;  %p8652_p5 = scmp.ge.s32.totalorder %s10735_s24, 1 }
  0x12   : > { %p10867_p6 = por %p398_p3, %p53_p0  ;;  %p405_p7 = scmp.lt.s32.totalorder %s10735_s24, 3 }
  0x13   : > { %s16205_s1 = sld [smem:[#allocation77_spill]]  ;;  %s10737_s18 = smov [#allocation5]  }
  0x14   : > { %s16203_s28 = scalar_select %p10867_p6, 1, 0 }
  0x15   : > { %p10875_p8 = pnand %p8652_p5, %p405_p7  ;;  %s418_s19 = sshll.u32 %s10737_s18, 4  ;;  %s419_s19 = int_to_ptr.vmem [resolvable:$true] %s418_s19 }
  0x16   : > { %16204 = sst [smem:[#allocation14_spill]] %s16203_s28  ;;  %s16001_s30 = smov 128  }
  0x17   : > { %p9564_p9 = pneg %p10875_p8  ;;  %s16207_s3 = sld [smem:[#allocation79_spill]] }
  0x18   : > { %s10740_s18 = smov [#allocation7]   ;;  %s10741_s20 = smov 64  }
  0x19   : > { %s416_s0 = sshll.u32 %s16205_s1, 4  ;;  %p9565_p10 = pnand %p9564_p9, %p54_p1  ;;  %s417_s0 = int_to_ptr.hbm [resolvable:$true] %s416_s0 }
  0x1a   : > { %s16002_s1 = smov 8   ;;  %s435_s28 = sshll.u32 %s10740_s18, 4  ;;  %s436_s28 = int_to_ptr.vmem [resolvable:$true] %s435_s28 }
  0x1b   : > { %9567 = dma.hbm_to_vmem [thread:$0]  (!%p9565_p10), %s417_s0, 6144, %s419_s19, [#allocation6], %s16001_s30, %s16001_s30, %s16002_s1  }
  0x1c   : > { %s10742_s26 = smov 4   ;;  %s40_s15 = sadd.s32 1, %s10731_s23 }
  0x1d   : > { %s433_s29 = sshll.u32 %s16207_s3, 4  ;;  %s10891_s3 = sadd.s32 1, %s10735_s24   ;;  %s434_s29 = int_to_ptr.hbm [resolvable:$true] %s433_s29 }
  0x1e   : > { %9570 = dma.hbm_to_vmem [thread:$0]  (!%p9565_p10), %s434_s29, 6144, %s436_s28, [#allocation6], %s10741_s20, %s10741_s20, %s10742_s26  }
  0x1f   : > { %16208 = sst [smem:[#allocation15_spill]] %s10891_s3  ;;  %s37_s21 = ssub.s32 %s10735_s24, %s10891_s3 }
  0x20   : > { %p38_p12 = scmp.eq.s32.totalorder %s37_s21, 0  ;;  %p47_p13 = scmp.ne.s32.totalorder %s10731_s23, %s10727_s22 }
  0x21   : > { %p48_p0 = scmp.eq.s32.totalorder %s10735_s24, 0  ;;  %p9581_p7 = scmp.lt.s32.totalorder %s10735_s24, 2 }
  0x22   : > { %s10900_s16 = scalar_select %p38_p12, %s10731_s23, %s40_s15  }
  0x23   : > { %p49_p3 = por %p48_p0, %p47_p13  ;;  %p10904_p5 = por %p392_p2, %p47_p13 }
  0x24   : > { %16209 = sst [smem:[#allocation16_spill]] %s10900_s16  ;;  %s485_s19 = sand.u32 1, %s10731_s23  }
  0x25   : > { %s16210_s0 = scalar_select %p10904_p5, 1, 0 }
  0x26   : > { %s8656_s18 = sshll.u32 %s485_s19, 8  ;;  %s9386_s28 = sshll.u32 %s10735_s24, 8 }
  0x27   : > { %16211 = sst [smem:[#allocation17_spill]] %s16210_s0  ;;  %s489_s21 = scalar_lea.vmem [#allocation2], %s8656_s18 }
  0x28   : > { %s16212_s26 = sld [smem:[#allocation76_spill]]  ;;  %s497_s1 = sshll.u32 %s489_s21, 4  ;;  %s498_s1 = int_to_ptr.vmem [resolvable:$true] %s497_s1 }
  0x29   : > { %p10914_p9 = pnand %p9581_p7, %p49_p3  ;;  %s486_s16 = scalar_lea.sflag [#allocation3], %s485_s19 }
  0x2b   : > { %p10639_p10 = pneg %p10914_p9 }
  0x2e   : > { %s494_s30 = scalar_lea.hbm %s16212_s26, %s9386_s28 }
  0x2f   : > { %s495_s3 = sshll.u32 %s494_s30, 4  ;;  %s10642_s30 = scalar_lea.hbm %s16212_s26, 512  ;;  %s496_s3 = int_to_ptr.hbm [resolvable:$true] %s495_s3 }
  0x30   : > { %s10635_s0 = sshra.s32 %s496_s3, 4  ;;  %s10636_s0 = int_to_ptr.hbm [resolvable:$true] %s10635_s0 }
  0x31   : > { %s10637_s23 = scalar_lea.hbm %s10636_s0, 256  ;;  %p10643_p0 = scmp.lt.s32.totalorder %s10636_s0, %s16212_s26 }
  0x32   : > { %p10638_p2 = scmp.ne.s32.totalorder %s10636_s0, %s10637_s23  ;;  %p10644_p3 = scmp.lt.s32.totalorder %s10642_s30, %s10637_s23 }
  0x34   : > { %p10640_p12 = pnand %p10639_p10, %p10638_p2  ;;  %p10645_p7 = por %p10644_p3, %p10643_p0 }
  0x36   : > { %p10641_p13 = pneg %p10640_p12 }
  0x38   : > { %p10646_p11 = pnand %p10645_p7, %p10641_p13 }
  0x3a   : > { %10649 = shalt.err (!%p10646_p11)
}
  0x3b   : > { %s16214_s19 = smov 8   ;;  %s16215_s21 = smov 128  }
  0x3c   : > { %9574 = dma.hbm_to_vmem [thread:$0]  (!%p10914_p9), %s496_s3, 4096, %s498_s1, %s486_s16, %s16215_s21, %s16215_s21, %s16214_s19  }
  0x3d   : > { %509 = sbr.rel (%p10875_p8) target bundleno = 3947 (0xf6b), region = 84 }
  0x42   : > { %s10934_s28 = sand.u32 1, %s10727_s22  }
  0x43   : > { %s8660_s0 = sshll.u32 %s10934_s28, 8  ;;  %s512_s23 = scalar_lea.sflag [#allocation3], %s10934_s28 }
  0x44   : > { %s10938_s18 = scalar_lea.vmem [#allocation2], %s8660_s0 }
  0x45   : > { %10710 = dma.done.wait (%p10862_p4), %s512_s23, 4096  }
  0x46   : > { %10712 = vsyncadd (%p10862_p4), %s512_s23, 4294963200 }
  0x47   : > { %10714 = dma.done.wait (%p54_p1), [#allocation6], 12288  }
  0x48   : > { %10716 = vsyncadd (%p54_p1), [#allocation6], 4294955008  ;;  %v8722_v0 = vld [vmem:[#allocation5 + $0x70] sm:$0xf]  ;;  %v9418_v1 = vld [vmem:[#allocation5 + $0x74] sm:$0xf0] }
  0x49   : > { %v8714_v2 = vld [vmem:[#allocation5 + $0x60] sm:$0xf]  ;;  %v8723_v3 = vor.u32 %v9418_v1, %v8722_v0  ;;  %v9416_v4 = vld [vmem:[#allocation5 + $0x64] sm:$0xf0]  ;;  %v8706_v6 = vld [vmem:[#allocation5 + $0x50] sm:$0xf] }
  0x4a   : > { %v8715_v5 = vor.u32 %v9416_v4, %v8714_v2  ;;  %v9414_v7 = vld [vmem:[#allocation5 + $0x54] sm:$0xf0]  ;;  %v8698_v9 = vld [vmem:[#allocation5 + $0x40] sm:$0xf]  ;;  %v9412_v10 = vld [vmem:[#allocation5 + $0x44] sm:$0xf0] }
  0x4b   : > { %1154 = vmatpush.bf16.msra.mxu0 %v8723_v3  ;;  %9528 = vmatpush.bf16.msra.mxu1 %v8723_v3  ;;  %v8707_v8 = vor.u32 %v9414_v7, %v8706_v6  ;;  %v8699_v11 = vor.u32 %v9412_v10, %v8698_v9  ;;  %v8690_v12 = vld [vmem:[#allocation5 + $0x30] sm:$0xf]  ;;  %v9410_v13 = vld [vmem:[#allocation5 + $0x34] sm:$0xf0]  ;;  %v8682_v15 = vld [vmem:[#allocation5 + $0x20] sm:$0xf] }
  0x4c   : > { %9529 = vmatpush.bf16.msra.mxu2 %v8723_v3  ;;  %9530 = vmatpush.bf16.msra.mxu3 %v8723_v3  ;;  %v8691_v14 = vor.u32 %v9410_v13, %v8690_v12  ;;  %v9408_v16 = vld [vmem:[#allocation5 + $0x24] sm:$0xf0]  ;;  %v8674_v18 = vld [vmem:[#allocation5 + $0x10] sm:$0xf]  ;;  %v9406_v19 = vld [vmem:[#allocation5 + $0x14] sm:$0xf0] }
  0x4d   : > { %v8683_v17 = vor.u32 %v9408_v16, %v8682_v15  ;;  %v8675_v20 = vor.u32 %v9406_v19, %v8674_v18  ;;  %v8666_v21 = vld [vmem:[#allocation5] sm:$0xf]  ;;  %v9404_v22 = vld [vmem:[#allocation5 + $0x4] sm:$0xf0]  ;;  %v9417_v25 = vld [vmem:[#allocation5 + $0x74] sm:$0xf] }
  0x4e   : > { %v576_v23 = vld [vmem:[%s10938_s18] sm:$0xff]  ;;  %v577_v24 = vld [vmem:[%s10938_s18 + $0x8] sm:$0xff]  ;;  %v8724_v26 = vld [vmem:[#allocation5 + $0x78] sm:$0xf0]  ;;  %v8667_v27 = vor.u32 %v9404_v22, %v8666_v21  ;;  %s16247_s2 = sld [smem:[#allocation78_spill]]  ;;  %s10743_s16 = smov 120  }
  0x4f   : > { %1155 = vmatpush.bf16.msra.mxu0 %v8715_v5  ;;  %9531 = vmatpush.bf16.msra.mxu1 %v8715_v5  ;;  %v586_v28 = vld [vmem:[%s10938_s18 + $0x50] sm:$0xff]  ;;  %v587_v29 = vld [vmem:[%s10938_s18 + $0x58] sm:$0xff]  ;;  %v592_v30 = vld [vmem:[%s10938_s18 + $0x80] sm:$0xff]  ;;  %v8727_v34 = vor.u32 %v9417_v25, %v8724_v26  ;;  %v10956_v35 = vpack.c.bf16 %v577_v24, %v576_v23  ;;  %s10744_s15 = smov 64   ;;  %s10745_s19 = smov 32  }
  0x50   : > { %9532 = vmatpush.bf16.msra.mxu2 %v8715_v5  ;;  %9533 = vmatpush.bf16.msra.mxu3 %v8715_v5  ;;  %v593_v31 = vld [vmem:[%s10938_s18 + $0x88] sm:$0xff]  ;;  %v600_v32 = vld [vmem:[%s10938_s18 + $0xc0] sm:$0xff]  ;;  %v10958_v36 = vpack.c.bf16 %v587_v29, %v586_v28  ;;  %v9413_v42 = vld [vmem:[#allocation5 + $0x54] sm:$0xf]  ;;  %s10746_s0 = smov 16   ;;  %s9383_s20 = sshll.u32 %s10853_s25, 3 }
  0x51   : > { %v601_v33 = vld [vmem:[%s10938_s18 + $0xc8] sm:$0xff]  ;;  %v9415_v37 = vld [vmem:[#allocation5 + $0x64] sm:$0xf]  ;;  %v10960_v39 = vpack.c.bf16 %v593_v31, %v592_v30  ;;  %v8708_v43 = vld [vmem:[#allocation5 + $0x58] sm:$0xf0]  ;;  %s16641_s27 = sld [smem:[#allocation80_spill]] }
  0x52   : > { %v8716_v38 = vld [vmem:[#allocation5 + $0x68] sm:$0xf0]  ;;  %v10962_v40 = vpack.c.bf16 %v601_v33, %v600_v32  ;;  %v8786_v44 = vld [vmem:[#allocation5 + $0xf0] sm:$0xf]  ;;  %v9402_v45 = vld [vmem:[#allocation5 + $0xf4] sm:$0xf0]  ;;  %v8711_v51 = vor.u32 %v9413_v42, %v8708_v43 }
  0x53   : > { %1156 = vmatpush.bf16.msra.mxu0 %v8707_v8  ;;  %9534 = vmatpush.bf16.msra.mxu1 %v8707_v8  ;;  %v8719_v41 = vor.u32 %v9415_v37, %v8716_v38  ;;  %v9401_v46 = vld [vmem:[#allocation5 + $0xf4] sm:$0xf]  ;;  %v8788_v47 = vld [vmem:[#allocation5 + $0xf8] sm:$0xf0]  ;;  %v8787_v48 = vor.u32 %v9402_v45, %v8786_v44  ;;  %v8778_v50 = vld [vmem:[#allocation5 + $0xe0] sm:$0xf] }
  0x54   : > { %9535 = vmatpush.bf16.msra.mxu2 %v8707_v8  ;;  %9536 = vmatpush.bf16.msra.mxu3 %v8707_v8  ;;  %v8791_v49 = vor.u32 %v9401_v46, %v8788_v47  ;;  %v9400_v52 = vld [vmem:[#allocation5 + $0xe4] sm:$0xf0]  ;;  %v9399_v53 = vld [vmem:[#allocation5 + $0xe4] sm:$0xf]  ;;  %v8780_v54 = vld [vmem:[#allocation5 + $0xe8] sm:$0xf0] }
  0x55   : > { %v9411_v55 = vld [vmem:[#allocation5 + $0x44] sm:$0xf]  ;;  %v8700_v56 = vld [vmem:[#allocation5 + $0x48] sm:$0xf0]  ;;  %v8779_v57 = vor.u32 %v9400_v52, %v8778_v50  ;;  %v8783_v58 = vor.u32 %v9399_v53, %v8780_v54  ;;  %v8770_v59 = vld [vmem:[#allocation5 + $0xd0] sm:$0xf] }
  0x56   : > { %v9398_v60 = vld [vmem:[#allocation5 + $0xd4] sm:$0xf0]  ;;  %v9397_v61 = vld [vmem:[#allocation5 + $0xd4] sm:$0xf]  ;;  %v8772_v62 = vld [vmem:[#allocation5 + $0xd8] sm:$0xf0]  ;;  %v8703_v1 = vor.u32 %v9411_v55, %v8700_v56 }
  0x57   : > { %1157 = vmatpush.bf16.msra.mxu0 %v8699_v11  ;;  %9537 = vmatpush.bf16.msra.mxu1 %v8699_v11  ;;  %v578_v63 = vld [vmem:[%s10938_s18 + $0x10] sm:$0xff]  ;;  %v579_v0 = vld [vmem:[%s10938_s18 + $0x18] sm:$0xff]  ;;  %v588_v2 = vld [vmem:[%s10938_s18 + $0x60] sm:$0xff]  ;;  %v8771_v5 = vor.u32 %v9398_v60, %v8770_v59  ;;  %v8775_v6 = vor.u32 %v9397_v61, %v8772_v62 }
  0x58   : > { %9538 = vmatpush.bf16.msra.mxu2 %v8699_v11  ;;  %9539 = vmatpush.bf16.msra.mxu3 %v8699_v11  ;;  %v9409_v3 = vld [vmem:[#allocation5 + $0x34] sm:$0xf]  ;;  %v8692_v4 = vld [vmem:[#allocation5 + $0x38] sm:$0xf0]  ;;  %v589_v7 = vld [vmem:[%s10938_s18 + $0x68] sm:$0xff] }
  0x59   : > { %v594_v8 = vld [vmem:[%s10938_s18 + $0x90] sm:$0xff]  ;;  %v595_v9 = vld [vmem:[%s10938_s18 + $0x98] sm:$0xff]  ;;  %v8762_v12 = vld [vmem:[#allocation5 + $0xc0] sm:$0xf]  ;;  %v8695_v13 = vor.u32 %v9409_v3, %v8692_v4  ;;  %v10978_v18 = vpack.c.bf16 %v589_v7, %v588_v2 }
  0x5a   : > { %v602_v10 = vld [vmem:[%s10938_s18 + $0xd0] sm:$0xff]  ;;  %v603_v11 = vld [vmem:[%s10938_s18 + $0xd8] sm:$0xff]  ;;  %v9395_v15 = vld [vmem:[#allocation5 + $0xc4] sm:$0xf]  ;;  %v10980_v21 = vpack.c.bf16 %v595_v9, %v594_v8 }
  0x5b   : > { %1158 = vmatpush.bf16.msra.mxu0 %v8691_v14  ;;  %9540 = vmatpush.bf16.msra.mxu1 %v8691_v14  ;;  %v8764_v16 = vld [vmem:[#allocation5 + $0xc8] sm:$0xf0]  ;;  %v9407_v19 = vld [vmem:[#allocation5 + $0x24] sm:$0xf]  ;;  %v10982_v22 = vpack.c.bf16 %v603_v11, %v602_v10  ;;  %v9405_v23 = vld [vmem:[#allocation5 + $0x14] sm:$0xf] }
  0x5c   : > { %9541 = vmatpush.bf16.msra.mxu2 %v8691_v14  ;;  %9542 = vmatpush.bf16.msra.mxu3 %v8691_v14  ;;  %v9396_v14 = vld [vmem:[#allocation5 + $0xc4] sm:$0xf0]  ;;  %16216 = vst [vmem:[#allocation18_spill] sm:$0xff] %v10980_v21  ;;  %v8767_v25 = vor.u32 %v9395_v15, %v8764_v16  ;;  %v8754_v28 = vld [vmem:[#allocation5 + $0xb0] sm:$0xf]  ;;  %v580_v60 = vld [vmem:[%s10938_s18 + $0x20] sm:$0xff] }
  0x5d   : > { %v8763_v24 = vor.u32 %v9396_v14, %v8762_v12  ;;  %v9394_v29 = vld [vmem:[#allocation5 + $0xb4] sm:$0xf0]  ;;  %v9393_v30 = vld [vmem:[#allocation5 + $0xb4] sm:$0xf]  ;;  %v8756_v31 = vld [vmem:[#allocation5 + $0xb8] sm:$0xf0] }
  0x5e   : > { %v8850_v32 = vld [vmem:[#allocation5 + $0x170] sm:$0xf]  ;;  %v9434_v33 = vld [vmem:[#allocation5 + $0x174] sm:$0xf0]  ;;  %v8759_v37 = vor.u32 %v9393_v30, %v8756_v31  ;;  %v9392_v42 = vld [vmem:[#allocation5 + $0xa4] sm:$0xf0] }
  0x5f   : > { %1159 = vmatpush.bf16.msra.mxu0 %v8683_v17  ;;  %9543 = vmatpush.bf16.msra.mxu1 %v8683_v17  ;;  %v8851_v38 = vor.u32 %v9434_v33, %v8850_v32  ;;  %v8842_v43 = vld [vmem:[#allocation5 + $0x160] sm:$0xf]  ;;  %v9391_v45 = vld [vmem:[#allocation5 + $0xa4] sm:$0xf]  ;;  %v8748_v46 = vld [vmem:[#allocation5 + $0xa8] sm:$0xf0] }
  0x60   : > { %9544 = vmatpush.bf16.msra.mxu2 %v8683_v17  ;;  %9545 = vmatpush.bf16.msra.mxu3 %v8683_v17  ;;  %v10976_v17 = vpack.c.bf16 %v579_v0, %v578_v63  ;;  %v9432_v47 = vld [vmem:[#allocation5 + $0x164] sm:$0xf0]  ;;  %v9430_v52 = vld [vmem:[#allocation5 + $0x154] sm:$0xf0]  ;;  %v8751_v54 = vor.u32 %v9391_v45, %v8748_v46  ;;  %v8738_v55 = vld [vmem:[#allocation5 + $0x90] sm:$0xf] }
  0x61   : > { %v8843_v50 = vor.u32 %v9432_v47, %v8842_v43  ;;  %v8740_v59 = vld [vmem:[#allocation5 + $0x98] sm:$0xf0]  ;;  %v581_v61 = vld [vmem:[%s10938_s18 + $0x28] sm:$0xff]  ;;  %v590_v62 = vld [vmem:[%s10938_s18 + $0x70] sm:$0xff] }
  0x62   : > { %v591_v0 = vld [vmem:[%s10938_s18 + $0x78] sm:$0xff]  ;;  %v597_v2 = vld [vmem:[%s10938_s18 + $0xa8] sm:$0xff]  ;;  %v604_v3 = vld [vmem:[%s10938_s18 + $0xe0] sm:$0xff]  ;;  %v10996_v11 = vpack.c.bf16 %v581_v61, %v580_v60 }
  0x63   : > { %1160 = vmatpush.bf16.msra.mxu0 %v8675_v20  ;;  %9546 = vmatpush.bf16.msra.mxu1 %v8675_v20  ;;  %v605_v4 = vld [vmem:[%s10938_s18 + $0xe8] sm:$0xff]  ;;  %v8730_v7 = vld [vmem:[#allocation5 + $0x80] sm:$0xf]  ;;  %v9387_v9 = vld [vmem:[#allocation5 + $0x84] sm:$0xf]  ;;  %v10998_v12 = vpack.c.bf16 %v591_v0, %v590_v62 }
  0x64   : > { %9547 = vmatpush.bf16.msra.mxu2 %v8675_v20  ;;  %9548 = vmatpush.bf16.msra.mxu3 %v8675_v20  ;;  %v8684_v20 = vld [vmem:[#allocation5 + $0x28] sm:$0xf0]  ;;  %v9388_v8 = vld [vmem:[#allocation5 + $0x84] sm:$0xf0]  ;;  %v11002_v16 = vpack.c.bf16 %v605_v4, %v604_v3  ;;  %v8802_v30 = vld [vmem:[#allocation5 + $0x110] sm:$0xf] }
  0x65   : > { %v8687_v26 = vor.u32 %v9407_v19, %v8684_v20  ;;  %v8732_v10 = vld [vmem:[#allocation5 + $0x88] sm:$0xf0]  ;;  %v9428_v14 = vld [vmem:[#allocation5 + $0x144] sm:$0xf0]  ;;  %v8731_v19 = vor.u32 %v9388_v8, %v8730_v7  ;;  %v9422_v31 = vld [vmem:[#allocation5 + $0x114] sm:$0xf0] }
  0x66   : > { %v8735_v20 = vor.u32 %v9387_v9, %v8732_v10  ;;  %v582_v32 = vld [vmem:[%s10938_s18 + $0x30] sm:$0xff]  ;;  %v583_v33 = vld [vmem:[%s10938_s18 + $0x38] sm:$0xff]  ;;  %v9420_v45 = vld [vmem:[#allocation5 + $0x104] sm:$0xf0] }
  0x67   : > { %1161 = vmatpush.bf16.msra.mxu0 %v8667_v27  ;;  %9549 = vmatpush.bf16.msra.mxu1 %v8667_v27  ;;  %v11014_v43 = vpack.c.bf16 %v583_v33, %v582_v32 }
  0x68   : > { %9550 = vmatpush.bf16.msra.mxu2 %v8667_v27  ;;  %9551 = vmatpush.bf16.msra.mxu3 %v8667_v27  ;;  %v8676_v27 = vld [vmem:[#allocation5 + $0x18] sm:$0xf0] }
  0x69   : > { %v8679_v44 = vor.u32 %v9405_v23, %v8676_v27  ;;  %v8810_v27 = vld [vmem:[#allocation5 + $0x120] sm:$0xf] }
  0x6a   : > { %1162 = vmatmul.bf16.vlgmr.msra.gmra.mxu0 %v10956_v35  ;;  %1187 = vmatmul.bf16.vlgmr.msra.gmra.mxu1 %v10958_v36 }
  0x6b   : > { %1243 = vmatpush.bf16.msrb.mxu1 %v8727_v34  ;;  %1202 = vmatmul.bf16.vlgmr.msra.gmra.mxu2 %v10960_v39  ;;  %v8755_v34 = vor.u32 %v9394_v29, %v8754_v28  ;;  %v9424_v28 = vld [vmem:[#allocation5 + $0x124] sm:$0xf0] }
  0x6c   : > { %1222 = vmatmul.bf16.vlgmr.msra.gmra.mxu3 %v10962_v40  ;;  %1701 = vmatpush.bf16.msrb.mxu2 %v8787_v48  ;;  %v9403_v48 = vld [vmem:[#allocation5 + $0x4] sm:$0xf]  ;;  %v8811_v29 = vor.u32 %v9424_v28, %v8810_v27 }
  0x6d   : > { %1790 = vmatpush.bf16.msrb.mxu3 %v8791_v49  ;;  %v8668_v49 = vld [vmem:[#allocation5 + $0x8] sm:$0xf0]  ;;  %1976 = vmatpush.bf16.msrb.mxu0 %v8851_v38  ;;  %v606_v38 = vld [vmem:[%s10938_s18 + $0xf0] sm:$0xff] }
  0x6e   : > { %v8671_v56 = vor.u32 %v9403_v48, %v8668_v49  ;;  %v584_v49 = vld [vmem:[%s10938_s18 + $0x40] sm:$0xff] }
  0x6f   : > { %1244 = vmatpush.bf16.msrb.mxu1 %v8719_v41  ;;  %v8746_v41 = vld [vmem:[#allocation5 + $0xa0] sm:$0xf] }
  0x70   : > { %1702 = vmatpush.bf16.msrb.mxu2 %v8779_v57  ;;  %v8747_v53 = vor.u32 %v9392_v42, %v8746_v41  ;;  %v9390_v57 = vld [vmem:[#allocation5 + $0x94] sm:$0xf0]  ;;  %v8803_v42 = vor.u32 %v9422_v31, %v8802_v30 }
  0x71   : > { %1791 = vmatpush.bf16.msrb.mxu3 %v8783_v58  ;;  %v9389_v58 = vld [vmem:[#allocation5 + $0x94] sm:$0xf]  ;;  %1977 = vmatpush.bf16.msrb.mxu0 %v8843_v50  ;;  %v607_v41 = vld [vmem:[%s10938_s18 + $0xf8] sm:$0xff]  ;;  %v585_v50 = vld [vmem:[%s10938_s18 + $0x48] sm:$0xff] }
  0x72   : > { %v11018_v47 = vpack.c.bf16 %v607_v41, %v606_v38 }
  0x73   : > { %1245 = vmatpush.bf16.msrb.mxu1 %v8711_v51  ;;  %v8834_v51 = vld [vmem:[#allocation5 + $0x150] sm:$0xf] }
  0x74   : > { %1703 = vmatpush.bf16.msrb.mxu2 %v8771_v5  ;;  %v8835_v63 = vor.u32 %v9430_v52, %v8834_v51  ;;  %v8739_v5 = vor.u32 %v9390_v57, %v8738_v55  ;;  %v11026_v51 = vpack.c.bf16 %v585_v50, %v584_v49 }
  0x75   : > { %1792 = vmatpush.bf16.msrb.mxu3 %v8775_v6  ;;  %v8743_v6 = vor.u32 %v9389_v58, %v8740_v59 }
  0x76   : > { %1978 = vmatpush.bf16.msrb.mxu0 %v8835_v63 }
  0x77   : > { %1246 = vmatpush.bf16.msrb.mxu1 %v8703_v1  ;;  %v596_v1 = vld [vmem:[%s10938_s18 + $0xa0] sm:$0xff] }
  0x78   : > { %1704 = vmatpush.bf16.msrb.mxu2 %v8763_v24  ;;  %v11000_v15 = vpack.c.bf16 %v597_v2, %v596_v1  ;;  %v8818_v24 = vld [vmem:[#allocation5 + $0x130] sm:$0xf] }
  0x79   : > { %1793 = vmatpush.bf16.msrb.mxu3 %v8767_v25  ;;  %v9426_v25 = vld [vmem:[#allocation5 + $0x134] sm:$0xf0] }
  0x7a   : > { %1167 = vmatmul.bf16.gmra.mxu0 %v10976_v17  ;;  %1192 = vmatmul.bf16.gmra.mxu1 %v10978_v18 }
  0x7b   : > { %1247 = vmatpush.bf16.msrb.mxu1 %v8695_v13  ;;  %1207 = vmatmul.bf16.gmra.mxu2 %v10980_v21  ;;  %v8826_v13 = vld [vmem:[#allocation5 + $0x140] sm:$0xf] }
  0x7c   : > { %1227 = vmatmul.bf16.gmra.mxu3 %v10982_v22  ;;  %1705 = vmatpush.bf16.msrb.mxu2 %v8755_v34  ;;  %v8827_v23 = vor.u32 %v9428_v14, %v8826_v13  ;;  %v598_v34 = vld [vmem:[%s10938_s18 + $0xb0] sm:$0xff] }
  0x7d   : > { %1794 = vmatpush.bf16.msrb.mxu3 %v8759_v37  ;;  %v599_v37 = vld [vmem:[%s10938_s18 + $0xb8] sm:$0xff] }
  0x7e   : > { %1979 = vmatpush.bf16.msrb.mxu0 %v8827_v23  ;;  %v11016_v46 = vpack.c.bf16 %v599_v37, %v598_v34 }
  0x7f   : > { %1248 = vmatpush.bf16.msrb.mxu1 %v8687_v26  ;;  %v8819_v26 = vor.u32 %v9426_v25, %v8818_v24 }
  0x80   : > { %1706 = vmatpush.bf16.msrb.mxu2 %v8747_v53 }
  0x81   : > { %1795 = vmatpush.bf16.msrb.mxu3 %v8751_v54  ;;  %v16009_v54 = vlaneseq }
  0x82   : > { %1980 = vmatpush.bf16.msrb.mxu0 %v8819_v26 }
  0x83   : > { %1249 = vmatpush.bf16.msrb.mxu1 %v8679_v44  ;;  %v8794_v44 = vld [vmem:[#allocation5 + $0x100] sm:$0xf]  ;;  %v11053_v55 = vshrl.u32 %v16009_v54, 7 }
  0x84   : > { %1707 = vmatpush.bf16.msrb.mxu2 %v8739_v5  ;;  %v8795_v48 = vor.u32 %v9420_v45, %v8794_v44 }
  0x85   : > { %1796 = vmatpush.bf16.msrb.mxu3 %v8743_v6  ;;  %vm1396_vm0 = vcmp.lt.s32.totalorder %v11053_v55, 1  ;;  %vm2218_vm3 = vcmp.lt.s32.totalorder %v11053_v55, 7 }
  0x86   : > { %1981 = vmatpush.bf16.msrb.mxu0 %v8811_v29 }
  0x87   : > { %1250 = vmatpush.bf16.msrb.mxu1 %v8671_v56 }
  0x88   : > { %1708 = vmatpush.bf16.msrb.mxu2 %v8731_v19 }
  0x89   : > { %1797 = vmatpush.bf16.msrb.mxu3 %v8735_v20 }
  0x8a   : > { %1172 = vmatmul.bf16.gmra.mxu0 %v10996_v11  ;;  %1197 = vmatmul.bf16.gmra.mxu1 %v10998_v12 }
  0x8b   : > { %1212 = vmatmul.bf16.gmra.mxu2 %v11000_v15  ;;  %1982 = vmatpush.bf16.msrb.mxu0 %v8803_v42 }
  0x8c   : > { %1232 = vmatmul.bf16.gmra.mxu3 %v11002_v16 }
  0x8f   : > { %1983 = vmatpush.bf16.msrb.mxu0 %v8795_v48 }
  0x9a   : > { %1177 = vmatmul.bf16.gmra.mxu0 %v11014_v43  ;;  %1251 = vmatmul.bf16.vlgmr.msrb.gmra.mxu1 %v10956_v35 }
  0x9b   : > { %1217 = vmatmul.bf16.gmra.mxu2 %v11016_v46 }
  0x9c   : > { %1237 = vmatmul.bf16.gmra.mxu3 %v11018_v47 }
  0xaa   : > { %1182 = vmatmul.bf16.gmra.mxu0 %v11026_v51  ;;  %1256 = vmatmul.bf16.gmra.mxu1 %v10976_v17 }
  0xab   : > { %1709 = vmatmul.bf16.vlgmr.msrb.gmra.mxu2 %v10956_v35 }
  0xac   : > { %1798 = vmatmul.bf16.vlgmr.msrb.gmra.mxu3 %v10956_v35 }
  0xba   : > { %1261 = vmatmul.bf16.gmra.mxu1 %v10996_v11  ;;  %1984 = vmatmul.bf16.vlgmr.msrb.gmra.mxu0 %v10956_v35 }
  0xbb   : > { %1714 = vmatmul.bf16.gmra.mxu2 %v10976_v17 }
  0xbc   : > { %1803 = vmatmul.bf16.gmra.mxu3 %v10976_v17 }
  0xca   : > { %1266 = vmatmul.bf16.gmra.mxu1 %v11014_v43  ;;  %1989 = vmatmul.bf16.gmra.mxu0 %v10976_v17 }
  0xcb   : > { %1719 = vmatmul.bf16.gmra.mxu2 %v10996_v11 }
  0xcc   : > { %1808 = vmatmul.bf16.gmra.mxu3 %v10996_v11 }
  0xda   : > { %1271 = vmatmul.bf16.gmra.mxu1 %v11026_v51  ;;  %1994 = vmatmul.bf16.gmra.mxu0 %v10996_v11 }
  0xdb   : > { %1724 = vmatmul.bf16.gmra.mxu2 %v11014_v43 }
  0xdc   : > { %1813 = vmatmul.bf16.gmra.mxu3 %v11014_v43 }
  0xe7   : > { %v11044_v52 = vpop.f32.mrf.mxu0  ;;  %v11046_v53 = vpop.f32.mrf.mxu1 }
  0xe8   : > { %v16012_v60 = vrot.slane %v11046_v53, 7  ;;  %v1332_v25 = vrot.slane %v11044_v52, 7 }
  0xea   : > { %1276 = vmatmul.bf16.gmra.mxu1 %v10958_v36  ;;  %1999 = vmatmul.bf16.gmra.mxu0 %v11014_v43 }
  0xeb   : > { %1729 = vmatmul.bf16.gmra.mxu2 %v11026_v51 }
  0xec   : > { %1818 = vmatmul.bf16.gmra.mxu3 %v11026_v51 }
  0xee   : > { %v11055_v56 = vpop.f32.mrf.mxu2 }
  0xef   : > { %v11057_v57 = vpop.f32.mrf.mxu3  ;;  %v1165_v58 = vpop.f32.mrf.mxu0  ;;  %v16011_v27 = vrot.slane %v11055_v56, 7 }
  0xf0   : > { %v1190_v59 = vpop.f32.mrf.mxu1  ;;  %v1334_v26 = vrot.slane %v1165_v58, 7 }
  0xf1   : > { %v1354_v61 = vrot.slane %v1190_v59, 7 }
  0xf2   : > { %v1457_v33 = vsel %vm1396_vm0, %v1332_v25, %v1334_v26 }
  0xf3   : > { %v11065_v62 = vsel %vm1396_vm0, %v16012_v60, %v1354_v61 }
  0xf4   : > { %16217 = vst [vmem:[#allocation19_spill] sm:$0xff] %v11065_v62 }
  0xf6   : > { %v11067_v63 = vpop.f32.mrf.mxu2 }
  0xf7   : > { %v11069_v0 = vpop.f32.mrf.mxu3  ;;  %v1168_v1 = vpop.f32.mrf.mxu0 }
  0xf8   : > { %v1193_v2 = vpop.f32.mrf.mxu1  ;;  %v1336_v42 = vrot.slane %v1168_v1, 7 }
  0xf9   : > { %v1356_v3 = vrot.slane %v1193_v2, 7 }
  0xfa   : > { %1281 = vmatmul.bf16.gmra.mxu1 %v10978_v18  ;;  %2004 = vmatmul.bf16.gmra.mxu0 %v11026_v51  ;;  %v1455_v48 = vsel %vm1396_vm0, %v1334_v26, %v1336_v42 }
  0xfb   : > { %v11075_v4 = vsel %vm1396_vm0, %v1354_v61, %v1356_v3  ;;  %1734 = vmatmul.bf16.gmra.mxu2 %v10958_v36 }
  0xfc   : > { %16218 = vst [vmem:[#allocation20_spill] sm:$0xff] %v11075_v4  ;;  %1823 = vmatmul.bf16.gmra.mxu3 %v10958_v36  ;;  %v613_v4 = vadd.s32 32, %v11053_v55 }
  0xfe   : > { %v11079_v5 = vpop.f32.mrf.mxu2 }
  0xff   : > { %v11081_v6 = vpop.f32.mrf.mxu3  ;;  %v1170_v7 = vpop.f32.mrf.mxu0 }
 0x100   : > { %v1195_v8 = vpop.f32.mrf.mxu1  ;;  %v1338_v49 = vrot.slane %v1170_v7, 7  ;;  %v11149_v7 = vand.u32 31, %v11053_v55 }
 0x101   : > { %v1358_v9 = vrot.slane %v1195_v8, 7 }
 0x102   : > { %16225 = vst [vmem:[#allocation27_spill] sm:$0xff] %v11149_v7  ;;  %vm1461_vm1 = vcmp.ge.s32.totalorder %v11149_v7, 1  ;;  %v612_v7 = vadd.s32 24, %v11053_v55 }
 0x103   : > { %v11085_v10 = vsel %vm1396_vm0, %v1356_v3, %v1358_v9  ;;  %v1453_v3 = vsel %vm1396_vm0, %v1336_v42, %v1338_v49 }
 0x104   : > { %16219 = vst [vmem:[#allocation21_spill] sm:$0xff] %v11085_v10 }
 0x106   : > { %v11087_v13 = vpop.f32.mrf.mxu2 }
 0x107   : > { %v11089_v14 = vpop.f32.mrf.mxu3  ;;  %v11091_v19 = vpop.f32.mrf.mxu0 }
 0x108   : > { %v1198_v20 = vpop.f32.mrf.mxu1 }
 0x109   : > { %v1360_v23 = vrot.slane %v1198_v20, 7  ;;  %v1340_v20 = vrot.slane %v11091_v19, 7 }
 0x10a   : > { %1286 = vmatmul.bf16.gmra.mxu1 %v10998_v12  ;;  %2009 = vmatmul.bf16.gmra.mxu0 %v10958_v36 }
 0x10b   : > { %v11097_v24 = vsel %vm1396_vm0, %v1358_v9, %v1360_v23  ;;  %1739 = vmatmul.bf16.gmra.mxu2 %v10978_v18 }
 0x10c   : > { %16220 = vst [vmem:[#allocation22_spill] sm:$0xff] %v11097_v24  ;;  %1828 = vmatmul.bf16.gmra.mxu3 %v10978_v18 }
 0x10e   : > { %v11103_v28 = vpop.f32.mrf.mxu2 }
 0x10f   : > { %v11105_v29 = vpop.f32.mrf.mxu3  ;;  %v11107_v30 = vpop.f32.mrf.mxu0 }
 0x110   : > { %v1200_v31 = vpop.f32.mrf.mxu1  ;;  %v1342_v54 = vrot.slane %v11107_v30, 7 }
 0x111   : > { %v1362_v32 = vrot.slane %v1200_v31, 7 }
 0x112   : > { %v1449_v30 = vsel %vm1396_vm0, %v1340_v20, %v1342_v54 }
 0x113   : > { %v11113_v34 = vsel %vm1396_vm0, %v1360_v23, %v1362_v32  ;;  %v11119_v37 = vsel %vm1396_vm0, %v1362_v32, %v16011_v27 }
 0x114   : > { %16221 = vst [vmem:[#allocation23_spill] sm:$0xff] %v11113_v34 }
 0x115   : > { %16222 = vst [vmem:[#allocation24_spill] sm:$0xff] %v11119_v37 }
 0x116   : > { %v11121_v38 = vpop.f32.mrf.mxu2 }
 0x117   : > { %v11123_v41 = vpop.f32.mrf.mxu3  ;;  %v11125_v44 = vpop.f32.mrf.mxu0 }
 0x118   : > { %v11127_v45 = vpop.f32.mrf.mxu1 }
 0x119   : > { %16223 = vst [vmem:[#allocation25_spill] sm:$0xff] %v11127_v45  ;;  %v16010_v61 = vrot.slane %v11127_v45, 7 }
 0x11a   : > { %1291 = vmatmul.bf16.gmra.mxu1 %v10960_v39  ;;  %2014 = vmatmul.bf16.gmra.mxu0 %v10978_v18 }
 0x11b   : > { %1744 = vmatmul.bf16.gmra.mxu2 %v10998_v12 }
 0x11c   : > { %1833 = vmatmul.bf16.gmra.mxu3 %v10998_v12 }
 0x11e   : > { %v11135_v50 = vpop.f32.mrf.mxu2 }
 0x11f   : > { %v11137_v52 = vpop.f32.mrf.mxu3  ;;  %v11139_v58 = vpop.f32.mrf.mxu0 }
 0x120   : > { %16224 = vst [vmem:[#allocation26_spill] sm:$0xff] %v11137_v52  ;;  %v1254_v59 = vpop.f32.mrf.mxu1 }
 0x121   : > { %v1335_v1 = vrot.slane %v1254_v59, 7  ;;  %v1451_v59 = vsel %vm1396_vm0, %v1338_v49, %v1340_v20  ;;  %v16228_v49 = vrot.slane %v11046_v53, 7  ;;  %v1344_v53 = vrot.slane %v11125_v44, 7 }
 0x122   : > { %v1346_v44 = vrot.slane %v11139_v58, 7 }
 0x123   : > { %v1458_v2 = vsel %vm1396_vm0, %v16010_v61, %v1335_v1 }
 0x126   : > { %v11151_v8 = vpop.f32.mrf.mxu2 }
 0x127   : > { %v11153_v9 = vpop.f32.mrf.mxu3  ;;  %v11157_v26 = vpop.f32.mrf.mxu0 }
 0x128   : > { %16226 = vst [vmem:[#allocation28_spill] sm:$0xff] %v11153_v9  ;;  %v16008_v23 = vrot.slane %v11153_v9, 7  ;;  %v1257_v31 = vpop.f32.mrf.mxu1 }
 0x129   : > { %v1337_v32 = vrot.slane %v1257_v31, 7 }
 0x12a   : > { %v1459_v42 = vsel %vm1396_vm0, %v16008_v23, %v1332_v25  ;;  %1296 = vmatmul.bf16.gmra.mxu1 %v10980_v21  ;;  %2019 = vmatmul.bf16.gmra.mxu0 %v10998_v12 }
 0x12b   : > { %v1456_v19 = vsel %vm1396_vm0, %v1335_v1, %v1337_v32  ;;  %1749 = vmatmul.bf16.gmra.mxu2 %v10960_v39  ;;  %v1557_v31 = vsel %vm1461_vm1, %v1459_v42, 0.0 }
 0x12c   : > { %1838 = vmatmul.bf16.gmra.mxu3 %v10960_v39 }
 0x12e   : > { %v1710_v25 = vpop.f32.mrf.mxu2 }
 0x12f   : > { %v11174_v23 = vpop.f32.mrf.mxu3  ;;  %v11177_v61 = vadd.f32 %v1710_v25, %v1557_v31  ;;  %v11179_v27 = vpop.f32.mrf.mxu0 }
 0x130   : > { %16227 = vst [vmem:[#allocation29_spill] sm:$0xff] %v11174_v23  ;;  %v1259_v1 = vpop.f32.mrf.mxu1  ;;  %v16014_v60 = vrot.slane %v11179_v27, 7 }
 0x131   : > { %v1339_v9 = vrot.slane %v1259_v1, 7 }
 0x132   : > { %v11190_v42 = vsel %vm1396_vm0, %v16014_v60, %v16228_v49 }
 0x133   : > { %v1454_v34 = vsel %vm1396_vm0, %v1337_v32, %v1339_v9  ;;  %16229 = vst [vmem:[#allocation30_spill] sm:$0xff] %v11190_v42 }
 0x136   : > { %v1712_v31 = vpop.f32.mrf.mxu2 }
 0x137   : > { %v1801_v25 = vpop.f32.mrf.mxu3  ;;  %v11194_v37 = vadd.f32 %v1712_v31, %v1457_v33  ;;  %v11198_v24 = vpop.f32.mrf.mxu0  ;;  %v11209_v33 = vsel %vm1396_vm0, %v1342_v54, %v1344_v53  ;;  %v11221_v54 = vsel %vm1396_vm0, %v1344_v53, %v1346_v44 }
 0x138   : > { %v11196_v10 = vadd.f32 %v1801_v25, %v1458_v2  ;;  %v1262_v1 = vpop.f32.mrf.mxu1  ;;  %16231 = vst [vmem:[#allocation32_spill] sm:$0xff] %v11198_v24 }
 0x139   : > { %v1341_v32 = vrot.slane %v1262_v1, 7 }
 0x13a   : > { %16230 = vst [vmem:[#allocation31_spill] sm:$0xff] %v11196_v10  ;;  %1301 = vmatmul.bf16.gmra.mxu1 %v11000_v15  ;;  %2024 = vmatmul.bf16.gmra.mxu0 %v10960_v39 }
 0x13b   : > { %v1452_v49 = vsel %vm1396_vm0, %v1339_v9, %v1341_v32  ;;  %1754 = vmatmul.bf16.gmra.mxu2 %v10980_v21 }
 0x13c   : > { %1843 = vmatmul.bf16.gmra.mxu3 %v10980_v21 }
 0x13e   : > { %v1715_v2 = vpop.f32.mrf.mxu2 }
 0x13f   : > { %v1804_v20 = vpop.f32.mrf.mxu3  ;;  %v1716_v31 = vadd.f32 %v1715_v2, %v1455_v48  ;;  %v11214_v60 = vpop.f32.mrf.mxu0  ;;  %v11227_v2 = vand.u32 31, %v613_v4 }
 0x140   : > { %v11212_v25 = vadd.f32 %v1804_v20, %v1456_v19  ;;  %v1264_v1 = vpop.f32.mrf.mxu1 }
 0x141   : > { %v1343_v62 = vrot.slane %v1264_v1, 7  ;;  %16234 = vst [vmem:[#allocation35_spill] sm:$0xff] %v11227_v2  ;;  %v1348_v1 = vrot.slane %v11157_v26, 7  ;;  %vm1465_vm2 = vcmp.ge.s32.totalorder %v11227_v2, 1 }
 0x142   : > { %16232 = vst [vmem:[#allocation33_spill] sm:$0xff] %v11212_v25  ;;  %v1566_v26 = vsel %vm1465_vm2, %v1452_v49, 0.0 }
 0x143   : > { %v1450_v9 = vsel %vm1396_vm0, %v1341_v32, %v1343_v62  ;;  %v11239_v4 = vsel %vm1396_vm0, %v1346_v44, %v1348_v1 }
 0x144   : > { %16235 = vst [vmem:[#allocation36_spill] sm:$0xff] %v11239_v4 }
 0x146   : > { %v1717_v42 = vpop.f32.mrf.mxu2 }
 0x147   : > { %v1806_v10 = vpop.f32.mrf.mxu3  ;;  %v1718_v23 = vadd.f32 %v1717_v42, %v1453_v3  ;;  %v11225_v19 = vpop.f32.mrf.mxu0 }
 0x148   : > { %v11223_v58 = vadd.f32 %v1806_v10, %v1454_v34  ;;  %v1267_v48 = vpop.f32.mrf.mxu1  ;;  %v1565_v10 = vsel %vm1465_vm2, %v1451_v59, 0.0  ;;  %v16020_v34 = vrot.slane %v11225_v19, 1 }
 0x149   : > { %v1345_v20 = vrot.slane %v1267_v48, 7 }
 0x14a   : > { %16233 = vst [vmem:[#allocation34_spill] sm:$0xff] %v11223_v58  ;;  %1306 = vmatmul.bf16.gmra.mxu1 %v11016_v46  ;;  %2029 = vmatmul.bf16.gmra.mxu0 %v10980_v21 }
 0x14b   : > { %v1448_v53 = vsel %vm1396_vm0, %v1343_v62, %v1345_v20  ;;  %1759 = vmatmul.bf16.gmra.mxu2 %v11000_v15 }
 0x14c   : > { %1848 = vmatmul.bf16.gmra.mxu3 %v11000_v15 }
 0x14e   : > { %v1720_v3 = vpop.f32.mrf.mxu2 }
 0x14f   : > { %v1809_v42 = vpop.f32.mrf.mxu3  ;;  %v1721_v32 = vadd.f32 %v1720_v3, %v1565_v10  ;;  %v1992_v58 = vpop.f32.mrf.mxu0  ;;  %v16237_v10 = vrot.slane %v11179_v27, 7 }
 0x150   : > { %v11242_v48 = vadd.f32 %v1809_v42, %v1566_v26  ;;  %v1269_v62 = vpop.f32.mrf.mxu1  ;;  %v2160_v21 = vrot.slane %v1992_v58, 1  ;;  %v11260_v58 = vand.u32 31, %v612_v7 }
 0x151   : > { %v1347_v25 = vrot.slane %v1269_v62, 7  ;;  %v11258_v3 = vsel %vm1396_vm0, %v1348_v1, %v16237_v10 }
 0x152   : > { %16236 = vst [vmem:[#allocation37_spill] sm:$0xff] %v11242_v48  ;;  %v2275_v59 = vsel %vm2218_vm3, %v16020_v34, %v2160_v21  ;;  %vm2286_vm4 = vcmp.lt.s32.totalorder %v11260_v58, 31 }
 0x153   : > { %v1446_v49 = vsel %vm1396_vm0, %v1345_v20, %v1347_v25  ;;  %v11252_v44 = vadd.f32 %v2275_v59, %v1716_v31  ;;  %16238 = vst [vmem:[#allocation38_spill] sm:$0xff] %v11258_v3  ;;  %v9433_v31 = vld [vmem:[#allocation5 + $0x174] sm:$0xf]  ;;  %v8852_v20 = vld [vmem:[#allocation5 + $0x178] sm:$0xf0] }
 0x154   : > { %16239 = vst [vmem:[#allocation39_spill] sm:$0xff] %v11260_v58  ;;  %v8836_v3 = vld [vmem:[#allocation5 + $0x158] sm:$0xf0] }
 0x156   : > { %v1722_v26 = vpop.f32.mrf.mxu2 }
 0x157   : > { %v1811_v42 = vpop.f32.mrf.mxu3  ;;  %v1723_v62 = vadd.f32 %v1722_v26, %v1449_v30  ;;  %v1995_v34 = vpop.f32.mrf.mxu0  ;;  %v8855_v30 = vor.u32 %v9433_v31, %v8852_v20 }
 0x158   : > { %v11262_v2 = vadd.f32 %v1811_v42, %v1450_v9  ;;  %v1272_v48 = vpop.f32.mrf.mxu1  ;;  %v2162_v45 = vrot.slane %v1995_v34, 1  ;;  %v8844_v34 = vld [vmem:[#allocation5 + $0x168] sm:$0xf0] }
 0x159   : > { %v1349_v4 = vrot.slane %v1272_v48, 7  ;;  %2065 = vmatpush.bf16.msra.mxu1 %v8855_v30 }
 0x15a   : > { %16240 = vst [vmem:[#allocation40_spill] sm:$0xff] %v11262_v2  ;;  %v2273_v27 = vsel %vm2218_vm3, %v2160_v21, %v2162_v45  ;;  %1311 = vmatmul.bf16.gmra.mxu1 %v10962_v40  ;;  %2034 = vmatmul.bf16.gmra.mxu0 %v11000_v15  ;;  %v9431_v21 = vld [vmem:[#allocation5 + $0x164] sm:$0xf] }
 0x15b   : > { %v11271_v7 = vsel %vm1396_vm0, %v1347_v25, %v1349_v4  ;;  %v2385_v9 = vsel %vm2286_vm4, %v2273_v27, 0.0  ;;  %1764 = vmatmul.bf16.gmra.mxu2 %v11016_v46  ;;  %v8847_v10 = vor.u32 %v9431_v21, %v8844_v34 }
 0x15c   : > { %16241 = vst [vmem:[#allocation41_spill] sm:$0xff] %v11271_v7  ;;  %1853 = vmatmul.bf16.gmra.mxu3 %v11016_v46  ;;  %v11277_v1 = vadd.f32 %v2385_v9, %v1718_v23  ;;  %v9429_v7 = vld [vmem:[#allocation5 + $0x154] sm:$0xf] }
 0x15d   : > { %2066 = vmatpush.bf16.msra.mxu1 %v8847_v10  ;;  %v8839_v9 = vor.u32 %v9429_v7, %v8836_v3  ;;  %v9423_v7 = vld [vmem:[#allocation5 + $0x124] sm:$0xf] }
 0x15e   : > { %v1725_v48 = vpop.f32.mrf.mxu2 }
 0x15f   : > { %v1814_v59 = vpop.f32.mrf.mxu3  ;;  %v1726_v26 = vadd.f32 %v1725_v48, %v11209_v33  ;;  %v1997_v31 = vpop.f32.mrf.mxu0  ;;  %v9427_v33 = vld [vmem:[#allocation5 + $0x144] sm:$0xf] }
 0x160   : > { %v11280_v25 = vadd.f32 %v1814_v59, %v1448_v53  ;;  %v1274_v42 = vpop.f32.mrf.mxu1  ;;  %v2164_v27 = vrot.slane %v1997_v31, 1  ;;  %v8828_v53 = vld [vmem:[#allocation5 + $0x148] sm:$0xf0] }
 0x161   : > { %v1351_v20 = vrot.slane %v1274_v42, 7  ;;  %2067 = vmatpush.bf16.msra.mxu1 %v8839_v9  ;;  %v8831_v59 = vor.u32 %v9427_v33, %v8828_v53 }
 0x162   : > { %16242 = vst [vmem:[#allocation42_spill] sm:$0xff] %v11280_v25  ;;  %v2271_v23 = vsel %vm2218_vm3, %v2162_v45, %v2164_v27 }
 0x163   : > { %v11286_v30 = vsel %vm1396_vm0, %v1349_v4, %v1351_v20  ;;  %v11288_v21 = vadd.f32 %v2271_v23, %v1721_v32  ;;  %v9425_v4 = vld [vmem:[#allocation5 + $0x134] sm:$0xf] }
 0x164   : > { %16243 = vst [vmem:[#allocation43_spill] sm:$0xff] %v11286_v30  ;;  %v8820_v30 = vld [vmem:[#allocation5 + $0x138] sm:$0xf0] }
 0x165   : > { %2068 = vmatpush.bf16.msra.mxu1 %v8831_v59 }
 0x166   : > { %v1727_v34 = vpop.f32.mrf.mxu2 }
 0x167   : > { %v1816_v48 = vpop.f32.mrf.mxu3  ;;  %v1728_v10 = vadd.f32 %v1727_v34, %v11221_v54  ;;  %v2000_v25 = vpop.f32.mrf.mxu0  ;;  %v8823_v54 = vor.u32 %v9425_v4, %v8820_v30  ;;  %v616_v34 = vadd.s32 56, %v11053_v55 }
 0x168   : > { %v11291_v42 = vadd.f32 %v1816_v48, %v1446_v49  ;;  %v1277_v31 = vpop.f32.mrf.mxu1  ;;  %v2166_v2 = vrot.slane %v2000_v25, 1  ;;  %v8812_v25 = vld [vmem:[#allocation5 + $0x128] sm:$0xf0]  ;;  %v8804_v48 = vld [vmem:[#allocation5 + $0x118] sm:$0xf0] }
 0x169   : > { %v1353_v45 = vrot.slane %v1277_v31, 7  ;;  %2069 = vmatpush.bf16.msra.mxu1 %v8823_v54  ;;  %v8815_v23 = vor.u32 %v9423_v7, %v8812_v25  ;;  %v11314_v4 = vand.u32 31, %v616_v34  ;;  %v8796_v54 = vld [vmem:[#allocation5 + $0x108] sm:$0xf0] }
 0x16a   : > { %v2269_v32 = vsel %vm2218_vm3, %v2164_v27, %v2166_v2  ;;  %1316 = vmatmul.bf16.gmra.mxu1 %v10982_v22  ;;  %2039 = vmatmul.bf16.gmra.mxu0 %v11016_v46 }
 0x16b   : > { %v11299_v3 = vsel %vm1396_vm0, %v1351_v20, %v1353_v45  ;;  %v11301_v49 = vadd.f32 %v2269_v32, %v1723_v62  ;;  %1769 = vmatmul.bf16.gmra.mxu2 %v10962_v40  ;;  %v9421_v20 = vld [vmem:[#allocation5 + $0x114] sm:$0xf]  ;;  %16244 = vst [vmem:[#allocation44_spill] sm:$0xff] %v11314_v4  ;;  %v9419_v32 = vld [vmem:[#allocation5 + $0x104] sm:$0xf]  ;;  %vm2290_vm5 = vcmp.lt.s32.totalorder %v11314_v4, 31 }
 0x16c   : > { %1858 = vmatmul.bf16.gmra.mxu3 %v10962_v40  ;;  %v8807_v59 = vor.u32 %v9421_v20, %v8804_v48  ;;  %v8799_v7 = vor.u32 %v9419_v32, %v8796_v54 }
 0x16d   : > { %2070 = vmatpush.bf16.msra.mxu1 %v8815_v23 }
 0x16f   : > { %v2002_v9 = vpop.f32.mrf.mxu0 }
 0x170   : > { %v1279_v27 = vpop.f32.mrf.mxu1  ;;  %v2168_v53 = vrot.slane %v2002_v9, 1 }
 0x171   : > { %v1355_v33 = vrot.slane %v1279_v27, 7  ;;  %2071 = vmatpush.bf16.msra.mxu1 %v8807_v59 }
 0x172   : > { %v2267_v62 = vsel %vm2218_vm3, %v2166_v2, %v2168_v53 }
 0x173   : > { %v11310_v30 = vsel %vm1396_vm0, %v1353_v45, %v1355_v33  ;;  %v11312_v31 = vadd.f32 %v2267_v62, %v1726_v26 }
 0x175   : > { %2072 = vmatpush.bf16.msra.mxu1 %v8799_v7 }
 0x177   : > { %v11316_v23 = vpop.f32.mrf.mxu0 }
 0x178   : > { %v1282_v25 = vpop.f32.mrf.mxu1  ;;  %v16023_v9 = vrot.slane %v11316_v23, 1 }
 0x179   : > { %v1357_v27 = vrot.slane %v1282_v25, 7  ;;  %v16245_v25 = vrot.slane %v11055_v56, 7 }
 0x17a   : > { %v2265_v2 = vsel %vm2218_vm3, %v2168_v53, %v16023_v9  ;;  %1321 = vmatmul.bf16.gmra.mxu1 %v11002_v16  ;;  %2044 = vmatmul.bf16.gmra.mxu0 %v10962_v40 }
 0x17b   : > { %v11328_v26 = vsel %vm1396_vm0, %v1355_v33, %v1357_v27  ;;  %v2393_v45 = vsel %vm2290_vm5, %v2265_v2, 0.0  ;;  %1774 = vmatmul.bf16.gmra.mxu2 %v10982_v22 }
 0x17c   : > { %1863 = vmatmul.bf16.gmra.mxu3 %v10982_v22  ;;  %v11334_v34 = vadd.f32 %v2393_v45, %v1728_v10  ;;  %v1366_v10 = vrot.slane %v11067_v63, 7  ;;  %v1368_v45 = vrot.slane %v11079_v5, 7 }
 0x17e   : > { %v11370_v56 = vsel %vm1396_vm0, %v1366_v10, %v1368_v45 }
 0x180   : > { %v1284_v20 = vpop.f32.mrf.mxu1 }
 0x181   : > { %v1359_v48 = vrot.slane %v1284_v20, 7 }
 0x183   : > { %v11338_v53 = vsel %vm1396_vm0, %v1357_v27, %v1359_v48  ;;  %v11357_v27 = vsel %vm1396_vm0, %v16245_v25, %v1366_v10  ;;  %v2156_v25 = vrot.slane %v11214_v60, 1 }
 0x188   : > { %v1287_v62 = vpop.f32.mrf.mxu1 }
 0x189   : > { %v1361_v59 = vrot.slane %v1287_v62, 7 }
 0x18a   : > { %1326 = vmatmul.bf16.gmra.mxu1 %v11018_v47  ;;  %2049 = vmatmul.bf16.gmra.mxu0 %v10982_v22 }
 0x18b   : > { %v11344_v33 = vsel %vm1396_vm0, %v1359_v48, %v1361_v59  ;;  %1779 = vmatmul.bf16.gmra.mxu2 %v11002_v16  ;;  %v1370_v48 = vrot.slane %v11087_v13, 7 }
 0x18c   : > { %1868 = vmatmul.bf16.gmra.mxu3 %v11002_v16 }
 0x190   : > { %v1289_v32 = vpop.f32.mrf.mxu1 }
 0x191   : > { %v1363_v54 = vrot.slane %v1289_v32, 7  ;;  %v1372_v32 = vrot.slane %v11103_v28, 7  ;;  %v16246_v28 = vrot.slane %v11225_v19, 1  ;;  %v1374_v19 = vrot.slane %v11121_v38, 7 }
 0x193   : > { %v11351_v7 = vsel %vm1396_vm0, %v1361_v59, %v1363_v54  ;;  %v2277_v60 = vsel %vm2218_vm3, %v2156_v25, %v16246_v28 }
 0x198   : > { %v1292_v2 = vpop.f32.mrf.mxu1 }
 0x199   : > { %v1365_v20 = vrot.slane %v1292_v2, 7 }
 0x19a   : > { %2054 = vmatmul.bf16.gmra.mxu0 %v11002_v16  ;;  %2073 = vmatmul.bf16.vlgmr.msra.gmra.mxu1 %v10956_v35  ;;  %v11379_v35 = vsel %vm1396_vm0, %v1368_v45, %v1370_v48 }
 0x19b   : > { %v11364_v63 = vsel %vm1396_vm0, %v1363_v54, %v1365_v20  ;;  %1784 = vmatmul.bf16.gmra.mxu2 %v11018_v47  ;;  %v16022_v54 = vrot.slane %v11198_v24, 1 }
 0x19c   : > { %1873 = vmatmul.bf16.gmra.mxu3 %v11018_v47 }
 0x19d   : > { %v2279_v45 = vsel %vm2218_vm3, %v16022_v54, %v2156_v25 }
 0x1a0   : > { %v1294_v5 = vpop.f32.mrf.mxu1 }
 0x1a1   : > { %v1367_v62 = vrot.slane %v1294_v5, 7  ;;  %v2443_v5 = vadd.f32 %v2279_v45, %v11177_v61  ;;  %v11427_v45 = vsel %vm1396_vm0, %v1372_v32, %v1374_v19 }
 0x1a3   : > { %v11375_v59 = vsel %vm1396_vm0, %v1365_v20, %v1367_v62  ;;  %v11400_v20 = vsel %vm1396_vm0, %v1370_v48, %v1372_v32 }
 0x1a8   : > { %v1297_v10 = vpop.f32.mrf.mxu1 }
 0x1a9   : > { %v1369_v2 = vrot.slane %v1297_v10, 7 }
 0x1aa   : > { %2059 = vmatmul.bf16.gmra.mxu0 %v11018_v47  ;;  %2078 = vmatmul.bf16.gmra.mxu1 %v10976_v17  ;;  %v11405_v17 = vld [vmem:[%s16247_s2] sm:$0x3] }
 0x1ab   : > { %v11388_v13 = vsel %vm1396_vm0, %v1367_v62, %v1369_v2  ;;  %v2445_v62 = vadd.f32 %v2277_v60, %v11194_v37  ;;  %v11410_v10 = vperm.slane %v11405_v17, 0 }
 0x1ad   : > { %v11414_v28 = vadd.f32 %v11410_v10, %v2443_v5  ;;  %v11417_v48 = vadd.f32 %v11410_v10, %v2445_v62  ;;  %v1380_v62 = vrot.slane %v11057_v57, 7 }
 0x1af   : > { %v16025_v61 = vmax.f32 %v11414_v28, 0.0  ;;  %v16024_v37 = vmax.f32 %v11417_v48, 0.0 }
 0x1b0   : > { %v1299_v54 = vpop.f32.mrf.mxu1 }
 0x1b1   : > { %v1371_v25 = vrot.slane %v1299_v54, 7  ;;  %v9627_v38 = vpack.i.bf16 %v16024_v37, %v16025_v61  ;;  %v1382_v61 = vrot.slane %v11069_v0, 7 }
 0x1b3   : > { %v11421_v9 = vsel %vm1396_vm0, %v1369_v2, %v1371_v25  ;;  %9628 = vrot.lane.b32.xlu0 %v9627_v38, %s10743_s16  ;;  %v1376_v2 = vrot.slane %v11135_v50, 7  ;;  %v1384_v38 = vrot.slane %v11081_v6, 7  ;;  %v11462_v57 = vsel %vm1396_vm0, %v1380_v62, %v1382_v61 }
 0x1b4   : > { %16252 = vst [vmem:[#allocation49_spill] sm:$0xff] %v11462_v57 }
 0x1b5   : > { %v11442_v32 = vsel %vm1396_vm0, %v1374_v19, %v1376_v2  ;;  %v11466_v0 = vsel %vm1396_vm0, %v1382_v61, %v1384_v38 }
 0x1b6   : > { %16253 = vst [vmem:[#allocation50_spill] sm:$0xff] %v11466_v0 }
 0x1b8   : > { %v1302_v54 = vpop.f32.mrf.mxu1 }
 0x1b9   : > { %v1373_v60 = vrot.slane %v1302_v54, 7  ;;  %v1378_v54 = vrot.slane %v11151_v8, 7 }
 0x1ba   : > { %2083 = vmatmul.bf16.gmra.mxu1 %v10996_v11 }
 0x1bb   : > { %v11438_v5 = vsel %vm1396_vm0, %v1371_v25, %v1373_v60  ;;  %v11454_v25 = vsel %vm1396_vm0, %v1376_v2, %v1378_v54  ;;  %v11458_v19 = vsel %vm1396_vm0, %v1378_v54, %v1380_v62  ;;  %v1386_v2 = vrot.slane %v11089_v14, 7 }
 0x1bc   : > { %16248 = vst [vmem:[#allocation45_spill] sm:$0xff] %v11438_v5  ;;  %v1388_v54 = vrot.slane %v11105_v29, 7  ;;  %v16282_v5 = vrot.slane %v11316_v23, 1 }
 0x1bd   : > { %16250 = vst [vmem:[#allocation47_spill] sm:$0xff] %v11454_v25  ;;  %v11481_v61 = vsel %vm1396_vm0, %v1384_v38, %v1386_v2  ;;  %v11616_v25 = vadd.f32 %v11410_v10, %v11277_v1 }
 0x1be   : > { %16251 = vst [vmem:[#allocation48_spill] sm:$0xff] %v11458_v19 }
 0x1bf   : > { %16256 = vst [vmem:[#allocation53_spill] sm:$0xff] %v11481_v61  ;;  %v16038_v23 = vmax.f32 %v11616_v25, 0.0 }
 0x1c0   : > { %v1304_v37 = vpop.f32.mrf.mxu1 }
 0x1c1   : > { %v1375_v50 = vrot.slane %v1304_v37, 7 }
 0x1c3   : > { %v11450_v11 = vsel %vm1396_vm0, %v1373_v60, %v1375_v50 }
 0x1c4   : > { %16249 = vst [vmem:[#allocation46_spill] sm:$0xff] %v11450_v11 }
 0x1c8   : > { %v1307_v6 = vpop.f32.mrf.mxu1 }
 0x1c9   : > { %v1377_v8 = vrot.slane %v1307_v6, 7 }
 0x1ca   : > { %2088 = vmatmul.bf16.gmra.mxu1 %v11014_v43  ;;  %v11485_v43 = vsel %vm1396_vm0, %v1386_v2, %v1388_v54 }
 0x1cb   : > { %v11471_v37 = vsel %vm1396_vm0, %v1375_v50, %v1377_v8  ;;  %16257 = vst [vmem:[#allocation54_spill] sm:$0xff] %v11485_v43 }
 0x1cc   : > { %16254 = vst [vmem:[#allocation51_spill] sm:$0xff] %v11471_v37 }
 0x1d0   : > { %v1309_v60 = vpop.f32.mrf.mxu1 }
 0x1d1   : > { %v1379_v24 = vrot.slane %v1309_v60, 7  ;;  %v16028_v60 = vrot.slane %v11137_v52, 7 }
 0x1d3   : > { %v11477_v62 = vsel %vm1396_vm0, %v1377_v8, %v1379_v24  ;;  %v1390_v8 = vrot.slane %v11123_v41, 7 }
 0x1d4   : > { %16255 = vst [vmem:[#allocation52_spill] sm:$0xff] %v11477_v62 }
 0x1d5   : > { %v11500_v2 = vsel %vm1396_vm0, %v1388_v54, %v1390_v8 }
 0x1d6   : > { %16260 = vst [vmem:[#allocation57_spill] sm:$0xff] %v11500_v2 }
 0x1d8   : > { %v1312_v50 = vpop.f32.mrf.mxu1 }
 0x1d9   : > { %v1381_v6 = vrot.slane %v1312_v50, 7 }
 0x1da   : > { %2093 = vmatmul.bf16.gmra.mxu1 %v11026_v51  ;;  %v11506_v51 = vsel %vm1396_vm0, %v1390_v8, %v16028_v60 }
 0x1db   : > { %v11490_v14 = vsel %vm1396_vm0, %v1379_v24, %v1381_v6  ;;  %16261 = vst [vmem:[#allocation58_spill] sm:$0xff] %v11506_v51 }
 0x1dc   : > { %16258 = vst [vmem:[#allocation55_spill] sm:$0xff] %v11490_v14 }
 0x1e0   : > { %v1314_v29 = vpop.f32.mrf.mxu1 }
 0x1e1   : > { %v1383_v62 = vrot.slane %v1314_v29, 7 }
 0x1e3   : > { %v11496_v38 = vsel %vm1396_vm0, %v1381_v6, %v1383_v62 }
 0x1e4   : > { %16259 = vst [vmem:[#allocation56_spill] sm:$0xff] %v11496_v38  ;;  %v16272_v38 = vld [vmem:[#allocation29_spill] sm:$0xff] }
 0x1e8   : > { %v1317_v24 = vpop.f32.mrf.mxu1 }
 0x1e9   : > { %v1385_v50 = vrot.slane %v1317_v24, 7 }
 0x1ea   : > { %2098 = vmatmul.bf16.gmra.mxu1 %v10958_v36 }
 0x1eb   : > { %v11511_v41 = vsel %vm1396_vm0, %v1383_v62, %v1385_v50 }
 0x1ec   : > { %16262 = vst [vmem:[#allocation59_spill] sm:$0xff] %v11511_v41  ;;  %v11552_v41 = vperm.slane %v11405_v17, 1 }
 0x1f0   : > { %v1319_v6 = vpop.f32.mrf.mxu1 }
 0x1f1   : > { %v1387_v29 = vrot.slane %v1319_v6, 7 }
 0x1f3   : > { %v11515_v54 = vsel %vm1396_vm0, %v1385_v50, %v1387_v29 }
 0x1f4   : > { %16263 = vst [vmem:[#allocation60_spill] sm:$0xff] %v11515_v54 }
 0x1f8   : > { %v1322_v2 = vpop.f32.mrf.mxu1 }
 0x1f9   : > { %v1389_v52 = vrot.slane %v1322_v2, 7  ;;  %v11531_v2 = vpop.f32.mrf.mxu0 }
 0x1fa   : > { %2103 = vmatmul.bf16.gmra.mxu1 %v10978_v18 }
 0x1fb   : > { %v11520_v8 = vsel %vm1396_vm0, %v1387_v29, %v1389_v52 }
 0x1fc   : > { %16264 = vst [vmem:[#allocation61_spill] sm:$0xff] %v11520_v8 }
 0x200   : > { %v1324_v24 = vpop.f32.mrf.mxu1 }
 0x201   : > { %v1391_v36 = vrot.slane %v1324_v24, 7  ;;  %v1730_v24 = vpop.f32.mrf.mxu2 }
 0x203   : > { %v11524_v62 = vsel %vm1396_vm0, %v1389_v52, %v1391_v36  ;;  %v11539_v52 = vpop.f32.mrf.mxu0 }
 0x204   : > { %16265 = vst [vmem:[#allocation62_spill] sm:$0xff] %v11524_v62 }
 0x208   : > { %v1327_v60 = vpop.f32.mrf.mxu1 }
 0x209   : > { %v1393_v6 = vrot.slane %v1327_v60, 7 }
 0x20a   : > { %2108 = vmatmul.bf16.gmra.mxu1 %v10998_v12  ;;  %v16269_v12 = vld [vmem:[#allocation25_spill] sm:$0xff] }
 0x20b   : > { %v11529_v50 = vsel %vm1396_vm0, %v1391_v36, %v1393_v6  ;;  %v16270_v60 = vrot.slane %v16269_v12, 7 }
 0x20c   : > { %16266 = vst [vmem:[#allocation63_spill] sm:$0xff] %v11529_v50 }
 0x210   : > { %v1329_v18 = vpop.f32.mrf.mxu1 }
 0x211   : > { %v1395_v54 = vrot.slane %v1329_v18, 7  ;;  %v11548_v18 = vpop.f32.mrf.mxu2 }
 0x213   : > { %v11535_v29 = vsel %vm1396_vm0, %v1393_v6, %v1395_v54  ;;  %v1460_v36 = vsel %vm1396_vm0, %v1395_v54, %v16270_v60  ;;  %v11563_v60 = vadd.f32 %v11410_v10, %v11252_v44  ;;  %v16274_v44 = vld [vmem:[#allocation18_spill] sm:$0xff] }
 0x214   : > { %16267 = vst [vmem:[#allocation64_spill] sm:$0xff] %v11535_v29  ;;  %v1558_v62 = vsel %vm1461_vm1, %v1460_v36, 0.0 }
 0x215   : > { %v1800_v61 = vadd.f32 %v16272_v38, %v1558_v62  ;;  %16273 = vst [vmem:[#allocation25_spill] sm:$0xff] %v11563_v60  ;;  %v16031_v38 = vmax.f32 %v11563_v60, 0.0  ;;  %v11570_v62 = vpop.f32.mrf.mxu3 }
 0x218   : > { %v11537_v8 = vpop.f32.mrf.mxu1 }
 0x219   : > { %16268 = vst [vmem:[#allocation65_spill] sm:$0xff] %v11537_v8  ;;  %v16030_v6 = vrot.slane %v11537_v8, 1  ;;  %v11572_v8 = vpop.f32.mrf.mxu2 }
 0x21a   : > { %2113 = vmatmul.bf16.gmra.mxu1 %v10960_v39  ;;  %v11555_v39 = vpop.f32.mrf.mxu0 }
 0x21d   : > { %v11588_v37 = vpop.f32.mrf.mxu3 }
 0x220   : > { %v2076_v51 = vpop.f32.mrf.mxu1 }
 0x221   : > { %v2157_v29 = vrot.slane %v2076_v51, 1 }
 0x223   : > { %v2280_v54 = vsel %vm2218_vm3, %v16030_v6, %v2157_v29  ;;  %v617_v6 = vadd.s32 64, %v11053_v55 }
 0x224   : > { %v2444_v12 = vadd.f32 %v2280_v54, %v1800_v61  ;;  %v11580_v54 = vpop.f32.mrf.mxu0 }
 0x225   : > { %v11586_v57 = vand.u32 31, %v617_v6 }
 0x226   : > { %v11566_v36 = vadd.f32 %v11552_v41, %v2444_v12 }
 0x227   : > { %16276 = vst [vmem:[#allocation29_spill] sm:$0xff] %v11586_v57  ;;  %vm1469_vm6 = vcmp.ge.s32.totalorder %v11586_v57, 1 }
 0x228   : > { %v2079_v51 = vpop.f32.mrf.mxu1  ;;  %v16032_v17 = vmax.f32 %v11566_v36, 0.0 }
 0x229   : > { %v2159_v50 = vrot.slane %v2079_v51, 1  ;;  %v16275_v51 = vld [vmem:[#allocation31_spill] sm:$0xff] }
 0x22a   : > { %v9632_v61 = vpack.i.bf16 %v16032_v17, %v16031_v38  ;;  %2118 = vmatmul.bf16.gmra.mxu1 %v16274_v44  ;;  %v11592_v38 = vpop.f32.mrf.mxu2  ;;  %16280 = vst [vmem:[#allocation31_spill] sm:$0xff] %v11616_v25 }
 0x22b   : > { %v2278_v12 = vsel %vm2218_vm3, %v2157_v29, %v2159_v50 }
 0x22c   : > { %9633 = vrot.lane.b32.xlu0 %v9632_v61, %s10743_s16  ;;  %v2446_v43 = vadd.f32 %v2278_v12, %v16275_v51  ;;  %v16277_v61 = vld [vmem:[#allocation33_spill] sm:$0xff]  ;;  %v11605_v12 = vpop.f32.mrf.mxu0 }
 0x22e   : > { %v11596_v11 = vadd.f32 %v11552_v41, %v2446_v43 }
 0x230   : > { %v2081_v14 = vpop.f32.mrf.mxu1 }
 0x231   : > { %v2161_v0 = vrot.slane %v2081_v14, 1  ;;  %v16279_v14 = vld [vmem:[#allocation36_spill] sm:$0xff] }
 0x232   : > { %v1573_v6 = vsel %vm1469_vm6, %v16279_v14, 0.0  ;;  %v11620_v14 = vadd.f32 %v11410_v10, %v11288_v21  ;;  %v11634_v21 = vpop.f32.mrf.mxu2 }
 0x233   : > { %v2276_v44 = vsel %vm2218_vm3, %v2159_v50, %v2161_v0  ;;  %v16034_v50 = vmax.f32 %v11596_v11, 0.0 }
 0x234   : > { %v2448_v17 = vadd.f32 %v2276_v44, %v16277_v61  ;;  %v2172_v44 = vrot.slane %v11531_v2, 1  ;;  %v1731_v61 = vadd.f32 %v1730_v24, %v1573_v6  ;;  %16281 = vst [vmem:[#allocation33_spill] sm:$0xff] %v11620_v14  ;;  %v11630_v6 = vpop.f32.mrf.mxu3 }
 0x236   : > { %v11600_v29 = vadd.f32 %v11552_v41, %v2448_v17  ;;  %v2263_v2 = vsel %vm2218_vm3, %v16282_v5, %v2172_v44 }
 0x238   : > { %16278 = vst [vmem:[#allocation18_spill] sm:$0xff] %v11600_v29  ;;  %v2084_v51 = vpop.f32.mrf.mxu1  ;;  %v16033_v19 = vmax.f32 %v11600_v29, 0.0 }
 0x239   : > { %v2163_v43 = vrot.slane %v2084_v51, 1  ;;  %v2459_v51 = vadd.f32 %v2263_v2, %v1731_v61  ;;  %v11647_v61 = vadd.f32 %v11410_v10, %v11334_v34 }
 0x23a   : > { %v9637_v17 = vpack.i.bf16 %v16033_v19, %v16034_v50  ;;  %2123 = vmatmul.bf16.gmra.mxu1 %v11000_v15  ;;  %v16039_v19 = vmax.f32 %v11620_v14, 0.0  ;;  %v16283_v50 = vld [vmem:[#allocation34_spill] sm:$0xff]  ;;  %v11684_v14 = vadd.f32 %v11410_v10, %v11312_v31  ;;  %v2176_v31 = vrot.slane %v11555_v39, 1 }
 0x23b   : > { %v2274_v24 = vsel %vm2218_vm3, %v2161_v0, %v2163_v43  ;;  %v11639_v0 = vpop.f32.mrf.mxu0  ;;  %16284 = vst [vmem:[#allocation36_spill] sm:$0xff] %v11647_v61  ;;  %v11650_v2 = vadd.f32 %v11410_v10, %v2459_v51  ;;  %v11666_v51 = vpop.f32.mrf.mxu2 }
 0x23c   : > { %9638 = vrot.lane.b32.xlu1 %v9637_v17, %s10743_s16  ;;  %v2386_v1 = vsel %vm2286_vm4, %v2274_v24, 0.0  ;;  %v9642_v17 = vpack.i.bf16 %v16039_v19, %v16038_v23  ;;  %v16043_v23 = vmax.f32 %v11647_v61, 0.0  ;;  %v11664_v19 = vpop.f32.mrf.mxu3  ;;  %16290 = vst [vmem:[#allocation68_spill] sm:$0xff] %v11684_v14 }
 0x23d   : > { %v2450_v29 = vadd.f32 %v2386_v1, %v16283_v50  ;;  %16285 = vst [vmem:[#allocation34_spill] sm:$0xff] %v11650_v2  ;;  %v16286_v50 = vld [vmem:[#allocation37_spill] sm:$0xff]  ;;  %v16044_v34 = vmax.f32 %v11650_v2, 0.0 }
 0x240   : > { %v2086_v5 = vpop.f32.mrf.mxu1 }
 0x241   : > { %v2165_v15 = vrot.slane %v2086_v5, 1  ;;  %v11657_v5 = vadd.f32 %v11552_v41, %v2450_v29 }
 0x243   : > { %v2272_v24 = vsel %vm2218_vm3, %v2163_v43, %v2165_v15  ;;  %16287 = vst [vmem:[#allocation37_spill] sm:$0xff] %v11657_v5  ;;  %v16045_v43 = vmax.f32 %v11657_v5, 0.0  ;;  %v11686_v60 = vpop.f32.mrf.mxu0  ;;  %v11702_v5 = vpop.f32.mrf.mxu2 }
 0x244   : > { %9643 = vrot.lane.b32.xlu1 %v9642_v17, %s10743_s16  ;;  %v2452_v1 = vadd.f32 %v2272_v24, %v16286_v50  ;;  %v9662_v50 = vpack.i.bf16 %v16044_v34, %v16043_v23  ;;  %v2174_v34 = vrot.slane %v11539_v52, 1  ;;  %v11698_v2 = vpop.f32.mrf.mxu3 }
 0x246   : > { %v11660_v58 = vadd.f32 %v11552_v41, %v2452_v1  ;;  %v11680_v1 = vadd.f32 %v11410_v10, %v11301_v49  ;;  %v16052_v49 = vmax.f32 %v11684_v14, 0.0  ;;  %v2261_v52 = vsel %vm2218_vm3, %v2172_v44, %v2174_v34 }
 0x247   : > { %v2259_v39 = vsel %vm2218_vm3, %v2174_v34, %v2176_v31  ;;  %v621_v34 = vadd.s32 96, %v11053_v55 }
 0x248   : > { %16288 = vst [vmem:[#allocation66_spill] sm:$0xff] %v11660_v58  ;;  %v2089_v25 = vpop.f32.mrf.mxu1  ;;  %v16046_v17 = vmax.f32 %v11660_v58, 0.0  ;;  %v16051_v23 = vmax.f32 %v11680_v1, 0.0 }
 0x249   : > { %v2167_v24 = vrot.slane %v2089_v25, 1  ;;  %16289 = vst [vmem:[#allocation67_spill] sm:$0xff] %v11680_v1 }
 0x24a   : > { %v9647_v29 = vpack.i.bf16 %v16046_v17, %v16045_v43  ;;  %2128 = vmatmul.bf16.gmra.mxu1 %v11016_v46  ;;  %v16291_v43 = vld [vmem:[#allocation40_spill] sm:$0xff] }
 0x24b   : > { %v2270_v25 = vsel %vm2218_vm3, %v2165_v15, %v2167_v24  ;;  %v9652_v15 = vpack.i.bf16 %v16052_v49, %v16051_v23  ;;  %v11721_v23 = vpop.f32.mrf.mxu0 }
 0x24c   : > { %9648 = vrot.lane.b32.xlu2 %v9647_v29, %s10743_s16  ;;  %9663 = vrot.lane.b32.xlu1 %v9662_v50, %s10743_s16  ;;  %v2454_v17 = vadd.f32 %v2270_v25, %v16291_v43  ;;  %v16292_v29 = vld [vmem:[#allocation38_spill] sm:$0xff] }
 0x24d   : > { %v1733_v50 = vadd.f32 %v11548_v18, %v16292_v29  ;;  %v16294_v18 = vld [vmem:[#allocation42_spill] sm:$0xff] }
 0x24e   : > { %v11719_v1 = vadd.f32 %v11552_v41, %v2454_v17 }
 0x24f   : > { %v2461_v49 = vadd.f32 %v2261_v52, %v1733_v50 }
 0x250   : > { %v2091_v61 = vpop.f32.mrf.mxu1  ;;  %16295 = vst [vmem:[#allocation40_spill] sm:$0xff] %v11719_v1  ;;  %v16055_v58 = vmax.f32 %v11719_v1, 0.0  ;;  %v16301_v1 = vld [vmem:[#allocation20_spill] sm:$0xff] }
 0x251   : > { %v2169_v46 = vrot.slane %v2091_v61, 1  ;;  %v16293_v61 = vld [vmem:[#allocation30_spill] sm:$0xff]  ;;  %v11735_v50 = vadd.f32 %v11410_v10, %v2461_v49 }
 0x252   : > { %v1736_v25 = vadd.f32 %v11572_v8, %v16293_v61 }
 0x253   : > { %v2268_v43 = vsel %vm2218_vm3, %v2167_v24, %v2169_v46  ;;  %16296 = vst [vmem:[#allocation38_spill] sm:$0xff] %v11735_v50 }
 0x254   : > { %v2456_v29 = vadd.f32 %v2268_v43, %v16294_v18  ;;  %9653 = vrot.lane.b32.xlu2 %v9652_v15, %s10743_s16  ;;  %v2463_v44 = vadd.f32 %v2259_v39, %v1736_v25  ;;  %v620_v15 = vadd.s32 88, %v11053_v55  ;;  %v11740_v39 = vpop.f32.mrf.mxu3  ;;  %v11745_v25 = vand.u32 31, %v621_v34  ;;  %v11747_v18 = vpop.f32.mrf.mxu2 }
 0x256   : > { %v11724_v14 = vadd.f32 %v11552_v41, %v2456_v29  ;;  %v11738_v52 = vadd.f32 %v11410_v10, %v2463_v44  ;;  %16297 = vst [vmem:[#allocation30_spill] sm:$0xff] %v11745_v25  ;;  %v11752_v29 = vand.u32 31, %v620_v15  ;;  %v2178_v44 = vrot.slane %v11580_v54, 1 }
 0x257   : > { %vm1473_vm7 = vcmp.ge.s32.totalorder %v11745_v25, 1 }
 0x258   : > { %v2094_v24 = vpop.f32.mrf.mxu1  ;;  %v16056_v8 = vmax.f32 %v11724_v14, 0.0  ;;  %16298 = vst [vmem:[#allocation42_spill] sm:$0xff] %v11752_v29  ;;  %vm2294_vm8 = vcmp.lt.s32.totalorder %v11752_v29, 31 }
 0x259   : > { %v2171_v43 = vrot.slane %v2094_v24, 1  ;;  %v2257_v24 = vsel %vm2218_vm3, %v2176_v31, %v2178_v44 }
 0x25a   : > { %v9657_v17 = vpack.i.bf16 %v16056_v8, %v16055_v58  ;;  %2133 = vmatmul.bf16.gmra.mxu1 %v10962_v40  ;;  %v16060_v58 = vmax.f32 %v11738_v52, 0.0  ;;  %v11758_v40 = vpop.f32.mrf.mxu0  ;;  %v16299_v8 = vld [vmem:[#allocation41_spill] sm:$0xff] }
 0x25b   : > { %v2266_v61 = vsel %vm2218_vm3, %v2169_v46, %v2171_v43  ;;  %v2180_v46 = vrot.slane %v11605_v12, 1  ;;  %v1574_v15 = vsel %vm1469_vm6, %v16299_v8, 0.0  ;;  %v16300_v12 = vmax.f32 %v11735_v50, 0.0 }
 0x25c   : > { %9658 = vrot.lane.b32.xlu0 %v9657_v17, %s10743_s16  ;;  %v2394_v49 = vsel %vm2290_vm5, %v2266_v61, 0.0  ;;  %v1820_v54 = vadd.f32 %v11570_v62, %v1574_v15  ;;  %v2401_v15 = vsel %vm2294_vm8, %v2257_v24, 0.0  ;;  %v11791_v57 = vpop.f32.mrf.mxu2  ;;  %vm4269_vm6 = vcmp.lt.s32.totalorder %v11053_v55, 6 }
 0x25d   : > { %v2458_v34 = vadd.f32 %v2394_v49, %v11291_v42  ;;  %v9672_v4 = vpack.i.bf16 %v16060_v58, %v16300_v12  ;;  %v1581_v42 = vsel %vm1473_vm7, %v16301_v1, 0.0  ;;  %v2255_v8 = vsel %vm2218_vm3, %v2178_v44, %v2180_v46  ;;  %v11787_v12 = vpop.f32.mrf.mxu3  ;;  %v16302_v1 = vld [vmem:[#allocation19_spill] sm:$0xff] }
 0x25e   : > { %v1741_v49 = vadd.f32 %v11634_v21, %v1581_v42  ;;  %v1738_v58 = vadd.f32 %v11592_v38, %v16302_v1 }
 0x260   : > { %v2096_v17 = vpop.f32.mrf.mxu1  ;;  %v2467_v44 = vadd.f32 %v2255_v8, %v1741_v49  ;;  %v2465_v21 = vadd.f32 %v2401_v15, %v1738_v58  ;;  %v16305_v49 = vld [vmem:[#allocation43_spill] sm:$0xff] }
 0x261   : > { %v2173_v61 = vrot.slane %v2096_v17, 1  ;;  %v11783_v17 = vadd.f32 %v11552_v41, %v2458_v34 }
 0x262   : > { %v11798_v42 = vpop.f32.mrf.mxu0  ;;  %v11805_v8 = vadd.f32 %v11410_v10, %v2467_v44  ;;  %v11810_v58 = vadd.f32 %v11410_v10, %v2465_v21  ;;  %v16068_v44 = vrot.slane %v11686_v60, 1  ;;  %v2182_v21 = vrot.slane %v11639_v0, 1  ;;  %v16306_v0 = vld [vmem:[#allocation22_spill] sm:$0xff] }
 0x263   : > { %v2264_v62 = vsel %vm2218_vm3, %v2171_v43, %v2173_v61 }
 0x264   : > { %v2460_v31 = vadd.f32 %v2264_v62, %v1820_v54  ;;  %9673 = vrot.lane.b32.xlu0 %v9672_v4, %s10743_s16  ;;  %v16063_v4 = vmax.f32 %v11783_v17, 0.0  ;;  %16303 = vst [vmem:[#allocation41_spill] sm:$0xff] %v11805_v8  ;;  %v16067_v15 = vmax.f32 %v11805_v8, 0.0  ;;  %v625_v8 = vadd.s32 128, %v11053_v55 }
 0x265   : > { %16304 = vst [vmem:[#allocation20_spill] sm:$0xff] %v11810_v58  ;;  %v11817_v1 = vpop.f32.mrf.mxu3 }
 0x266   : > { %v11794_v43 = vadd.f32 %v11552_v41, %v2460_v31  ;;  %v1822_v31 = vadd.f32 %v11588_v37, %v16305_v49  ;;  %v2251_v49 = vsel %vm2218_vm3, %v2182_v21, %v16068_v44 }
 0x268   : > { %v2099_v54 = vpop.f32.mrf.mxu1  ;;  %v16064_v34 = vmax.f32 %v11794_v43, 0.0 }
 0x269   : > { %v2175_v24 = vrot.slane %v2099_v54, 1  ;;  %v11820_v54 = vpop.f32.mrf.mxu2 }
 0x26a   : > { %v9667_v38 = vpack.i.bf16 %v16064_v34, %v16063_v4  ;;  %2138 = vmatmul.bf16.gmra.mxu1 %v10982_v22 }
 0x26b   : > { %v2262_v62 = vsel %vm2218_vm3, %v2173_v61, %v2175_v24  ;;  %v1825_v61 = vadd.f32 %v11630_v6, %v11299_v3  ;;  %v2253_v6 = vsel %vm2218_vm3, %v2180_v46, %v2182_v21  ;;  %v624_v46 = vadd.s32 120, %v11053_v55 }
 0x26c   : > { %9668 = vrot.lane.b32.xlu2 %v9667_v38, %s10743_s16  ;;  %v2462_v22 = vadd.f32 %v2262_v62, %v1822_v31  ;;  %v16066_v38 = vmax.f32 %v11810_v58, 0.0  ;;  %v11834_v62 = vpop.f32.mrf.mxu0 }
 0x26e   : > { %v9682_v37 = vpack.i.bf16 %v16067_v15, %v16066_v38  ;;  %v11842_v3 = vadd.f32 %v11552_v41, %v2462_v22  ;;  %v16308_v38 = vld [vmem:[#allocation21_spill] sm:$0xff]  ;;  %v11854_v22 = vpop.f32.mrf.mxu3 }
 0x26f   : > { %v1743_v15 = vadd.f32 %v11666_v51, %v16308_v38  ;;  %v9458_v38 = vld [vmem:[#allocation7 + $0x38] sm:$0xff] }
 0x270   : > { %v2101_v4 = vpop.f32.mrf.mxu1  ;;  %16307 = vst [vmem:[#allocation19_spill] sm:$0xff] %v11842_v3  ;;  %3285 = vmatpush.bf16.msra.mxu2 %v9458_v38 }
 0x271   : > { %v2177_v34 = vrot.slane %v2101_v4, 1  ;;  %v1746_v4 = vadd.f32 %v11702_v5, %v16306_v0  ;;  %v11857_v21 = vpop.f32.mrf.mxu2  ;;  %v9442_v0 = vld [vmem:[#allocation7 + $0xb8] sm:$0xff] }
 0x272   : > { %3752 = vmatpush.bf16.msra.mxu0 %v9442_v0  ;;  %v16312_v0 = vrot.slane %v11686_v60, 1 }
 0x273   : > { %v2260_v31 = vsel %vm2218_vm3, %v2175_v24, %v2177_v34  ;;  %v2471_v44 = vadd.f32 %v2251_v49, %v1746_v4  ;;  %v2469_v24 = vadd.f32 %v2253_v6, %v1743_v15  ;;  %v9466_v49 = vld [vmem:[#allocation7 + $0x78] sm:$0xff]  ;;  %v11869_v4 = vand.u32 31, %v625_v8 }
 0x274   : > { %v2464_v50 = vadd.f32 %v2260_v31, %v1825_v61  ;;  %9683 = vrot.lane.b32.xlu2 %v9682_v37, %s10743_s16  ;;  %v16071_v61 = vmax.f32 %v11842_v3, 0.0  ;;  %3374 = vmatpush.bf16.msra.mxu3 %v9466_v49  ;;  %v2186_v8 = vrot.slane %v11721_v23, 1  ;;  %v9465_v3 = vld [vmem:[#allocation7 + $0x70] sm:$0xff] }
 0x275   : > { %16310 = vst [vmem:[#allocation22_spill] sm:$0xff] %v11869_v4  ;;  %v11873_v6 = vadd.f32 %v11410_v10, %v2469_v24  ;;  %v16077_v24 = vrot.slane %v11758_v40, 1  ;;  %vm1477_vm9 = vcmp.ge.s32.totalorder %v11869_v4, 1 }
 0x276   : > { %v11849_v58 = vadd.f32 %v11552_v41, %v2464_v50  ;;  %v11864_v50 = vadd.f32 %v11410_v10, %v2471_v44 }
 0x277   : > { %v16075_v49 = vmax.f32 %v11873_v6, 0.0  ;;  %v2247_v60 = vsel %vm2218_vm3, %v2186_v8, %v16077_v24 }
 0x278   : > { %16309 = vst [vmem:[#allocation43_spill] sm:$0xff] %v11849_v58  ;;  %v2104_v5 = vpop.f32.mrf.mxu1  ;;  %v16072_v37 = vmax.f32 %v11849_v58, 0.0  ;;  %v9441_v58 = vld [vmem:[#allocation7 + $0xb0] sm:$0xff]  ;;  %3375 = vmatpush.bf16.msra.mxu3 %v9465_v3 }
 0x279   : > { %v2179_v31 = vrot.slane %v2104_v5, 1  ;;  %v9450_v5 = vld [vmem:[#allocation7 + $0xf8] sm:$0xff]  ;;  %3753 = vmatpush.bf16.msra.mxu0 %v9441_v58 }
 0x27a   : > { %v9677_v51 = vpack.i.bf16 %v16072_v37, %v16071_v61  ;;  %2143 = vmatmul.bf16.gmra.mxu1 %v11002_v16  ;;  %v11875_v61 = vpop.f32.mrf.mxu0  ;;  %v1827_v16 = vadd.f32 %v11664_v19, %v11310_v30  ;;  %v9457_v37 = vld [vmem:[#allocation7 + $0x30] sm:$0xff]  ;;  %v1582_v19 = vsel %vm1473_vm7, %v11328_v26, 0.0  ;;  %v16313_v26 = vld [vmem:[#allocation24_spill] sm:$0xff] }
 0x27b   : > { %v2258_v15 = vsel %vm2218_vm3, %v2177_v34, %v2179_v31  ;;  %v11881_v34 = vand.u32 31, %v624_v46  ;;  %3841 = vmatpush.bf16.msrb.mxu1 %v9450_v5  ;;  %v9449_v30 = vld [vmem:[#allocation7 + $0xf0] sm:$0xff]  ;;  %3286 = vmatpush.bf16.msra.mxu2 %v9457_v37  ;;  %v1830_v46 = vadd.f32 %v11698_v2, %v1582_v19  ;;  %v2249_v5 = vsel %vm2218_vm3, %v16312_v0, %v2186_v8  ;;  %v11904_v37 = vpop.f32.mrf.mxu3  ;;  %v9440_v19 = vld [vmem:[#allocation7 + $0xa8] sm:$0xff] }
 0x27c   : > { %9678 = vrot.lane.b32.xlu1 %v9677_v51, %s10743_s16  ;;  %v2402_v44 = vsel %vm2294_vm8, %v2258_v15, 0.0  ;;  %v16076_v51 = vmax.f32 %v11864_v50, 0.0  ;;  %v1589_v3 = vsel %vm1477_vm9, %v16313_v26, 0.0 }
 0x27d   : > { %16311 = vst [vmem:[#allocation21_spill] sm:$0xff] %v11881_v34  ;;  %v2466_v15 = vadd.f32 %v2402_v44, %v1827_v16  ;;  %vm2298_vm10 = vcmp.lt.s32.totalorder %v11881_v34, 31  ;;  %v9456_v16 = vld [vmem:[#allocation7 + $0x28] sm:$0xff]  ;;  %v1751_v58 = vadd.f32 %v11791_v57, %v1589_v3  ;;  %3754 = vmatpush.bf16.msra.mxu0 %v9440_v19  ;;  %v9439_v3 = vld [vmem:[#allocation7 + $0xa0] sm:$0xff]  ;;  %v9438_v19 = vld [vmem:[#allocation7 + $0x98] sm:$0xff] }
 0x27e   : > { %v9692_v44 = vpack.i.bf16 %v16076_v51, %v16075_v49  ;;  %v9448_v49 = vld [vmem:[#allocation7 + $0xe8] sm:$0xff]  ;;  %v2409_v8 = vsel %vm2298_vm10, %v2249_v5, 0.0  ;;  %v16333_v34 = vld [vmem:[#allocation18_spill] sm:$0xff] }
 0x27f   : > { %3842 = vmatpush.bf16.msrb.mxu1 %v9449_v30  ;;  %v11913_v30 = vpop.f32.mrf.mxu2  ;;  %v11917_v26 = vadd.f32 %v11552_v41, %v2466_v15  ;;  %3287 = vmatpush.bf16.msra.mxu2 %v9456_v16  ;;  %v2475_v24 = vadd.f32 %v2247_v60, %v1751_v58  ;;  %v9463_v15 = vld [vmem:[#allocation7 + $0x60] sm:$0xff]  ;;  %v9462_v60 = vld [vmem:[#allocation7 + $0x58] sm:$0xff]  ;;  %v16334_v4 = vmax.f32 %v16333_v34, 0.0 }
 0x280   : > { %v2106_v38 = vpop.f32.mrf.mxu1  ;;  %v9446_v58 = vld [vmem:[#allocation7 + $0xd8] sm:$0xff] }
 0x281   : > { %v2181_v23 = vrot.slane %v2106_v38, 1  ;;  %v9464_v38 = vld [vmem:[#allocation7 + $0x68] sm:$0xff]  ;;  %v16082_v5 = vmax.f32 %v11917_v26, 0.0  ;;  %3755 = vmatpush.bf16.msra.mxu0 %v9439_v3 }
 0x282   : > { %3376 = vmatpush.bf16.msra.mxu3 %v9464_v38  ;;  %v9447_v38 = vld [vmem:[#allocation7 + $0xe0] sm:$0xff] }
 0x283   : > { %v2256_v2 = vsel %vm2218_vm3, %v2179_v31, %v2181_v23  ;;  %v16314_v31 = vld [vmem:[#allocation23_spill] sm:$0xff]  ;;  %3843 = vmatpush.bf16.msrb.mxu1 %v9448_v49  ;;  %v11935_v49 = vadd.f32 %v11410_v10, %v2475_v24  ;;  %v1832_v24 = vadd.f32 %v11740_v39, %v11338_v53  ;;  %v1835_v53 = vadd.f32 %v11787_v12, %v11344_v33 }
 0x284   : > { %v2468_v0 = vadd.f32 %v2256_v2, %v1830_v46  ;;  %9693 = vrot.lane.b32.xlu1 %v9692_v44, %s10743_s16  ;;  %v1748_v51 = vadd.f32 %v11747_v18, %v16314_v31  ;;  %v11926_v46 = vpop.f32.mrf.mxu0  ;;  %v9455_v44 = vld [vmem:[#allocation7 + $0x20] sm:$0xff]  ;;  %v16315_v33 = vrot.slane %v11758_v40, 1 }
 0x285   : > { %3288 = vmatpush.bf16.msra.mxu2 %v9455_v44  ;;  %v16084_v31 = vmax.f32 %v11935_v49, 0.0  ;;  %3756 = vmatpush.bf16.msra.mxu0 %v9438_v19  ;;  %v2190_v44 = vrot.slane %v11798_v42, 1  ;;  %v1753_v19 = vadd.f32 %v11820_v54, %v11357_v27  ;;  %v1756_v42 = vadd.f32 %v11857_v21, %v11370_v56 }
 0x286   : > { %v11924_v57 = vadd.f32 %v11552_v41, %v2468_v0  ;;  %v2473_v2 = vadd.f32 %v2409_v8, %v1748_v51  ;;  %3377 = vmatpush.bf16.msra.mxu3 %v9463_v15  ;;  %v9454_v51 = vld [vmem:[#allocation7 + $0x18] sm:$0xff]  ;;  %v11942_v0 = vpop.f32.mrf.mxu3  ;;  %v2192_v15 = vrot.slane %v11834_v62, 1  ;;  %v628_v56 = vadd.s32 152, %v11053_v55 }
 0x287   : > { %3844 = vmatpush.bf16.msrb.mxu1 %v9447_v38  ;;  %v2245_v12 = vsel %vm2218_vm3, %v16315_v33, %v2190_v44 }
 0x288   : > { %v2109_v29 = vpop.f32.mrf.mxu1  ;;  %v16089_v16 = vmax.f32 %v11924_v57, 0.0  ;;  %v2243_v27 = vsel %vm2218_vm3, %v2190_v44, %v2192_v15  ;;  %v2477_v33 = vadd.f32 %v2245_v12, %v1753_v19  ;;  %v9435_v12 = vld [vmem:[#allocation7 + $0x80] sm:$0xff] }
 0x289   : > { %v2183_v25 = vrot.slane %v2109_v29, 1  ;;  %v11940_v29 = vadd.f32 %v11410_v10, %v2473_v2  ;;  %3289 = vmatpush.bf16.msra.mxu2 %v9454_v51  ;;  %v9437_v51 = vld [vmem:[#allocation7 + $0x90] sm:$0xff]  ;;  %v2479_v44 = vadd.f32 %v2243_v27, %v1756_v42 }
 0x28a   : > { %v9687_v18 = vpack.i.bf16 %v16089_v16, %v16082_v5  ;;  %2148 = vmatmul.bf16.gmra.mxu1 %v11018_v47  ;;  %3378 = vmatpush.bf16.msra.mxu3 %v9462_v60  ;;  %v11948_v47 = vpop.f32.mrf.mxu2  ;;  %v9445_v5 = vld [vmem:[#allocation7 + $0xd0] sm:$0xff] }
 0x28b   : > { %v2254_v8 = vsel %vm2218_vm3, %v2181_v23, %v2183_v25  ;;  %3845 = vmatpush.bf16.msrb.mxu1 %v9446_v58  ;;  %v16083_v38 = vmax.f32 %v11940_v29, 0.0  ;;  %v9453_v23 = vld [vmem:[#allocation7 + $0x10] sm:$0xff]  ;;  %v629_v58 = vadd.s32 160, %v11053_v55  ;;  %3757 = vmatpush.bf16.msra.mxu0 %v9437_v51  ;;  %v2194_v51 = vrot.slane %v11875_v61, 1 }
 0x28c   : > { %9688 = vrot.lane.b32.xlu0 %v9687_v18, %s10743_s16  ;;  %v2470_v3 = vadd.f32 %v2254_v8, %v1832_v24  ;;  %v9461_v18 = vld [vmem:[#allocation7 + $0x50] sm:$0xff]  ;;  %v11956_v39 = vpop.f32.mrf.mxu0  ;;  %v9452_v24 = vld [vmem:[#allocation7 + $0x8] sm:$0xff]  ;;  %v12005_v61 = vadd.f32 %v11410_v10, %v2479_v44  ;;  %v12023_v44 = vpop.permute.xlu0 %9628 }
 0x28d   : > { %v9702_v8 = vpack.i.bf16 %v16084_v31, %v16083_v38  ;;  %3290 = vmatpush.bf16.msra.mxu2 %v9453_v23  ;;  %v9436_v23 = vld [vmem:[#allocation7 + $0x88] sm:$0xff]  ;;  %v11982_v38 = vand.u32 31, %v629_v58  ;;  %v9451_v58 = vld [vmem:[#allocation7] sm:$0xff] }
 0x28e   : > { %3379 = vmatpush.bf16.msra.mxu3 %v9461_v18  ;;  %v11980_v40 = vadd.f32 %v11552_v41, %v2470_v3  ;;  %v9444_v18 = vld [vmem:[#allocation7 + $0xc8] sm:$0xff] }
 0x28f   : > { %3846 = vmatpush.bf16.msrb.mxu1 %v9445_v5  ;;  %16316 = vst [vmem:[#allocation24_spill] sm:$0xff] %v11982_v38  ;;  %v11989_v5 = vand.u32 31, %v628_v56  ;;  %3758 = vmatpush.bf16.msra.mxu0 %v9436_v23  ;;  %vm1481_vm11 = vcmp.ge.s32.totalorder %v11982_v38, 1 }
 0x290   : > { %v2111_v2 = vpop.f32.mrf.mxu1  ;;  %v16087_v19 = vmax.f32 %v11980_v40, 0.0 }
 0x291   : > { %v2185_v60 = vrot.slane %v2111_v2, 1  ;;  %v9460_v2 = vld [vmem:[#allocation7 + $0x48] sm:$0xff]  ;;  %3291 = vmatpush.bf16.msra.mxu2 %v9452_v24  ;;  %16317 = vst [vmem:[#allocation23_spill] sm:$0xff] %v11989_v5  ;;  %v1597_v24 = vsel %vm1481_vm11, %v11400_v20, 0.0  ;;  %vm2302_vm12 = vcmp.lt.s32.totalorder %v11989_v5, 31  ;;  %v1837_v20 = vadd.f32 %v11817_v1, %v11351_v7 }
 0x292   : > { %3380 = vmatpush.bf16.msra.mxu3 %v9460_v2  ;;  %v11991_v3 = vpop.f32.mrf.mxu2  ;;  %v16090_v2 = vrot.slane %v11926_v46, 1  ;;  %v1761_v62 = vadd.f32 %v11948_v47, %v1597_v24 }
 0x293   : > { %v2252_v54 = vsel %vm2218_vm3, %v2183_v25, %v2185_v60  ;;  %v11987_v25 = vpop.f32.mrf.mxu3  ;;  %3847 = vmatpush.bf16.msrb.mxu1 %v9444_v18  ;;  %3759 = vmatpush.bf16.msra.mxu0 %v9435_v12 }
 0x294   : > { %v2472_v21 = vadd.f32 %v2252_v54, %v1835_v53  ;;  %9703 = vrot.lane.b32.xlu0 %v9702_v8, %s10743_s16  ;;  %v9459_v8 = vld [vmem:[#allocation7 + $0x40] sm:$0xff]  ;;  %v12011_v23 = vpop.f32.mrf.mxu0  ;;  %v2239_v7 = vsel %vm2218_vm3, %v2194_v51, %v16090_v2  ;;  %v12090_v16 = vadd.f32 %v11987_v25, %v11421_v9  ;;  %v9631_v25 = vunpack.i.h.bf16 %v12023_v44 }
 0x295   : > { %v9443_v54 = vld [vmem:[#allocation7 + $0xc0] sm:$0xff]  ;;  %3292 = vmatpush.bf16.msra.mxu2 %v9451_v58 }
 0x296   : > { %v11985_v31 = vadd.f32 %v11552_v41, %v2472_v21  ;;  %v12002_v21 = vadd.f32 %v11410_v10, %v2477_v33  ;;  %3381 = vmatpush.bf16.msra.mxu3 %v9459_v8  ;;  %v2241_v33 = vsel %vm2218_vm3, %v2192_v15, %v2194_v51  ;;  %v16086_v15 = vmax.f32 %v12005_v61, 0.0 }
 0x297   : > { %3848 = vmatpush.bf16.msrb.mxu1 %v9443_v54  ;;  %v2417_v8 = vsel %vm2302_vm12, %v2241_v33, 0.0 }
 0x298   : > { %v2114_v53 = vpop.f32.mrf.mxu1  ;;  %v16088_v42 = vmax.f32 %v11985_v31, 0.0  ;;  %16318 = vst [vmem:[#allocation69_spill] sm:$0xff] %v12002_v21  ;;  %v16085_v58 = vmax.f32 %v12002_v21, 0.0 }
 0x299   : > { %v2187_v27 = vrot.slane %v2114_v53, 1 }
 0x29a   : > { %v9697_v56 = vpack.i.bf16 %v16088_v42, %v16087_v19  ;;  %v1765_v24 = vpop.f32.mrf.mxu2  ;;  %v9712_v33 = vpack.i.bf16 %v16086_v15, %v16085_v58  ;;  %v1842_v15 = vadd.f32 %v11904_v37, %v11375_v59  ;;  %v1763_v59 = vadd.f32 %v11991_v3, %v11427_v45 }
 0x29b   : > { %v2250_v18 = vsel %vm2218_vm3, %v2185_v60, %v2187_v27  ;;  %v1758_v60 = vadd.f32 %v11913_v30, %v11379_v35  ;;  %v1590_v35 = vsel %vm1477_vm9, %v11364_v63, 0.0  ;;  %v12041_v30 = vpop.f32.mrf.mxu3 }
 0x29c   : > { %9698 = vrot.lane.b32.xlu2 %v9697_v56, %s10743_s16  ;;  %v2410_v53 = vsel %vm2298_vm10, %v2250_v18, 0.0  ;;  %v1840_v54 = vadd.f32 %v11854_v22, %v1590_v35  ;;  %v2483_v18 = vadd.f32 %v2239_v7, %v1761_v62  ;;  %v12057_v22 = vpop.f32.mrf.mxu0  ;;  %v633_v7 = vadd.s32 192, %v11053_v55 }
 0x29d   : > { %v2474_v1 = vadd.f32 %v2410_v53, %v1837_v20  ;;  %v2481_v56 = vadd.f32 %v2417_v8, %v1758_v60  ;;  %v16319_v53 = vlaneseq }
 0x29e   : > { %v9634_v60 = vpop.permute.xlu0 %9633  ;;  %v12084_v42 = vand.u32 31, %v633_v7 }
 0x29f   : > { %v12052_v63 = vadd.f32 %v11552_v41, %v2474_v1  ;;  %v12063_v8 = vadd.f32 %v11410_v10, %v2481_v56  ;;  %v9636_v35 = vunpack.i.h.bf16 %v9634_v60 }
 0x2a0   : > { %v2116_v12 = vpop.f32.mrf.mxu1  ;;  %16322 = vst [vmem:[#allocation72_spill] sm:$0xff] %v12084_v42  ;;  %vm1485_vm15 = vcmp.ge.s32.totalorder %v12084_v42, 1  ;;  %v16404_v42 = vld [vmem:[#allocation38_spill] sm:$0xff] }
 0x2a1   : > { %v2189_v47 = vrot.slane %v2116_v12, 1  ;;  %v12055_v12 = vand.u32 127, %v16319_v53  ;;  %16320 = vst [vmem:[#allocation70_spill] sm:$0xff] %v12063_v8  ;;  %v9630_v53 = vunpack.i.l.bf16 %v12023_v44 }
 0x2a2   : > { %v12092_v2 = vpop.f32.mrf.mxu2 }
 0x2a3   : > { %v2248_v51 = vsel %vm2218_vm3, %v2187_v27, %v2189_v47  ;;  %v12066_v27 = vadd.f32 %v11410_v10, %v2483_v18  ;;  %vm2771_vm13 = vcmp.lt.s32.totalorder %v12055_v12, 120  ;;  %v16093_v18 = vmax.f32 %v12063_v8, 0.0  ;;  %v12082_v19 = vpop.f32.mrf.mxu3 }
 0x2a4   : > { %v2476_v20 = vadd.f32 %v2248_v51, %v1840_v54  ;;  %9713 = vrot.lane.b32.xlu2 %v9712_v33, %s10743_s16  ;;  %v16091_v54 = vmax.f32 %v12052_v63, 0.0  ;;  %v632_v51 = vadd.s32 184, %v11053_v55  ;;  %v12113_v3 = vpop.f32.mrf.mxu0 }
 0x2a5   : > { %16321 = vst [vmem:[#allocation71_spill] sm:$0xff] %v12066_v27  ;;  %v16094_v58 = vmax.f32 %v12066_v27, 0.0 }
 0x2a6   : > { %v12060_v62 = vadd.f32 %v11552_v41, %v2476_v20  ;;  %v12100_v37 = vand.u32 31, %v632_v51  ;;  %v16324_v51 = vmax.f32 %v11414_v28, 0.0 }
 0x2a7   : > { %v9722_v45 = vpack.i.bf16 %v16094_v58, %v16093_v18  ;;  %v16327_v18 = vmax.f32 %v11566_v36, 0.0 }
 0x2a8   : > { %v2119_v1 = vpop.f32.mrf.mxu1  ;;  %v16092_v33 = vmax.f32 %v12060_v62, 0.0  ;;  %16323 = vst [vmem:[#allocation73_spill] sm:$0xff] %v12100_v37  ;;  %vm2306_vm14 = vcmp.lt.s32.totalorder %v12100_v37, 31 }
 0x2a9   : > { %v2191_v20 = vrot.slane %v2119_v1, 1  ;;  %v1845_v1 = vadd.f32 %v11942_v0, %v11388_v13  ;;  %v2804_v13 = vsel %vm2771_vm13, %v9636_v35, %v9630_v53  ;;  %v1766_v0 = vadd.f32 %v1765_v24, %v11442_v32 }
 0x2aa   : > { %v9707_v56 = vpack.i.bf16 %v16092_v33, %v16091_v54  ;;  %v2198_v54 = vrot.slane %v11956_v39, 1  ;;  %v2772_v33 = vsel %vm2771_vm13, %v9630_v53, %v9636_v35  ;;  %v16095_v39 = vrot.slane %v12011_v23, 1 }
 0x2ab   : > { %v2246_v9 = vsel %vm2218_vm3, %v2189_v47, %v2191_v20  ;;  %v12117_v35 = vmax.f32 %v16324_v51, %v2772_v33  ;;  %v9635_v53 = vunpack.i.l.bf16 %v9634_v60  ;;  %v16326_v32 = vrot.slane %v11926_v46, 1 }
 0x2ac   : > { %9708 = vrot.lane.b32.xlu1 %v9707_v56, %s10743_s16  ;;  %v2235_v24 = vsel %vm2218_vm3, %v2198_v54, %v16095_v39  ;;  %v12129_v58 = vmax.f32 %v16327_v18, %v2804_v13  ;;  %v2478_v28 = vadd.f32 %v2246_v9, %v1842_v15  ;;  %v16330_v18 = vmax.f32 %v11596_v11, 0.0  ;;  %v16331_v13 = vld [vmem:[#allocation25_spill] sm:$0xff] }
 0x2ad   : > { %16325 = vst [vmem:[#allocation74_spill] sm:$0xff] %v12117_v35  ;;  %v2237_v44 = vsel %vm2218_vm3, %v16326_v32, %v2198_v54  ;;  %v9649_v32 = vpop.permute.xlu2 %9648  ;;  %v16329_v54 = vmax.f32 %v11417_v48, 0.0  ;;  %v16332_v9 = vmax.f32 %v16331_v13, 0.0 }
 0x2ae   : > { %v9639_v7 = vpop.permute.xlu1 %9638  ;;  %16328 = vst [vmem:[#allocation75_spill] sm:$0xff] %v12129_v58  ;;  %v2485_v27 = vadd.f32 %v2237_v44, %v1763_v59  ;;  %v9651_v34 = vunpack.i.h.bf16 %v9649_v32  ;;  %v12161_v59 = vadd.f32 %v11552_v41, %v2478_v28  ;;  %v9650_v28 = vunpack.i.l.bf16 %v9649_v32 }
 0x2af   : > { %v9641_v47 = vunpack.i.h.bf16 %v9639_v7  ;;  %v9640_v56 = vunpack.i.l.bf16 %v9639_v7 }
 0x2b0   : > { %v2121_v33 = vpop.f32.mrf.mxu1 }
 0x2b1   : > { %v2773_v60 = vsel %vm2771_vm13, %v9631_v25, %v9640_v56  ;;  %v2774_v46 = vsel %vm2771_vm13, %v9635_v53, %v9641_v47  ;;  %v2805_v7 = vsel %vm2771_vm13, %v9640_v56, %v9631_v25  ;;  %v2806_v51 = vsel %vm2771_vm13, %v9641_v47, %v9635_v53 }
 0x2b2   : > { %v2838_v36 = vmax.f32 %v16329_v54, %v2773_v60  ;;  %v2839_v15 = vmax.f32 %v16330_v18, %v2805_v7  ;;  %v12145_v39 = vmax.f32 %v16332_v9, %v2774_v46  ;;  %v12149_v8 = vmax.f32 %v16334_v4, %v2806_v51  ;;  %v12155_v60 = vpop.f32.mrf.mxu3 }
 0x2b3   : > { %v2487_v25 = vadd.f32 %v2235_v24, %v1766_v0  ;;  %v16105_v56 = vrot.slane %v12117_v35, 1  ;;  %v2193_v53 = vrot.slane %v2121_v33, 1  ;;  %v16104_v46 = vrot.slane %v12129_v58, 1  ;;  %v12163_v0 = vpop.f32.mrf.mxu2 }
 0x2b4   : > { %v2902_v47 = vrot.slane %v2838_v36, 1  ;;  %v2903_v21 = vrot.slane %v2839_v15, 1  ;;  %v16106_v48 = vrot.slane %v12145_v39, 1  ;;  %v16103_v11 = vrot.slane %v12149_v8, 1  ;;  %9723 = vrot.lane.b32.xlu1 %v9722_v45, %s10743_s16 }
 0x2b5   : > { %v2244_v4 = vsel %vm2218_vm3, %v2191_v20, %v2193_v53  ;;  %v2202_v18 = vrot.slane %v12057_v22, 1 }
 0x2b6   : > { %v3022_v44 = vsel %vm2218_vm3, %v2902_v47, %v16106_v48  ;;  %v3023_v45 = vsel %vm2218_vm3, %v2903_v21, %v16103_v11  ;;  %v2480_v24 = vadd.f32 %v2244_v4, %v1845_v1  ;;  %v9644_v33 = vpop.permute.xlu1 %9643  ;;  %v3024_v20 = vsel %vm2218_vm3, %v16105_v56, %v2902_v47  ;;  %v12186_v11 = vpop.f32.mrf.mxu0  ;;  %v16338_v48 = vld [vmem:[#allocation31_spill] sm:$0xff] }
 0x2b7   : > { %v3030_v7 = vmax.f32 %v2838_v36, %v3022_v44  ;;  %v9646_v51 = vunpack.i.h.bf16 %v9644_v33  ;;  %v9645_v54 = vunpack.i.l.bf16 %v9644_v33  ;;  %v3028_v9 = vmax.f32 %v12117_v35, %v3024_v20  ;;  %v16336_v20 = vld [vmem:[#allocation33_spill] sm:$0xff] }
 0x2b8   : > { %v2124_v13 = vpop.f32.mrf.mxu1  ;;  %v3025_v1 = vsel %vm2218_vm3, %v16104_v46, %v2903_v21  ;;  %v12184_v4 = vadd.f32 %v11552_v41, %v2480_v24  ;;  %v3031_v47 = vmax.f32 %v2839_v15, %v3023_v45  ;;  %v16337_v46 = vmax.f32 %v16336_v20, 0.0  ;;  %v16347_v20 = vld [vmem:[#allocation45_spill] sm:$0xff] }
 0x2b9   : > { %v2776_v32 = vsel %vm2771_vm13, %v9646_v51, %v9651_v34  ;;  %v2775_v22 = vsel %vm2771_vm13, %v9645_v54, %v9650_v28  ;;  %v2808_v44 = vsel %vm2771_vm13, %v9651_v34, %v9646_v51  ;;  %v2807_v21 = vsel %vm2771_vm13, %v9650_v28, %v9645_v54 }
 0x2ba   : > { %v2195_v33 = vrot.slane %v2124_v13, 1  ;;  %v12197_v24 = vpack.c.bf16 %v3030_v7, %v3028_v9  ;;  %v12201_v15 = vmax.f32 %v16337_v46, %v2776_v32  ;;  %v3029_v45 = vmax.f32 %v12129_v58, %v3025_v1  ;;  %v16343_v13 = vld [vmem:[#allocation66_spill] sm:$0xff]  ;;  %v16345_v1 = vld [vmem:[#allocation37_spill] sm:$0xff] }
 0x2bb   : > { %v16108_v56 = vmax.f32 %v12184_v4, 0.0  ;;  %v16339_v35 = vmax.f32 %v16338_v48, 0.0  ;;  %v12215_v46 = vadd.f32 %v11410_v10, %v2485_v27  ;;  %v12218_v28 = vadd.f32 %v11410_v10, %v2487_v25 }
 0x2bc   : > { %16335 = vst [vmem:[#allocation25_spill] sm:$0xff] %v12197_v24  ;;  %v2242_v34 = vsel %vm2218_vm3, %v2193_v53, %v2195_v33  ;;  %3293 = vmatmul.bf16.vlgmr.msra.gmra.mxu2 %v12197_v24  ;;  %3760 = vmatmul.bf16.vlgmr.msra.gmra.mxu0 %v12197_v24  ;;  %v16340_v7 = vrot.slane %v12011_v23, 1  ;;  %v12226_v51 = vpack.c.bf16 %v3031_v47, %v3029_v45  ;;  %v16342_v53 = vmax.f32 %v12161_v59, 0.0  ;;  %v12243_v45 = vpop.f32.mrf.mxu3 }
 0x2bd   : > { %v12207_v36 = vmax.f32 %v16339_v35, %v2775_v22  ;;  %v2418_v48 = vsel %vm2302_vm12, %v2242_v34, 0.0  ;;  %v16109_v27 = vrot.slane %v12113_v3, 1  ;;  %v16344_v25 = vmax.f32 %v16343_v13, 0.0 }
 0x2be   : > { %v2233_v35 = vsel %vm2218_vm3, %v16340_v7, %v2202_v18  ;;  %16341 = vst [vmem:[#allocation18_spill] sm:$0xff] %v12226_v51  ;;  %v9717_v54 = vpack.i.bf16 %v16108_v56, %v16342_v53  ;;  %v16346_v32 = vmax.f32 %v16345_v1, 0.0  ;;  %v1598_v47 = vsel %vm1481_vm11, %v16347_v20, 0.0  ;;  %3382 = vmatmul.bf16.vlgmr.msra.gmra.mxu3 %v12226_v51  ;;  %3849 = vmatmul.bf16.vlgmr.msrb.gmra.mxu1 %v12226_v51  ;;  %v16348_v7 = vld [vmem:[#allocation47_spill] sm:$0xff] }
 0x2bf   : > { %v12235_v9 = vmax.f32 %v16344_v25, %v2808_v44  ;;  %v2906_v23 = vrot.slane %v12207_v36, 1  ;;  %v1850_v44 = vadd.f32 %v12041_v30, %v1598_v47  ;;  %v1768_v53 = vadd.f32 %v12092_v2, %v16348_v7  ;;  %v1772_v25 = vpop.f32.mrf.mxu2  ;;  %v12271_v7 = vpop.f32.mrf.mxu0 }
 0x2c0   : > { %v2843_v22 = vmax.f32 %v16346_v32, %v2807_v21  ;;  %v16349_v21 = vld [vmem:[#allocation48_spill] sm:$0xff]  ;;  %v2482_v1 = vadd.f32 %v2418_v48, %v12090_v16  ;;  %9718 = vrot.lane.b32.xlu0 %v9717_v54, %s10743_s16  ;;  %v2126_v32 = vpop.f32.mrf.mxu1  ;;  %v2425_v20 = vsel %vm2306_vm14, %v2233_v35, 0.0  ;;  %v2231_v2 = vsel %vm2218_vm3, %v2202_v18, %v16109_v27 }
 0x2c1   : > { %v1605_v13 = vsel %vm1485_vm15, %v16349_v21, 0.0  ;;  %v2197_v56 = vrot.slane %v2126_v32, 1  ;;  %v16350_v16 = vrot.slane %v12145_v39, 1  ;;  %v16351_v32 = vrot.slane %v12201_v15, 1 }
 0x2c2   : > { %v2907_v54 = vrot.slane %v2843_v22, 1  ;;  %v1771_v35 = vadd.f32 %v12163_v0, %v1605_v13  ;;  %v12280_v47 = vadd.f32 %v11552_v41, %v2482_v1  ;;  %v2489_v30 = vadd.f32 %v2425_v20, %v1768_v53 }
 0x2c3   : > { %v3020_v48 = vsel %vm2218_vm3, %v16350_v16, %v2906_v23  ;;  %v2240_v21 = vsel %vm2218_vm3, %v2195_v33, %v2197_v56  ;;  %v3018_v18 = vsel %vm2218_vm3, %v2906_v23, %v16351_v32  ;;  %v16352_v16 = vmax.f32 %v12215_v46, 0.0 }
 0x2c4   : > { %v2484_v27 = vadd.f32 %v2240_v21, %v1850_v44  ;;  %v2491_v34 = vadd.f32 %v2231_v2, %v1771_v35  ;;  %v16353_v0 = vmax.f32 %v12218_v28, 0.0  ;;  %v3032_v5 = vmax.f32 %v12145_v39, %v3020_v48  ;;  %v12302_v2 = vpop.f32.mrf.mxu3 }
 0x2c5   : > { %v3034_v33 = vmax.f32 %v12207_v36, %v3018_v18  ;;  %v16354_v38 = vrot.slane %v12235_v9, 1  ;;  %v16355_v44 = vrot.slane %v12149_v8, 1  ;;  %v16114_v39 = vmax.f32 %v12280_v47, 0.0 }
 0x2c6   : > { %v9732_v13 = vpack.i.bf16 %v16353_v0, %v16352_v16  ;;  %v12297_v1 = vadd.f32 %v11552_v41, %v2484_v27  ;;  %v637_v48 = vadd.s32 224, %v11053_v55  ;;  %v12307_v21 = vadd.f32 %v11410_v10, %v2489_v30  ;;  %v9654_v27 = vpop.permute.xlu2 %9653 }
 0x2c7   : > { %v3019_v23 = vsel %vm2218_vm3, %v2907_v54, %v16354_v38  ;;  %v3021_v53 = vsel %vm2218_vm3, %v16355_v44, %v2907_v54  ;;  %v1775_v54 = vpop.f32.mrf.mxu2  ;;  %v12309_v18 = vpack.c.bf16 %v3034_v33, %v3032_v5  ;;  %v12316_v0 = vadd.f32 %v11410_v10, %v2491_v34  ;;  %v12326_v33 = vpop.f32.mrf.mxu0 }
 0x2c8   : > { %9733 = vrot.lane.b32.xlu0 %v9732_v13, %s10743_s16  ;;  %v2129_v20 = vpop.f32.mrf.mxu1  ;;  %v16115_v36 = vmax.f32 %v12297_v1, 0.0  ;;  %v3033_v38 = vmax.f32 %v12149_v8, %v3021_v53  ;;  %v3035_v35 = vmax.f32 %v2843_v22, %v3019_v23  ;;  %16356 = vst [vmem:[#allocation33_spill] sm:$0xff] %v12307_v21  ;;  %v2206_v13 = vrot.slane %v12186_v11, 1  ;;  %v16359_v22 = vld [vmem:[#allocation46_spill] sm:$0xff]  ;;  %v16362_v11 = vld [vmem:[#allocation51_spill] sm:$0xff]  ;;  %v16363_v53 = vld [vmem:[#allocation49_spill] sm:$0xff] }
 0x2c9   : > { %v2199_v32 = vrot.slane %v2129_v20, 1  ;;  %16357 = vst [vmem:[#allocation31_spill] sm:$0xff] %v12309_v18  ;;  %v1852_v5 = vadd.f32 %v12082_v19, %v16359_v22  ;;  %v12324_v30 = vand.u32 31, %v637_v48  ;;  %v1855_v44 = vadd.f32 %v12155_v60, %v16362_v11 }
 0x2ca   : > { %v9727_v16 = vpack.i.bf16 %v16115_v36, %v16114_v39  ;;  %16358 = vst [vmem:[#allocation66_spill] sm:$0xff] %v12316_v0  ;;  %v12330_v34 = vpack.c.bf16 %v3035_v35, %v3033_v38  ;;  %v1773_v20 = vadd.f32 %v1772_v25, %v16363_v53  ;;  %v9656_v48 = vunpack.i.h.bf16 %v9654_v27  ;;  %v16364_v35 = vld [vmem:[#allocation50_spill] sm:$0xff] }
 0x2cb   : > { %16360 = vst [vmem:[#allocation37_spill] sm:$0xff] %v12324_v30  ;;  %v2238_v23 = vsel %vm2218_vm3, %v2197_v56, %v2199_v32  ;;  %v9655_v22 = vunpack.i.l.bf16 %v9654_v27  ;;  %v16365_v8 = vrot.slane %v12113_v3, 1  ;;  %v16366_v25 = vrot.slane %v12271_v7, 1 }
 0x2cc   : > { %3298 = vmatmul.bf16.gmra.mxu2 %v12309_v18  ;;  %3765 = vmatmul.bf16.gmra.mxu0 %v12309_v18  ;;  %16361 = vst [vmem:[#allocation45_spill] sm:$0xff] %v12330_v34  ;;  %v2486_v53 = vadd.f32 %v2238_v23, %v1852_v5  ;;  %v12367_v24 = vpop.f32.mrf.mxu3  ;;  %vm1489_vm1 = vcmp.ge.s32.totalorder %v12324_v30, 1 }
 0x2cd   : > { %9728 = vrot.lane.b32.xlu2 %v9727_v16, %s10743_s16  ;;  %v1776_v16 = vadd.f32 %v1775_v54, %v16364_v35  ;;  %v2229_v60 = vsel %vm2218_vm3, %v16365_v8, %v2206_v13  ;;  %v2227_v11 = vsel %vm2218_vm3, %v2206_v13, %v16366_v25  ;;  %v16367_v35 = vld [vmem:[#allocation68_spill] sm:$0xff]  ;;  %v16369_v13 = vmax.f32 %v11724_v14, 0.0  ;;  %v16370_v25 = vld [vmem:[#allocation67_spill] sm:$0xff] }
 0x2ce   : > { %v9659_v39 = vpop.permute.xlu0 %9658  ;;  %3387 = vmatmul.bf16.gmra.mxu3 %v12330_v34  ;;  %3854 = vmatmul.bf16.gmra.mxu1 %v12330_v34  ;;  %v9669_v8 = vpop.permute.xlu2 %9668  ;;  %v16368_v36 = vmax.f32 %v16367_v35, 0.0  ;;  %v16371_v18 = vmax.f32 %v16370_v25, 0.0 }
 0x2cf   : > { %v9661_v56 = vunpack.i.h.bf16 %v9659_v39  ;;  %v9660_v38 = vunpack.i.l.bf16 %v9659_v39  ;;  %v2495_v58 = vadd.f32 %v2227_v11, %v1776_v16  ;;  %v12376_v14 = vpop.f32.mrf.mxu2  ;;  %v2493_v11 = vadd.f32 %v2229_v60, %v1773_v20  ;;  %v12394_v20 = vpop.f32.mrf.mxu0 }
 0x2d0   : > { %v2131_v27 = vpop.f32.mrf.mxu1 }
 0x2d1   : > { %v2777_v19 = vsel %vm2771_vm13, %v9655_v22, %v9660_v38  ;;  %v2778_v39 = vsel %vm2771_vm13, %v9656_v48, %v9661_v56  ;;  %v2809_v54 = vsel %vm2771_vm13, %v9660_v38, %v9655_v22  ;;  %v2810_v3 = vsel %vm2771_vm13, %v9661_v56, %v9656_v48 }
 0x2d2   : > { %v12359_v34 = vmax.f32 %v16368_v36, %v2778_v39  ;;  %v12363_v5 = vmax.f32 %v16369_v13, %v2810_v3  ;;  %v2201_v23 = vrot.slane %v2131_v27, 1  ;;  %v2846_v51 = vmax.f32 %v16371_v18, %v2777_v19  ;;  %v16374_v36 = vld [vmem:[#allocation40_spill] sm:$0xff]  ;;  %v9664_v3 = vpop.permute.xlu1 %9663 }
 0x2d3   : > { %v636_v22 = vadd.s32 216, %v11053_v55  ;;  %v16372_v48 = vmax.f32 %v12307_v21, 0.0  ;;  %v16373_v56 = vmax.f32 %v12316_v0, 0.0  ;;  %v16375_v39 = vmax.f32 %v16374_v36, 0.0 }
 0x2d4   : > { %v16121_v27 = vrot.slane %v12359_v34, 1  ;;  %v2236_v19 = vsel %vm2218_vm3, %v2199_v32, %v2201_v23  ;;  %v2910_v16 = vrot.slane %v2846_v51, 1  ;;  %v9671_v13 = vunpack.i.h.bf16 %v9669_v8 }
 0x2d5   : > { %v9742_v38 = vpack.i.bf16 %v16373_v56, %v16372_v48  ;;  %v2847_v35 = vmax.f32 %v16375_v39, %v2809_v54  ;;  %v2488_v25 = vadd.f32 %v2236_v19, %v1855_v44  ;;  %v9670_v56 = vunpack.i.l.bf16 %v9669_v8 }
 0x2d6   : > { %v3014_v54 = vsel %vm2218_vm3, %v2910_v16, %v16121_v27  ;;  %v16376_v36 = vrot.slane %v12201_v15, 1  ;;  %v12392_v32 = vadd.f32 %v11552_v41, %v2486_v53  ;;  %v9666_v44 = vunpack.i.h.bf16 %v9664_v3 }
 0x2d7   : > { %9743 = vrot.lane.b32.xlu2 %v9742_v38, %s10743_s16  ;;  %v2911_v48 = vrot.slane %v2847_v35, 1  ;;  %v3038_v38 = vmax.f32 %v2846_v51, %v3014_v54  ;;  %v12398_v8 = vadd.f32 %v11410_v10, %v2495_v58  ;;  %v9665_v19 = vunpack.i.l.bf16 %v9664_v3 }
 0x2d8   : > { %v3016_v39 = vsel %vm2218_vm3, %v16376_v36, %v2910_v16  ;;  %v2134_v18 = vpop.f32.mrf.mxu1  ;;  %v16377_v27 = vrot.slane %v12363_v5, 1  ;;  %v16378_v16 = vrot.slane %v12235_v9, 1  ;;  %v12409_v36 = vadd.f32 %v11552_v41, %v2488_v25 }
 0x2d9   : > { %v3036_v60 = vmax.f32 %v12201_v15, %v3016_v39  ;;  %v2203_v15 = vrot.slane %v2134_v18, 1  ;;  %v2779_v54 = vsel %vm2771_vm13, %v9665_v19, %v9670_v56  ;;  %v16126_v39 = vmax.f32 %v12392_v32, 0.0 }
 0x2da   : > { %v3015_v21 = vsel %vm2218_vm3, %v2911_v48, %v16377_v27  ;;  %v3017_v53 = vsel %vm2218_vm3, %v16378_v16, %v2911_v48  ;;  %v2780_v27 = vsel %vm2771_vm13, %v9666_v44, %v9671_v13  ;;  %v16125_v0 = vmax.f32 %v12409_v36, 0.0 }
 0x2db   : > { %v12411_v51 = vpack.c.bf16 %v3038_v38, %v3036_v60  ;;  %v3037_v58 = vmax.f32 %v12235_v9, %v3017_v53  ;;  %v3039_v3 = vmax.f32 %v2847_v35, %v3015_v21  ;;  %v12420_v48 = vand.u32 31, %v636_v22  ;;  %v12439_v22 = vpop.f32.mrf.mxu3  ;;  %v16383_v60 = vld [vmem:[#allocation34_spill] sm:$0xff] }
 0x2dc   : > { %v2234_v18 = vsel %vm2218_vm3, %v2201_v23, %v2203_v15  ;;  %v12427_v9 = vadd.f32 %v11410_v10, %v2493_v11  ;;  %v2210_v21 = vrot.slane %v12326_v33, 1  ;;  %v2811_v35 = vsel %vm2771_vm13, %v9670_v56, %v9665_v19  ;;  %v16385_v19 = vld [vmem:[#allocation36_spill] sm:$0xff] }
 0x2dd   : > { %16379 = vst [vmem:[#allocation47_spill] sm:$0xff] %v12411_v51  ;;  %v12424_v25 = vpack.c.bf16 %v3039_v3, %v3037_v58  ;;  %3303 = vmatmul.bf16.gmra.mxu2 %v12411_v51  ;;  %3770 = vmatmul.bf16.gmra.mxu0 %v12411_v51  ;;  %v9737_v23 = vpack.i.bf16 %v16125_v0, %v16126_v39  ;;  %v16384_v38 = vmax.f32 %v16383_v60, 0.0  ;;  %v2426_v56 = vsel %vm2306_vm14, %v2234_v18, 0.0  ;;  %v16387_v58 = vld [vmem:[#allocation52_spill] sm:$0xff]  ;;  %v1780_v51 = vpop.f32.mrf.mxu2  ;;  %v16388_v39 = vld [vmem:[#allocation54_spill] sm:$0xff] }
 0x2de   : > { %16380 = vst [vmem:[#allocation48_spill] sm:$0xff] %v12420_v48  ;;  %v2812_v11 = vsel %vm2771_vm13, %v9671_v13, %v9666_v44  ;;  %v16386_v16 = vmax.f32 %v16385_v19, 0.0  ;;  %v1857_v3 = vadd.f32 %v12243_v45, %v16387_v58  ;;  %v1613_v13 = vsel %vm1489_vm1, %v16388_v39, 0.0  ;;  %v12476_v44 = vpop.f32.mrf.mxu0 }
 0x2df   : > { %16381 = vst [vmem:[#allocation46_spill] sm:$0xff] %v12424_v25  ;;  %v12445_v33 = vmax.f32 %v16384_v38, %v2780_v27  ;;  %9738 = vrot.lane.b32.xlu1 %v9737_v23, %s10743_s16  ;;  %vm2310_vm2 = vcmp.lt.s32.totalorder %v12420_v48, 31  ;;  %3392 = vmatmul.bf16.gmra.mxu3 %v12424_v25  ;;  %v16389_v45 = vrot.slane %v12271_v7, 1  ;;  %v16390_v18 = vmax.f32 %v11794_v43, 0.0 }
 0x2e0   : > { %16382 = vst [vmem:[#allocation51_spill] sm:$0xff] %v12427_v9  ;;  %v2850_v53 = vmax.f32 %v16386_v16, %v2779_v54  ;;  %3859 = vmatmul.bf16.gmra.mxu1 %v12424_v25  ;;  %v2490_v39 = vadd.f32 %v2426_v56, %v1857_v3  ;;  %v2136_v60 = vpop.f32.mrf.mxu1  ;;  %v16391_v38 = vmax.f32 %v11783_v17, 0.0  ;;  %v16392_v16 = vld [vmem:[#allocation55_spill] sm:$0xff]  ;;  %v1781_v43 = vadd.f32 %v1780_v51, %v1613_v13  ;;  %v16406_v25 = vld [vmem:[#allocation56_spill] sm:$0xff] }
 0x2e1   : > { %v2225_v27 = vsel %vm2218_vm3, %v16389_v45, %v2210_v21  ;;  %v12469_v23 = vmax.f32 %v16390_v18, %v2812_v11  ;;  %v1606_v58 = vsel %vm1485_vm15, %v16392_v16, 0.0  ;;  %v16130_v7 = vrot.slane %v12445_v33, 1 }
 0x2e2   : > { %v2851_v19 = vmax.f32 %v16391_v38, %v2811_v35  ;;  %v2205_v0 = vrot.slane %v2136_v60, 1  ;;  %v2914_v54 = vrot.slane %v2850_v53, 1  ;;  %v1860_v45 = vadd.f32 %v12302_v2, %v1606_v58 }
 0x2e3   : > { %v16393_v11 = vmax.f32 %v12427_v9, 0.0  ;;  %v16394_v56 = vmax.f32 %v12398_v8, 0.0  ;;  %v2433_v17 = vsel %vm2310_vm2, %v2225_v27, 0.0  ;;  %v16395_v35 = vrot.slane %v12394_v20, 1  ;;  %v16397_v27 = vld [vmem:[#allocation53_spill] sm:$0xff] }
 0x2e4   : > { %v2232_v60 = vsel %vm2218_vm3, %v2203_v15, %v2205_v0  ;;  %v16396_v38 = vrot.slane %v12359_v34, 1  ;;  %v16129_v51 = vrot.slane %v12469_v23, 1  ;;  %v2915_v16 = vrot.slane %v2851_v19, 1 }
 0x2e5   : > { %v9752_v3 = vpack.i.bf16 %v16394_v56, %v16393_v11  ;;  %v2223_v18 = vsel %vm2218_vm3, %v2210_v21, %v16395_v35  ;;  %v2492_v13 = vadd.f32 %v2232_v60, %v1860_v45  ;;  %v12498_v58 = vadd.f32 %v11552_v41, %v2490_v39  ;;  %v12515_v60 = vpop.f32.mrf.mxu3 }
 0x2e6   : > { %v3012_v2 = vsel %vm2218_vm3, %v16396_v38, %v2914_v54  ;;  %v1778_v11 = vadd.f32 %v12376_v14, %v16397_v27  ;;  %v3010_v15 = vsel %vm2218_vm3, %v2914_v54, %v16130_v7  ;;  %v2499_v21 = vadd.f32 %v2223_v18, %v1781_v43  ;;  %v12517_v38 = vpop.f32.mrf.mxu2 }
 0x2e7   : > { %9753 = vrot.lane.b32.xlu1 %v9752_v3, %s10743_s16  ;;  %v3040_v56 = vmax.f32 %v12359_v34, %v3012_v2  ;;  %v16398_v35 = vrot.slane %v12363_v5, 1  ;;  %v12513_v39 = vadd.f32 %v11552_v41, %v2492_v13  ;;  %v3042_v54 = vmax.f32 %v2850_v53, %v3010_v15  ;;  %v12535_v13 = vpop.f32.mrf.mxu0 }
 0x2e8   : > { %v2497_v14 = vadd.f32 %v2433_v17, %v1778_v11  ;;  %v2139_v27 = vpop.f32.mrf.mxu1  ;;  %v3011_v34 = vsel %vm2218_vm3, %v2915_v16, %v16129_v51  ;;  %v16127_v43 = vmax.f32 %v12498_v58, 0.0  ;;  %v12533_v53 = vadd.f32 %v11410_v10, %v2499_v21 }
 0x2e9   : > { %v3013_v45 = vsel %vm2218_vm3, %v16398_v35, %v2915_v16  ;;  %v16128_v3 = vmax.f32 %v12513_v39, 0.0  ;;  %v12526_v2 = vpack.c.bf16 %v3042_v54, %v3040_v56  ;;  %v3043_v11 = vmax.f32 %v2851_v19, %v3011_v34  ;;  %v9674_v16 = vpop.permute.xlu0 %9673 }
 0x2ea   : > { %v3041_v18 = vmax.f32 %v12363_v5, %v3013_v45  ;;  %v2207_v15 = vrot.slane %v2139_v27, 1  ;;  %v12540_v5 = vadd.f32 %v11410_v10, %v2497_v14  ;;  %v9676_v54 = vunpack.i.h.bf16 %v9674_v16  ;;  %v16402_v45 = vld [vmem:[#allocation43_spill] sm:$0xff] }
 0x2eb   : > { %16399 = vst [vmem:[#allocation49_spill] sm:$0xff] %v12526_v2  ;;  %v9747_v17 = vpack.i.bf16 %v16128_v3, %v16127_v43  ;;  %v9675_v19 = vunpack.i.l.bf16 %v9674_v16  ;;  %v2214_v14 = vrot.slane %v12476_v44, 1  ;;  %v16401_v7 = vmax.f32 %v11738_v52, 0.0 }
 0x2ec   : > { %v12542_v56 = vpack.c.bf16 %v3043_v11, %v3041_v18  ;;  %v2230_v18 = vsel %vm2218_vm3, %v2205_v0, %v2207_v15  ;;  %v1862_v9 = vadd.f32 %v12367_v24, %v16406_v25  ;;  %v16408_v52 = vmax.f32 %v12540_v5, 0.0 }
 0x2ed   : > { %3308 = vmatmul.bf16.gmra.mxu2 %v12526_v2  ;;  %3775 = vmatmul.bf16.gmra.mxu0 %v12526_v2  ;;  %v1869_v43 = vpop.f32.mrf.mxu3 }
 0x2ee   : > { %16400 = vst [vmem:[#allocation50_spill] sm:$0xff] %v12542_v56  ;;  %9748 = vrot.lane.b32.xlu0 %v9747_v17, %s10743_s16  ;;  %v9679_v21 = vpop.permute.xlu1 %9678  ;;  %v1785_v44 = vpop.f32.mrf.mxu2  ;;  %v16403_v17 = vmax.f32 %v16402_v45, 0.0  ;;  %v16410_v45 = vld [vmem:[#allocation19_spill] sm:$0xff] }
 0x2ef   : > { %3397 = vmatmul.bf16.gmra.mxu3 %v12542_v56  ;;  %v9681_v27 = vunpack.i.h.bf16 %v9679_v21  ;;  %v9680_v34 = vunpack.i.l.bf16 %v9679_v21 }
 0x2f0   : > { %3864 = vmatmul.bf16.gmra.mxu1 %v12542_v56  ;;  %v2141_v11 = vpop.f32.mrf.mxu1  ;;  %v16405_v56 = vmax.f32 %v16404_v42, 0.0 }
 0x2f1   : > { %v2781_v3 = vsel %vm2771_vm13, %v9675_v19, %v9680_v34  ;;  %v2782_v16 = vsel %vm2771_vm13, %v9676_v54, %v9681_v27  ;;  %v2813_v51 = vsel %vm2771_vm13, %v9680_v34, %v9675_v19  ;;  %v2814_v21 = vsel %vm2771_vm13, %v9681_v27, %v9676_v54 }
 0x2f2   : > { %v12563_v0 = vmax.f32 %v16401_v7, %v2782_v16  ;;  %v12567_v35 = vmax.f32 %v16403_v17, %v2814_v21  ;;  %v2209_v37 = vrot.slane %v2141_v11, 1  ;;  %v2854_v2 = vmax.f32 %v16405_v56, %v2781_v3  ;;  %v16412_v3 = vld [vmem:[#allocation59_spill] sm:$0xff]  ;;  %v16413_v16 = vld [vmem:[#allocation58_spill] sm:$0xff] }
 0x2f3   : > { %v16407_v19 = vrot.slane %v12535_v13, 1  ;;  %v16409_v7 = vmax.f32 %v12533_v53, 0.0  ;;  %v16411_v34 = vmax.f32 %v16410_v45, 0.0  ;;  %v1865_v56 = vadd.f32 %v12439_v22, %v16412_v3 }
 0x2f4   : > { %v16141_v11 = vrot.slane %v12563_v0, 1  ;;  %v2228_v24 = vsel %vm2218_vm3, %v2207_v15, %v2209_v37  ;;  %v2918_v25 = vrot.slane %v2854_v2, 1  ;;  %v1786_v21 = vadd.f32 %v1785_v44, %v16413_v16 }
 0x2f5   : > { %v2219_v54 = vsel %vm2218_vm3, %v2214_v14, %v16407_v19  ;;  %v9762_v27 = vpack.i.bf16 %v16409_v7, %v16408_v52  ;;  %v2855_v17 = vmax.f32 %v16411_v34, %v2813_v51  ;;  %v2494_v19 = vadd.f32 %v2230_v18, %v1862_v9 }
 0x2f6   : > { %v3006_v51 = vsel %vm2218_vm3, %v2918_v25, %v16141_v11  ;;  %v16414_v7 = vrot.slane %v12445_v33, 1  ;;  %v2503_v45 = vadd.f32 %v2219_v54, %v1786_v21  ;;  %v2496_v34 = vadd.f32 %v2228_v24, %v1865_v56 }
 0x2f7   : > { %9763 = vrot.lane.b32.xlu0 %v9762_v27, %s10743_s16  ;;  %v2919_v52 = vrot.slane %v2855_v17, 1  ;;  %v3046_v44 = vmax.f32 %v2854_v2, %v3006_v51  ;;  %v16415_v9 = vrot.slane %v12567_v35, 1  ;;  %v16416_v27 = vrot.slane %v12469_v23, 1  ;;  %v16419_v51 = vld [vmem:[#allocation60_spill] sm:$0xff] }
 0x2f8   : > { %v3008_v15 = vsel %vm2218_vm3, %v16414_v7, %v2918_v25  ;;  %v2144_v42 = vpop.f32.mrf.mxu1  ;;  %v16417_v16 = vrot.slane %v12394_v20, 1  ;;  %v12613_v24 = vadd.f32 %v11552_v41, %v2494_v19  ;;  %v9684_v25 = vpop.permute.xlu2 %9683  ;;  %v1867_v7 = vadd.f32 %v12515_v60, %v16419_v51 }
 0x2f9   : > { %v3044_v22 = vmax.f32 %v12445_v33, %v3008_v15  ;;  %v3007_v18 = vsel %vm2218_vm3, %v2919_v52, %v16415_v9  ;;  %v3009_v3 = vsel %vm2218_vm3, %v16416_v27, %v2919_v52  ;;  %v16418_v33 = vld [vmem:[#allocation57_spill] sm:$0xff]  ;;  %v2211_v56 = vrot.slane %v2144_v42, 1  ;;  %v12621_v15 = vpop.f32.mrf.mxu3 }
 0x2fa   : > { %v2221_v54 = vsel %vm2218_vm3, %v16417_v16, %v2214_v14  ;;  %v1783_v2 = vadd.f32 %v12517_v38, %v16418_v33  ;;  %v3045_v20 = vmax.f32 %v12469_v23, %v3009_v3  ;;  %v3047_v52 = vmax.f32 %v2855_v17, %v3007_v18 }
 0x2fb   : > { %v12617_v21 = vpack.c.bf16 %v3046_v44, %v3044_v22  ;;  %v12625_v14 = vadd.f32 %v11552_v41, %v2496_v34  ;;  %v2226_v9 = vsel %vm2218_vm3, %v2209_v37, %v2211_v56  ;;  %v12632_v38 = vadd.f32 %v11410_v10, %v2503_v45  ;;  %v16420_v34 = vld [vmem:[#allocation61_spill] sm:$0xff] }
 0x2fc   : > { %v2501_v19 = vadd.f32 %v2221_v54, %v1783_v2  ;;  %v2434_v60 = vsel %vm2310_vm2, %v2226_v9, 0.0  ;;  %v12636_v42 = vpack.c.bf16 %v3047_v52, %v3045_v20  ;;  %v16139_v23 = vmax.f32 %v12613_v24, 0.0 }
 0x2fd   : > { %3313 = vmatmul.bf16.gmra.mxu2 %v12617_v21  ;;  %3780 = vmatmul.bf16.gmra.mxu0 %v12617_v21  ;;  %v16140_v17 = vmax.f32 %v12625_v14, 0.0  ;;  %v1614_v37 = vsel %vm1489_vm1, %v16420_v34, 0.0  ;;  %v640_v22 = vadd.s32 248, %v11053_v55  ;;  %v9686_v18 = vunpack.i.h.bf16 %v9684_v25  ;;  %v16421_v34 = vld [vmem:[#allocation41_spill] sm:$0xff] }
 0x2fe   : > { %v9689_v44 = vpop.permute.xlu0 %9688  ;;  %v2498_v27 = vadd.f32 %v2434_v60, %v1867_v7  ;;  %v1870_v16 = vadd.f32 %v1869_v43, %v1614_v37  ;;  %v9685_v54 = vunpack.i.l.bf16 %v9684_v25  ;;  %v12651_v51 = vadd.f32 %v11410_v10, %v2501_v19 }
 0x2ff   : > { %3402 = vmatmul.bf16.gmra.mxu3 %v12636_v42  ;;  %v9757_v45 = vpack.i.bf16 %v16140_v17, %v16139_v23  ;;  %v9691_v3 = vunpack.i.h.bf16 %v9689_v44  ;;  %v9690_v33 = vunpack.i.l.bf16 %v9689_v44  ;;  %v16422_v43 = vmax.f32 %v16421_v34, 0.0  ;;  %v9694_v23 = vpop.permute.xlu1 %9693 }
 0x300   : > { %3869 = vmatmul.bf16.gmra.mxu1 %v12636_v42  ;;  %v2146_v2 = vpop.f32.mrf.mxu1  ;;  %v9699_v60 = vpop.permute.xlu2 %9698  ;;  %v16423_v37 = vmax.f32 %v11924_v57, 0.0  ;;  %v12678_v57 = vadd.f32 %v11552_v41, %v2498_v27 }
 0x301   : > { %9758 = vrot.lane.b32.xlu2 %v9757_v45, %s10743_s16  ;;  %v2784_v7 = vsel %vm2771_vm13, %v9686_v18, %v9691_v3  ;;  %v2816_v20 = vsel %vm2771_vm13, %v9691_v3, %v9686_v18  ;;  %v2213_v52 = vrot.slane %v2146_v2, 1  ;;  %v2783_v44 = vsel %vm2771_vm13, %v9685_v54, %v9690_v33  ;;  %v16424_v3 = vld [vmem:[#allocation20_spill] sm:$0xff] }
 0x302   : > { %v12661_v25 = vmax.f32 %v16422_v43, %v2784_v7  ;;  %v12665_v19 = vmax.f32 %v16423_v37, %v2816_v20  ;;  %v2815_v45 = vsel %vm2771_vm13, %v9690_v33, %v9685_v54  ;;  %v16425_v2 = vmax.f32 %v16424_v3, 0.0  ;;  %v1874_v33 = vpop.f32.mrf.mxu3 }
 0x303   : > { %v2224_v18 = vsel %vm2218_vm3, %v2211_v56, %v2213_v52  ;;  %v16426_v7 = vmax.f32 %v11917_v26, 0.0  ;;  %v12680_v20 = vand.u32 31, %v640_v22  ;;  %v9701_v11 = vunpack.i.h.bf16 %v9699_v60 }
 0x304   : > { %v2858_v17 = vmax.f32 %v16425_v2, %v2783_v44  ;;  %v16145_v43 = vrot.slane %v12661_v25, 1  ;;  %v2500_v54 = vadd.f32 %v2224_v18, %v1870_v16  ;;  %v16144_v56 = vmax.f32 %v12651_v51, 0.0 }
 0x305   : > { %v2859_v34 = vmax.f32 %v16426_v7, %v2815_v45  ;;  %16427 = vst [vmem:[#allocation68_spill] sm:$0xff] %v12680_v20  ;;  %v9700_v44 = vunpack.i.l.bf16 %v9699_v60  ;;  %v9696_v2 = vunpack.i.h.bf16 %v9694_v23  ;;  %v9695_v26 = vunpack.i.l.bf16 %v9694_v23 }
 0x306   : > { %v2922_v9 = vrot.slane %v2858_v17, 1  ;;  %v12686_v45 = vadd.f32 %v11552_v41, %v2500_v54  ;;  %v16428_v22 = vmax.f32 %v12632_v38, 0.0  ;;  %v16429_v18 = vrot.slane %v12563_v0, 1 }
 0x307   : > { %v2923_v3 = vrot.slane %v2859_v34, 1  ;;  %v16430_v48 = vrot.slane %v12665_v19, 1  ;;  %vm2314_vm4 = vcmp.lt.s32.totalorder %v12680_v20, 31 }
 0x308   : > { %v9772_v27 = vpack.i.bf16 %v16428_v22, %v16144_v56  ;;  %v3002_v16 = vsel %vm2218_vm3, %v2922_v9, %v16145_v43  ;;  %v3004_v60 = vsel %vm2218_vm3, %v16429_v18, %v2922_v9  ;;  %v2149_v7 = vpop.f32.mrf.mxu1  ;;  %v16431_v56 = vrot.slane %v12567_v35, 1 }
 0x309   : > { %v3048_v54 = vmax.f32 %v12563_v0, %v3004_v60  ;;  %v3050_v37 = vmax.f32 %v2858_v17, %v3002_v16  ;;  %v3003_v22 = vsel %vm2218_vm3, %v2923_v3, %v16430_v48  ;;  %v2215_v30 = vrot.slane %v2149_v7, 1  ;;  %v16432_v16 = vld [vmem:[#allocation32_spill] sm:$0xff] }
 0x30a   : > { %v3005_v43 = vsel %vm2218_vm3, %v16431_v56, %v2923_v3  ;;  %9773 = vrot.lane.b32.xlu2 %v9772_v27, %s10743_s16  ;;  %v3051_v18 = vmax.f32 %v2859_v34, %v3003_v22  ;;  %v16152_v23 = vmax.f32 %v12686_v45, 0.0  ;;  %v2786_v0 = vsel %vm2771_vm13, %v9696_v2, %v9701_v11  ;;  %v1787_v27 = vpop.f32.mrf.mxu2 }
 0x30b   : > { %v3049_v9 = vmax.f32 %v12567_v35, %v3005_v43  ;;  %v2785_v17 = vsel %vm2771_vm13, %v9695_v26, %v9700_v44  ;;  %v12717_v48 = vpack.c.bf16 %v3050_v37, %v3048_v54  ;;  %v16433_v60 = vrot.slane %v16432_v16, 1  ;;  %v16439_v16 = vld [vmem:[#allocation28_spill] sm:$0xff] }
 0x30c   : > { %v16434_v56 = vrot.slane %v12535_v13, 1  ;;  %v16435_v34 = vmax.f32 %v12678_v57, 0.0  ;;  %v2818_v37 = vsel %vm2771_vm13, %v9701_v11, %v9696_v2  ;;  %v16436_v13 = vmax.f32 %v11864_v50, 0.0  ;;  %v16438_v11 = vld [vmem:[#allocation62_spill] sm:$0xff] }
 0x30d   : > { %v12726_v35 = vpack.c.bf16 %v3051_v18, %v3049_v9  ;;  %3318 = vmatmul.bf16.gmra.mxu2 %v12717_v48  ;;  %3785 = vmatmul.bf16.gmra.mxu0 %v12717_v48  ;;  %v2817_v54 = vsel %vm2771_vm13, %v9700_v44, %v9695_v26  ;;  %v2222_v22 = vsel %vm2218_vm3, %v2213_v52, %v2215_v30  ;;  %v16437_v9 = vmax.f32 %v11873_v6, 0.0  ;;  %v1876_v52 = vpop.f32.mrf.mxu3 }
 0x30e   : > { %v2281_v3 = vsel %vm2218_vm3, %v16434_v56, %v16433_v60  ;;  %v9767_v43 = vpack.i.bf16 %v16152_v23, %v16435_v34  ;;  %v12738_v7 = vmax.f32 %v16436_v13, %v2786_v0  ;;  %v1872_v2 = vadd.f32 %v12621_v15, %v16438_v11  ;;  %v16441_v56 = vld [vmem:[#allocation26_spill] sm:$0xff] }
 0x30f   : > { %v2862_v18 = vmax.f32 %v16437_v9, %v2785_v17  ;;  %v16440_v60 = vrot.slane %v16439_v16, 7  ;;  %v16442_v50 = vrot.slane %v16441_v56, 7  ;;  %v2441_v44 = vsel %vm2314_vm4, %v2281_v3, 0.0  ;;  %3407 = vmatmul.bf16.gmra.mxu3 %v12726_v35  ;;  %v16446_v56 = vld [vmem:[#allocation64_spill] sm:$0xff] }
 0x310   : > { %9768 = vrot.lane.b32.xlu1 %v9767_v43, %s10743_s16  ;;  %v16443_v34 = vmax.f32 %v11985_v31, 0.0  ;;  %3874 = vmatmul.bf16.gmra.mxu1 %v12726_v35  ;;  %v2502_v6 = vadd.f32 %v2222_v22, %v1872_v2  ;;  %v2151_v15 = vpop.f32.mrf.mxu1  ;;  %v16444_v17 = vmax.f32 %v11980_v40, 0.0  ;;  %v2928_v11 = vrot.slane %v12738_v7, 1 }
 0x311   : > { %v1397_v0 = vsel %vm1396_vm0, %v16442_v50, %v16440_v60  ;;  %v2217_v16 = vrot.slane %v2151_v15, 1  ;;  %v2926_v3 = vrot.slane %v2862_v18, 1  ;;  %v1877_v31 = vadd.f32 %v1876_v52, %v16446_v56 }
 0x312   : > { %v1788_v26 = vadd.f32 %v1787_v27, %v1397_v0  ;;  %v12759_v43 = vmax.f32 %v16443_v34, %v2818_v37  ;;  %v2863_v13 = vmax.f32 %v16444_v17, %v2817_v54  ;;  %v16445_v27 = vld [vmem:[#allocation63_spill] sm:$0xff]  ;;  %v16447_v0 = vld [vmem:[#allocation65_spill] sm:$0xff]  ;;  %v16449_v54 = vrot.slane %v12661_v25, 1 }
 0x313   : > { %v1875_v60 = vadd.f32 %v1874_v33, %v16445_v27  ;;  %v2220_v50 = vsel %vm2218_vm3, %v2215_v30, %v2217_v16  ;;  %v16448_v22 = vrot.slane %v16447_v0, 1  ;;  %v12782_v52 = vadd.f32 %v11552_v41, %v2502_v6 }
 0x314   : > { %v2505_v9 = vadd.f32 %v2441_v44, %v1788_v26  ;;  %v2929_v37 = vrot.slane %v12759_v43, 1  ;;  %v3000_v2 = vsel %vm2218_vm3, %v16449_v54, %v2926_v3  ;;  %v2927_v26 = vrot.slane %v2863_v13, 1 }
 0x315   : > { %v2282_v40 = vsel %vm2218_vm3, %v2217_v16, %v16448_v22  ;;  %v2504_v44 = vadd.f32 %v2220_v50, %v1875_v60  ;;  %v2998_v30 = vsel %vm2218_vm3, %v2926_v3, %v2928_v11  ;;  %v3052_v17 = vmax.f32 %v12661_v25, %v3000_v2 }
 0x316   : > { %v2442_v33 = vsel %vm2314_vm4, %v2282_v40, 0.0  ;;  %v12787_v15 = vadd.f32 %v11410_v10, %v2505_v9  ;;  %v16450_v16 = vrot.slane %v12665_v19, 1  ;;  %v3054_v56 = vmax.f32 %v2862_v18, %v2998_v30  ;;  %v9704_v40 = vpop.permute.xlu0 %9703 }
 0x317   : > { %v2506_v34 = vadd.f32 %v2442_v33, %v1877_v31  ;;  %v12795_v60 = vadd.f32 %v11552_v41, %v2504_v44  ;;  %v2999_v3 = vsel %vm2218_vm3, %v2927_v26, %v2929_v37  ;;  %v16150_v10 = vmax.f32 %v12782_v52, 0.0 }
 0x318   : > { %v3001_v27 = vsel %vm2218_vm3, %v16450_v16, %v2927_v26  ;;  %v16149_v31 = vmax.f32 %v12787_v15, 0.0  ;;  %v12807_v0 = vpack.c.bf16 %v3054_v56, %v3052_v17  ;;  %v3055_v18 = vmax.f32 %v2863_v13, %v2999_v3 }
 0x319   : > { %v12798_v6 = vadd.f32 %v11552_v41, %v2506_v34  ;;  %v16151_v9 = vmax.f32 %v12795_v60, 0.0  ;;  %v3053_v25 = vmax.f32 %v12665_v19, %v3001_v27  ;;  %v9706_v2 = vunpack.i.h.bf16 %v9704_v40 }
 0x31a   : > { %v9705_v33 = vunpack.i.l.bf16 %v9704_v40  ;;  %v16451_v16 = vmax.f32 %v11935_v49, 0.0  ;;  %v16452_v56 = vmax.f32 %v12060_v62, 0.0  ;;  %vm3495_vm0 = vcmp.lt.s32.totalorder %v11053_v55, 2 }
 0x31b   : > { %v16148_v50 = vmax.f32 %v12798_v6, 0.0  ;;  %v9777_v41 = vpack.i.bf16 %v16151_v9, %v16150_v10  ;;  %v12819_v19 = vpack.c.bf16 %v3055_v18, %v3053_v25  ;;  %v16453_v25 = vmax.f32 %v11940_v29, 0.0 }
 0x31c   : > { %v16454_v18 = vmax.f32 %v12052_v63, 0.0 }
 0x31d   : > { %v9782_v22 = vpack.i.bf16 %v16148_v50, %v16149_v31  ;;  %3323 = vmatmul.bf16.gmra.mxu2 %v12807_v0  ;;  %3790 = vmatmul.bf16.gmra.mxu0 %v12807_v0 }
 0x31e   : > { %9778 = vrot.lane.b32.xlu0 %v9777_v41, %s10743_s16  ;;  %v9709_v54 = vpop.permute.xlu1 %9708 }
 0x31f   : > { %9783 = vrot.lane.b32.xlu1 %v9782_v22, %s10743_s16  ;;  %3412 = vmatmul.bf16.gmra.mxu3 %v12819_v19  ;;  %v9711_v13 = vunpack.i.h.bf16 %v9709_v54  ;;  %v9710_v44 = vunpack.i.l.bf16 %v9709_v54 }
 0x320   : > { %3879 = vmatmul.bf16.gmra.mxu1 %v12819_v19 }
 0x321   : > { %v2787_v26 = vsel %vm2771_vm13, %v9705_v33, %v9710_v44  ;;  %v2788_v34 = vsel %vm2771_vm13, %v9706_v2, %v9711_v13  ;;  %v2819_v30 = vsel %vm2771_vm13, %v9710_v44, %v9705_v33  ;;  %v2820_v17 = vsel %vm2771_vm13, %v9711_v13, %v9706_v2 }
 0x322   : > { %v2868_v27 = vmax.f32 %v16451_v16, %v2788_v34  ;;  %v2869_v3 = vmax.f32 %v16452_v56, %v2820_v17  ;;  %v2866_v41 = vmax.f32 %v16453_v25, %v2787_v26  ;;  %v2867_v22 = vmax.f32 %v16454_v18, %v2819_v30 }
 0x323   : > { %v16455_v18 = vmax.f32 %v12005_v61, 0.0 }
 0x324   : > { %v2932_v40 = vrot.slane %v2868_v27, 1  ;;  %v2933_v54 = vrot.slane %v2869_v3, 1  ;;  %v2930_v50 = vrot.slane %v2866_v41, 1  ;;  %v2931_v31 = vrot.slane %v2867_v22, 1 }
 0x326   : > { %v2994_v33 = vsel %vm2218_vm3, %v2930_v50, %v2932_v40  ;;  %v2996_v49 = vsel %vm2218_vm3, %v2928_v11, %v2930_v50  ;;  %v2995_v62 = vsel %vm2218_vm3, %v2931_v31, %v2933_v54  ;;  %v2997_v29 = vsel %vm2218_vm3, %v2929_v37, %v2931_v31  ;;  %v9714_v11 = vpop.permute.xlu2 %9713 }
 0x327   : > { %v3056_v2 = vmax.f32 %v12738_v7, %v2996_v49  ;;  %v3058_v63 = vmax.f32 %v2866_v41, %v2994_v33  ;;  %v3057_v13 = vmax.f32 %v12759_v43, %v2997_v29  ;;  %v3059_v44 = vmax.f32 %v2867_v22, %v2995_v62  ;;  %v9724_v41 = vpop.permute.xlu1 %9723  ;;  %v16457_v62 = vld [vmem:[#allocation69_spill] sm:$0xff] }
 0x328   : > { %v9716_v31 = vunpack.i.h.bf16 %v9714_v11  ;;  %v9715_v7 = vunpack.i.l.bf16 %v9714_v11  ;;  %v16456_v33 = vmax.f32 %v12184_v4, 0.0  ;;  %v16458_v29 = vmax.f32 %v16457_v62, 0.0 }
 0x329   : > { %v12851_v26 = vpack.c.bf16 %v3058_v63, %v3056_v2  ;;  %v12853_v34 = vpack.c.bf16 %v3059_v44, %v3057_v13  ;;  %v16459_v63 = vmax.f32 %v12161_v59, 0.0  ;;  %v9725_v10 = vunpack.i.l.bf16 %v9724_v41 }
 0x32d   : > { %3328 = vmatmul.bf16.gmra.mxu2 %v12851_v26  ;;  %3795 = vmatmul.bf16.gmra.mxu0 %v12851_v26 }
 0x32e   : > { %v9729_v25 = vpop.permute.xlu2 %9728 }
 0x32f   : > { %3417 = vmatmul.bf16.gmra.mxu3 %v12853_v34 }
 0x330   : > { %3884 = vmatmul.bf16.gmra.mxu1 %v12853_v34 }
 0x332   : > { %v9719_v37 = vpop.permute.xlu0 %9718 }
 0x333   : > { %v9721_v50 = vunpack.i.h.bf16 %v9719_v37  ;;  %v9720_v30 = vunpack.i.l.bf16 %v9719_v37 }
 0x335   : > { %v2790_v43 = vsel %vm2771_vm13, %v9716_v31, %v9721_v50  ;;  %v2822_v17 = vsel %vm2771_vm13, %v9721_v50, %v9716_v31  ;;  %v2789_v16 = vsel %vm2771_vm13, %v9715_v7, %v9720_v30  ;;  %v2821_v56 = vsel %vm2771_vm13, %v9720_v30, %v9715_v7 }
 0x336   : > { %v2872_v22 = vmax.f32 %v16455_v18, %v2790_v43  ;;  %v2873_v49 = vmax.f32 %v16456_v33, %v2822_v17  ;;  %v2870_v2 = vmax.f32 %v16458_v29, %v2789_v16  ;;  %v2871_v13 = vmax.f32 %v16459_v63, %v2821_v56  ;;  %v16460_v29 = vld [vmem:[#allocation71_spill] sm:$0xff] }
 0x337   : > { %v9731_v50 = vunpack.i.h.bf16 %v9729_v25  ;;  %v9730_v7 = vunpack.i.l.bf16 %v9729_v25  ;;  %v9726_v30 = vunpack.i.h.bf16 %v9724_v41 }
 0x338   : > { %v2936_v44 = vrot.slane %v2872_v22, 1  ;;  %v2937_v11 = vrot.slane %v2873_v49, 1  ;;  %v2934_v37 = vrot.slane %v2870_v2, 1  ;;  %v2935_v31 = vrot.slane %v2871_v13, 1 }
 0x339   : > { %v12875_v9 = vpop.f32.mrf.mxu0  ;;  %v2792_v41 = vsel %vm2771_vm13, %v9726_v30, %v9731_v50  ;;  %v2791_v18 = vsel %vm2771_vm13, %v9725_v10, %v9730_v7 }
 0x33a   : > { %v2990_v61 = vsel %vm2218_vm3, %v2934_v37, %v2936_v44  ;;  %v2992_v4 = vsel %vm2218_vm3, %v2932_v40, %v2934_v37  ;;  %v2991_v59 = vsel %vm2218_vm3, %v2935_v31, %v2937_v11  ;;  %v2993_v43 = vsel %vm2218_vm3, %v2933_v54, %v2935_v31 }
 0x33b   : > { %v3060_v17 = vmax.f32 %v2868_v27, %v2992_v4  ;;  %v3062_v16 = vmax.f32 %v2870_v2, %v2990_v61  ;;  %v3061_v56 = vmax.f32 %v2869_v3, %v2993_v43  ;;  %v3063_v25 = vmax.f32 %v2871_v13, %v2991_v59  ;;  %v12889_v33 = vpop.f32.mrf.mxu1  ;;  %v16462_v13 = vld [vmem:[#allocation70_spill] sm:$0xff] }
 0x33c   : > { %v2824_v40 = vsel %vm2771_vm13, %v9731_v50, %v9726_v30  ;;  %v2823_v54 = vsel %vm2771_vm13, %v9730_v7, %v9725_v10  ;;  %v16461_v2 = vmax.f32 %v16460_v29, 0.0  ;;  %v16463_v37 = vmax.f32 %v16462_v13, 0.0 }
 0x33d   : > { %v12891_v62 = vpack.c.bf16 %v3062_v16, %v3060_v17  ;;  %v12897_v27 = vpack.c.bf16 %v3063_v25, %v3061_v56  ;;  %v16464_v10 = vmax.f32 %v12297_v1, 0.0  ;;  %v16465_v7 = vmax.f32 %v12280_v47, 0.0 }
 0x33e   : > { %v12903_v63 = vmax.f32 %v16461_v2, %v2792_v41  ;;  %v2874_v31 = vmax.f32 %v16463_v37, %v2791_v18 }
 0x33f   : > { %3333 = vmatmul.bf16.gmra.mxu2 %v12891_v62  ;;  %3800 = vmatmul.bf16.gmra.mxu0 %v12891_v62  ;;  %v3294_v3 = vpop.f32.mrf.mxu2  ;;  %v12911_v50 = vmax.f32 %v16464_v10, %v2824_v40  ;;  %v2875_v30 = vmax.f32 %v16465_v7, %v2823_v54 }
 0x340   : > { %3422 = vmatmul.bf16.gmra.mxu3 %v12897_v27  ;;  %3889 = vmatmul.bf16.gmra.mxu1 %v12897_v27  ;;  %v2940_v43 = vrot.slane %v12903_v63, 1  ;;  %v2938_v17 = vrot.slane %v2874_v31, 1 }
 0x341   : > { %v3383_v61 = vpop.f32.mrf.mxu3  ;;  %v3763_v4 = vpop.f32.mrf.mxu0  ;;  %v2941_v16 = vrot.slane %v12911_v50, 1  ;;  %v2939_v56 = vrot.slane %v2875_v30, 1 }
 0x342   : > { %v12915_v59 = vadd.f32 %v3383_v61, %v3294_v3  ;;  %v2988_v25 = vsel %vm2218_vm3, %v2936_v44, %v2938_v17  ;;  %v2986_v47 = vsel %vm2218_vm3, %v2938_v17, %v2940_v43 }
 0x343   : > { %v3852_v41 = vpop.f32.mrf.mxu1  ;;  %v2989_v18 = vsel %vm2218_vm3, %v2937_v11, %v2939_v56  ;;  %v3064_v40 = vmax.f32 %v2872_v22, %v2988_v25  ;;  %v2987_v54 = vsel %vm2218_vm3, %v2939_v56, %v2941_v16  ;;  %v3066_v13 = vmax.f32 %v2874_v31, %v2986_v47  ;;  %v9734_v11 = vpop.permute.xlu0 %9733 }
 0x344   : > { %v3065_v29 = vmax.f32 %v2873_v49, %v2989_v18  ;;  %v3067_v44 = vmax.f32 %v2875_v30, %v2987_v54  ;;  %v16153_v10 = vrot.slane %v12915_v59, 6  ;;  %v9736_v17 = vunpack.i.h.bf16 %v9734_v11 }
 0x345   : > { %v12929_v61 = vpack.c.bf16 %v3066_v13, %v3064_v40  ;;  %v9735_v56 = vunpack.i.l.bf16 %v9734_v11  ;;  %v16466_v13 = vmax.f32 %v12218_v28, 0.0 }
 0x346   : > { %v12931_v23 = vpack.c.bf16 %v3067_v44, %v3065_v29 }
 0x347   : > { %v3296_v1 = vpop.f32.mrf.mxu2 }
 0x349   : > { %v3385_v3 = vpop.f32.mrf.mxu3  ;;  %v3766_v37 = vpop.f32.mrf.mxu0 }
 0x34a   : > { %v3386_v2 = vadd.f32 %v3385_v3, %v3296_v1 }
 0x34b   : > { %v3855_v25 = vpop.f32.mrf.mxu1 }
 0x34c   : > { %v3464_v7 = vrot.slane %v3386_v2, 6 }
 0x34e   : > { %v3526_v22 = vsel %vm3495_vm0, %v16153_v10, %v3464_v7 }
 0x34f   : > { %3338 = vmatmul.bf16.gmra.mxu2 %v12929_v61  ;;  %3805 = vmatmul.bf16.gmra.mxu0 %v12929_v61  ;;  %v3299_v49 = vpop.f32.mrf.mxu2  ;;  %v3764_v31 = vadd.f32 %v3763_v4, %v3526_v22  ;;  %v16468_v22 = vmax.f32 %v12392_v32, 0.0 }
 0x350   : > { %3427 = vmatmul.bf16.gmra.mxu3 %v12931_v23  ;;  %3894 = vmatmul.bf16.gmra.mxu1 %v12931_v23 }
 0x351   : > { %v9739_v30 = vpop.permute.xlu1 %9738  ;;  %v3388_v47 = vpop.f32.mrf.mxu3  ;;  %v12941_v40 = vadd.f32 %v3852_v41, %v3764_v31  ;;  %v16467_v41 = vmax.f32 %v12215_v46, 0.0 }
 0x352   : > { %v9741_v1 = vunpack.i.h.bf16 %v9739_v30  ;;  %v9740_v18 = vunpack.i.l.bf16 %v9739_v30  ;;  %v3389_v54 = vadd.f32 %v3388_v47, %v3299_v49  ;;  %v16469_v30 = vmax.f32 %v12409_v36, 0.0 }
 0x354   : > { %v2793_v3 = vsel %vm2771_vm13, %v9735_v56, %v9740_v18  ;;  %v2794_v4 = vsel %vm2771_vm13, %v9736_v17, %v9741_v1  ;;  %v2825_v29 = vsel %vm2771_vm13, %v9740_v18, %v9735_v56  ;;  %v2826_v2 = vsel %vm2771_vm13, %v9741_v1, %v9736_v17  ;;  %v3768_v18 = vpop.f32.mrf.mxu0 }
 0x355   : > { %v12953_v44 = vmax.f32 %v16466_v13, %v2794_v4  ;;  %v2878_v11 = vmax.f32 %v16467_v41, %v2793_v3  ;;  %v2879_v49 = vmax.f32 %v16468_v22, %v2825_v29  ;;  %v3465_v31 = vrot.slane %v3389_v54, 6  ;;  %v3857_v41 = vpop.f32.mrf.mxu1 }
 0x356   : > { %v12961_v47 = vmax.f32 %v16469_v30, %v2826_v2 }
 0x357   : > { %v16155_v56 = vrot.slane %v12953_v44, 1  ;;  %v2942_v10 = vrot.slane %v2878_v11, 1  ;;  %v2943_v17 = vrot.slane %v2879_v49, 1  ;;  %v3525_v28 = vsel %vm3495_vm0, %v3464_v7, %v3465_v31  ;;  %v3301_v46 = vpop.f32.mrf.mxu2 }
 0x358   : > { %v16154_v1 = vrot.slane %v12961_v47, 1  ;;  %v3767_v3 = vadd.f32 %v3766_v37, %v3525_v28 }
 0x359   : > { %v2982_v32 = vsel %vm2218_vm3, %v2942_v10, %v16155_v56  ;;  %v2984_v36 = vsel %vm2218_vm3, %v2940_v43, %v2942_v10  ;;  %v2985_v54 = vsel %vm2218_vm3, %v2941_v16, %v2943_v17  ;;  %v3390_v2 = vpop.f32.mrf.mxu3  ;;  %v9744_v10 = vpop.permute.xlu2 %9743 }
 0x35a   : > { %v3068_v4 = vmax.f32 %v12903_v63, %v2984_v36  ;;  %v3070_v29 = vmax.f32 %v2878_v11, %v2982_v32  ;;  %v2983_v37 = vsel %vm2218_vm3, %v2943_v17, %v16154_v1  ;;  %v3069_v7 = vmax.f32 %v12911_v50, %v2985_v54 }
 0x35b   : > { %v12981_v13 = vadd.f32 %v3855_v25, %v3767_v3  ;;  %v3391_v22 = vadd.f32 %v3390_v2, %v3301_v46  ;;  %v3071_v43 = vmax.f32 %v2879_v49, %v2983_v37  ;;  %v9746_v63 = vunpack.i.h.bf16 %v9744_v10  ;;  %v16473_v37 = vld [vmem:[#allocation66_spill] sm:$0xff] }
 0x35c   : > { %v12983_v30 = vpack.c.bf16 %v3070_v29, %v3068_v4  ;;  %v9745_v17 = vunpack.i.l.bf16 %v9744_v10  ;;  %v3771_v46 = vpop.f32.mrf.mxu0  ;;  %v9754_v29 = vpop.permute.xlu1 %9753 }
 0x35d   : > { %16470 = vst [vmem:[#allocation67_spill] sm:$0xff] %v12981_v13  ;;  %v3466_v16 = vrot.slane %v3391_v22, 6  ;;  %v12985_v28 = vpack.c.bf16 %v3071_v43, %v3069_v7  ;;  %v16474_v7 = vmax.f32 %v16473_v37, 0.0  ;;  %v16475_v43 = vmax.f32 %v12513_v39, 0.0 }
 0x35e   : > { %16471 = vst [vmem:[#allocation40_spill] sm:$0xff] %v12983_v30  ;;  %v9756_v37 = vunpack.i.h.bf16 %v9754_v29 }
 0x35f   : > { %16472 = vst [vmem:[#allocation34_spill] sm:$0xff] %v12985_v28  ;;  %v3524_v11 = vsel %vm3495_vm0, %v3465_v31, %v3466_v16  ;;  %3343 = vmatmul.bf16.gmra.mxu2 %v12983_v30  ;;  %3810 = vmatmul.bf16.gmra.mxu0 %v12983_v30 }
 0x360   : > { %v3304_v50 = vpop.f32.mrf.mxu2  ;;  %v9749_v25 = vpop.permute.xlu0 %9748  ;;  %v3769_v3 = vadd.f32 %v3768_v18, %v3524_v11  ;;  %3432 = vmatmul.bf16.gmra.mxu3 %v12985_v28  ;;  %3899 = vmatmul.bf16.gmra.mxu1 %v12985_v28  ;;  %v16476_v11 = vld [vmem:[#allocation33_spill] sm:$0xff] }
 0x361   : > { %v9751_v49 = vunpack.i.h.bf16 %v9749_v25  ;;  %v9750_v32 = vunpack.i.l.bf16 %v9749_v25  ;;  %v16477_v25 = vmax.f32 %v16476_v11, 0.0  ;;  %v9759_v20 = vpop.permute.xlu2 %9758 }
 0x362   : > { %v3393_v36 = vpop.f32.mrf.mxu3  ;;  %v9761_v11 = vunpack.i.h.bf16 %v9759_v20 }
 0x363   : > { %v2796_v54 = vsel %vm2771_vm13, %v9746_v63, %v9751_v49  ;;  %v2828_v31 = vsel %vm2771_vm13, %v9751_v49, %v9746_v63  ;;  %v2795_v4 = vsel %vm2771_vm13, %v9745_v17, %v9750_v32  ;;  %v2827_v18 = vsel %vm2771_vm13, %v9750_v32, %v9745_v17  ;;  %v16478_v63 = vld [vmem:[#allocation35_spill] sm:$0xff]  ;;  %v3860_v17 = vpop.f32.mrf.mxu1 }
 0x364   : > { %v3394_v2 = vadd.f32 %v3393_v36, %v3304_v50  ;;  %v13003_v22 = vmax.f32 %v16474_v7, %v2796_v54  ;;  %v13007_v10 = vmax.f32 %v16475_v43, %v2828_v31  ;;  %v2882_v1 = vmax.f32 %v16477_v25, %v2795_v4  ;;  %v3773_v28 = vpop.f32.mrf.mxu0 }
 0x365   : > { %vm3532_vm5 = vcmp.ge.s32.totalorder %v16478_v63, 2  ;;  %v16479_v49 = vmax.f32 %v12498_v58, 0.0  ;;  %v13016_v31 = vadd.f32 %v3857_v41, %v3769_v3  ;;  %v9755_v7 = vunpack.i.l.bf16 %v9754_v29 }
 0x366   : > { %v3467_v32 = vrot.slane %v3394_v2, 6  ;;  %v2948_v50 = vrot.slane %v13003_v22, 1  ;;  %v2949_v36 = vrot.slane %v13007_v10, 1  ;;  %v2946_v54 = vrot.slane %v2882_v1, 1 }
 0x367   : > { %v2883_v56 = vmax.f32 %v16479_v49, %v2827_v18  ;;  %16480 = vst [vmem:[#allocation36_spill] sm:$0xff] %v13016_v31  ;;  %v16481_v18 = vrot.slane %v12953_v44, 1  ;;  %v9760_v25 = vunpack.i.l.bf16 %v9759_v20  ;;  %v16482_v31 = vrot.slane %v12961_v47, 1 }
 0x368   : > { %v3523_v4 = vsel %vm3495_vm0, %v3466_v16, %v3467_v32  ;;  %v3306_v43 = vpop.f32.mrf.mxu2  ;;  %v2978_v58 = vsel %vm2218_vm3, %v2946_v54, %v2948_v50 }
 0x369   : > { %v2947_v39 = vrot.slane %v2883_v56, 1  ;;  %v2980_v2 = vsel %vm2218_vm3, %v16481_v18, %v2946_v54  ;;  %v3628_v49 = vsel %vm3532_vm5, %v3523_v4, 0.0  ;;  %v3074_v29 = vmax.f32 %v2882_v1, %v2978_v58 }
 0x36a   : > { %v3072_v41 = vmax.f32 %v12953_v44, %v2980_v2  ;;  %v3772_v3 = vadd.f32 %v3771_v46, %v3628_v49  ;;  %v3395_v30 = vpop.f32.mrf.mxu3  ;;  %v2798_v1 = vsel %vm2771_vm13, %v9756_v37, %v9761_v11  ;;  %v2797_v46 = vsel %vm2771_vm13, %v9755_v7, %v9760_v25 }
 0x36b   : > { %v2979_v16 = vsel %vm2218_vm3, %v2947_v39, %v2949_v36  ;;  %v2981_v13 = vsel %vm2218_vm3, %v16482_v31, %v2947_v39  ;;  %v3396_v4 = vadd.f32 %v3395_v30, %v3306_v43  ;;  %v2830_v39 = vsel %vm2771_vm13, %v9761_v11, %v9756_v37  ;;  %v16484_v37 = vld [vmem:[#allocation51_spill] sm:$0xff] }
 0x36c   : > { %v3073_v54 = vmax.f32 %v12961_v47, %v2981_v13  ;;  %v3075_v20 = vmax.f32 %v2883_v56, %v2979_v16  ;;  %v13036_v18 = vadd.f32 %v3860_v17, %v3772_v3  ;;  %v13038_v63 = vpack.c.bf16 %v3074_v29, %v3072_v41  ;;  %v3862_v56 = vpop.f32.mrf.mxu1  ;;  %v3776_v29 = vpop.f32.mrf.mxu0 }
 0x36d   : > { %v3468_v58 = vrot.slane %v3396_v4, 6  ;;  %v2829_v47 = vsel %vm2771_vm13, %v9760_v25, %v9755_v7  ;;  %v16483_v17 = vmax.f32 %v12398_v8, 0.0  ;;  %v16485_v7 = vmax.f32 %v16484_v37, 0.0  ;;  %v9764_v37 = vpop.permute.xlu0 %9763 }
 0x36e   : > { %v13040_v44 = vpack.c.bf16 %v3075_v20, %v3073_v54  ;;  %v16486_v11 = vmax.f32 %v12625_v14, 0.0  ;;  %v16487_v25 = vmax.f32 %v12613_v24, 0.0 }
 0x36f   : > { %v3522_v13 = vsel %vm3495_vm0, %v3467_v32, %v3468_v58  ;;  %3348 = vmatmul.bf16.gmra.mxu2 %v13038_v63  ;;  %3815 = vmatmul.bf16.gmra.mxu0 %v13038_v63  ;;  %v13056_v31 = vmax.f32 %v16483_v17, %v2798_v1  ;;  %v2886_v2 = vmax.f32 %v16485_v7, %v2797_v46 }
 0x370   : > { %v3309_v30 = vpop.f32.mrf.mxu2  ;;  %v3774_v43 = vadd.f32 %v3773_v28, %v3522_v13  ;;  %3437 = vmatmul.bf16.gmra.mxu3 %v13040_v44  ;;  %3904 = vmatmul.bf16.gmra.mxu1 %v13040_v44  ;;  %v13064_v32 = vmax.f32 %v16486_v11, %v2830_v39  ;;  %v2887_v49 = vmax.f32 %v16487_v25, %v2829_v47 }
 0x371   : > { %v2952_v28 = vrot.slane %v13056_v31, 1  ;;  %v2950_v16 = vrot.slane %v2886_v2, 1 }
 0x372   : > { %v3398_v41 = vpop.f32.mrf.mxu3  ;;  %v13068_v3 = vadd.f32 %v3862_v56, %v3774_v43  ;;  %v2953_v54 = vrot.slane %v13064_v32, 1  ;;  %v2951_v4 = vrot.slane %v2887_v49, 1 }
 0x373   : > { %v3399_v8 = vadd.f32 %v3398_v41, %v3309_v30  ;;  %v2976_v14 = vsel %vm2218_vm3, %v2948_v50, %v2950_v16  ;;  %v2974_v47 = vsel %vm2218_vm3, %v2950_v16, %v2952_v28 }
 0x374   : > { %v2977_v46 = vsel %vm2218_vm3, %v2949_v36, %v2951_v4  ;;  %v3865_v56 = vpop.f32.mrf.mxu1  ;;  %v3076_v13 = vmax.f32 %v13003_v22, %v2976_v14  ;;  %v2975_v50 = vsel %vm2218_vm3, %v2951_v4, %v2953_v54  ;;  %v3078_v43 = vmax.f32 %v2886_v2, %v2974_v47  ;;  %v3778_v41 = vpop.f32.mrf.mxu0 }
 0x375   : > { %v3469_v20 = vrot.slane %v3399_v8, 6  ;;  %v3077_v17 = vmax.f32 %v13007_v10, %v2977_v46  ;;  %v3079_v7 = vmax.f32 %v2887_v49, %v2975_v50  ;;  %v9766_v22 = vunpack.i.h.bf16 %v9764_v37 }
 0x376   : > { %v13090_v25 = vpack.c.bf16 %v3078_v43, %v3076_v13  ;;  %v9765_v4 = vunpack.i.l.bf16 %v9764_v37  ;;  %v16488_v50 = vmax.f32 %v12533_v53, 0.0  ;;  %v16490_v37 = vmax.f32 %v12540_v5, 0.0 }
 0x377   : > { %v3521_v1 = vsel %vm3495_vm0, %v3468_v58, %v3469_v20  ;;  %v13092_v8 = vpack.c.bf16 %v3079_v7, %v3077_v17  ;;  %v16489_v17 = vmax.f32 %v12686_v45, 0.0 }
 0x378   : > { %v3311_v24 = vpop.f32.mrf.mxu2  ;;  %v3777_v39 = vadd.f32 %v3776_v29, %v3521_v1  ;;  %v9474_v1 = vld [vmem:[#allocation7 + $0x138] sm:$0xff] }
 0x379   : > { %4059 = vmatpush.bf16.msrb.mxu2 %v9474_v1 }
 0x37a   : > { %v13087_v30 = vadd.f32 %v3865_v56, %v3777_v39  ;;  %v3400_v58 = vpop.f32.mrf.mxu3 }
 0x37b   : > { %v3401_v36 = vadd.f32 %v3400_v58, %v3311_v24  ;;  %v9482_v24 = vld [vmem:[#allocation7 + $0x178] sm:$0xff] }
 0x37c   : > { %v3867_v13 = vpop.f32.mrf.mxu1  ;;  %4148 = vmatpush.bf16.msrb.mxu3 %v9482_v24 }
 0x37d   : > { %v3470_v11 = vrot.slane %v3401_v36, 6 }
 0x37f   : > { %v3520_v29 = vsel %vm3495_vm0, %v3469_v20, %v3470_v11  ;;  %3353 = vmatmul.bf16.gmra.mxu2 %v13090_v25  ;;  %3820 = vmatmul.bf16.gmra.mxu0 %v13090_v25 }
 0x380   : > { %v3314_v10 = vpop.f32.mrf.mxu2  ;;  %v3779_v2 = vadd.f32 %v3778_v41, %v3520_v29  ;;  %3442 = vmatmul.bf16.gmra.mxu3 %v13092_v8  ;;  %3909 = vmatmul.bf16.gmra.mxu1 %v13092_v8  ;;  %v16491_v41 = vmax.f32 %v12678_v57, 0.0 }
 0x382   : > { %v9769_v16 = vpop.permute.xlu1 %9768  ;;  %v3403_v56 = vpop.f32.mrf.mxu3 }
 0x383   : > { %v9771_v49 = vunpack.i.h.bf16 %v9769_v16  ;;  %v9770_v14 = vunpack.i.l.bf16 %v9769_v16  ;;  %v3404_v43 = vadd.f32 %v3403_v56, %v3314_v10 }
 0x385   : > { %v2799_v46 = vsel %vm2771_vm13, %v9765_v4, %v9770_v14  ;;  %v2800_v20 = vsel %vm2771_vm13, %v9766_v22, %v9771_v49  ;;  %v2831_v39 = vsel %vm2771_vm13, %v9770_v14, %v9765_v4  ;;  %v2832_v47 = vsel %vm2771_vm13, %v9771_v49, %v9766_v22 }
 0x386   : > { %v13110_v58 = vmax.f32 %v16488_v50, %v2800_v20  ;;  %v13114_v36 = vmax.f32 %v16489_v17, %v2832_v47  ;;  %v2890_v7 = vmax.f32 %v16490_v37, %v2799_v46  ;;  %v2891_v29 = vmax.f32 %v16491_v41, %v2831_v39  ;;  %v9774_v50 = vpop.permute.xlu2 %9773  ;;  %v9480_v37 = vld [vmem:[#allocation7 + $0x168] sm:$0xff] }
 0x387   : > { %v13120_v22 = vadd.f32 %v3867_v13, %v3779_v2  ;;  %v3471_v4 = vrot.slane %v3404_v43, 6  ;;  %v9472_v43 = vld [vmem:[#allocation7 + $0x128] sm:$0xff]  ;;  %v9776_v41 = vunpack.i.h.bf16 %v9774_v50 }
 0x388   : > { %v2956_v16 = vrot.slane %v13110_v58, 1  ;;  %v2957_v53 = vrot.slane %v13114_v36, 1  ;;  %v2954_v49 = vrot.slane %v2890_v7, 1  ;;  %v2955_v14 = vrot.slane %v2891_v29, 1  ;;  %v3316_v10 = vpop.f32.mrf.mxu2 }
 0x389   : > { %v13126_v45 = vsel %vm3495_vm0, %v3470_v11, %v3471_v4 }
 0x38a   : > { %v2970_v5 = vsel %vm2218_vm3, %v2954_v49, %v2956_v16  ;;  %v2972_v57 = vsel %vm2218_vm3, %v2952_v28, %v2954_v49  ;;  %v2971_v11 = vsel %vm2218_vm3, %v2955_v14, %v2957_v53  ;;  %v2973_v24 = vsel %vm2218_vm3, %v2953_v54, %v2955_v14  ;;  %v3405_v20 = vpop.f32.mrf.mxu3  ;;  %v9473_v28 = vld [vmem:[#allocation7 + $0x130] sm:$0xff] }
 0x38b   : > { %v3080_v2 = vmax.f32 %v13056_v31, %v2972_v57  ;;  %v3082_v1 = vmax.f32 %v2890_v7, %v2970_v5  ;;  %v3083_v46 = vmax.f32 %v2891_v29, %v2971_v11  ;;  %v3081_v39 = vmax.f32 %v13064_v32, %v2973_v24  ;;  %v9481_v31 = vld [vmem:[#allocation7 + $0x170] sm:$0xff]  ;;  %4060 = vmatpush.bf16.msrb.mxu2 %v9473_v28  ;;  %v9479_v5 = vld [vmem:[#allocation7 + $0x160] sm:$0xff] }
 0x38c   : > { %v3406_v47 = vadd.f32 %v3405_v20, %v3316_v10  ;;  %4149 = vmatpush.bf16.msrb.mxu3 %v9481_v31  ;;  %v9775_v29 = vunpack.i.l.bf16 %v9774_v50  ;;  %v9471_v10 = vld [vmem:[#allocation7 + $0x120] sm:$0xff]  ;;  %v16492_v24 = vmax.f32 %v12632_v38, 0.0  ;;  %v16493_v20 = vmax.f32 %v12795_v60, 0.0  ;;  %v9470_v38 = vld [vmem:[#allocation7 + $0x118] sm:$0xff] }
 0x38d   : > { %v13146_v56 = vpack.c.bf16 %v3082_v1, %v3080_v2  ;;  %v13148_v13 = vpack.c.bf16 %v3083_v46, %v3081_v39  ;;  %v16494_v31 = vmax.f32 %v12651_v51, 0.0 }
 0x38e   : > { %v3472_v17 = vrot.slane %v3406_v47, 6 }
 0x38f   : > { %3358 = vmatmul.bf16.gmra.mxu2 %v13146_v56  ;;  %3825 = vmatmul.bf16.gmra.mxu0 %v13146_v56 }
 0x390   : > { %v13152_v54 = vsel %vm3495_vm0, %v3471_v4, %v3472_v17  ;;  %v9779_v32 = vpop.permute.xlu0 %9778  ;;  %v3319_v7 = vpop.f32.mrf.mxu2  ;;  %3447 = vmatmul.bf16.gmra.mxu3 %v13148_v13  ;;  %3914 = vmatmul.bf16.gmra.mxu1 %v13148_v13 }
 0x391   : > { %v9781_v49 = vunpack.i.h.bf16 %v9779_v32  ;;  %v9780_v14 = vunpack.i.l.bf16 %v9779_v32  ;;  %4061 = vmatpush.bf16.msrb.mxu2 %v9472_v43  ;;  %4150 = vmatpush.bf16.msrb.mxu3 %v9480_v37  ;;  %v9784_v28 = vpop.permute.xlu1 %9783  ;;  %v16495_v43 = vmax.f32 %v12782_v52, 0.0 }
 0x392   : > { %v3408_v11 = vpop.f32.mrf.mxu3  ;;  %v9786_v51 = vunpack.i.h.bf16 %v9784_v28 }
 0x393   : > { %v2802_v4 = vsel %vm2771_vm13, %v9776_v41, %v9781_v49  ;;  %v2834_v57 = vsel %vm2771_vm13, %v9781_v49, %v9776_v41  ;;  %v2801_v2 = vsel %vm2771_vm13, %v9775_v29, %v9780_v14  ;;  %v2833_v1 = vsel %vm2771_vm13, %v9780_v14, %v9775_v29  ;;  %v9478_v14 = vld [vmem:[#allocation7 + $0x158] sm:$0xff] }
 0x394   : > { %v13168_v46 = vmax.f32 %v16492_v24, %v2802_v4  ;;  %v13172_v39 = vmax.f32 %v16493_v20, %v2834_v57  ;;  %v3409_v47 = vadd.f32 %v3408_v11, %v3319_v7  ;;  %v2894_v50 = vmax.f32 %v16494_v31, %v2801_v2 }
 0x395   : > { %v2895_v37 = vmax.f32 %v16495_v43, %v2833_v1  ;;  %4062 = vmatpush.bf16.msrb.mxu2 %v9471_v10  ;;  %4151 = vmatpush.bf16.msrb.mxu3 %v9479_v5  ;;  %v9785_v4 = vunpack.i.l.bf16 %v9784_v28  ;;  %v9477_v28 = vld [vmem:[#allocation7 + $0x150] sm:$0xff] }
 0x396   : > { %v2960_v32 = vrot.slane %v13168_v46, 1  ;;  %v2961_v41 = vrot.slane %v13172_v39, 1  ;;  %v3473_v29 = vrot.slane %v3409_v47, 6  ;;  %v2958_v49 = vrot.slane %v2894_v50, 1  ;;  %v9469_v47 = vld [vmem:[#allocation7 + $0x110] sm:$0xff] }
 0x397   : > { %v2959_v60 = vrot.slane %v2895_v37, 1 }
 0x398   : > { %v13182_v7 = vsel %vm3495_vm0, %v3472_v17, %v3473_v29  ;;  %v3321_v57 = vpop.f32.mrf.mxu2  ;;  %v2966_v52 = vsel %vm2218_vm3, %v2958_v49, %v2960_v32  ;;  %v2968_v10 = vsel %vm2218_vm3, %v2956_v16, %v2958_v49  ;;  %v2803_v16 = vsel %vm2771_vm13, %v9785_v4, %v9786_v51  ;;  %v9476_v49 = vld [vmem:[#allocation7 + $0x148] sm:$0xff] }
 0x399   : > { %v2967_v5 = vsel %vm2218_vm3, %v2959_v60, %v2961_v41  ;;  %v3084_v2 = vmax.f32 %v13110_v58, %v2968_v10  ;;  %v3086_v1 = vmax.f32 %v2894_v50, %v2966_v52  ;;  %v2969_v17 = vsel %vm2218_vm3, %v2957_v53, %v2959_v60  ;;  %4063 = vmatpush.bf16.msrb.mxu2 %v9470_v38  ;;  %v9475_v52 = vld [vmem:[#allocation7 + $0x140] sm:$0xff] }
 0x39a   : > { %v3087_v11 = vmax.f32 %v2895_v37, %v2967_v5  ;;  %v3410_v24 = vpop.f32.mrf.mxu3  ;;  %v3085_v20 = vmax.f32 %v13114_v36, %v2969_v17  ;;  %4152 = vmatpush.bf16.msrb.mxu3 %v9478_v14  ;;  %v2835_v58 = vsel %vm2771_vm13, %v9786_v51, %v9785_v4  ;;  %v9468_v37 = vld [vmem:[#allocation7 + $0x108] sm:$0xff]  ;;  %v16496_v38 = vmax.f32 %v12787_v15, 0.0  ;;  %v9467_v15 = vld [vmem:[#allocation7 + $0x100] sm:$0xff] }
 0x39b   : > { %v3411_v31 = vadd.f32 %v3410_v24, %v3321_v57  ;;  %v13200_v43 = vpack.c.bf16 %v3086_v1, %v3084_v2  ;;  %v16497_v14 = vmax.f32 %v12798_v6, 0.0  ;;  %v16498_v1 = vld [vmem:[#allocation74_spill] sm:$0xff] }
 0x39c   : > { %v13204_v50 = vpack.c.bf16 %v3087_v11, %v3085_v20  ;;  %v2898_v36 = vmax.f32 %v16496_v38, %v2803_v16  ;;  %v16499_v6 = vrot.slane %v16498_v1, 1 }
 0x39d   : > { %v3474_v53 = vrot.slane %v3411_v31, 6  ;;  %4064 = vmatpush.bf16.msrb.mxu2 %v9469_v47  ;;  %v2899_v51 = vmax.f32 %v16497_v14, %v2835_v58  ;;  %v16500_v47 = vld [vmem:[#allocation75_spill] sm:$0xff] }
 0x39e   : > { %4153 = vmatpush.bf16.msrb.mxu3 %v9477_v28  ;;  %v2962_v57 = vrot.slane %v2898_v36, 1  ;;  %v16501_v28 = vrot.slane %v16500_v47, 1 }
 0x39f   : > { %v13210_v60 = vsel %vm3495_vm0, %v3473_v29, %v3474_v53  ;;  %3363 = vmatmul.bf16.gmra.mxu2 %v13200_v43  ;;  %3830 = vmatmul.bf16.gmra.mxu0 %v13200_v43  ;;  %v2963_v10 = vrot.slane %v2899_v51, 1 }
 0x3a0   : > { %v3324_v12 = vpop.f32.mrf.mxu2  ;;  %3452 = vmatmul.bf16.gmra.mxu3 %v13204_v50  ;;  %3919 = vmatmul.bf16.gmra.mxu1 %v13204_v50  ;;  %v2964_v2 = vsel %vm2218_vm3, %v2960_v32, %v2962_v57  ;;  %v3026_v17 = vsel %vm2218_vm3, %v2962_v57, %v16499_v6 }
 0x3a1   : > { %4065 = vmatpush.bf16.msrb.mxu2 %v9468_v37  ;;  %v2965_v20 = vsel %vm2218_vm3, %v2961_v41, %v2963_v10  ;;  %v3027_v16 = vsel %vm2218_vm3, %v2963_v10, %v16501_v28  ;;  %v3088_v32 = vmax.f32 %v13168_v46, %v2964_v2  ;;  %v3090_v31 = vmax.f32 %v2898_v36, %v3026_v17  ;;  %v16503_v2 = vld [vmem:[#allocation18_spill] sm:$0xff] }
 0x3a2   : > { %v3413_v4 = vpop.f32.mrf.mxu3  ;;  %4154 = vmatpush.bf16.msrb.mxu3 %v9476_v49  ;;  %v3089_v37 = vmax.f32 %v13172_v39, %v2965_v20  ;;  %v3091_v38 = vmax.f32 %v2899_v51, %v3027_v16 }
 0x3a3   : > { %v3414_v29 = vadd.f32 %v3413_v4, %v3324_v12 }
 0x3a4   : > { %v13238_v14 = vpack.c.bf16 %v3091_v38, %v3089_v37  ;;  %v16505_v37 = vld [vmem:[#allocation45_spill] sm:$0xff] }
 0x3a5   : > { %v3475_v5 = vrot.slane %v3414_v29, 6  ;;  %4066 = vmatpush.bf16.msrb.mxu2 %v9467_v15 }
 0x3a6   : > { %4155 = vmatpush.bf16.msrb.mxu3 %v9475_v52 }
 0x3a7   : > { %v13226_v11 = vsel %vm3495_vm0, %v3474_v53, %v3475_v5  ;;  %v13236_v53 = vpack.c.bf16 %v3090_v31, %v3088_v32  ;;  %v16504_v31 = vld [vmem:[#allocation31_spill] sm:$0xff] }
 0x3a8   : > { %v3326_v24 = vpop.f32.mrf.mxu2 }
 0x3aa   : > { %v3415_v58 = vpop.f32.mrf.mxu3 }
 0x3ab   : > { %v3416_v49 = vadd.f32 %v3415_v58, %v3326_v24 }
 0x3ad   : > { %v3476_v12 = vrot.slane %v3416_v49, 6 }
 0x3af   : > { %v13242_v41 = vsel %vm3495_vm0, %v3475_v5, %v3476_v12  ;;  %3368 = vmatmul.bf16.gmra.mxu2 %v13236_v53  ;;  %3835 = vmatmul.bf16.gmra.mxu0 %v13236_v53  ;;  %v16502_v5 = vld [vmem:[#allocation25_spill] sm:$0xff] }
 0x3b0   : > { %v3329_v46 = vpop.f32.mrf.mxu2  ;;  %3457 = vmatmul.bf16.gmra.mxu3 %v13238_v14  ;;  %3924 = vmatmul.bf16.gmra.mxu1 %v13238_v14 }
 0x3b2   : > { %v3418_v39 = vpop.f32.mrf.mxu3 }
 0x3b3   : > { %v3419_v36 = vadd.f32 %v3418_v39, %v3329_v46 }
 0x3b5   : > { %v3477_v51 = vrot.slane %v3419_v36, 6 }
 0x3b7   : > { %v13250_v15 = vsel %vm3495_vm0, %v3476_v12, %v3477_v51 }
 0x3b8   : > { %v3331_v4 = vpop.f32.mrf.mxu2 }
 0x3ba   : > { %v3420_v57 = vpop.f32.mrf.mxu3 }
 0x3bb   : > { %v3421_v52 = vadd.f32 %v3420_v57, %v3331_v4 }
 0x3bd   : > { %v3478_v29 = vrot.slane %v3421_v52, 6  ;;  %v16506_v52 = vld [vmem:[#allocation47_spill] sm:$0xff] }
 0x3bf   : > { %v13254_v10 = vsel %vm3495_vm0, %v3477_v51, %v3478_v29  ;;  %4067 = vmatmul.bf16.vlgmr.msrb.gmra.mxu2 %v16502_v5  ;;  %v16507_v5 = vld [vmem:[#allocation46_spill] sm:$0xff] }
 0x3c0   : > { %4156 = vmatmul.bf16.vlgmr.msrb.gmra.mxu3 %v16503_v2 }
 0x3c2   : > { %v3334_v1 = vpop.f32.mrf.mxu2 }
 0x3c3   : > { %v3423_v6 = vpop.f32.mrf.mxu3 }
 0x3c4   : > { %v3424_v17 = vadd.f32 %v3423_v6, %v3334_v1 }
 0x3c6   : > { %v3479_v24 = vrot.slane %v3424_v17, 6 }
 0x3c8   : > { %v13260_v20 = vsel %vm3495_vm0, %v3478_v29, %v3479_v24 }
 0x3ca   : > { %v3336_v47 = vpop.f32.mrf.mxu2 }
 0x3cb   : > { %v3425_v28 = vpop.f32.mrf.mxu3 }
 0x3cc   : > { %v3426_v16 = vadd.f32 %v3425_v28, %v3336_v47 }
 0x3ce   : > { %v3480_v32 = vrot.slane %v3426_v16, 6 }
 0x3cf   : > { %4072 = vmatmul.bf16.gmra.mxu2 %v16504_v31  ;;  %v16508_v31 = vld [vmem:[#allocation49_spill] sm:$0xff] }
 0x3d0   : > { %v13265_v58 = vsel %vm3495_vm0, %v3479_v24, %v3480_v32  ;;  %4161 = vmatmul.bf16.gmra.mxu3 %v16505_v37 }
 0x3d2   : > { %v3339_v38 = vpop.f32.mrf.mxu2 }
 0x3d3   : > { %v3428_v49 = vpop.f32.mrf.mxu3 }
 0x3d4   : > { %v3429_v12 = vadd.f32 %v3428_v49, %v3339_v38  ;;  %v16509_v38 = vld [vmem:[#allocation50_spill] sm:$0xff] }
 0x3d6   : > { %v3481_v46 = vrot.slane %v3429_v12, 6 }
 0x3d8   : > { %v13270_v39 = vsel %vm3495_vm0, %v3480_v32, %v3481_v46 }
 0x3da   : > { %v3341_v36 = vpop.f32.mrf.mxu2 }
 0x3db   : > { %v3430_v51 = vpop.f32.mrf.mxu3 }
 0x3dc   : > { %v3431_v4 = vadd.f32 %v3430_v51, %v3341_v36 }
 0x3de   : > { %v3482_v57 = vrot.slane %v3431_v4, 6 }
 0x3df   : > { %4077 = vmatmul.bf16.gmra.mxu2 %v16506_v52 }
 0x3e0   : > { %v13275_v29 = vsel %vm3495_vm0, %v3481_v46, %v3482_v57  ;;  %4166 = vmatmul.bf16.gmra.mxu3 %v16507_v5 }
 0x3e2   : > { %v3344_v2 = vpop.f32.mrf.mxu2 }
 0x3e3   : > { %v3433_v1 = vpop.f32.mrf.mxu3 }
 0x3e4   : > { %v3434_v6 = vadd.f32 %v3433_v1, %v3344_v2 }
 0x3e6   : > { %v3483_v17 = vrot.slane %v3434_v6, 6 }
 0x3e8   : > { %v13280_v24 = vsel %vm3495_vm0, %v3482_v57, %v3483_v17 }
 0x3ea   : > { %v3346_v47 = vpop.f32.mrf.mxu2 }
 0x3eb   : > { %v3435_v28 = vpop.f32.mrf.mxu3 }
 0x3ec   : > { %v3436_v16 = vadd.f32 %v3435_v28, %v3346_v47 }
 0x3ee   : > { %v3484_v32 = vrot.slane %v3436_v16, 6 }
 0x3ef   : > { %4082 = vmatmul.bf16.gmra.mxu2 %v16508_v31 }
 0x3f0   : > { %v13285_v37 = vsel %vm3495_vm0, %v3483_v17, %v3484_v32  ;;  %4171 = vmatmul.bf16.gmra.mxu3 %v16509_v38 }
 0x3f2   : > { %v3349_v49 = vpop.f32.mrf.mxu2 }
 0x3f3   : > { %v3438_v12 = vpop.f32.mrf.mxu3 }
 0x3f4   : > { %v3439_v46 = vadd.f32 %v3438_v12, %v3349_v49 }
 0x3f6   : > { %v3485_v36 = vrot.slane %v3439_v46, 6 }
 0x3f8   : > { %v13290_v51 = vsel %vm3495_vm0, %v3484_v32, %v3485_v36 }
 0x3fa   : > { %v3351_v4 = vpop.f32.mrf.mxu2 }
 0x3fb   : > { %v3440_v57 = vpop.f32.mrf.mxu3 }
 0x3fc   : > { %v3441_v52 = vadd.f32 %v3440_v57, %v3351_v4 }
 0x3fe   : > { %v3486_v5 = vrot.slane %v3441_v52, 6 }
 0x3ff   : > { %4087 = vmatmul.bf16.gmra.mxu2 %v12617_v21 }
 0x400   : > { %v13295_v2 = vsel %vm3495_vm0, %v3485_v36, %v3486_v5  ;;  %4176 = vmatmul.bf16.gmra.mxu3 %v12636_v42 }
 0x402   : > { %v3354_v1 = vpop.f32.mrf.mxu2 }
 0x403   : > { %v3443_v6 = vpop.f32.mrf.mxu3 }
 0x404   : > { %v3444_v17 = vadd.f32 %v3443_v6, %v3354_v1 }
 0x406   : > { %v3487_v47 = vrot.slane %v3444_v17, 6 }
 0x408   : > { %v13300_v28 = vsel %vm3495_vm0, %v3486_v5, %v3487_v47 }
 0x40a   : > { %v3356_v16 = vpop.f32.mrf.mxu2 }
 0x40b   : > { %v3445_v32 = vpop.f32.mrf.mxu3 }
 0x40c   : > { %v3446_v31 = vadd.f32 %v3445_v32, %v3356_v16 }
 0x40e   : > { %v3488_v38 = vrot.slane %v3446_v31, 6 }
 0x40f   : > { %4092 = vmatmul.bf16.gmra.mxu2 %v12717_v48 }
 0x410   : > { %v13305_v21 = vsel %vm3495_vm0, %v3487_v47, %v3488_v38  ;;  %4181 = vmatmul.bf16.gmra.mxu3 %v12726_v35 }
 0x412   : > { %v3359_v42 = vpop.f32.mrf.mxu2 }
 0x413   : > { %v3448_v49 = vpop.f32.mrf.mxu3 }
 0x414   : > { %v3449_v12 = vadd.f32 %v3448_v49, %v3359_v42 }
 0x416   : > { %v3489_v46 = vrot.slane %v3449_v12, 6 }
 0x418   : > { %v13310_v36 = vsel %vm3495_vm0, %v3488_v38, %v3489_v46 }
 0x41a   : > { %v3361_v4 = vpop.f32.mrf.mxu2 }
 0x41b   : > { %v3450_v57 = vpop.f32.mrf.mxu3 }
 0x41c   : > { %v3451_v52 = vadd.f32 %v3450_v57, %v3361_v4 }
 0x41e   : > { %v3490_v5 = vrot.slane %v3451_v52, 6 }
 0x41f   : > { %4097 = vmatmul.bf16.gmra.mxu2 %v12807_v0 }
 0x420   : > { %v13315_v48 = vsel %vm3495_vm0, %v3489_v46, %v3490_v5  ;;  %4186 = vmatmul.bf16.gmra.mxu3 %v12819_v19 }
 0x422   : > { %v3364_v35 = vpop.f32.mrf.mxu2 }
 0x423   : > { %v3453_v1 = vpop.f32.mrf.mxu3 }
 0x424   : > { %v3454_v6 = vadd.f32 %v3453_v1, %v3364_v35  ;;  %v16512_v1 = vrot.slane %v12915_v59, 6 }
 0x426   : > { %v3491_v17 = vrot.slane %v3454_v6, 6 }
 0x428   : > { %v13320_v47 = vsel %vm3495_vm0, %v3490_v5, %v3491_v17 }
 0x42a   : > { %v3366_v16 = vpop.f32.mrf.mxu2 }
 0x42b   : > { %v3455_v32 = vpop.f32.mrf.mxu3 }
 0x42c   : > { %v3456_v31 = vadd.f32 %v3455_v32, %v3366_v16 }
 0x42e   : > { %v3492_v38 = vrot.slane %v3456_v31, 6 }
 0x42f   : > { %4102 = vmatmul.bf16.gmra.mxu2 %v12851_v26 }
 0x430   : > { %v13325_v0 = vsel %vm3495_vm0, %v3491_v17, %v3492_v38  ;;  %4191 = vmatmul.bf16.gmra.mxu3 %v12853_v34  ;;  %v16513_v17 = vld [vmem:[#allocation27_spill] sm:$0xff] }
 0x431   : > { %vm3528_vm3 = vcmp.ge.s32.totalorder %v16513_v17, 2 }
 0x432   : > { %v3369_v19 = vpop.f32.mrf.mxu2 }
 0x433   : > { %v3458_v42 = vpop.f32.mrf.mxu3 }
 0x434   : > { %v3459_v49 = vadd.f32 %v3458_v42, %v3369_v19 }
 0x436   : > { %v3493_v12 = vrot.slane %v3459_v49, 6 }
 0x438   : > { %v13330_v46 = vsel %vm3495_vm0, %v3492_v38, %v3493_v12 }
 0x439   : > { %16510 = vst [vmem:[#allocation52_spill] sm:$0xff] %v13330_v46 }
 0x43a   : > { %v3371_v4 = vpop.f32.mrf.mxu2 }
 0x43b   : > { %v3460_v57 = vpop.f32.mrf.mxu3 }
 0x43c   : > { %v3461_v52 = vadd.f32 %v3460_v57, %v3371_v4  ;;  %v13355_v57 = vpop.f32.mrf.mxu0 }
 0x43e   : > { %v3494_v5 = vrot.slane %v3461_v52, 6 }
 0x43f   : > { %4107 = vmatmul.bf16.gmra.mxu2 %v12891_v62 }
 0x440   : > { %v13335_v26 = vsel %vm3495_vm0, %v3493_v12, %v3494_v5  ;;  %4196 = vmatmul.bf16.gmra.mxu3 %v12897_v27  ;;  %v3527_v6 = vsel %vm3495_vm0, %v3494_v5, %v16512_v1 }
 0x441   : > { %16511 = vst [vmem:[#allocation54_spill] sm:$0xff] %v13335_v26  ;;  %v3624_v31 = vsel %vm3528_vm3, %v3527_v6, 0.0  ;;  %vm4940_vm3 = vcmp.lt.s32.totalorder %v11053_v55, 4 }
 0x442   : > { %v4068_v34 = vpop.f32.mrf.mxu2  ;;  %v3762_v42 = vadd.f32 %v12875_v9, %v3624_v31 }
 0x443   : > { %v4157_v35 = vpop.f32.mrf.mxu3 }
 0x444   : > { %v13343_v38 = vadd.f32 %v4157_v35, %v4068_v34  ;;  %v3851_v12 = vadd.f32 %v12889_v33, %v3762_v42  ;;  %v13375_v42 = vpop.f32.mrf.mxu0 }
 0x446   : > { %16514 = vst [vmem:[#allocation55_spill] sm:$0xff] %v13343_v38  ;;  %v16161_v27 = vrot.slane %v13343_v38, 2 }
 0x44a   : > { %v4070_v16 = vpop.f32.mrf.mxu2 }
 0x44b   : > { %v4159_v32 = vpop.f32.mrf.mxu3 }
 0x44c   : > { %v4160_v62 = vadd.f32 %v4159_v32, %v4070_v16 }
 0x44e   : > { %v4238_v19 = vrot.slane %v4160_v62, 2 }
 0x44f   : > { %4112 = vmatmul.bf16.gmra.mxu2 %v12929_v61  ;;  %v13360_v61 = vld [vmem:[%s15984_s4] ss:$0 sm:$0xff] }
 0x450   : > { %4201 = vmatmul.bf16.gmra.mxu3 %v12931_v23  ;;  %v4300_v59 = vsel %vm4269_vm6, %v16161_v27, %v4238_v19  ;;  %v13362_v23 = vpop.f32.mrf.mxu1  ;;  %v16518_v27 = vld [vmem:[#allocation39_spill] sm:$0xff] }
 0x451   : > { %v4430_v52 = vadd.f32 %v4300_v59, %v3851_v12  ;;  %v16516_v12 = vld [vmem:[#allocation34_spill] sm:$0xff]  ;;  %vm4305_vm7 = vcmp.lt.s32.totalorder %v16518_v27, 30 }
 0x452   : > { %v4073_v49 = vpop.f32.mrf.mxu2 }
 0x453   : > { %v4162_v4 = vpop.f32.mrf.mxu3  ;;  %v13368_v33 = vadd.f32 %v13360_v61, %v4430_v52 }
 0x454   : > { %v4163_v9 = vadd.f32 %v4162_v4, %v4073_v49  ;;  %v16515_v49 = vld [vmem:[#allocation40_spill] sm:$0xff]  ;;  %v16517_v4 = vld [vmem:[#allocation67_spill] sm:$0xff] }
 0x455   : > { %v16162_v31 = vmax.f32 %v13368_v33, 0.0 }
 0x456   : > { %v4239_v5 = vrot.slane %v4163_v9, 2 }
 0x458   : > { %v4299_v34 = vsel %vm4269_vm6, %v4238_v19, %v4239_v5  ;;  %v13387_v52 = vpop.f32.mrf.mxu1 }
 0x459   : > { %v4431_v35 = vadd.f32 %v4299_v34, %v12941_v40 }
 0x45a   : > { %v4075_v1 = vpop.f32.mrf.mxu2 }
 0x45b   : > { %v4164_v6 = vpop.f32.mrf.mxu3  ;;  %v13371_v16 = vadd.f32 %v13360_v61, %v4431_v35 }
 0x45c   : > { %v4165_v32 = vadd.f32 %v4164_v6, %v4075_v1 }
 0x45d   : > { %v16163_v62 = vmax.f32 %v13371_v16, 0.0 }
 0x45e   : > { %v4240_v59 = vrot.slane %v4165_v32, 2 }
 0x45f   : > { %4117 = vmatmul.bf16.gmra.mxu2 %v16515_v49  ;;  %v9787_v40 = vpack.i.bf16 %v16163_v62, %v16162_v31 }
 0x460   : > { %v4298_v19 = vsel %vm4269_vm6, %v4239_v5, %v4240_v59  ;;  %4206 = vmatmul.bf16.gmra.mxu3 %v16516_v12  ;;  %v13397_v5 = vpop.f32.mrf.mxu0 }
 0x461   : > { %9788 = vrot.lane.b32.xlu2 %v9787_v40, %s10743_s16  ;;  %v4432_v9 = vadd.f32 %v4298_v19, %v16517_v4 }
 0x462   : > { %v4078_v34 = vpop.f32.mrf.mxu2 }
 0x463   : > { %v4167_v35 = vpop.f32.mrf.mxu3  ;;  %v13390_v1 = vadd.f32 %v13360_v61, %v4432_v9  ;;  %v13401_v9 = vpop.f32.mrf.mxu1 }
 0x464   : > { %v4168_v6 = vadd.f32 %v4167_v35, %v4078_v34  ;;  %v16519_v35 = vld [vmem:[#allocation36_spill] sm:$0xff] }
 0x465   : > { %v16164_v32 = vmax.f32 %v13390_v1, 0.0 }
 0x466   : > { %v4241_v49 = vrot.slane %v4168_v6, 2 }
 0x467   : > { %4534 = vrot.lane.b32.xlu0 %v16164_v32, %s10743_s16 }
 0x468   : > { %v4297_v40 = vsel %vm4269_vm6, %v4240_v59, %v4241_v49 }
 0x469   : > { %v4401_v19 = vsel %vm4305_vm7, %v4297_v40, 0.0  ;;  %v13412_v40 = vpop.f32.mrf.mxu0 }
 0x46a   : > { %v4080_v12 = vpop.f32.mrf.mxu2  ;;  %v4433_v31 = vadd.f32 %v4401_v19, %v16519_v35 }
 0x46b   : > { %v4169_v4 = vpop.f32.mrf.mxu3 }
 0x46c   : > { %v4170_v34 = vadd.f32 %v4169_v4, %v4080_v12  ;;  %v13410_v59 = vadd.f32 %v13360_v61, %v4433_v31 }
 0x46e   : > { %v4242_v6 = vrot.slane %v4170_v34, 2 }
 0x46f   : > { %4122 = vmatmul.bf16.gmra.mxu2 %v13038_v63  ;;  %v16165_v63 = vmax.f32 %v13410_v59, 0.0 }
 0x470   : > { %v4296_v62 = vsel %vm4269_vm6, %v4241_v49, %v4242_v6  ;;  %4211 = vmatmul.bf16.gmra.mxu3 %v13040_v44  ;;  %v13419_v49 = vpop.f32.mrf.mxu1 }
 0x471   : > { %v4434_v32 = vadd.f32 %v4296_v62, %v13036_v18 }
 0x472   : > { %v4083_v17 = vpop.f32.mrf.mxu2 }
 0x473   : > { %v4172_v27 = vpop.f32.mrf.mxu3  ;;  %v13415_v12 = vadd.f32 %v13360_v61, %v4434_v32 }
 0x474   : > { %v4173_v19 = vadd.f32 %v4172_v27, %v4083_v17  ;;  %v13428_v17 = vpop.f32.mrf.mxu0 }
 0x475   : > { %v16166_v4 = vmax.f32 %v13415_v12, 0.0 }
 0x476   : > { %v4243_v44 = vrot.slane %v4173_v19, 2 }
 0x477   : > { %v9792_v18 = vpack.i.bf16 %v16166_v4, %v16165_v63 }
 0x478   : > { %v4295_v31 = vsel %vm4269_vm6, %v4242_v6, %v4243_v44  ;;  %v13432_v19 = vpop.f32.mrf.mxu1 }
 0x479   : > { %9793 = vrot.lane.b32.xlu1 %v9792_v18, %s10743_s16  ;;  %v4435_v34 = vadd.f32 %v4295_v31, %v13068_v3  ;;  %v16520_v31 = vld [vmem:[#allocation29_spill] sm:$0xff] }
 0x47a   : > { %v4085_v62 = vpop.f32.mrf.mxu2  ;;  %vm3536_vm8 = vcmp.ge.s32.totalorder %v16520_v31, 2 }
 0x47b   : > { %v4174_v32 = vpop.f32.mrf.mxu3  ;;  %v13439_v6 = vadd.f32 %v13360_v61, %v4435_v34 }
 0x47c   : > { %v4175_v27 = vadd.f32 %v4174_v32, %v4085_v62 }
 0x47e   : > { %v4244_v35 = vrot.slane %v4175_v27, 2  ;;  %v16521_v27 = vld [vmem:[#allocation44_spill] sm:$0xff] }
 0x47f   : > { %4127 = vmatmul.bf16.gmra.mxu2 %v13090_v25  ;;  %v16168_v25 = vmax.f32 %v13439_v6, 0.0  ;;  %vm4309_vm9 = vcmp.lt.s32.totalorder %v16521_v27, 30 }
 0x480   : > { %v4294_v63 = vsel %vm4269_vm6, %v4243_v44, %v4244_v35  ;;  %4216 = vmatmul.bf16.gmra.mxu3 %v13092_v8  ;;  %v13447_v44 = vpop.f32.mrf.mxu0 }
 0x481   : > { %v4436_v18 = vadd.f32 %v4294_v63, %v13087_v30  ;;  %v3632_v63 = vsel %vm3536_vm8, %v13126_v45, 0.0 }
 0x482   : > { %v4088_v4 = vpop.f32.mrf.mxu2 }
 0x483   : > { %v4177_v38 = vpop.f32.mrf.mxu3  ;;  %v13442_v62 = vadd.f32 %v13360_v61, %v4436_v18 }
 0x484   : > { %v4178_v3 = vadd.f32 %v4177_v38, %v4088_v4  ;;  %v13458_v4 = vpop.f32.mrf.mxu1 }
 0x485   : > { %v16182_v32 = vmax.f32 %v13442_v62, 0.0 }
 0x486   : > { %v4245_v8 = vrot.slane %v4178_v3, 2  ;;  %v3782_v3 = vadd.f32 %v13355_v57, %v3632_v63 }
 0x487   : > { %v9797_v30 = vpack.i.bf16 %v16182_v32, %v16168_v25 }
 0x488   : > { %v4293_v38 = vsel %vm4269_vm6, %v4244_v35, %v4245_v8  ;;  %v3871_v25 = vadd.f32 %v13362_v23, %v3782_v3  ;;  %v13464_v45 = vpop.f32.mrf.mxu0  ;;  %v3787_v3 = vadd.f32 %v13397_v5, %v13182_v7 }
 0x489   : > { %9798 = vrot.lane.b32.xlu2 %v9797_v30, %s10743_s16  ;;  %v4405_v34 = vsel %vm4309_vm9, %v4293_v38, 0.0 }
 0x48a   : > { %v4090_v18 = vpop.f32.mrf.mxu2  ;;  %v4437_v26 = vadd.f32 %v4405_v34, %v13120_v22 }
 0x48b   : > { %v4179_v31 = vpop.f32.mrf.mxu3 }
 0x48c   : > { %v4180_v27 = vadd.f32 %v4179_v31, %v4090_v18  ;;  %v13470_v38 = vadd.f32 %v13360_v61, %v4437_v26 }
 0x48e   : > { %v4246_v46 = vrot.slane %v4180_v27, 2  ;;  %v13475_v27 = vpop.f32.mrf.mxu1 }
 0x48f   : > { %4132 = vmatmul.bf16.gmra.mxu2 %v13146_v56  ;;  %v16175_v56 = vmax.f32 %v13470_v38, 0.0 }
 0x490   : > { %v4292_v35 = vsel %vm4269_vm6, %v4245_v8, %v4246_v46  ;;  %4221 = vmatmul.bf16.gmra.mxu3 %v13148_v13  ;;  %v3784_v13 = vadd.f32 %v13375_v42, %v13152_v54 }
 0x491   : > { %v4438_v30 = vadd.f32 %v4292_v35, %v3871_v25  ;;  %v13486_v25 = vpop.f32.mrf.mxu0 }
 0x492   : > { %v4093_v57 = vpop.f32.mrf.mxu2  ;;  %v3873_v35 = vadd.f32 %v13387_v52, %v3784_v13 }
 0x493   : > { %v4182_v31 = vpop.f32.mrf.mxu3  ;;  %v13473_v22 = vadd.f32 %v13360_v61, %v4438_v30 }
 0x494   : > { %v4183_v23 = vadd.f32 %v4182_v31, %v4093_v57 }
 0x495   : > { %v16181_v63 = vmax.f32 %v13473_v22, 0.0 }
 0x496   : > { %v4247_v34 = vrot.slane %v4183_v23, 2  ;;  %v13493_v57 = vpop.f32.mrf.mxu1  ;;  %v3876_v23 = vadd.f32 %v13401_v9, %v3787_v3  ;;  %v16522_v9 = vld [vmem:[#allocation30_spill] sm:$0xff] }
 0x497   : > { %v9802_v26 = vpack.i.bf16 %v16181_v63, %v16175_v56  ;;  %vm3540_vm10 = vcmp.ge.s32.totalorder %v16522_v9, 2 }
 0x498   : > { %v4291_v8 = vsel %vm4269_vm6, %v4246_v46, %v4247_v34 }
 0x499   : > { %9803 = vrot.lane.b32.xlu0 %v9802_v26, %s10743_s16  ;;  %v4439_v42 = vadd.f32 %v4291_v8, %v3873_v35  ;;  %v13506_v8 = vpop.f32.mrf.mxu0  ;;  %v16523_v35 = vld [vmem:[#allocation42_spill] sm:$0xff] }
 0x49a   : > { %v4095_v18 = vpop.f32.mrf.mxu2  ;;  %vm4313_vm11 = vcmp.lt.s32.totalorder %v16523_v35, 30 }
 0x49b   : > { %v4184_v30 = vpop.f32.mrf.mxu3  ;;  %v13501_v7 = vadd.f32 %v13360_v61, %v4439_v42 }
 0x49c   : > { %v4185_v54 = vadd.f32 %v4184_v30, %v4095_v18 }
 0x49e   : > { %v4248_v31 = vrot.slane %v4185_v54, 2  ;;  %v3636_v54 = vsel %vm3540_vm10, %v13226_v11, 0.0  ;;  %v13519_v42 = vpop.f32.mrf.mxu1  ;;  %v9506_v11 = vld [vmem:[%s15985_s5 + $0xb8] sm:$0xff] }
 0x49f   : > { %4137 = vmatmul.bf16.gmra.mxu2 %v13200_v43  ;;  %v16169_v43 = vmax.f32 %v13501_v7, 0.0 }
 0x4a0   : > { %v4290_v26 = vsel %vm4269_vm6, %v4247_v34, %v4248_v31  ;;  %4226 = vmatmul.bf16.gmra.mxu3 %v13204_v50  ;;  %v3789_v50 = vadd.f32 %v13412_v40, %v13210_v60  ;;  %v9498_v60 = vld [vmem:[%s15985_s5 + $0x38] sm:$0xff]  ;;  %5303 = vmatpush.bf16.msra.mxu2 %v9506_v11 }
 0x4a1   : > { %v4440_v46 = vadd.f32 %v4290_v26, %v3876_v23  ;;  %v9490_v40 = vld [vmem:[%s15985_s5 + $0x78] sm:$0xff]  ;;  %4819 = vmatpush.bf16.msrb.mxu0 %v9498_v60 }
 0x4a2   : > { %v4098_v52 = vpop.f32.mrf.mxu2  ;;  %5149 = vmatpush.bf16.msra.mxu1 %v9490_v40  ;;  %v9496_v40 = vld [vmem:[%s15985_s5 + $0x28] sm:$0xff] }
 0x4a3   : > { %v4187_v5 = vpop.f32.mrf.mxu3  ;;  %v13504_v13 = vadd.f32 %v13360_v61, %v4440_v46 }
 0x4a4   : > { %v4188_v18 = vadd.f32 %v4187_v5, %v4098_v52  ;;  %v3792_v52 = vadd.f32 %v13428_v17, %v3636_v54  ;;  %v9505_v17 = vld [vmem:[%s15985_s5 + $0xb0] sm:$0xff]  ;;  %v13544_v54 = vpop.f32.mrf.mxu0 }
 0x4a5   : > { %v16172_v34 = vmax.f32 %v13504_v13, 0.0  ;;  %5304 = vmatpush.bf16.msra.mxu2 %v9505_v17  ;;  %v9503_v17 = vld [vmem:[%s15985_s5 + $0xa0] sm:$0xff] }
 0x4a6   : > { %v4249_v3 = vrot.slane %v4188_v18, 2 }
 0x4a7   : > { %v9807_v30 = vpack.i.bf16 %v16172_v34, %v16169_v43  ;;  %v9489_v43 = vld [vmem:[%s15985_s5 + $0x70] sm:$0xff] }
 0x4a8   : > { %v4289_v23 = vsel %vm4269_vm6, %v4248_v31, %v4249_v3  ;;  %v3878_v31 = vadd.f32 %v13419_v49, %v3789_v50  ;;  %v3881_v50 = vadd.f32 %v13432_v19, %v3792_v52  ;;  %5150 = vmatpush.bf16.msra.mxu1 %v9489_v43  ;;  %v9504_v19 = vld [vmem:[%s15985_s5 + $0xa8] sm:$0xff] }
 0x4a9   : > { %9808 = vrot.lane.b32.xlu1 %v9807_v30, %s10743_s16  ;;  %v4409_v26 = vsel %vm4313_vm11, %v4289_v23, 0.0  ;;  %v9497_v30 = vld [vmem:[%s15985_s5 + $0x30] sm:$0xff]  ;;  %5305 = vmatpush.bf16.msra.mxu2 %v9504_v19  ;;  %v9502_v19 = vld [vmem:[%s15985_s5 + $0x98] sm:$0xff] }
 0x4aa   : > { %v4100_v46 = vpop.f32.mrf.mxu2  ;;  %v4441_v23 = vadd.f32 %v4409_v26, %v3878_v31  ;;  %4820 = vmatpush.bf16.msrb.mxu0 %v9497_v30  ;;  %v9495_v31 = vld [vmem:[%s15985_s5 + $0x20] sm:$0xff] }
 0x4ab   : > { %v4189_v5 = vpop.f32.mrf.mxu3  ;;  %v9487_v30 = vld [vmem:[%s15985_s5 + $0x60] sm:$0xff] }
 0x4ac   : > { %v4190_v18 = vadd.f32 %v4189_v5, %v4100_v46  ;;  %v13552_v60 = vadd.f32 %v13360_v61, %v4441_v23 }
 0x4ad   : > { %5306 = vmatpush.bf16.msra.mxu2 %v9503_v17  ;;  %v9485_v17 = vld [vmem:[%s15985_s5 + $0x50] sm:$0xff] }
 0x4ae   : > { %v4250_v49 = vrot.slane %v4190_v18, 2  ;;  %4821 = vmatpush.bf16.msrb.mxu0 %v9496_v40  ;;  %v16170_v5 = vmax.f32 %v13552_v60, 0.0  ;;  %v9494_v40 = vld [vmem:[%s15985_s5 + $0x18] sm:$0xff] }
 0x4af   : > { %4142 = vmatmul.bf16.gmra.mxu2 %v13236_v53  ;;  %v9488_v53 = vld [vmem:[%s15985_s5 + $0x68] sm:$0xff] }
 0x4b0   : > { %v4288_v46 = vsel %vm4269_vm6, %v4249_v3, %v4250_v49  ;;  %4231 = vmatmul.bf16.gmra.mxu3 %v13238_v14  ;;  %v13563_v14 = vpop.f32.mrf.mxu1  ;;  %5151 = vmatpush.bf16.msra.mxu1 %v9488_v53  ;;  %v9486_v53 = vld [vmem:[%s15985_s5 + $0x58] sm:$0xff] }
 0x4b1   : > { %v4442_v26 = vadd.f32 %v4288_v46, %v3881_v50  ;;  %v3794_v50 = vadd.f32 %v13447_v44, %v13242_v41  ;;  %5307 = vmatpush.bf16.msra.mxu2 %v9502_v19 }
 0x4b2   : > { %v4103_v3 = vpop.f32.mrf.mxu2  ;;  %4822 = vmatpush.bf16.msrb.mxu0 %v9495_v31 }
 0x4b3   : > { %v4192_v11 = vpop.f32.mrf.mxu3  ;;  %v13566_v52 = vadd.f32 %v13360_v61, %v4442_v26  ;;  %v13585_v26 = vpop.f32.mrf.mxu0 }
 0x4b4   : > { %v4193_v43 = vadd.f32 %v4192_v11, %v4103_v3  ;;  %5152 = vmatpush.bf16.msra.mxu1 %v9487_v30  ;;  %v3797_v3 = vadd.f32 %v13464_v45, %v13250_v15  ;;  %v3883_v11 = vadd.f32 %v13458_v4, %v3794_v50  ;;  %v9501_v15 = vld [vmem:[%s15985_s5 + $0x90] sm:$0xff] }
 0x4b5   : > { %v16171_v18 = vmax.f32 %v13566_v52, 0.0  ;;  %5308 = vmatpush.bf16.msra.mxu2 %v9501_v15 }
 0x4b6   : > { %v4251_v23 = vrot.slane %v4193_v43, 2  ;;  %4823 = vmatpush.bf16.msrb.mxu0 %v9494_v40  ;;  %v3886_v4 = vadd.f32 %v13475_v27, %v3797_v3 }
 0x4b7   : > { %v9812_v46 = vpack.i.bf16 %v16171_v18, %v16170_v5 }
 0x4b8   : > { %v4287_v41 = vsel %vm4269_vm6, %v4250_v49, %v4251_v23  ;;  %v13602_v31 = vpop.f32.mrf.mxu1  ;;  %v9493_v49 = vld [vmem:[%s15985_s5 + $0x10] sm:$0xff]  ;;  %5153 = vmatpush.bf16.msra.mxu1 %v9486_v53  ;;  %v9492_v53 = vld [vmem:[%s15985_s5 + $0x8] sm:$0xff] }
 0x4b9   : > { %9813 = vrot.lane.b32.xlu2 %v9812_v46, %s10743_s16  ;;  %v4443_v46 = vadd.f32 %v4287_v41, %v3883_v11  ;;  %v9484_v41 = vld [vmem:[%s15985_s5 + $0x48] sm:$0xff] }
 0x4ba   : > { %v4105_v44 = vpop.f32.mrf.mxu2  ;;  %4824 = vmatpush.bf16.msrb.mxu0 %v9493_v49 }
 0x4bb   : > { %v4194_v43 = vpop.f32.mrf.mxu3  ;;  %v13617_v40 = vadd.f32 %v13360_v61, %v4443_v46 }
 0x4bc   : > { %v4195_v30 = vadd.f32 %v4194_v43, %v4105_v44  ;;  %5154 = vmatpush.bf16.msra.mxu1 %v9485_v17  ;;  %v13625_v44 = vpop.f32.mrf.mxu0  ;;  %v9491_v43 = vld [vmem:[%s15985_s5] sm:$0xff] }
 0x4bd   : > { %v16173_v49 = vmax.f32 %v13617_v40, 0.0  ;;  %v9483_v17 = vld [vmem:[%s15985_s5 + $0x40] sm:$0xff] }
 0x4be   : > { %v4252_v5 = vrot.slane %v4195_v30, 2  ;;  %4825 = vmatpush.bf16.msrb.mxu0 %v9492_v53  ;;  %v16524_v30 = vld [vmem:[#allocation22_spill] sm:$0xff]  ;;  %v16525_v53 = vld [vmem:[#allocation21_spill] sm:$0xff] }
 0x4bf   : > { %vm3544_vm12 = vcmp.ge.s32.totalorder %v16524_v30, 2  ;;  %vm4317_vm13 = vcmp.lt.s32.totalorder %v16525_v53, 30 }
 0x4c0   : > { %v4286_v45 = vsel %vm4269_vm6, %v4251_v23, %v4252_v5  ;;  %v9500_v23 = vld [vmem:[%s15985_s5 + $0x88] sm:$0xff]  ;;  %5155 = vmatpush.bf16.msra.mxu1 %v9484_v41  ;;  %v13642_v15 = vpop.f32.mrf.mxu1 }
 0x4c1   : > { %v4444_v50 = vadd.f32 %v4286_v45, %v3886_v4  ;;  %5309 = vmatpush.bf16.msra.mxu2 %v9500_v23  ;;  %v9499_v45 = vld [vmem:[%s15985_s5 + $0x80] sm:$0xff] }
 0x4c2   : > { %v4108_v27 = vpop.f32.mrf.mxu2  ;;  %4826 = vmatpush.bf16.msrb.mxu0 %v9491_v43 }
 0x4c3   : > { %v4197_v19 = vpop.f32.mrf.mxu3  ;;  %v13631_v3 = vadd.f32 %v13360_v61, %v4444_v50  ;;  %v3799_v50 = vadd.f32 %v13486_v25, %v13254_v10 }
 0x4c4   : > { %v4198_v11 = vadd.f32 %v4197_v19, %v4108_v27  ;;  %v3640_v27 = vsel %vm3544_vm12, %v13260_v20, 0.0  ;;  %5156 = vmatpush.bf16.msra.mxu1 %v9483_v17  ;;  %v13660_v34 = vpop.f32.mrf.mxu0  ;;  %vm4985_vm12 = vcmp.ge.s32.totalorder %v16522_v9, 4 }
 0x4c5   : > { %v16174_v46 = vmax.f32 %v13631_v3, 0.0  ;;  %5310 = vmatpush.bf16.msra.mxu2 %v9499_v45  ;;  %v3802_v10 = vadd.f32 %v13506_v8, %v3640_v27  ;;  %v3888_v25 = vadd.f32 %v13493_v57, %v3799_v50 }
 0x4c6   : > { %v4253_v4 = vrot.slane %v4198_v11, 2 }
 0x4c7   : > { %v9817_v41 = vpack.i.bf16 %v16174_v46, %v16173_v49  ;;  %v9789_v46 = vpop.permute.xlu2 %9788 }
 0x4c8   : > { %v4285_v19 = vsel %vm4269_vm6, %v4252_v5, %v4253_v4  ;;  %v3891_v5 = vadd.f32 %v13519_v42, %v3802_v10  ;;  %v13663_v43 = vpop.f32.mrf.mxu1  ;;  %v9790_v17 = vunpack.i.l.bf16 %v9789_v46  ;;  %v16527_v42 = vmax.f32 %v13368_v33, 0.0 }
 0x4c9   : > { %9818 = vrot.lane.b32.xlu0 %v9817_v41, %s10743_s16  ;;  %v4413_v23 = vsel %vm4317_vm13, %v4285_v19, 0.0  ;;  %v9791_v41 = vunpack.i.h.bf16 %v9789_v46  ;;  %vm5684_vm13 = vcmask 1048064  }
 0x4ca   : > { %v4110_v11 = vpop.f32.mrf.mxu2  ;;  %v4445_v20 = vadd.f32 %v4413_v23, %v3888_v25  ;;  %v13677_v23 = vmax.f32 %v16527_v42, %v9790_v17 }
 0x4cb   : > { %v4199_v18 = vpop.f32.mrf.mxu3 }
 0x4cc   : > { %v4200_v49 = vadd.f32 %v4199_v18, %v4110_v11  ;;  %v13668_v8 = vadd.f32 %v13360_v61, %v4445_v20  ;;  %v13681_v10 = vpop.f32.mrf.mxu0  ;;  %v3804_v20 = vadd.f32 %v13544_v54, %v13265_v58  ;;  %v16177_v33 = vrot.slane %v13677_v23, 2 }
 0x4cd   : > { %v3807_v54 = vadd.f32 %v13585_v26, %v13270_v39 }
 0x4ce   : > { %v4254_v56 = vrot.slane %v4200_v49, 2  ;;  %v16526_v49 = vmax.f32 %v13371_v16, 0.0  ;;  %v16176_v11 = vmax.f32 %v13668_v8, 0.0 }
 0x4d0   : > { %v4284_v45 = vsel %vm4269_vm6, %v4253_v4, %v4254_v56  ;;  %v4595_v27 = vmax.f32 %v16526_v49, %v9791_v41  ;;  %v13691_v17 = vpop.f32.mrf.mxu1 }
 0x4d1   : > { %v4446_v19 = vadd.f32 %v4284_v45, %v3891_v5 }
 0x4d2   : > { %v4113_v57 = vpop.f32.mrf.mxu2  ;;  %v4627_v5 = vrot.slane %v4595_v27, 2 }
 0x4d3   : > { %v4202_v50 = vpop.f32.mrf.mxu3  ;;  %v13671_v18 = vadd.f32 %v13360_v61, %v4446_v19  ;;  %v16528_v19 = vmax.f32 %v13390_v1, 0.0 }
 0x4d4   : > { %v4203_v46 = vadd.f32 %v4202_v50, %v4113_v57  ;;  %v3893_v50 = vadd.f32 %v13563_v14, %v3804_v20  ;;  %v4688_v42 = vsel %vm4269_vm6, %v16177_v33, %v4627_v5  ;;  %v13711_v14 = vpop.f32.mrf.mxu0 }
 0x4d5   : > { %v16178_v4 = vmax.f32 %v13671_v18, 0.0  ;;  %v4690_v39 = vmax.f32 %v13677_v23, %v4688_v42  ;;  %v3809_v42 = vadd.f32 %v13625_v44, %v13275_v29 }
 0x4d6   : > { %v4255_v25 = vrot.slane %v4203_v46, 2 }
 0x4d7   : > { %v9822_v16 = vpack.i.bf16 %v16178_v4, %v16176_v11  ;;  %v3898_v44 = vadd.f32 %v13642_v15, %v3809_v42 }
 0x4d8   : > { %v4283_v45 = vsel %vm4269_vm6, %v4254_v56, %v4255_v25 }
 0x4d9   : > { %v4535_v41 = vpop.permute.xlu0 %4534  ;;  %9823 = vrot.lane.b32.xlu1 %v9822_v16, %s10743_s16  ;;  %v4447_v56 = vadd.f32 %v4283_v45, %v3893_v50 }
 0x4da   : > { %v13697_v57 = vmax.f32 %v16528_v19, %v4535_v41  ;;  %v4115_v58 = vpop.f32.mrf.mxu2  ;;  %v3896_v19 = vadd.f32 %v13602_v31, %v3807_v54  ;;  %v13721_v31 = vpop.f32.mrf.mxu1  ;;  %v16529_v54 = vld [vmem:[#allocation24_spill] sm:$0xff] }
 0x4db   : > { %v4204_v49 = vpop.f32.mrf.mxu3  ;;  %v13716_v4 = vadd.f32 %v13360_v61, %v4447_v56  ;;  %vm3548_vm14 = vcmp.ge.s32.totalorder %v16529_v54, 2 }
 0x4dc   : > { %v4628_v46 = vrot.slane %v13697_v57, 2  ;;  %v4205_v16 = vadd.f32 %v4204_v49, %v4115_v58  ;;  %v3644_v56 = vsel %vm3548_vm14, %v13280_v24, 0.0  ;;  %vm5467_vm14 = vcmp.lt.s32.totalorder %v16523_v35, 28 }
 0x4dd   : > { %v3812_v29 = vadd.f32 %v13660_v34, %v3644_v56 }
 0x4de   : > { %v4687_v1 = vsel %vm4269_vm6, %v4627_v5, %v4628_v46  ;;  %v4256_v41 = vrot.slane %v4205_v16, 2  ;;  %v16530_v16 = vld [vmem:[#allocation23_spill] sm:$0xff] }
 0x4df   : > { %v4691_v26 = vmax.f32 %v4595_v27, %v4687_v1  ;;  %vm4321_vm15 = vcmp.lt.s32.totalorder %v16530_v16, 30  ;;  %v13737_v1 = vpop.f32.mrf.mxu0  ;;  %v3901_v32 = vadd.f32 %v13663_v43, %v3812_v29  ;;  %v16594_v16 = vld [vmem:[#allocation27_spill] sm:$0xff] }
 0x4e0   : > { %v4282_v20 = vsel %vm4269_vm6, %v4255_v25, %v4256_v41  ;;  %v16179_v25 = vmax.f32 %v13716_v4, 0.0 }
 0x4e1   : > { %v4722_v11 = vpack.c.bf16 %v4691_v26, %v4690_v39  ;;  %v4448_v33 = vadd.f32 %v4282_v20, %v3896_v19 }
 0x4e2   : > { %v4118_v45 = vpop.f32.mrf.mxu2  ;;  %v13741_v24 = vpop.f32.mrf.mxu1 }
 0x4e3   : > { %v4207_v58 = vpop.f32.mrf.mxu3  ;;  %4827 = vmatmul.bf16.vlgmr.msrb.gmra.mxu0 %v4722_v11  ;;  %5157 = vmatmul.bf16.vlgmr.msra.gmra.mxu1 %v4722_v11  ;;  %v13719_v5 = vadd.f32 %v13360_v61, %v4448_v33  ;;  %v9799_v42 = vpop.permute.xlu2 %9798 }
 0x4e4   : > { %v4208_v27 = vadd.f32 %v4207_v58, %v4118_v45  ;;  %5311 = vmatmul.bf16.vlgmr.msra.gmra.mxu2 %v4722_v11 }
 0x4e5   : > { %v16180_v50 = vmax.f32 %v13719_v5, 0.0 }
 0x4e6   : > { %v4257_v49 = vrot.slane %v4208_v27, 2 }
 0x4e7   : > { %v9827_v33 = vpack.i.bf16 %v16180_v50, %v16179_v25 }
 0x4e8   : > { %v4281_v11 = vsel %vm4269_vm6, %v4256_v41, %v4257_v49  ;;  %v16531_v41 = vmax.f32 %v13415_v12, 0.0 }
 0x4e9   : > { %9828 = vrot.lane.b32.xlu2 %v9827_v33, %s10743_s16  ;;  %v4417_v19 = vsel %vm4321_vm15, %v4281_v11, 0.0  ;;  %v16532_v33 = vmax.f32 %v13410_v59, 0.0  ;;  %vm4989_vm15 = vcmp.ge.s32.totalorder %v16524_v30, 4 }
 0x4ea   : > { %v4120_v39 = vpop.f32.mrf.mxu2  ;;  %v4449_v25 = vadd.f32 %v4417_v19, %v3898_v44 }
 0x4eb   : > { %v4209_v26 = vpop.f32.mrf.mxu3  ;;  %v9794_v20 = vpop.permute.xlu1 %9793 }
 0x4ec   : > { %v9796_v45 = vunpack.i.h.bf16 %v9794_v20  ;;  %v9795_v58 = vunpack.i.l.bf16 %v9794_v20  ;;  %v4210_v27 = vadd.f32 %v4209_v26, %v4120_v39  ;;  %v13751_v19 = vadd.f32 %v13360_v61, %v4449_v25 }
 0x4ee   : > { %v4598_v50 = vmax.f32 %v16531_v41, %v9796_v45  ;;  %v4597_v63 = vmax.f32 %v16532_v33, %v9795_v58  ;;  %v4258_v11 = vrot.slane %v4210_v27, 2  ;;  %v9801_v45 = vunpack.i.h.bf16 %v9799_v42 }
 0x4ef   : > { %v4517_v27 = vmax.f32 %v13751_v19, 0.0 }
 0x4f0   : > { %v4630_v34 = vrot.slane %v4598_v50, 2  ;;  %v4629_v56 = vrot.slane %v4597_v63, 2  ;;  %v4280_v15 = vsel %vm4269_vm6, %v4257_v49, %v4258_v11  ;;  %v3821_v49 = vpop.f32.mrf.mxu0 }
 0x4f1   : > { %v4450_v20 = vadd.f32 %v4280_v15, %v3901_v32  ;;  %v9800_v32 = vunpack.i.l.bf16 %v9799_v42  ;;  %v16534_v42 = vmax.f32 %v13439_v6, 0.0 }
 0x4f2   : > { %v4123_v39 = vpop.f32.mrf.mxu2  ;;  %v4685_v12 = vsel %vm4269_vm6, %v4629_v56, %v4630_v34  ;;  %v4686_v59 = vsel %vm4269_vm6, %v4628_v46, %v4629_v56  ;;  %v3814_v46 = vadd.f32 %v13681_v10, %v13285_v37  ;;  %v16533_v56 = vmax.f32 %v13442_v62, 0.0 }
 0x4f3   : > { %v4212_v44 = vpop.f32.mrf.mxu3  ;;  %v4692_v43 = vmax.f32 %v13697_v57, %v4686_v59  ;;  %v4693_v29 = vmax.f32 %v4597_v63, %v4685_v12  ;;  %v13759_v26 = vadd.f32 %v13360_v61, %v4450_v20  ;;  %v3910_v57 = vpop.f32.mrf.mxu1  ;;  %v4599_v20 = vmax.f32 %v16534_v42, %v9800_v32 }
 0x4f4   : > { %v4213_v58 = vadd.f32 %v4212_v44, %v4123_v39  ;;  %v13771_v15 = vmax.f32 %v16533_v56, %v9801_v45  ;;  %v3817_v39 = vadd.f32 %v13711_v14, %v13290_v51  ;;  %v3903_v12 = vadd.f32 %v13691_v17, %v3814_v46 }
 0x4f5   : > { %v4723_v25 = vpack.c.bf16 %v4693_v29, %v4692_v43  ;;  %v4518_v41 = vmax.f32 %v13759_v26, 0.0  ;;  %v4631_v44 = vrot.slane %v4599_v20, 2 }
 0x4f6   : > { %v4259_v33 = vrot.slane %v4213_v58, 2  ;;  %v4632_v62 = vrot.slane %v13771_v15, 2 }
 0x4f7   : > { %4832 = vmatmul.bf16.gmra.mxu0 %v4723_v25  ;;  %5162 = vmatmul.bf16.gmra.mxu1 %v4723_v25  ;;  %v9832_v63 = vpack.i.bf16 %v4518_v41, %v4517_v27  ;;  %v4684_v32 = vsel %vm4269_vm6, %v4630_v34, %v4631_v44 }
 0x4f8   : > { %5316 = vmatmul.bf16.gmra.mxu2 %v4723_v25  ;;  %v4279_v37 = vsel %vm4269_vm6, %v4258_v11, %v4259_v33  ;;  %v13782_v6 = vpop.f32.mrf.mxu0  ;;  %v3906_v11 = vadd.f32 %v13721_v31, %v3817_v39  ;;  %v4683_v51 = vsel %vm4269_vm6, %v4631_v44, %v4632_v62  ;;  %v4694_v14 = vmax.f32 %v4598_v50, %v4684_v32 }
 0x4f9   : > { %9833 = vrot.lane.b32.xlu0 %v9832_v63, %s10743_s16  ;;  %v4451_v29 = vadd.f32 %v4279_v37, %v3903_v12  ;;  %v4695_v42 = vmax.f32 %v4599_v20, %v4683_v51  ;;  %v16535_v37 = vld [vmem:[#allocation72_spill] sm:$0xff]  ;;  %v3819_v12 = vadd.f32 %v13737_v1, %v13295_v2 }
 0x4fa   : > { %v4125_v10 = vpop.f32.mrf.mxu2  ;;  %vm3552_vm1 = vcmp.ge.s32.totalorder %v16535_v37, 2 }
 0x4fb   : > { %v4214_v59 = vpop.f32.mrf.mxu3  ;;  %v13792_v25 = vadd.f32 %v13360_v61, %v4451_v29  ;;  %v13794_v46 = vpop.f32.mrf.mxu1  ;;  %v3648_v44 = vsel %vm3552_vm1, %v13300_v28, 0.0  ;;  %v16537_v28 = vmax.f32 %v13473_v22, 0.0  ;;  %vm5471_vm1 = vcmp.lt.s32.totalorder %v16525_v53, 28 }
 0x4fc   : > { %v4215_v43 = vadd.f32 %v4214_v59, %v4125_v10  ;;  %v16536_v59 = vld [vmem:[#allocation73_spill] sm:$0xff]  ;;  %v3822_v1 = vadd.f32 %v3821_v49, %v3648_v44 }
 0x4fd   : > { %v4519_v10 = vmax.f32 %v13792_v25, 0.0  ;;  %vm4325_vm2 = vcmp.lt.s32.totalorder %v16536_v59, 30 }
 0x4fe   : > { %v4260_v45 = vrot.slane %v4215_v43, 2 }
 0x500   : > { %v4278_v58 = vsel %vm4269_vm6, %v4259_v33, %v4260_v45  ;;  %v4724_v33 = vpack.c.bf16 %v4695_v42, %v4694_v14  ;;  %v3826_v43 = vpop.f32.mrf.mxu0 }
 0x501   : > { %v4452_v17 = vadd.f32 %v4278_v58, %v3906_v11  ;;  %v3908_v11 = vadd.f32 %v13741_v24, %v3819_v12 }
 0x502   : > { %v4128_v63 = vpop.f32.mrf.mxu2 }
 0x503   : > { %v4217_v56 = vpop.f32.mrf.mxu3  ;;  %v13797_v34 = vadd.f32 %v13360_v61, %v4452_v17  ;;  %v3915_v17 = vpop.f32.mrf.mxu1 }
 0x504   : > { %v4218_v31 = vadd.f32 %v4217_v56, %v4128_v63 }
 0x505   : > { %v4520_v39 = vmax.f32 %v13797_v34, 0.0 }
 0x506   : > { %v4261_v50 = vrot.slane %v4218_v31, 2 }
 0x507   : > { %4837 = vmatmul.bf16.gmra.mxu0 %v4724_v33  ;;  %5167 = vmatmul.bf16.gmra.mxu1 %v4724_v33  ;;  %v9837_v20 = vpack.i.bf16 %v4520_v39, %v4519_v10 }
 0x508   : > { %v4277_v29 = vsel %vm4269_vm6, %v4260_v45, %v4261_v50  ;;  %5321 = vmatmul.bf16.gmra.mxu2 %v4724_v33  ;;  %v16538_v45 = vmax.f32 %v13470_v38, 0.0 }
 0x509   : > { %9838 = vrot.lane.b32.xlu1 %v9837_v20, %s10743_s16  ;;  %v4421_v32 = vsel %vm4325_vm2, %v4277_v29, 0.0  ;;  %v3911_v29 = vadd.f32 %v3910_v57, %v3822_v1  ;;  %vm4993_vm2 = vcmp.ge.s32.totalorder %v16529_v54, 4 }
 0x50a   : > { %v4130_v2 = vpop.f32.mrf.mxu2  ;;  %v4453_v42 = vadd.f32 %v4421_v32, %v3908_v11  ;;  %v3828_v32 = vpop.f32.mrf.mxu0 }
 0x50b   : > { %v4219_v58 = vpop.f32.mrf.mxu3  ;;  %v9804_v51 = vpop.permute.xlu0 %9803 }
 0x50c   : > { %v9806_v14 = vunpack.i.h.bf16 %v9804_v51  ;;  %v9805_v63 = vunpack.i.l.bf16 %v9804_v51  ;;  %v4220_v56 = vadd.f32 %v4219_v58, %v4130_v2  ;;  %v13824_v51 = vadd.f32 %v13360_v61, %v4453_v42  ;;  %v3917_v42 = vpop.f32.mrf.mxu1 }
 0x50e   : > { %v13816_v31 = vmax.f32 %v16537_v28, %v9806_v14  ;;  %v4601_v33 = vmax.f32 %v16538_v45, %v9805_v63  ;;  %v4262_v20 = vrot.slane %v4220_v56, 2  ;;  %v4521_v63 = vmax.f32 %v13824_v51, 0.0  ;;  %v14018_v51 = vld [vmem:[%s15986_s6] ss:$0 sm:$0xff] }
 0x50f   : > { %v3824_v45 = vadd.f32 %v13782_v6, %v13305_v21 }
 0x510   : > { %v4634_v49 = vrot.slane %v13816_v31, 2  ;;  %v4633_v44 = vrot.slane %v4601_v33, 2  ;;  %v4276_v24 = vsel %vm4269_vm6, %v4261_v50, %v4262_v20 }
 0x511   : > { %v4454_v12 = vadd.f32 %v4276_v24, %v3911_v29  ;;  %v3827_v29 = vadd.f32 %v3826_v43, %v13310_v36 }
 0x512   : > { %v4133_v2 = vpop.f32.mrf.mxu2  ;;  %v4681_v22 = vsel %vm4269_vm6, %v4633_v44, %v4634_v49  ;;  %v4682_v38 = vsel %vm4269_vm6, %v4632_v62, %v4633_v44  ;;  %v3913_v44 = vadd.f32 %v13794_v46, %v3824_v45  ;;  %v3831_v6 = vpop.f32.mrf.mxu0 }
 0x513   : > { %v4222_v11 = vpop.f32.mrf.mxu3  ;;  %v4696_v57 = vmax.f32 %v13771_v15, %v4682_v38  ;;  %v4697_v1 = vmax.f32 %v4601_v33, %v4681_v22  ;;  %v13832_v58 = vadd.f32 %v13360_v61, %v4454_v12  ;;  %v9814_v45 = vpop.permute.xlu2 %9813 }
 0x514   : > { %v4223_v50 = vadd.f32 %v4222_v11, %v4133_v2  ;;  %v16539_v11 = vmax.f32 %v13504_v13, 0.0 }
 0x515   : > { %v4725_v14 = vpack.c.bf16 %v4697_v1, %v4696_v57  ;;  %v4522_v56 = vmax.f32 %v13832_v58, 0.0  ;;  %v16540_v1 = vmax.f32 %v13501_v7, 0.0 }
 0x516   : > { %v4263_v28 = vrot.slane %v4223_v50, 2 }
 0x517   : > { %4842 = vmatmul.bf16.gmra.mxu0 %v4725_v14  ;;  %5172 = vmatmul.bf16.gmra.mxu1 %v4725_v14  ;;  %v9842_v15 = vpack.i.bf16 %v4522_v56, %v4521_v63 }
 0x518   : > { %5326 = vmatmul.bf16.gmra.mxu2 %v4725_v14  ;;  %v4275_v62 = vsel %vm4269_vm6, %v4262_v20, %v4263_v28  ;;  %v3916_v14 = vadd.f32 %v3915_v17, %v3827_v29 }
 0x519   : > { %9843 = vrot.lane.b32.xlu2 %v9842_v15, %s10743_s16  ;;  %v4455_v38 = vadd.f32 %v4275_v62, %v3913_v44  ;;  %v3920_v15 = vpop.f32.mrf.mxu1 }
 0x51a   : > { %v4135_v33 = vpop.f32.mrf.mxu2 }
 0x51b   : > { %v4224_v24 = vpop.f32.mrf.mxu3  ;;  %v9809_v21 = vpop.permute.xlu1 %9808  ;;  %v13857_v62 = vadd.f32 %v13360_v61, %v4455_v38 }
 0x51c   : > { %v9811_v12 = vunpack.i.h.bf16 %v9809_v21  ;;  %v9810_v2 = vunpack.i.l.bf16 %v9809_v21  ;;  %v4225_v22 = vadd.f32 %v4224_v24, %v4135_v33 }
 0x51e   : > { %v13849_v57 = vmax.f32 %v16539_v11, %v9811_v12  ;;  %v4603_v50 = vmax.f32 %v16540_v1, %v9810_v2  ;;  %v4264_v20 = vrot.slane %v4225_v22, 2  ;;  %v9815_v12 = vunpack.i.l.bf16 %v9814_v45  ;;  %v16541_v22 = vld [vmem:[#allocation37_spill] sm:$0xff] }
 0x51f   : > { %vm3556_vm4 = vcmp.ge.s32.totalorder %v16541_v22, 2  ;;  %v16183_v11 = vmax.f32 %v13857_v62, 0.0 }
 0x520   : > { %v4636_v36 = vrot.slane %v13849_v57, 2  ;;  %v4635_v46 = vrot.slane %v4603_v50, 2  ;;  %v4274_v43 = vsel %vm4269_vm6, %v4263_v28, %v4264_v20  ;;  %v9816_v28 = vunpack.i.h.bf16 %v9814_v45 }
 0x521   : > { %v4456_v21 = vadd.f32 %v4274_v43, %v3916_v14  ;;  %v3833_v14 = vpop.f32.mrf.mxu0  ;;  %v16543_v45 = vmax.f32 %v13566_v52, 0.0 }
 0x522   : > { %v4138_v13 = vpop.f32.mrf.mxu2  ;;  %v4679_v33 = vsel %vm4269_vm6, %v4635_v46, %v4636_v36  ;;  %v4680_v7 = vsel %vm4269_vm6, %v4634_v49, %v4635_v46  ;;  %v3829_v49 = vadd.f32 %v3828_v32, %v13315_v48  ;;  %v16542_v46 = vld [vmem:[#allocation48_spill] sm:$0xff]  ;;  %v3922_v32 = vpop.f32.mrf.mxu1 }
 0x523   : > { %v4227_v17 = vpop.f32.mrf.mxu3  ;;  %v4698_v29 = vmax.f32 %v13816_v31, %v4680_v7  ;;  %v4699_v44 = vmax.f32 %v4603_v50, %v4679_v33  ;;  %v13865_v24 = vadd.f32 %v13360_v61, %v4456_v21  ;;  %vm4329_vm0 = vcmp.lt.s32.totalorder %v16542_v46, 30 }
 0x524   : > { %v4228_v2 = vadd.f32 %v4227_v17, %v4138_v13  ;;  %v3652_v50 = vsel %vm3556_vm4, %v13320_v47, 0.0  ;;  %v13879_v21 = vmax.f32 %v16543_v45, %v9816_v28  ;;  %v16544_v13 = vmax.f32 %v13552_v60, 0.0 }
 0x525   : > { %v4726_v38 = vpack.c.bf16 %v4699_v44, %v4698_v29  ;;  %v4524_v1 = vmax.f32 %v13865_v24, 0.0  ;;  %v3832_v29 = vadd.f32 %v3831_v6, %v3652_v50  ;;  %v3918_v44 = vadd.f32 %v3917_v42, %v3829_v49 }
 0x526   : > { %v4265_v43 = vrot.slane %v4228_v2, 2  ;;  %v4605_v33 = vmax.f32 %v16544_v13, %v9815_v12  ;;  %v4638_v47 = vrot.slane %v13879_v21, 2 }
 0x527   : > { %4847 = vmatmul.bf16.gmra.mxu0 %v4726_v38  ;;  %5177 = vmatmul.bf16.gmra.mxu1 %v4726_v38  ;;  %v9847_v31 = vpack.i.bf16 %v4524_v1, %v16183_v11  ;;  %v3921_v12 = vadd.f32 %v3920_v15, %v3832_v29 }
 0x528   : > { %v4273_v48 = vsel %vm4269_vm6, %v4264_v20, %v4265_v43  ;;  %5331 = vmatmul.bf16.gmra.mxu2 %v4726_v38  ;;  %v4637_v52 = vrot.slane %v4605_v33, 2 }
 0x529   : > { %9848 = vrot.lane.b32.xlu0 %v9847_v31, %s10743_s16  ;;  %v4425_v7 = vsel %vm4329_vm0, %v4273_v48, 0.0  ;;  %v3836_v20 = vpop.f32.mrf.mxu0 }
 0x52a   : > { %v4140_v17 = vpop.f32.mrf.mxu2  ;;  %v4457_v45 = vadd.f32 %v4425_v7, %v3918_v44  ;;  %v4678_v60 = vsel %vm4269_vm6, %v4636_v36, %v4637_v52  ;;  %v4677_v31 = vsel %vm4269_vm6, %v4637_v52, %v4638_v47  ;;  %v3925_v15 = vpop.f32.mrf.mxu1 }
 0x52b   : > { %v4229_v2 = vpop.f32.mrf.mxu3  ;;  %v4700_v42 = vmax.f32 %v13849_v57, %v4678_v60  ;;  %v4701_v48 = vmax.f32 %v4605_v33, %v4677_v31  ;;  %v16546_v60 = vld [vmem:[#allocation54_spill] sm:$0xff] }
 0x52c   : > { %v4230_v28 = vadd.f32 %v4229_v2, %v4140_v17  ;;  %v13895_v49 = vadd.f32 %v13360_v61, %v4457_v45  ;;  %v3834_v2 = vadd.f32 %v3833_v14, %v13325_v0 }
 0x52d   : > { %v4727_v17 = vpack.c.bf16 %v4701_v48, %v4700_v42  ;;  %v16547_v48 = vmax.f32 %v13631_v3, 0.0 }
 0x52e   : > { %v4266_v11 = vrot.slane %v4230_v28, 2  ;;  %v16545_v28 = vld [vmem:[#allocation52_spill] sm:$0xff]  ;;  %v3923_v0 = vadd.f32 %v3922_v32, %v3834_v2 }
 0x52f   : > { %v3837_v45 = vadd.f32 %v3836_v20, %v16545_v28 }
 0x530   : > { %v4272_v38 = vsel %vm4269_vm6, %v4265_v43, %v4266_v11  ;;  %v16184_v43 = vmax.f32 %v13895_v49, 0.0 }
 0x531   : > { %v4458_v6 = vadd.f32 %v4272_v38, %v3921_v12  ;;  %v3926_v20 = vadd.f32 %v3925_v15, %v3837_v45 }
 0x532   : > { %v4143_v50 = vpop.f32.mrf.mxu2 }
 0x533   : > { %v4232_v13 = vpop.f32.mrf.mxu3  ;;  %v13898_v7 = vadd.f32 %v13360_v61, %v4458_v6  ;;  %v3838_v61 = vpop.f32.mrf.mxu0 }
 0x534   : > { %v4233_v36 = vadd.f32 %v4232_v13, %v4143_v50  ;;  %v3839_v12 = vadd.f32 %v3838_v61, %v16546_v60  ;;  %v3927_v13 = vpop.f32.mrf.mxu1  ;;  %v16550_v60 = vld [vmem:[#allocation55_spill] sm:$0xff] }
 0x535   : > { %v4526_v29 = vmax.f32 %v13898_v7, 0.0 }
 0x536   : > { %v4267_v44 = vrot.slane %v4233_v36, 2  ;;  %v3928_v28 = vadd.f32 %v3927_v13, %v3839_v12 }
 0x537   : > { %4852 = vmatmul.bf16.gmra.mxu0 %v4727_v17  ;;  %5182 = vmatmul.bf16.gmra.mxu1 %v4727_v17  ;;  %v9852_v57 = vpack.i.bf16 %v4526_v29, %v16184_v43  ;;  %v16549_v43 = vld [vmem:[#allocation68_spill] sm:$0xff] }
 0x538   : > { %5336 = vmatmul.bf16.gmra.mxu2 %v4727_v17  ;;  %v4271_v33 = vsel %vm4269_vm6, %v4266_v11, %v4267_v44  ;;  %v16548_v17 = vmax.f32 %v13617_v40, 0.0  ;;  %vm4333_vm5 = vcmp.lt.s32.totalorder %v16549_v43, 30  ;;  %v10573_v40 = vld [vmem:[%s15984_s4] ss:$0 sm:$0xff]  ;;  %vm5487_vm11 = vcmp.lt.s32.totalorder %v16549_v43, 28 }
 0x539   : > { %9853 = vrot.lane.b32.xlu1 %v9852_v57, %s10743_s16  ;;  %v4459_v50 = vadd.f32 %v4271_v33, %v3923_v0 }
 0x53a   : > { %v4145_v52 = vpop.f32.mrf.mxu2 }
 0x53b   : > { %v4234_v14 = vpop.f32.mrf.mxu3  ;;  %v9819_v38 = vpop.permute.xlu0 %9818 }
 0x53c   : > { %v9821_v31 = vunpack.i.h.bf16 %v9819_v38  ;;  %v9820_v6 = vunpack.i.l.bf16 %v9819_v38  ;;  %v4235_v42 = vadd.f32 %v4234_v14, %v4145_v52  ;;  %v16551_v52 = vrot.slane %v16550_v60, 2 }
 0x53d   : > { %v13926_v14 = vadd.f32 %v10573_v40, %v4459_v50 }
 0x53e   : > { %v4608_v36 = vmax.f32 %v16547_v48, %v9821_v31  ;;  %v4607_v57 = vmax.f32 %v16548_v17, %v9820_v6  ;;  %v4268_v11 = vrot.slane %v4235_v42, 2 }
 0x53f   : > { %v4527_v13 = vmax.f32 %v13926_v14, 0.0 }
 0x540   : > { %v4640_v61 = vrot.slane %v4608_v36, 2  ;;  %v4639_v32 = vrot.slane %v4607_v57, 2  ;;  %v4270_v2 = vsel %vm4269_vm6, %v4267_v44, %v4268_v11  ;;  %v4301_v33 = vsel %vm4269_vm6, %v4268_v11, %v16551_v52 }
 0x541   : > { %v4460_v3 = vadd.f32 %v4270_v2, %v3926_v20  ;;  %v4429_v0 = vsel %vm4333_vm5, %v4301_v33, 0.0  ;;  %v16552_v11 = vmax.f32 %v13671_v18, 0.0  ;;  %v16554_v18 = vmax.f32 %v13719_v5, 0.0 }
 0x542   : > { %v4675_v15 = vsel %vm4269_vm6, %v4639_v32, %v4640_v61  ;;  %v4676_v45 = vsel %vm4269_vm6, %v4638_v47, %v4639_v32  ;;  %v4461_v44 = vadd.f32 %v4429_v0, %v3928_v28  ;;  %v16553_v28 = vmax.f32 %v13668_v8, 0.0 }
 0x543   : > { %v4702_v12 = vmax.f32 %v13879_v21, %v4676_v45  ;;  %v4703_v38 = vmax.f32 %v4607_v57, %v4675_v15  ;;  %v13933_v31 = vadd.f32 %v10573_v40, %v4460_v3  ;;  %v9829_v52 = vpop.permute.xlu2 %9828 }
 0x544   : > { %v13935_v6 = vadd.f32 %v10573_v40, %v4461_v44  ;;  %v9831_v15 = vunpack.i.h.bf16 %v9829_v52  ;;  %v9830_v45 = vunpack.i.l.bf16 %v9829_v52 }
 0x545   : > { %v4728_v42 = vpack.c.bf16 %v4703_v38, %v4702_v12  ;;  %v4528_v50 = vmax.f32 %v13933_v31, 0.0  ;;  %v16555_v12 = vmax.f32 %v13716_v4, 0.0 }
 0x546   : > { %v4529_v48 = vmax.f32 %v13935_v6, 0.0  ;;  %v4612_v8 = vmax.f32 %v16554_v18, %v9831_v15 }
 0x547   : > { %4857 = vmatmul.bf16.gmra.mxu0 %v4728_v42  ;;  %5187 = vmatmul.bf16.gmra.mxu1 %v4728_v42  ;;  %v9857_v47 = vpack.i.bf16 %v4528_v50, %v4527_v13  ;;  %v4611_v38 = vmax.f32 %v16555_v12, %v9830_v45 }
 0x548   : > { %5341 = vmatmul.bf16.gmra.mxu2 %v4728_v42  ;;  %4592 = vrot.lane.b32.xlu0 %v4529_v48, %s10743_s16  ;;  %v4644_v42 = vrot.slane %v4612_v8, 2 }
 0x549   : > { %9858 = vrot.lane.b32.xlu2 %v9857_v47, %s10743_s16  ;;  %v4643_v47 = vrot.slane %v4611_v38, 2 }
 0x54b   : > { %v9824_v21 = vpop.permute.xlu1 %9823 }
 0x54c   : > { %v9826_v17 = vunpack.i.h.bf16 %v9824_v21  ;;  %v9825_v57 = vunpack.i.l.bf16 %v9824_v21 }
 0x54e   : > { %v4610_v20 = vmax.f32 %v16552_v11, %v9826_v17  ;;  %v4609_v32 = vmax.f32 %v16553_v28, %v9825_v57 }
 0x550   : > { %v4642_v2 = vrot.slane %v4610_v20, 2  ;;  %v4641_v60 = vrot.slane %v4609_v32, 2 }
 0x552   : > { %v4673_v33 = vsel %vm4269_vm6, %v4641_v60, %v4642_v2  ;;  %v4674_v3 = vsel %vm4269_vm6, %v4640_v61, %v4641_v60  ;;  %v4672_v21 = vsel %vm4269_vm6, %v4642_v2, %v4643_v47 }
 0x553   : > { %v4704_v0 = vmax.f32 %v4608_v36, %v4674_v3  ;;  %v4705_v40 = vmax.f32 %v4609_v32, %v4673_v33  ;;  %v4671_v36 = vsel %vm4269_vm6, %v4643_v47, %v4644_v42  ;;  %v4706_v57 = vmax.f32 %v4610_v20, %v4672_v21 }
 0x554   : > { %v4707_v11 = vmax.f32 %v4611_v38, %v4671_v36 }
 0x555   : > { %v4729_v44 = vpack.c.bf16 %v4705_v40, %v4704_v0 }
 0x556   : > { %v4730_v5 = vpack.c.bf16 %v4707_v11, %v4706_v57 }
 0x557   : > { %4862 = vmatmul.bf16.gmra.mxu0 %v4729_v44  ;;  %5192 = vmatmul.bf16.gmra.mxu1 %v4729_v44 }
 0x558   : > { %5346 = vmatmul.bf16.gmra.mxu2 %v4729_v44 }
 0x560   : > { %v13962_v61 = vpop.f32.mrf.mxu0  ;;  %v13966_v17 = vpop.f32.mrf.mxu1 }
 0x561   : > { %v16192_v28 = vrot.slane %v13962_v61, 4 }
 0x567   : > { %4867 = vmatmul.bf16.gmra.mxu0 %v4730_v5  ;;  %5197 = vmatmul.bf16.gmra.mxu1 %v4730_v5  ;;  %v13970_v32 = vpop.f32.mrf.mxu2 }
 0x568   : > { %5351 = vmatmul.bf16.gmra.mxu2 %v4730_v5  ;;  %v4830_v4 = vpop.f32.mrf.mxu0  ;;  %v5160_v52 = vpop.f32.mrf.mxu1 }
 0x569   : > { %v4909_v2 = vrot.slane %v4830_v4, 4 }
 0x56b   : > { %v4971_v60 = vsel %vm4940_vm3, %v16192_v28, %v4909_v2  ;;  %v9834_v20 = vpop.permute.xlu0 %9833 }
 0x56c   : > { %v5161_v33 = vadd.f32 %v5160_v52, %v4971_v60  ;;  %v9836_v3 = vunpack.i.h.bf16 %v9834_v20  ;;  %v9835_v0 = vunpack.i.l.bf16 %v9834_v20 }
 0x56e   : > { %v4614_v40 = vmax.f32 %v4518_v41, %v9836_v3  ;;  %v4613_v15 = vmax.f32 %v4517_v27, %v9835_v0 }
 0x56f   : > { %v13984_v38 = vpop.f32.mrf.mxu2 }
 0x570   : > { %v4646_v45 = vrot.slane %v4614_v40, 2  ;;  %v4645_v44 = vrot.slane %v4613_v15, 2  ;;  %v16191_v27 = vrot.slane %v13984_v38, 4 }
 0x572   : > { %v4669_v18 = vsel %vm4269_vm6, %v4645_v44, %v4646_v45  ;;  %v4670_v12 = vsel %vm4269_vm6, %v4644_v42, %v4645_v44 }
 0x573   : > { %v4708_v47 = vmax.f32 %v4612_v8, %v4670_v12  ;;  %v4709_v21 = vmax.f32 %v4613_v15, %v4669_v18  ;;  %v9844_v44 = vpop.permute.xlu2 %9843 }
 0x574   : > { %v4833_v36 = vpop.f32.mrf.mxu0  ;;  %v5163_v57 = vpop.f32.mrf.mxu1  ;;  %v9846_v34 = vunpack.i.h.bf16 %v9844_v44 }
 0x575   : > { %v4731_v11 = vpack.c.bf16 %v4709_v21, %v4708_v47  ;;  %v4910_v47 = vrot.slane %v4833_v36, 4 }
 0x577   : > { %4872 = vmatmul.bf16.gmra.mxu0 %v4731_v11  ;;  %5202 = vmatmul.bf16.gmra.mxu1 %v4731_v11 }
 0x578   : > { %5356 = vmatmul.bf16.gmra.mxu2 %v4731_v11 }
 0x57b   : > { %v5317_v19 = vpop.f32.mrf.mxu2  ;;  %v9839_v26 = vpop.permute.xlu1 %9838 }
 0x57c   : > { %v5394_v41 = vrot.slane %v5317_v19, 4  ;;  %v9841_v5 = vunpack.i.h.bf16 %v9839_v26  ;;  %v9840_v4 = vunpack.i.l.bf16 %v9839_v26  ;;  %v4835_v60 = vpop.f32.mrf.mxu0  ;;  %v5165_v52 = vpop.f32.mrf.mxu1 }
 0x57e   : > { %v5453_v8 = vsel %vm4940_vm3, %v16191_v27, %v5394_v41  ;;  %v4616_v42 = vmax.f32 %v4520_v39, %v9841_v5  ;;  %v4615_v20 = vmax.f32 %v4519_v10, %v9840_v4  ;;  %v9845_v39 = vunpack.i.l.bf16 %v9844_v44 }
 0x57f   : > { %v13995_v3 = vadd.f32 %v5453_v8, %v5161_v33  ;;  %v4970_v5 = vsel %vm4940_vm3, %v4909_v2, %v4910_v47  ;;  %v4911_v4 = vrot.slane %v4835_v60, 4  ;;  %v14005_v8 = vmax.f32 %v4522_v56, %v9846_v34  ;;  %v16556_v2 = vld [vmem:[#allocation39_spill] sm:$0xff] }
 0x580   : > { %v4648_v0 = vrot.slane %v4616_v42, 2  ;;  %v4647_v15 = vrot.slane %v4615_v20, 2  ;;  %v5164_v36 = vadd.f32 %v5163_v57, %v4970_v5  ;;  %vm5459_vm7 = vcmp.lt.s32.totalorder %v16556_v2, 28  ;;  %v16557_v5 = vld [vmem:[#allocation35_spill] sm:$0xff] }
 0x581   : > { %v4650_v60 = vrot.slane %v14005_v8, 2  ;;  %vm4977_vm8 = vcmp.ge.s32.totalorder %v16557_v5, 4 }
 0x582   : > { %v4667_v18 = vsel %vm4269_vm6, %v4647_v15, %v4648_v0  ;;  %v4668_v12 = vsel %vm4269_vm6, %v4646_v45, %v4647_v15 }
 0x583   : > { %v5319_v21 = vpop.f32.mrf.mxu2  ;;  %v4710_v11 = vmax.f32 %v4614_v40, %v4668_v12  ;;  %v4711_v19 = vmax.f32 %v4615_v20, %v4667_v18  ;;  %v4617_v40 = vmax.f32 %v4521_v63, %v9845_v39  ;;  %v4969_v20 = vsel %vm4940_vm3, %v4910_v47, %v4911_v4 }
 0x584   : > { %v4838_v26 = vpop.f32.mrf.mxu0  ;;  %v5168_v25 = vpop.f32.mrf.mxu1  ;;  %v5395_v10 = vrot.slane %v5319_v21, 4  ;;  %v5166_v63 = vadd.f32 %v5165_v52, %v4969_v20 }
 0x585   : > { %v4732_v33 = vpack.c.bf16 %v4711_v19, %v4710_v11  ;;  %v4649_v44 = vrot.slane %v4617_v40, 2  ;;  %v4912_v47 = vrot.slane %v4838_v26, 4 }
 0x586   : > { %v5452_v45 = vsel %vm4940_vm3, %v5394_v41, %v5395_v10 }
 0x587   : > { %4877 = vmatmul.bf16.gmra.mxu0 %v4732_v33  ;;  %5207 = vmatmul.bf16.gmra.mxu1 %v4732_v33  ;;  %v5586_v58 = vadd.f32 %v5452_v45, %v5164_v36  ;;  %v4666_v41 = vsel %vm4269_vm6, %v4648_v0, %v4649_v44  ;;  %v4665_v34 = vsel %vm4269_vm6, %v4649_v44, %v4650_v60 }
 0x588   : > { %5361 = vmatmul.bf16.gmra.mxu2 %v4732_v33  ;;  %v4712_v39 = vmax.f32 %v4616_v42, %v4666_v41  ;;  %v4968_v52 = vsel %vm4940_vm3, %v4911_v4, %v4912_v47  ;;  %v4713_v45 = vmax.f32 %v4617_v40, %v4665_v34 }
 0x589   : > { %v5622_v11 = vadd.f32 %v14018_v51, %v5586_v58  ;;  %v5073_v58 = vsel %vm4977_vm8, %v4968_v52, 0.0 }
 0x58a   : > { %v4733_v44 = vpack.c.bf16 %v4713_v45, %v4712_v39 }
 0x58b   : > { %v5322_v15 = vpop.f32.mrf.mxu2  ;;  %v14031_v36 = vmax.f32 %v5622_v11, 0.0 }
 0x58c   : > { %v5396_v56 = vrot.slane %v5322_v15, 4  ;;  %v4840_v18 = vpop.f32.mrf.mxu0  ;;  %v5170_v12 = vpop.f32.mrf.mxu1 }
 0x58d   : > { %v4913_v2 = vrot.slane %v4840_v18, 4  ;;  %v5169_v18 = vadd.f32 %v5168_v25, %v5073_v58  ;;  %v16558_v25 = vmax.f32 %v13857_v62, 0.0 }
 0x58e   : > { %v5451_v57 = vsel %vm4940_vm3, %v5395_v10, %v5396_v56 }
 0x58f   : > { %v5555_v21 = vsel %vm5459_vm7, %v5451_v57, 0.0  ;;  %v4967_v41 = vsel %vm4940_vm3, %v4912_v47, %v4913_v2 }
 0x590   : > { %v5587_v19 = vadd.f32 %v5555_v21, %v5166_v63 }
 0x592   : > { %v5623_v33 = vadd.f32 %v14018_v51, %v5587_v19 }
 0x593   : > { %v5324_v10 = vpop.f32.mrf.mxu2 }
 0x594   : > { %v14033_v0 = vmax.f32 %v5623_v33, 0.0  ;;  %v5397_v26 = vrot.slane %v5324_v10, 4  ;;  %v14035_v20 = vpop.f32.mrf.mxu0  ;;  %v5173_v15 = vpop.f32.mrf.mxu1  ;;  %v5171_v10 = vadd.f32 %v5170_v12, %v4967_v41 }
 0x595   : > { %v4914_v42 = vrot.slane %v14035_v20, 4 }
 0x596   : > { %v9867_v4 = vpack.i.bf16 %v14033_v0, %v14031_v36  ;;  %v5450_v40 = vsel %vm4940_vm3, %v5396_v56, %v5397_v26 }
 0x597   : > { %v4966_v63 = vsel %vm4940_vm3, %v4913_v2, %v4914_v42  ;;  %4882 = vmatmul.bf16.gmra.mxu0 %v4733_v44  ;;  %5212 = vmatmul.bf16.gmra.mxu1 %v4733_v44  ;;  %v5588_v21 = vadd.f32 %v5450_v40, %v5169_v18 }
 0x598   : > { %v5174_v57 = vadd.f32 %v5173_v15, %v4966_v63  ;;  %5366 = vmatmul.bf16.gmra.mxu2 %v4733_v44  ;;  %9868 = vrot.lane.b32.xlu2 %v9867_v4, %s10744_s15 }
 0x599   : > { %v5624_v47 = vadd.f32 %v14018_v51, %v5588_v21 }
 0x59b   : > { %v5327_v11 = vpop.f32.mrf.mxu2  ;;  %v9849_v19 = vpop.permute.xlu0 %9848 }
 0x59c   : > { %v5398_v34 = vrot.slane %v5327_v11, 4  ;;  %v9851_v39 = vunpack.i.h.bf16 %v9849_v19  ;;  %v9850_v33 = vunpack.i.l.bf16 %v9849_v19  ;;  %v4845_v52 = vpop.f32.mrf.mxu0  ;;  %v5175_v5 = vpop.f32.mrf.mxu1 }
 0x59e   : > { %v5449_v56 = vsel %vm4940_vm3, %v5397_v26, %v5398_v34  ;;  %v4620_v45 = vmax.f32 %v4524_v1, %v9851_v39  ;;  %v4619_v20 = vmax.f32 %v16558_v25, %v9850_v33  ;;  %v14059_v26 = vmax.f32 %v5624_v47, 0.0 }
 0x59f   : > { %v5589_v15 = vadd.f32 %v5449_v56, %v5171_v10 }
 0x5a0   : > { %v4652_v2 = vrot.slane %v4620_v45, 2  ;;  %v4651_v44 = vrot.slane %v4619_v20, 2 }
 0x5a1   : > { %v5625_v58 = vadd.f32 %v14018_v51, %v5589_v15 }
 0x5a2   : > { %v4663_v4 = vsel %vm4269_vm6, %v4651_v44, %v4652_v2  ;;  %v4664_v12 = vsel %vm4269_vm6, %v4650_v60, %v4651_v44  ;;  %v4915_v60 = vrot.slane %v4845_v52, 4  ;;  %v16559_v44 = vld [vmem:[#allocation44_spill] sm:$0xff] }
 0x5a3   : > { %v14061_v24 = vmax.f32 %v5625_v58, 0.0  ;;  %v5329_v1 = vpop.f32.mrf.mxu2  ;;  %v4714_v62 = vmax.f32 %v14005_v8, %v4664_v12  ;;  %v4715_v63 = vmax.f32 %v4619_v20, %v4663_v4  ;;  %vm5463_vm9 = vcmp.lt.s32.totalorder %v16559_v44, 28 }
 0x5a4   : > { %v5399_v40 = vrot.slane %v5329_v1, 4  ;;  %v4848_v18 = vpop.f32.mrf.mxu0  ;;  %v5178_v41 = vpop.f32.mrf.mxu1  ;;  %v16560_v58 = vmax.f32 %v13895_v49, 0.0  ;;  %v16561_v1 = vld [vmem:[#allocation29_spill] sm:$0xff] }
 0x5a5   : > { %v9872_v21 = vpack.i.bf16 %v14061_v24, %v14059_v26  ;;  %v4734_v11 = vpack.c.bf16 %v4715_v63, %v4714_v62  ;;  %v4916_v8 = vrot.slane %v4848_v18, 4  ;;  %vm4981_vm10 = vcmp.ge.s32.totalorder %v16561_v1, 4 }
 0x5a6   : > { %v5448_v19 = vsel %vm4940_vm3, %v5398_v34, %v5399_v40 }
 0x5a7   : > { %v14068_v39 = vadd.f32 %v5448_v19, %v5174_v57  ;;  %9873 = vrot.lane.b32.xlu0 %v9872_v21, %s10744_s15  ;;  %4887 = vmatmul.bf16.gmra.mxu0 %v4734_v11  ;;  %v4965_v57 = vsel %vm4940_vm3, %v4914_v42, %v4915_v60  ;;  %v4964_v12 = vsel %vm4940_vm3, %v4915_v60, %v4916_v8 }
 0x5a8   : > { %5217 = vmatmul.bf16.gmra.mxu1 %v4734_v11  ;;  %5371 = vmatmul.bf16.gmra.mxu2 %v4734_v11  ;;  %v5176_v21 = vadd.f32 %v5175_v5, %v4965_v57  ;;  %v9859_v11 = vpop.permute.xlu2 %9858  ;;  %v5077_v42 = vsel %vm4981_vm10, %v4964_v12, 0.0  ;;  %vm6919_vm10 = vcmask 1047808  }
 0x5a9   : > { %v9860_v60 = vunpack.i.l.bf16 %v9859_v11  ;;  %v5179_v5 = vadd.f32 %v5178_v41, %v5077_v42 }
 0x5ab   : > { %v5332_v33 = vpop.f32.mrf.mxu2  ;;  %v9854_v10 = vpop.permute.xlu1 %9853 }
 0x5ac   : > { %v5400_v56 = vrot.slane %v5332_v33, 4  ;;  %v9856_v25 = vunpack.i.h.bf16 %v9854_v10  ;;  %v9855_v20 = vunpack.i.l.bf16 %v9854_v10  ;;  %v14071_v47 = vpop.f32.mrf.mxu0  ;;  %v5180_v15 = vpop.f32.mrf.mxu1  ;;  %v9861_v10 = vunpack.i.h.bf16 %v9859_v11 }
 0x5ae   : > { %v5447_v34 = vsel %vm4940_vm3, %v5399_v40, %v5400_v56  ;;  %v4622_v52 = vmax.f32 %v4526_v29, %v9856_v25  ;;  %v4621_v4 = vmax.f32 %v16560_v58, %v9855_v20 }
 0x5af   : > { %v5559_v62 = vsel %vm5463_vm9, %v5447_v34, 0.0  ;;  %v16190_v34 = vrot.slane %v14071_v47, 4  ;;  %vm6190_vm9 = vcmask 523264  }
 0x5b0   : > { %v4654_v63 = vrot.slane %v4622_v52, 2  ;;  %v4653_v18 = vrot.slane %v4621_v4, 2  ;;  %v5591_v29 = vadd.f32 %v5559_v62, %v5176_v21 }
 0x5b1   : > { %v4963_v1 = vsel %vm4940_vm3, %v4916_v8, %v16190_v34 }
 0x5b2   : > { %v4661_v40 = vsel %vm4269_vm6, %v4653_v18, %v4654_v63  ;;  %v4662_v7 = vsel %vm4269_vm6, %v4652_v2, %v4653_v18  ;;  %v5627_v2 = vadd.f32 %v14018_v51, %v5591_v29  ;;  %v5181_v11 = vadd.f32 %v5180_v15, %v4963_v1 }
 0x5b3   : > { %v5334_v49 = vpop.f32.mrf.mxu2  ;;  %v4716_v19 = vmax.f32 %v4620_v45, %v4662_v7  ;;  %v4717_v33 = vmax.f32 %v4621_v4, %v4661_v40  ;;  %v4624_v45 = vmax.f32 %v4528_v50, %v9861_v10  ;;  %v4623_v4 = vmax.f32 %v4527_v13, %v9860_v60 }
 0x5b4   : > { %v5401_v25 = vrot.slane %v5334_v49, 4  ;;  %v14089_v20 = vpop.f32.mrf.mxu0  ;;  %v14091_v44 = vpop.f32.mrf.mxu1 }
 0x5b5   : > { %v4735_v57 = vpack.c.bf16 %v4717_v33, %v4716_v19  ;;  %v4656_v31 = vrot.slane %v4624_v45, 2  ;;  %v4655_v50 = vrot.slane %v4623_v4, 2  ;;  %v4918_v43 = vrot.slane %v14089_v20, 4 }
 0x5b6   : > { %v5446_v58 = vsel %vm4940_vm3, %v5400_v56, %v5401_v25  ;;  %v14106_v56 = vmax.f32 %v5627_v2, 0.0  ;;  %v16562_v2 = vrot.slane %v13677_v23, 2 }
 0x5b7   : > { %v5592_v12 = vadd.f32 %v5446_v58, %v5179_v5  ;;  %4892 = vmatmul.bf16.gmra.mxu0 %v4735_v57  ;;  %v4660_v40 = vsel %vm4269_vm6, %v4654_v63, %v4655_v50  ;;  %v4659_v29 = vsel %vm4269_vm6, %v4655_v50, %v4656_v31 }
 0x5b8   : > { %5222 = vmatmul.bf16.gmra.mxu1 %v4735_v57  ;;  %5376 = vmatmul.bf16.gmra.mxu2 %v4735_v57  ;;  %v4718_v49 = vmax.f32 %v4622_v52, %v4660_v40  ;;  %v4719_v33 = vmax.f32 %v4623_v4, %v4659_v29 }
 0x5b9   : > { %v5628_v41 = vadd.f32 %v14018_v51, %v5592_v12 }
 0x5ba   : > { %v4593_v15 = vpop.permute.xlu0 %4592 }
 0x5bb   : > { %v14108_v62 = vmax.f32 %v5628_v41, 0.0  ;;  %v14110_v18 = vpop.f32.mrf.mxu2  ;;  %v4625_v63 = vmax.f32 %v4529_v48, %v4593_v15 }
 0x5bc   : > { %v16189_v14 = vrot.slane %v14110_v18, 4  ;;  %v14113_v13 = vpop.f32.mrf.mxu0  ;;  %v14115_v21 = vpop.f32.mrf.mxu1 }
 0x5bd   : > { %v9887_v42 = vpack.i.bf16 %v14108_v62, %v14106_v56  ;;  %v4657_v5 = vrot.slane %v4625_v63, 2  ;;  %v4919_v20 = vrot.slane %v14113_v13, 4 }
 0x5be   : > { %v5445_v8 = vsel %vm4940_vm3, %v5401_v25, %v16189_v14  ;;  %v4736_v25 = vpack.c.bf16 %v4719_v33, %v4718_v49 }
 0x5bf   : > { %v14125_v7 = vadd.f32 %v5445_v8, %v5181_v11  ;;  %9888 = vrot.lane.b32.xlu0 %v9887_v42, %s10744_s15  ;;  %v4689_v12 = vsel %vm4269_vm6, %v4657_v5, %v16562_v2  ;;  %v4658_v4 = vsel %vm4269_vm6, %v4656_v31, %v4657_v5  ;;  %vm4973_vm6 = vcmp.ge.s32.totalorder %v16594_v16, 4 }
 0x5c0   : > { %v4721_v41 = vmax.f32 %v4625_v63, %v4689_v12  ;;  %v4720_v1 = vmax.f32 %v4624_v45, %v4658_v4 }
 0x5c2   : > { %v4737_v8 = vpack.c.bf16 %v4721_v41, %v4720_v1 }
 0x5c3   : > { %v14130_v19 = vpop.f32.mrf.mxu2 }
 0x5c4   : > { %v14132_v10 = vpop.f32.mrf.mxu0  ;;  %v14134_v60 = vpop.f32.mrf.mxu1 }
 0x5c5   : > { %v16188_v40 = vrot.slane %v14132_v10, 4 }
 0x5c7   : > { %4897 = vmatmul.bf16.gmra.mxu0 %v4736_v25 }
 0x5c8   : > { %5227 = vmatmul.bf16.gmra.mxu1 %v4736_v25  ;;  %5381 = vmatmul.bf16.gmra.mxu2 %v4736_v25 }
 0x5cb   : > { %v14138_v57 = vpop.f32.mrf.mxu2 }
 0x5cc   : > { %v4860_v58 = vpop.f32.mrf.mxu0  ;;  %v5190_v52 = vpop.f32.mrf.mxu1 }
 0x5cd   : > { %v4921_v11 = vrot.slane %v4860_v58, 4 }
 0x5cf   : > { %v4959_v45 = vsel %vm4940_vm3, %v16188_v40, %v4921_v11 }
 0x5d0   : > { %v5191_v63 = vadd.f32 %v5190_v52, %v4959_v45 }
 0x5d3   : > { %v14146_v6 = vpop.f32.mrf.mxu2 }
 0x5d4   : > { %v14148_v48 = vpop.f32.mrf.mxu0  ;;  %v5193_v50 = vpop.f32.mrf.mxu1  ;;  %v16187_v49 = vrot.slane %v14146_v6, 4 }
 0x5d5   : > { %v16185_v42 = vrot.slane %v14148_v48, 4 }
 0x5d7   : > { %v4958_v23 = vsel %vm4940_vm3, %v4921_v11, %v16185_v42  ;;  %4902 = vmatmul.bf16.gmra.mxu0 %v4737_v8 }
 0x5d8   : > { %v5194_v31 = vadd.f32 %v5193_v50, %v4958_v23  ;;  %5232 = vmatmul.bf16.gmra.mxu1 %v4737_v8  ;;  %5386 = vmatmul.bf16.gmra.mxu2 %v4737_v8 }
 0x5db   : > { %v5347_v29 = vpop.f32.mrf.mxu2 }
 0x5dc   : > { %v5406_v15 = vrot.slane %v5347_v29, 4  ;;  %v14161_v33 = vpop.f32.mrf.mxu0  ;;  %v14163_v25 = vpop.f32.mrf.mxu1 }
 0x5de   : > { %v5441_v5 = vsel %vm4940_vm3, %v16187_v49, %v5406_v15 }
 0x5df   : > { %v14169_v58 = vadd.f32 %v5441_v5, %v5191_v63 }
 0x5e3   : > { %v14171_v2 = vpop.f32.mrf.mxu2 }
 0x5e4   : > { %v16186_v12 = vrot.slane %v14171_v2, 4  ;;  %v14174_v4 = vpop.f32.mrf.mxu0  ;;  %v14176_v41 = vpop.f32.mrf.mxu1 }
 0x5e6   : > { %v5440_v52 = vsel %vm4940_vm3, %v5406_v15, %v16186_v12 }
 0x5e7   : > { %v14182_v1 = vadd.f32 %v5440_v52, %v5194_v31 }
 0x5eb   : > { %v14184_v50 = vpop.f32.mrf.mxu2 }
 0x5ec   : > { %v14186_v11 = vpop.f32.mrf.mxu0  ;;  %v14188_v8 = vpop.f32.mrf.mxu1 }
 0x5f3   : > { %v14190_v23 = vpop.f32.mrf.mxu2 }
 0x5f4   : > { %v14192_v45 = vpop.f32.mrf.mxu0  ;;  %v14194_v29 = vpop.f32.mrf.mxu1 }
 0x5fb   : > { %v14196_v63 = vpop.f32.mrf.mxu2 }
 0x5fc   : > { %v14198_v5 = vpop.f32.mrf.mxu0  ;;  %v14200_v42 = vpop.f32.mrf.mxu1 }
 0x5fd   : > { %16563 = vst [vmem:[#allocation53_spill] sm:$0xff] %v14200_v42 }
 0x603   : > { %v14202_v31 = vpop.f32.mrf.mxu2 }
 0x604   : > { %v14204_v15 = vpop.f32.mrf.mxu0  ;;  %v14206_v52 = vpop.f32.mrf.mxu1 }
 0x605   : > { %16564 = vst [vmem:[#allocation43_spill] sm:$0xff] %v14206_v52 }
 0x60b   : > { %v14208_v12 = vpop.f32.mrf.mxu2 }
 0x60c   : > { %v14210_v49 = vpop.f32.mrf.mxu0  ;;  %v14212_v40 = vpop.f32.mrf.mxu1 }
 0x60d   : > { %16565 = vst [vmem:[#allocation38_spill] sm:$0xff] %v14210_v49 }
 0x60e   : > { %16566 = vst [vmem:[#allocation56_spill] sm:$0xff] %v14212_v40 }
 0x613   : > { %v14214_v14 = vpop.f32.mrf.mxu2 }
 0x614   : > { %v14216_v34 = vpop.f32.mrf.mxu0  ;;  %v14218_v27 = vpop.f32.mrf.mxu1 }
 0x615   : > { %16567 = vst [vmem:[#allocation19_spill] sm:$0xff] %v14216_v34 }
 0x616   : > { %16568 = vst [vmem:[#allocation59_spill] sm:$0xff] %v14218_v27 }
 0x61b   : > { %v14220_v28 = vpop.f32.mrf.mxu2 }
 0x61c   : > { %16569 = vst [vmem:[#allocation58_spill] sm:$0xff] %v14220_v28  ;;  %v14222_v46 = vpop.f32.mrf.mxu0  ;;  %v14224_v22 = vpop.f32.mrf.mxu1 }
 0x61d   : > { %16570 = vst [vmem:[#allocation57_spill] sm:$0xff] %v14222_v46 }
 0x61e   : > { %16571 = vst [vmem:[#allocation60_spill] sm:$0xff] %v14224_v22 }
 0x623   : > { %v14226_v59 = vpop.f32.mrf.mxu2 }
 0x624   : > { %16572 = vst [vmem:[#allocation61_spill] sm:$0xff] %v14226_v59  ;;  %v14228_v37 = vpop.f32.mrf.mxu0 }
 0x625   : > { %16573 = vst [vmem:[#allocation41_spill] sm:$0xff] %v14228_v37  ;;  %v14230_v42 = vpop.f32.mrf.mxu1 }
 0x626   : > { %16574 = vst [vmem:[#allocation20_spill] sm:$0xff] %v14230_v42 }
 0x62b   : > { %v14232_v49 = vpop.f32.mrf.mxu2 }
 0x62c   : > { %16575 = vst [vmem:[#allocation32_spill] sm:$0xff] %v14232_v49  ;;  %v14234_v40 = vpop.f32.mrf.mxu0 }
 0x62d   : > { %16576 = vst [vmem:[#allocation62_spill] sm:$0xff] %v14234_v40  ;;  %v14236_v52 = vpop.f32.mrf.mxu1 }
 0x62e   : > { %16577 = vst [vmem:[#allocation28_spill] sm:$0xff] %v14236_v52 }
 0x633   : > { %v14238_v34 = vpop.f32.mrf.mxu2 }
 0x634   : > { %16578 = vst [vmem:[#allocation26_spill] sm:$0xff] %v14238_v34  ;;  %v14240_v27 = vpop.f32.mrf.mxu0 }
 0x635   : > { %16579 = vst [vmem:[#allocation63_spill] sm:$0xff] %v14240_v27  ;;  %v14242_v28 = vpop.f32.mrf.mxu1 }
 0x636   : > { %16580 = vst [vmem:[#allocation64_spill] sm:$0xff] %v14242_v28 }
 0x63b   : > { %v14244_v46 = vpop.f32.mrf.mxu2 }
 0x63c   : > { %16581 = vst [vmem:[#allocation65_spill] sm:$0xff] %v14244_v46  ;;  %v14246_v22 = vpop.f32.mrf.mxu0 }
 0x63d   : > { %16582 = vst [vmem:[#allocation69_spill] sm:$0xff] %v14246_v22  ;;  %v14248_v59 = vpop.f32.mrf.mxu1 }
 0x63e   : > { %16583 = vst [vmem:[#allocation71_spill] sm:$0xff] %v14248_v59 }
 0x643   : > { %v14250_v37 = vpop.f32.mrf.mxu2 }
 0x644   : > { %16584 = vst [vmem:[#allocation70_spill] sm:$0xff] %v14250_v37  ;;  %v14252_v42 = vpop.f32.mrf.mxu0 }
 0x645   : > { %16585 = vst [vmem:[#allocation66_spill] sm:$0xff] %v14252_v42  ;;  %v14254_v49 = vpop.f32.mrf.mxu1 }
 0x646   : > { %16586 = vst [vmem:[#allocation33_spill] sm:$0xff] %v14254_v49  ;;  %v16595_v49 = vrot.slane %v13962_v61, 4 }
 0x64b   : > { %v14256_v40 = vpop.f32.mrf.mxu2 }
 0x64c   : > { %16587 = vst [vmem:[#allocation51_spill] sm:$0xff] %v14256_v40  ;;  %v14258_v52 = vpop.f32.mrf.mxu0  ;;  %v16596_v40 = vrot.slane %v13984_v38, 4 }
 0x64d   : > { %16588 = vst [vmem:[#allocation74_spill] sm:$0xff] %v14258_v52  ;;  %v14260_v34 = vpop.f32.mrf.mxu1 }
 0x64e   : > { %16589 = vst [vmem:[#allocation75_spill] sm:$0xff] %v14260_v34 }
 0x653   : > { %v14262_v27 = vpop.f32.mrf.mxu2 }
 0x654   : > { %16590 = vst [vmem:[#allocation25_spill] sm:$0xff] %v14262_v27  ;;  %v14264_v28 = vpop.f32.mrf.mxu0 }
 0x655   : > { %16591 = vst [vmem:[#allocation18_spill] sm:$0xff] %v14264_v28  ;;  %v14266_v46 = vpop.f32.mrf.mxu1  ;;  %v4938_v37 = vrot.slane %v14264_v28, 4 }
 0x656   : > { %16592 = vst [vmem:[#allocation31_spill] sm:$0xff] %v14266_v46  ;;  %v5392_v46 = vrot.slane %v13970_v32, 4 }
 0x658   : > { %v5454_v16 = vsel %vm4940_vm3, %v5392_v46, %v16596_v40 }
 0x65b   : > { %v14268_v22 = vpop.f32.mrf.mxu2 }
 0x65c   : > { %16593 = vst [vmem:[#allocation45_spill] sm:$0xff] %v14268_v22  ;;  %v4905_v59 = vpop.f32.mrf.mxu0 }
 0x65d   : > { %v4939_v42 = vrot.slane %v4905_v59, 4  ;;  %v5621_v59 = vadd.f32 %v14018_v51, %v13995_v3 }
 0x65f   : > { %v4972_v52 = vsel %vm4940_vm3, %v4939_v42, %v16595_v49  ;;  %v4941_v34 = vsel %vm4940_vm3, %v4938_v37, %v4939_v42  ;;  %v5235_v42 = vpop.f32.mrf.mxu1  ;;  %v14297_v38 = vmax.f32 %v5621_v59, 0.0  ;;  %v9869_v59 = vpop.permute.xlu2 %9868 }
 0x660   : > { %v5069_v27 = vsel %vm4973_vm6, %v4972_v52, 0.0  ;;  %v5236_v52 = vadd.f32 %v5235_v42, %v4941_v34  ;;  %v5403_v34 = vrot.slane %v14130_v19, 4  ;;  %v5626_v42 = vadd.f32 %v14018_v51, %v14068_v39 }
 0x661   : > { %v5159_v22 = vadd.f32 %v13966_v17, %v5069_v27  ;;  %v9870_v19 = vunpack.i.l.bf16 %v9869_v59  ;;  %vm8042_vm6 = vcmask 1047680  }
 0x662   : > { %v14326_v39 = vmax.f32 %v5626_v42, 0.0 }
 0x663   : > { %v5584_v61 = vadd.f32 %v5454_v16, %v5159_v22  ;;  %v14288_v49 = vpop.f32.mrf.mxu2  ;;  %v16597_v16 = vrot.slane %v14071_v47, 4 }
 0x664   : > { %v5423_v28 = vrot.slane %v14288_v49, 4 }
 0x665   : > { %v5620_v32 = vadd.f32 %v14018_v51, %v5584_v61  ;;  %v16598_v61 = vrot.slane %v14110_v18, 4  ;;  %v5404_v18 = vrot.slane %v14138_v57, 4 }
 0x666   : > { %v5455_v17 = vsel %vm4940_vm3, %v5423_v28, %v5392_v46  ;;  %v4962_v46 = vsel %vm4940_vm3, %v16597_v16, %v4918_v43 }
 0x667   : > { %v5583_v27 = vsel %vm5487_vm11, %v5455_v17, 0.0  ;;  %v14299_v3 = vmax.f32 %v5620_v32, 0.0  ;;  %v5444_v32 = vsel %vm4940_vm3, %v16598_v61, %v5403_v34  ;;  %v16599_v17 = vrot.slane %v14132_v10, 4 }
 0x668   : > { %v14301_v22 = vadd.f32 %v5583_v27, %v5236_v52  ;;  %v5184_v52 = vadd.f32 %v14091_v44, %v4962_v46  ;;  %v14329_v44 = vpop.permute.xlu0 %9873  ;;  %v5693_v10 = vsel %vm5684_vm13, %v9870_v19, %v14031_v36  ;;  %vm8490_vm11 = vcmask 130048  }
 0x669   : > { %v9862_v40 = vpack.i.bf16 %v14297_v38, %v14299_v3  ;;  %v4960_v27 = vsel %vm4940_vm3, %v4919_v20, %v16599_v17  ;;  %v4961_v17 = vsel %vm4940_vm3, %v4918_v43, %v4919_v20  ;;  %v9875_v19 = vunpack.i.l.bf16 %v14329_v44 }
 0x66a   : > { %v5594_v47 = vadd.f32 %v5444_v32, %v5184_v52  ;;  %v5081_v9 = vsel %vm4985_vm12, %v4960_v27, 0.0  ;;  %v5443_v32 = vsel %vm4940_vm3, %v5403_v34, %v5404_v18  ;;  %v16600_v27 = vrot.slane %v14146_v6, 4 }
 0x66b   : > { %9863 = vrot.lane.b32.xlu1 %v9862_v40, %s10744_s15  ;;  %v5563_v34 = vsel %vm5467_vm14, %v5443_v32, 0.0  ;;  %v9871_v43 = vunpack.i.h.bf16 %v9869_v59  ;;  %v5186_v6 = vadd.f32 %v14115_v21, %v4961_v17 }
 0x66c   : > { %v5630_v46 = vadd.f32 %v14018_v51, %v5594_v47  ;;  %v5189_v47 = vadd.f32 %v14134_v60, %v5081_v9 }
 0x66d   : > { %v5696_v60 = vsel %vm5684_vm13, %v9871_v43, %v14033_v0 }
 0x66e   : > { %v14356_v20 = vmax.f32 %v5630_v46, 0.0 }
 0x670   : > { %v9889_v46 = vpop.permute.xlu0 %9888 }
 0x6dd   : > { %v9864_v40 = vpop.permute.xlu1 %9863 }
 0x6de   : > { %v9866_v16 = vunpack.i.h.bf16 %v9864_v40  ;;  %v9865_v61 = vunpack.i.l.bf16 %v9864_v40  ;;  %v5442_v40 = vsel %vm4940_vm3, %v5404_v18, %v16600_v27 }
 0x6df   : > { %v5596_v18 = vadd.f32 %v5442_v40, %v5189_v47 }
 0x6e0   : > { %v5690_v13 = vsel %vm5684_vm13, %v9866_v16, %v14297_v38  ;;  %v5687_v57 = vsel %vm5684_vm13, %v9865_v61, %v14299_v3  ;;  %v5629_v16 = vadd.f32 %v14018_v51, %v14125_v7  ;;  %v5699_v61 = vsel %vm5684_vm13, %v9875_v19, %v14059_v26 }
 0x6e1   : > { %v9882_v42 = vpack.i.bf16 %v5693_v10, %v5690_v13  ;;  %v9877_v52 = vpack.i.bf16 %v5687_v57, %v14326_v39  ;;  %v5595_v7 = vadd.f32 %v5563_v34, %v5186_v6  ;;  %v5632_v9 = vadd.f32 %v14018_v51, %v5596_v18 }
 0x6e2   : > { %v14360_v13 = vmax.f32 %v5629_v16, 0.0  ;;  %v9892_v59 = vpack.i.bf16 %v5699_v61, %v5696_v60  ;;  %v4924_v61 = vrot.slane %v14174_v4, 4  ;;  %v5634_v4 = vadd.f32 %v14018_v51, %v14182_v1 }
 0x6e3   : > { %9883 = vrot.lane.b32.xlu2 %v9882_v42, %s10744_s15  ;;  %9878 = vrot.lane.b32.xlu1 %v9877_v52, %s10744_s15  ;;  %v5631_v21 = vadd.f32 %v14018_v51, %v5595_v7  ;;  %v14370_v10 = vmax.f32 %v5632_v9, 0.0  ;;  %v9891_v42 = vunpack.i.h.bf16 %v9889_v46  ;;  %v9890_v52 = vunpack.i.l.bf16 %v9889_v46 }
 0x6e4   : > { %v9897_v35 = vpack.i.bf16 %v14356_v20, %v14360_v13  ;;  %v4923_v7 = vrot.slane %v14161_v33, 4  ;;  %v9876_v9 = vunpack.i.h.bf16 %v14329_v44  ;;  %v5409_v46 = vrot.slane %v14190_v23, 4 }
 0x6e5   : > { %v14372_v57 = vmax.f32 %v5631_v21, 0.0  ;;  %v5708_v17 = vsel %vm5684_vm13, %v9890_v52, %v14106_v56  ;;  %v5711_v27 = vsel %vm5684_vm13, %v9891_v42, %v14108_v62  ;;  %v5633_v44 = vadd.f32 %v14018_v51, %v14169_v58 }
 0x6e6   : > { %v9922_v40 = vpack.i.bf16 %v5711_v27, %v5708_v17  ;;  %v4956_v60 = vsel %vm4940_vm3, %v4923_v7, %v4924_v61  ;;  %v16601_v1 = vrot.slane %v14171_v2, 4  ;;  %v4926_v2 = vrot.slane %v14192_v45, 4 }
 0x6e7   : > { %v9907_v32 = vpack.i.bf16 %v14370_v10, %v14372_v57  ;;  %v5085_v52 = vsel %vm4989_vm15, %v4956_v60, 0.0 }
 0x6eb   : > { %9898 = vrot.lane.b32.xlu2 %v9897_v35, %s10744_s15  ;;  %9893 = vrot.lane.b32.xlu1 %v9892_v59, %s10744_s15  ;;  %v5408_v59 = vrot.slane %v14184_v50, 4  ;;  %v5702_v50 = vsel %vm5684_vm13, %v9876_v9, %v14061_v24 }
 0x6ed   : > { %v5439_v53 = vsel %vm4940_vm3, %v16601_v1, %v5408_v59  ;;  %v5413_v1 = vrot.slane %v14214_v14, 4 }
 0x6ee   : > { %v5567_v58 = vsel %vm5471_vm1, %v5439_v53, 0.0 }
 0x6f3   : > { %9908 = vrot.lane.b32.xlu1 %v9907_v32, %s10744_s15 }
 0x6fb   : > { %9923 = vrot.lane.b32.xlu1 %v9922_v40, %s10744_s15  ;;  %v16602_v40 = vrot.slane %v14148_v48, 4 }
 0x73d   : > { %v9884_v19 = vpop.permute.xlu2 %9883 }
 0x73e   : > { %v9885_v35 = vunpack.i.l.bf16 %v9884_v19 }
 0x740   : > { %v5846_v30 = vsel %vm5684_vm13, %v9885_v35, %v14297_v38  ;;  %v5411_v35 = vrot.slane %v14202_v31, 4 }
 0x745   : > { %v9899_v16 = vpop.permute.xlu2 %9898 }
 0x746   : > { %v9901_v47 = vunpack.i.h.bf16 %v9899_v16  ;;  %v9900_v34 = vunpack.i.l.bf16 %v9899_v16  ;;  %v4957_v16 = vsel %vm4940_vm3, %v16602_v40, %v4923_v7  ;;  %v4925_v7 = vrot.slane %v14186_v11, 4 }
 0x747   : > { %v5196_v48 = vadd.f32 %v14163_v25, %v4957_v16 }
 0x748   : > { %v5714_v43 = vsel %vm5684_vm13, %v9900_v34, %v14360_v13  ;;  %v5717_v6 = vsel %vm5684_vm13, %v9901_v47, %v14356_v20  ;;  %v5438_v47 = vsel %vm4940_vm3, %v5408_v59, %v5409_v46  ;;  %v14418_v34 = vmax.f32 %v5634_v4, 0.0 }
 0x749   : > { %v9937_v18 = vpack.i.bf16 %v5717_v6, %v5714_v43  ;;  %v5199_v43 = vadd.f32 %v14176_v41, %v5085_v52  ;;  %v9886_v6 = vunpack.i.h.bf16 %v9884_v19  ;;  %v5599_v59 = vadd.f32 %v5567_v58, %v5196_v48 }
 0x74a   : > { %v4954_v45 = vsel %vm4940_vm3, %v4925_v7, %v4926_v2  ;;  %v5410_v19 = vrot.slane %v14196_v63, 4  ;;  %v4955_v31 = vsel %vm4940_vm3, %v4924_v61, %v4925_v7  ;;  %v16604_v7 = vld [vmem:[#allocation43_spill] sm:$0xff] }
 0x74b   : > { %9938 = vrot.lane.b32.xlu1 %v9937_v18, %s10744_s15  ;;  %v14424_v18 = vmax.f32 %v5633_v44, 0.0  ;;  %v5600_v60 = vadd.f32 %v5438_v47, %v5199_v43  ;;  %v5847_v25 = vsel %vm5684_vm13, %v9886_v6, %v14031_v36  ;;  %v5204_v63 = vadd.f32 %v14194_v29, %v4954_v45 }
 0x74c   : > { %v5436_v52 = vsel %vm4940_vm3, %v5410_v19, %v5411_v35  ;;  %v5201_v61 = vadd.f32 %v14188_v8, %v4955_v31  ;;  %v5412_v29 = vrot.slane %v14208_v12, 4  ;;  %v16608_v31 = vld [vmem:[#allocation61_spill] sm:$0xff] }
 0x74e   : > { %v5435_v12 = vsel %vm4940_vm3, %v5411_v35, %v5412_v29  ;;  %v5434_v6 = vsel %vm4940_vm3, %v5412_v29, %v5413_v1  ;;  %v16605_v35 = vld [vmem:[#allocation19_spill] sm:$0xff] }
 0x755   : > { %v9879_v21 = vpop.permute.xlu1 %9878 }
 0x756   : > { %v9881_v32 = vunpack.i.h.bf16 %v9879_v21  ;;  %v9880_v42 = vunpack.i.l.bf16 %v9879_v21  ;;  %v9927_v21 = vpack.i.bf16 %v14418_v34, %v14424_v18 }
 0x758   : > { %v5845_v33 = vsel %vm5684_vm13, %v9881_v32, %v14299_v3  ;;  %v5705_v23 = vsel %vm5684_vm13, %v9880_v42, %v14326_v39  ;;  %v5636_v32 = vadd.f32 %v14018_v51, %v5600_v60  ;;  %v4928_v42 = vrot.slane %v14204_v15, 4 }
 0x759   : > { %v9912_v17 = vpack.i.bf16 %v5846_v30, %v5845_v33  ;;  %v9902_v27 = vpack.i.bf16 %v5705_v23, %v5702_v50  ;;  %v5635_v33 = vadd.f32 %v14018_v51, %v5599_v59  ;;  %v4927_v30 = vrot.slane %v14198_v5, 4 }
 0x75a   : > { %v5437_v50 = vsel %vm4940_vm3, %v5409_v46, %v5410_v19  ;;  %v14456_v15 = vmax.f32 %v5636_v32, 0.0  ;;  %v5602_v23 = vadd.f32 %v5436_v52, %v5204_v63  ;;  %v16603_v46 = vld [vmem:[#allocation23_spill] sm:$0xff]  ;;  %v4930_v59 = vrot.slane %v16605_v35, 4  ;;  %v16609_v63 = vld [vmem:[#allocation58_spill] sm:$0xff] }
 0x75b   : > { %9913 = vrot.lane.b32.xlu2 %v9912_v17, %s10743_s16  ;;  %9903 = vrot.lane.b32.xlu0 %v9902_v27, %s10744_s15  ;;  %v4952_v44 = vsel %vm4940_vm3, %v4927_v30, %v4928_v42  ;;  %v14462_v27 = vmax.f32 %v5635_v33, 0.0  ;;  %v5601_v8 = vadd.f32 %v5437_v50, %v5201_v61  ;;  %vm5475_vm4 = vcmp.lt.s32.totalorder %v16603_v46, 28 }
 0x75c   : > { %v5089_v40 = vsel %vm4993_vm2, %v4952_v44, 0.0  ;;  %v5638_v47 = vadd.f32 %v14018_v51, %v5602_v23  ;;  %v4953_v58 = vsel %vm4940_vm3, %v4926_v2, %v4927_v30  ;;  %v5415_v32 = vrot.slane %v16608_v31, 4  ;;  %v16610_v23 = vld [vmem:[#allocation41_spill] sm:$0xff] }
 0x75d   : > { %v14428_v9 = vpop.permute.xlu1 %9893  ;;  %v9942_v14 = vpack.i.bf16 %v14456_v15, %v14462_v27  ;;  %v5637_v48 = vadd.f32 %v14018_v51, %v5601_v8  ;;  %v5209_v60 = vadd.f32 %v16604_v7, %v5089_v40  ;;  %v5414_v30 = vrot.slane %v16609_v63, 4  ;;  %v16612_v40 = vld [vmem:[#allocation57_spill] sm:$0xff] }
 0x75e   : > { %v9895_v41 = vunpack.i.l.bf16 %v14428_v9  ;;  %v14484_v19 = vmax.f32 %v5638_v47, 0.0  ;;  %v4932_v44 = vrot.slane %v16610_v23, 4  ;;  %v4931_v46 = vrot.slane %v16612_v40, 4  ;;  %v16614_v47 = vld [vmem:[#allocation72_spill] sm:$0xff] }
 0x75f   : > { %vm4997_vm0 = vcmp.ge.s32.totalorder %v16614_v47, 4 }
 0x760   : > { %v5848_v11 = vsel %vm5684_vm13, %v9895_v41, %v14033_v0  ;;  %v5571_v41 = vsel %vm5475_vm4, %v5435_v12, 0.0 }
 0x761   : > { %v9917_v4 = vpack.i.bf16 %v5848_v11, %v5847_v25  ;;  %v16607_v25 = vld [vmem:[#allocation38_spill] sm:$0xff]  ;;  %v5604_v11 = vadd.f32 %v5434_v6, %v5209_v60 }
 0x762   : > { %v4929_v2 = vrot.slane %v16607_v25, 4 }
 0x763   : > { %9928 = vrot.lane.b32.xlu2 %v9927_v21, %s10744_s15  ;;  %9918 = vrot.lane.b32.xlu0 %v9917_v4, %s10743_s16  ;;  %v16606_v21 = vld [vmem:[#allocation53_spill] sm:$0xff]  ;;  %v14488_v4 = vmax.f32 %v5637_v48, 0.0  ;;  %v5640_v50 = vadd.f32 %v14018_v51, %v5604_v11  ;;  %v16616_v48 = vld [vmem:[#allocation26_spill] sm:$0xff] }
 0x764   : > { %v5206_v45 = vadd.f32 %v16606_v21, %v4953_v58  ;;  %v4950_v33 = vsel %vm4940_vm3, %v4929_v2, %v4930_v59  ;;  %v4951_v61 = vsel %vm4940_vm3, %v4928_v42, %v4929_v2  ;;  %v16615_v58 = vld [vmem:[#allocation32_spill] sm:$0xff]  ;;  %v5417_v7 = vrot.slane %v16616_v48, 4 }
 0x765   : > { %v9909_v5 = vpop.permute.xlu1 %9908  ;;  %v9957_v29 = vpack.i.bf16 %v14484_v19, %v14488_v4  ;;  %v14509_v12 = vmax.f32 %v5640_v50, 0.0  ;;  %v5416_v6 = vrot.slane %v16615_v58, 4  ;;  %v4949_v2 = vsel %vm4940_vm3, %v4930_v59, %v4931_v46  ;;  %v16622_v59 = vld [vmem:[#allocation70_spill] sm:$0xff] }
 0x766   : > { %v9911_v53 = vunpack.i.h.bf16 %v9909_v5  ;;  %v9910_v17 = vunpack.i.l.bf16 %v9909_v5  ;;  %v5603_v52 = vadd.f32 %v5571_v41, %v5206_v45  ;;  %v5432_v5 = vsel %vm4940_vm3, %v5414_v30, %v5415_v32  ;;  %v16617_v45 = vld [vmem:[#allocation73_spill] sm:$0xff] }
 0x767   : > { %vm5479_vm5 = vcmp.lt.s32.totalorder %v16617_v45, 28  ;;  %v5430_v11 = vsel %vm4940_vm3, %v5416_v6, %v5417_v7  ;;  %v16627_v45 = vld [vmem:[#allocation28_spill] sm:$0xff] }
 0x768   : > { %v5720_v54 = vsel %vm5684_vm13, %v9910_v17, %v14372_v57  ;;  %v5723_v16 = vsel %vm5684_vm13, %v9911_v53, %v14370_v10  ;;  %v5639_v53 = vadd.f32 %v14018_v51, %v5603_v52  ;;  %v16611_v17 = vld [vmem:[#allocation59_spill] sm:$0xff]  ;;  %v16618_v52 = vld [vmem:[#allocation20_spill] sm:$0xff] }
 0x769   : > { %v9952_v43 = vpack.i.bf16 %v5723_v16, %v5720_v54  ;;  %v5214_v8 = vadd.f32 %v16611_v17, %v4950_v33  ;;  %v16613_v54 = vld [vmem:[#allocation56_spill] sm:$0xff]  ;;  %v5433_v16 = vsel %vm4940_vm3, %v5413_v1, %v5414_v30  ;;  %v5431_v1 = vsel %vm4940_vm3, %v5415_v32, %v5416_v6  ;;  %v16619_v30 = vld [vmem:[#allocation63_spill] sm:$0xff] }
 0x76a   : > { %v5211_v42 = vadd.f32 %v16613_v54, %v4951_v61  ;;  %v14515_v60 = vmax.f32 %v5639_v53, 0.0  ;;  %v5575_v63 = vsel %vm5479_vm5, %v5431_v1, 0.0  ;;  %v4934_v32 = vrot.slane %v16619_v30, 4  ;;  %v16620_v61 = vld [vmem:[#allocation60_spill] sm:$0xff]  ;;  %v16623_v54 = vld [vmem:[#allocation65_spill] sm:$0xff] }
 0x76b   : > { %9943 = vrot.lane.b32.xlu2 %v9942_v14, %s10744_s15  ;;  %9953 = vrot.lane.b32.xlu1 %v9952_v43, %s10744_s15  ;;  %v5606_v14 = vadd.f32 %v5432_v5, %v5214_v8  ;;  %v4948_v43 = vsel %vm4940_vm3, %v4931_v46, %v4932_v44  ;;  %v5216_v50 = vadd.f32 %v16620_v61, %v4949_v2  ;;  %v5419_v17 = vrot.slane %v16622_v59, 4  ;;  %v16628_v2 = vld [vmem:[#allocation37_spill] sm:$0xff]  ;;  %v16631_v59 = vld [vmem:[#allocation48_spill] sm:$0xff] }
 0x76c   : > { %v5605_v41 = vadd.f32 %v5433_v16, %v5211_v42  ;;  %v5093_v35 = vsel %vm4997_vm0, %v4948_v43, 0.0  ;;  %v9972_v25 = vpack.i.bf16 %v14509_v12, %v14515_v60  ;;  %v5418_v42 = vrot.slane %v16623_v54, 4  ;;  %v16630_v30 = vld [vmem:[#allocation25_spill] sm:$0xff] }
 0x76d   : > { %v5642_v21 = vadd.f32 %v14018_v51, %v5606_v14  ;;  %v5219_v33 = vadd.f32 %v16618_v52, %v5093_v35  ;;  %v5607_v40 = vadd.f32 %v5575_v63, %v5216_v50  ;;  %v16624_v14 = vld [vmem:[#allocation66_spill] sm:$0xff]  ;;  %vm5001_vm7 = vcmp.ge.s32.totalorder %v16628_v2, 4 }
 0x76e   : > { %v5641_v31 = vadd.f32 %v14018_v51, %v5605_v41  ;;  %v4936_v43 = vrot.slane %v16624_v14, 4  ;;  %v5428_v6 = vsel %vm4940_vm3, %v5418_v42, %v5419_v17  ;;  %v16625_v41 = vld [vmem:[#allocation64_spill] sm:$0xff]  ;;  %v5421_v61 = vrot.slane %v16630_v30, 4  ;;  %v16637_v30 = vld [vmem:[#allocation31_spill] sm:$0xff] }
 0x76f   : > { %v14532_v23 = vmax.f32 %v5642_v21, 0.0  ;;  %v5608_v53 = vadd.f32 %v5430_v11, %v5219_v33  ;;  %v5643_v48 = vadd.f32 %v14018_v51, %v5607_v40  ;;  %v16626_v21 = vld [vmem:[#allocation69_spill] sm:$0xff]  ;;  %v16629_v33 = vld [vmem:[#allocation51_spill] sm:$0xff]  ;;  %vm5483_vm8 = vcmp.lt.s32.totalorder %v16631_v59, 28 }
 0x770   : > { %v14536_v8 = vmax.f32 %v5641_v31, 0.0  ;;  %v4935_v1 = vrot.slane %v16626_v21, 4  ;;  %v5420_v63 = vrot.slane %v16629_v33, 4 }
 0x771   : > { %v5644_v47 = vadd.f32 %v14018_v51, %v5608_v53  ;;  %v14563_v50 = vmax.f32 %v5643_v48, 0.0 }
 0x772   : > { %v9987_v58 = vpack.i.bf16 %v14532_v23, %v14536_v8  ;;  %v4944_v52 = vsel %vm4940_vm3, %v4935_v1, %v4936_v43  ;;  %v5426_v54 = vsel %vm4940_vm3, %v5420_v63, %v5421_v61 }
 0x773   : > { %9958 = vrot.lane.b32.xlu2 %v9957_v29, %s10744_s15  ;;  %v16621_v29 = vld [vmem:[#allocation62_spill] sm:$0xff]  ;;  %v14557_v11 = vmax.f32 %v5644_v47, 0.0 }
 0x774   : > { %v4933_v5 = vrot.slane %v16621_v29, 4 }
 0x775   : > { %v9997_v40 = vpack.i.bf16 %v14557_v11, %v14563_v50 }
 0x776   : > { %v4946_v46 = vsel %vm4940_vm3, %v4933_v5, %v4934_v32  ;;  %v4947_v16 = vsel %vm4940_vm3, %v4932_v44, %v4933_v5  ;;  %v5097_v5 = vsel %vm5001_vm7, %v4944_v52, 0.0 }
 0x777   : > { %v5224_v35 = vadd.f32 %v16625_v41, %v4946_v46  ;;  %v5221_v44 = vadd.f32 %v16627_v45, %v4947_v16  ;;  %v4945_v46 = vsel %vm4940_vm3, %v4934_v32, %v4935_v1  ;;  %v16632_v16 = vld [vmem:[#allocation33_spill] sm:$0xff]  ;;  %v16634_v41 = vld [vmem:[#allocation74_spill] sm:$0xff] }
 0x778   : > { %v5229_v47 = vadd.f32 %v16632_v16, %v5097_v5  ;;  %v16638_v5 = vld [vmem:[#allocation75_spill] sm:$0xff]  ;;  %v9512_v1 = vld [vmem:[%s15987_s7 + $0x8] sm:$0xff] }
 0x779   : > { %v5610_v31 = vadd.f32 %v5428_v6, %v5224_v35  ;;  %v4937_v35 = vrot.slane %v16634_v41, 4  ;;  %v9514_v16 = vld [vmem:[%s15987_s7 + $0x18] sm:$0xff] }
 0x77a   : > { %v5612_v48 = vadd.f32 %v5426_v54, %v5229_v47  ;;  %v9510_v47 = vld [vmem:[%s15987_s7 + $0x38] sm:$0xff]  ;;  %6243 = vmatpush.bf16.msra.mxu3 %v9514_v16 }
 0x77b   : > { %9973 = vrot.lane.b32.xlu2 %v9972_v25, %s10744_s15  ;;  %v5429_v25 = vsel %vm4940_vm3, %v5417_v7, %v5418_v42  ;;  %v5646_v53 = vadd.f32 %v14018_v51, %v5610_v31  ;;  %v5427_v7 = vsel %vm4940_vm3, %v5419_v17, %v5420_v63  ;;  %v4942_v45 = vsel %vm4940_vm3, %v4937_v35, %v4938_v37 }
 0x77c   : > { %v5609_v29 = vadd.f32 %v5429_v25, %v5221_v44  ;;  %v5579_v14 = vsel %vm5483_vm8, %v5427_v7, 0.0  ;;  %v16636_v44 = vld [vmem:[#allocation45_spill] sm:$0xff]  ;;  %v5648_v2 = vadd.f32 %v14018_v51, %v5612_v48  ;;  %v4943_v52 = vsel %vm4940_vm3, %v4936_v43, %v4937_v35  ;;  %6484 = vmatpush.bf16.msra.mxu0 %v9510_v47  ;;  %v9517_v48 = vld [vmem:[%s15987_s7 + $0x50] sm:$0xff] }
 0x77d   : > { %v14579_v6 = vmax.f32 %v5646_v53, 0.0  ;;  %v5422_v25 = vrot.slane %v16636_v44, 4  ;;  %v5231_v53 = vadd.f32 %v16638_v5, %v4943_v52  ;;  %v9516_v44 = vld [vmem:[%s15987_s7 + $0x48] sm:$0xff]  ;;  %v9511_v52 = vld [vmem:[%s15987_s7] sm:$0xff] }
 0x77e   : > { %v5645_v42 = vadd.f32 %v14018_v51, %v5609_v29  ;;  %v5234_v29 = vadd.f32 %v16637_v30, %v4942_v45  ;;  %v14604_v7 = vmax.f32 %v5648_v2, 0.0  ;;  %v9508_v45 = vld [vmem:[%s15987_s7 + $0x28] sm:$0xff] }
 0x77f   : > { %v5424_v33 = vsel %vm4940_vm3, %v5422_v25, %v5423_v28  ;;  %v5425_v37 = vsel %vm4940_vm3, %v5421_v61, %v5422_v25 }
 0x780   : > { %v14582_v21 = vmax.f32 %v5645_v42, 0.0  ;;  %v5614_v59 = vadd.f32 %v5424_v33, %v5234_v29  ;;  %v5613_v49 = vadd.f32 %v5425_v37, %v5231_v53  ;;  %v9507_v33 = vld [vmem:[%s15987_s7 + $0x20] sm:$0xff] }
 0x782   : > { %v10012_v31 = vpack.i.bf16 %v14579_v6, %v14582_v21 }
 0x783   : > { %9988 = vrot.lane.b32.xlu2 %v9987_v58, %s10744_s15  ;;  %v16633_v58 = vld [vmem:[#allocation71_spill] sm:$0xff] }
 0x784   : > { %v5226_v17 = vadd.f32 %v16633_v58, %v4945_v46  ;;  %v5649_v46 = vadd.f32 %v14018_v51, %v5613_v49  ;;  %v9513_v58 = vld [vmem:[%s15987_s7 + $0x10] sm:$0xff]  ;;  %v9896_v49 = vunpack.i.h.bf16 %v14428_v9 }
 0x785   : > { %6244 = vmatpush.bf16.msra.mxu3 %v9513_v58  ;;  %v9924_v58 = vpop.permute.xlu1 %9923 }
 0x786   : > { %v5611_v32 = vadd.f32 %v5579_v14, %v5226_v17  ;;  %v14615_v61 = vmax.f32 %v5649_v46, 0.0  ;;  %v9509_v17 = vld [vmem:[%s15987_s7 + $0x30] sm:$0xff] }
 0x787   : > { %6485 = vmatpush.bf16.msra.mxu0 %v9509_v17  ;;  %v5849_v17 = vsel %vm5684_vm13, %v9896_v49, %v14059_v26 }
 0x788   : > { %v5647_v63 = vadd.f32 %v14018_v51, %v5611_v32 }
 0x789   : > { %6245 = vmatpush.bf16.msra.mxu3 %v9512_v1 }
 0x78a   : > { %v14606_v43 = vmax.f32 %v5647_v63, 0.0  ;;  %v9515_v63 = vld [vmem:[%s15987_s7 + $0x40] sm:$0xff] }
 0x78b   : > { %9998 = vrot.lane.b32.xlu2 %v9997_v40, %s10744_s15  ;;  %v5650_v40 = vadd.f32 %v14018_v51, %v5614_v59  ;;  %v9518_v51 = vld [vmem:[%s15987_s7 + $0x58] sm:$0xff]  ;;  %6486 = vmatpush.bf16.msra.mxu0 %v9508_v45 }
 0x78c   : > { %v10027_v28 = vpack.i.bf16 %v14604_v7, %v14606_v43  ;;  %6606 = vmatpush.bf16.msrb.mxu1 %v9518_v51 }
 0x78d   : > { %v14613_v54 = vmax.f32 %v5650_v40, 0.0  ;;  %6246 = vmatpush.bf16.msra.mxu3 %v9511_v52 }
 0x78f   : > { %v10042_v42 = vpack.i.bf16 %v14613_v54, %v14615_v61  ;;  %6487 = vmatpush.bf16.msra.mxu0 %v9507_v33 }
 0x790   : > { %6607 = vmatpush.bf16.msrb.mxu1 %v9517_v48 }
 0x793   : > { %10013 = vrot.lane.b32.xlu2 %v10012_v31, %s10744_s15 }
 0x794   : > { %6608 = vmatpush.bf16.msrb.mxu1 %v9516_v44  ;;  %v9925_v44 = vunpack.i.l.bf16 %v9924_v58 }
 0x798   : > { %6609 = vmatpush.bf16.msrb.mxu1 %v9515_v63 }
 0x79b   : > { %10028 = vrot.lane.b32.xlu2 %v10027_v28, %s10744_s15 }
 0x7a3   : > { %10043 = vrot.lane.b32.xlu2 %v10042_v42, %s10744_s15 }
 0x7b5   : > { %v9914_v14 = vpop.permute.xlu2 %9913 }
 0x7b6   : > { %v9916_v40 = vunpack.i.h.bf16 %v9914_v14  ;;  %v9915_v28 = vunpack.i.l.bf16 %v9914_v14 }
 0x7b8   : > { %v6006_v48 = vmax.f32 %v14297_v38, %v9916_v40 }
 0x7ba   : > { %v6038_v38 = vrot.slane %v6006_v48, 4 }
 0x7bd   : > { %v9929_v41 = vpop.permute.xlu2 %9928 }
 0x7be   : > { %v9931_v35 = vunpack.i.h.bf16 %v9929_v41  ;;  %v9930_v32 = vunpack.i.l.bf16 %v9929_v41 }
 0x7c0   : > { %v5726_v25 = vsel %vm5684_vm13, %v9930_v32, %v14424_v18  ;;  %v5729_v2 = vsel %vm5684_vm13, %v9931_v35, %v14418_v34  ;;  %v14677_v35 = vmax.f32 %v14299_v3, %v9915_v28 }
 0x7c1   : > { %v9967_v31 = vpack.i.bf16 %v5729_v2, %v5726_v25 }
 0x7c2   : > { %v6037_v25 = vrot.slane %v14677_v35, 4 }
 0x7c3   : > { %9968 = vrot.lane.b32.xlu1 %v9967_v31, %s10744_s15 }
 0x7c5   : > { %v9944_v30 = vpop.permute.xlu2 %9943 }
 0x7c6   : > { %v9946_v29 = vunpack.i.h.bf16 %v9944_v30  ;;  %v9945_v37 = vunpack.i.l.bf16 %v9944_v30 }
 0x7c8   : > { %v5732_v5 = vsel %vm5684_vm13, %v9945_v37, %v14462_v27  ;;  %v5735_v53 = vsel %vm5684_vm13, %v9946_v29, %v14456_v15  ;;  %v9939_v29 = vpop.permute.xlu1 %9938  ;;  %v5852_v37 = vsel %vm5684_vm13, %v9925_v44, %v14106_v56 }
 0x7c9   : > { %v9982_v59 = vpack.i.bf16 %v5735_v53, %v5732_v5 }
 0x7cb   : > { %9983 = vrot.lane.b32.xlu1 %v9982_v59, %s10744_s15 }
 0x7cd   : > { %v9959_v46 = vpop.permute.xlu2 %9958  ;;  %v9904_v42 = vpop.permute.xlu0 %9903 }
 0x7ce   : > { %v9961_v16 = vunpack.i.h.bf16 %v9959_v46  ;;  %v9960_v47 = vunpack.i.l.bf16 %v9959_v46  ;;  %v9905_v51 = vunpack.i.l.bf16 %v9904_v42  ;;  %v9906_v32 = vunpack.i.h.bf16 %v9904_v42 }
 0x7cf   : > { %v6099_v46 = vsel %vm4940_vm3, %v6037_v25, %v6038_v38  ;;  %v9940_v42 = vunpack.i.l.bf16 %v9939_v29 }
 0x7d0   : > { %v5738_v41 = vsel %vm5684_vm13, %v9960_v47, %v14488_v4  ;;  %v5741_v9 = vsel %vm5684_vm13, %v9961_v16, %v14484_v19  ;;  %v5850_v14 = vsel %vm5684_vm13, %v9905_v51, %v14061_v24  ;;  %v5851_v52 = vsel %vm5684_vm13, %v9906_v32, %v14326_v39 }
 0x7d1   : > { %v9992_v1 = vpack.i.bf16 %v5741_v9, %v5738_v41  ;;  %v9932_v45 = vpack.i.bf16 %v5850_v14, %v5849_v17  ;;  %v9947_v28 = vpack.i.bf16 %v5852_v37, %v5851_v52  ;;  %v6101_v17 = vmax.f32 %v14677_v35, %v6099_v46 }
 0x7d3   : > { %9993 = vrot.lane.b32.xlu1 %v9992_v1, %s10744_s15  ;;  %9933 = vrot.lane.b32.xlu0 %v9932_v45, %s10743_s16 }
 0x7d5   : > { %v9974_v2 = vpop.permute.xlu2 %9973  ;;  %v9919_v31 = vpop.permute.xlu0 %9918 }
 0x7d6   : > { %v9976_v33 = vunpack.i.h.bf16 %v9974_v2  ;;  %v9975_v63 = vunpack.i.l.bf16 %v9974_v2  ;;  %v9921_v3 = vunpack.i.h.bf16 %v9919_v31  ;;  %v9920_v30 = vunpack.i.l.bf16 %v9919_v31 }
 0x7d8   : > { %v14687_v5 = vmax.f32 %v14033_v0, %v9921_v3  ;;  %v14690_v53 = vmax.f32 %v14031_v36, %v9920_v30  ;;  %v5744_v59 = vsel %vm5684_vm13, %v9975_v63, %v14515_v60  ;;  %v5747_v49 = vsel %vm5684_vm13, %v9976_v33, %v14509_v12 }
 0x7d9   : > { %v10007_v40 = vpack.i.bf16 %v5747_v49, %v5744_v59  ;;  %v9926_v36 = vunpack.i.h.bf16 %v9924_v58  ;;  %v5854_v58 = vsel %vm5684_vm13, %v9940_v42, %v14360_v13  ;;  %v9941_v63 = vunpack.i.h.bf16 %v9939_v29 }
 0x7da   : > { %v6040_v0 = vrot.slane %v14687_v5, 4  ;;  %v6039_v16 = vrot.slane %v14690_v53, 4 }
 0x7db   : > { %10008 = vrot.lane.b32.xlu1 %v10007_v40, %s10744_s15  ;;  %9948 = vrot.lane.b32.xlu0 %v9947_v28, %s10743_s16  ;;  %v5855_v28 = vsel %vm5684_vm13, %v9941_v63, %v14356_v20 }
 0x7dc   : > { %v14708_v47 = vsel %vm4940_vm3, %v6039_v16, %v6040_v0  ;;  %v6098_v51 = vsel %vm4940_vm3, %v6038_v38, %v6039_v16 }
 0x7dd   : > { %v6102_v41 = vmax.f32 %v6006_v48, %v6098_v51  ;;  %v6103_v9 = vmax.f32 %v14690_v53, %v14708_v47  ;;  %v9989_v14 = vpop.permute.xlu2 %9988  ;;  %v9954_v44 = vpop.permute.xlu1 %9953  ;;  %v5853_v48 = vsel %vm5684_vm13, %v9926_v36, %v14108_v62 }
 0x7de   : > { %v9991_v32 = vunpack.i.h.bf16 %v9989_v14  ;;  %v9990_v1 = vunpack.i.l.bf16 %v9989_v14  ;;  %v9962_v52 = vpack.i.bf16 %v5854_v58, %v5853_v48  ;;  %v9955_v33 = vunpack.i.l.bf16 %v9954_v44 }
 0x7df   : > { %v6133_v45 = vpack.c.bf16 %v6102_v41, %v6101_v17  ;;  %v9956_v16 = vunpack.i.h.bf16 %v9954_v44 }
 0x7e0   : > { %v5750_v2 = vsel %vm5684_vm13, %v9990_v1, %v14536_v8  ;;  %v5753_v38 = vsel %vm5684_vm13, %v9991_v32, %v14532_v23  ;;  %v5856_v59 = vsel %vm5684_vm13, %v9955_v33, %v14372_v57  ;;  %v10574_v1 = vld [vmem:[%s15986_s6] ss:$0 sm:$0xff] }
 0x7e1   : > { %9200 = vmatmul.msk.bf16.vlgmr.msra.gmra.mxu3 %vm6190_vm9, %v6133_v45  ;;  %9232 = vmatmul.msk.bf16.vlgmr.msra.gmra.mxu0 %vm6190_vm9, %v6133_v45  ;;  %v10022_v31 = vpack.i.bf16 %v5753_v38, %v5750_v2  ;;  %v9977_v42 = vpack.i.bf16 %v5856_v59, %v5855_v28  ;;  %v5857_v32 = vsel %vm5684_vm13, %v9956_v16, %v14370_v10 }
 0x7e2   : > { %9272 = vmatmul.msk.bf16.vlgmr.msrb.gmra.mxu1 %vm6190_vm9, %v6133_v45  ;;  %v5651_v58 = vadd.f32 %v10574_v1, %v14301_v22 }
 0x7e3   : > { %10023 = vrot.lane.b32.xlu1 %v10022_v31, %s10744_s15  ;;  %9963 = vrot.lane.b32.xlu0 %v9962_v52, %s10743_s16 }
 0x7e4   : > { %v14750_v2 = vmax.f32 %v5651_v58, 0.0 }
 0x7e5   : > { %v9999_v3 = vpop.permute.xlu2 %9998 }
 0x7e6   : > { %v10001_v30 = vunpack.i.h.bf16 %v9999_v3  ;;  %v10000_v37 = vunpack.i.l.bf16 %v9999_v3 }
 0x7e8   : > { %v5756_v49 = vsel %vm5684_vm13, %v10000_v37, %v14563_v50  ;;  %v5759_v40 = vsel %vm5684_vm13, %v10001_v30, %v14557_v11 }
 0x7e9   : > { %v10037_v46 = vpack.i.bf16 %v5759_v40, %v5756_v49 }
 0x7eb   : > { %10038 = vrot.lane.b32.xlu1 %v10037_v46, %s10744_s15  ;;  %9978 = vrot.lane.b32.xlu0 %v9977_v42, %s10743_s16 }
 0x7ed   : > { %v10014_v29 = vpop.permute.xlu2 %10013 }
 0x7ee   : > { %v10016_v36 = vunpack.i.h.bf16 %v10014_v29  ;;  %v10015_v51 = vunpack.i.l.bf16 %v10014_v29 }
 0x7f0   : > { %v5762_v17 = vsel %vm5684_vm13, %v10015_v51, %v14582_v21  ;;  %v5765_v41 = vsel %vm5684_vm13, %v10016_v36, %v14579_v6 }
 0x7f1   : > { %v10052_v14 = vpack.i.bf16 %v5765_v41, %v5762_v17 }
 0x7f3   : > { %10053 = vrot.lane.b32.xlu1 %v10052_v14, %s10744_s15  ;;  %5933 = vrot.lane.b32.xlu0 %v5857_v32, %s10743_s16 }
 0x7f5   : > { %v10029_v45 = vpop.permute.xlu2 %10028 }
 0x7f6   : > { %v10030_v44 = vunpack.i.l.bf16 %v10029_v45  ;;  %v10031_v31 = vunpack.i.h.bf16 %v10029_v45 }
 0x7f8   : > { %v5768_v38 = vsel %vm5684_vm13, %v10030_v44, %v14606_v43  ;;  %v5771_v33 = vsel %vm5684_vm13, %v10031_v31, %v14604_v7 }
 0x7f9   : > { %v10057_v48 = vpack.i.bf16 %v5768_v38, %v14750_v2 }
 0x7fb   : > { %10058 = vrot.lane.b32.xlu2 %v10057_v48, %s10744_s15 }
 0x7fd   : > { %v14756_v52 = vpop.permute.xlu2 %10043 }
 0x7fe   : > { %v10045_v22 = vunpack.i.l.bf16 %v14756_v52 }
 0x800   : > { %v5774_v63 = vsel %vm5684_vm13, %v10045_v22, %v14615_v61 }
 0x801   : > { %v10067_v3 = vpack.i.bf16 %v5774_v63, %v5771_v33 }
 0x803   : > { %10068 = vrot.lane.b32.xlu1 %v10067_v3, %s10744_s15 }
 0x835   : > { %v9969_v30 = vpop.permute.xlu1 %9968 }
 0x836   : > { %v9971_v37 = vunpack.i.h.bf16 %v9969_v30  ;;  %v9970_v59 = vunpack.i.l.bf16 %v9969_v30 }
 0x838   : > { %v5858_v49 = vsel %vm5684_vm13, %v9970_v59, %v14424_v18  ;;  %v5859_v40 = vsel %vm5684_vm13, %v9971_v37, %v14418_v34 }
 0x839   : > { %v10002_v28 = vpack.i.bf16 %v5859_v40, %v5858_v49 }
 0x83b   : > { %10003 = vrot.lane.b32.xlu0 %v10002_v28, %s10743_s16 }
 0x83d   : > { %v9984_v46 = vpop.permute.xlu1 %9983 }
 0x83e   : > { %v9986_v42 = vunpack.i.h.bf16 %v9984_v46  ;;  %v9985_v29 = vunpack.i.l.bf16 %v9984_v46 }
 0x840   : > { %v5860_v16 = vsel %vm5684_vm13, %v9985_v29, %v14462_v27  ;;  %v5861_v36 = vsel %vm5684_vm13, %v9986_v42, %v14456_v15 }
 0x841   : > { %v10017_v51 = vpack.i.bf16 %v5861_v36, %v5860_v16 }
 0x843   : > { %10018 = vrot.lane.b32.xlu0 %v10017_v51, %s10743_s16 }
 0x845   : > { %v9994_v17 = vpop.permute.xlu1 %9993  ;;  %v9934_v41 = vpop.permute.xlu0 %9933 }
 0x846   : > { %v9996_v14 = vunpack.i.h.bf16 %v9994_v17  ;;  %v9995_v32 = vunpack.i.l.bf16 %v9994_v17  ;;  %v9935_v1 = vunpack.i.l.bf16 %v9934_v41 }
 0x848   : > { %v6009_v58 = vmax.f32 %v14059_v26, %v9935_v1  ;;  %v5862_v45 = vsel %vm5684_vm13, %v9995_v32, %v14488_v4  ;;  %v5863_v44 = vsel %vm5684_vm13, %v9996_v14, %v14484_v19  ;;  %v9936_v26 = vunpack.i.h.bf16 %v9934_v41 }
 0x849   : > { %v10032_v38 = vpack.i.bf16 %v5863_v44, %v5862_v45  ;;  %v10046_v32 = vunpack.i.h.bf16 %v14756_v52 }
 0x84a   : > { %v6041_v48 = vrot.slane %v6009_v58, 4  ;;  %v6010_v28 = vmax.f32 %v14061_v24, %v9936_v26 }
 0x84b   : > { %10033 = vrot.lane.b32.xlu0 %v10032_v38, %s10743_s16  ;;  %v5777_v52 = vsel %vm5684_vm13, %v10046_v32, %v14613_v54 }
 0x84c   : > { %v6096_v31 = vsel %vm4940_vm3, %v6040_v0, %v6041_v48  ;;  %v6042_v47 = vrot.slane %v6010_v28, 4 }
 0x84d   : > { %v10009_v22 = vpop.permute.xlu1 %10008  ;;  %v9949_v33 = vpop.permute.xlu0 %9948  ;;  %v6104_v63 = vmax.f32 %v14687_v5, %v6096_v31 }
 0x84e   : > { %v10011_v3 = vunpack.i.h.bf16 %v10009_v22  ;;  %v10010_v30 = vunpack.i.l.bf16 %v10009_v22  ;;  %v9950_v37 = vunpack.i.l.bf16 %v9949_v33  ;;  %v6095_v17 = vsel %vm4940_vm3, %v6041_v48, %v6042_v47 }
 0x84f   : > { %v6134_v59 = vpack.c.bf16 %v6104_v63, %v6103_v9  ;;  %v6105_v45 = vmax.f32 %v6009_v58, %v6095_v17  ;;  %v9951_v38 = vunpack.i.h.bf16 %v9949_v33 }
 0x850   : > { %v14789_v49 = vmax.f32 %v14326_v39, %v9950_v37  ;;  %v5864_v40 = vsel %vm5684_vm13, %v10010_v30, %v14515_v60  ;;  %v5865_v0 = vsel %vm5684_vm13, %v10011_v3, %v14509_v12 }
 0x851   : > { %9201 = vmatmul.msk.bf16.gmra.mxu3 %vm6190_vm9, %v6134_v59  ;;  %9233 = vmatmul.msk.bf16.gmra.mxu0 %vm6190_vm9, %v6134_v59  ;;  %v10047_v5 = vpack.i.bf16 %v5865_v0, %v5864_v40 }
 0x852   : > { %9273 = vmatmul.msk.bf16.gmra.mxu1 %vm6190_vm9, %v6134_v59  ;;  %v6043_v39 = vrot.slane %v14789_v49, 4  ;;  %v6012_v59 = vmax.f32 %v14106_v56, %v9951_v38 }
 0x853   : > { %10048 = vrot.lane.b32.xlu0 %v10047_v5, %s10743_s16 }
 0x854   : > { %v6094_v29 = vsel %vm4940_vm3, %v6042_v47, %v6043_v39  ;;  %v6044_v0 = vrot.slane %v6012_v59, 4 }
 0x855   : > { %v10024_v53 = vpop.permute.xlu1 %10023  ;;  %v10059_v42 = vpop.permute.xlu2 %10058  ;;  %v6106_v14 = vmax.f32 %v6010_v28, %v6094_v29 }
 0x856   : > { %v10026_v9 = vunpack.i.h.bf16 %v10024_v53  ;;  %v10025_v46 = vunpack.i.l.bf16 %v10024_v53  ;;  %v9964_v36 = vpop.permute.xlu0 %9963  ;;  %v10060_v41 = vunpack.i.l.bf16 %v10059_v42  ;;  %v6093_v29 = vsel %vm4940_vm3, %v6043_v39, %v6044_v0 }
 0x857   : > { %v9965_v1 = vunpack.i.l.bf16 %v9964_v36  ;;  %v6135_v3 = vpack.c.bf16 %v6106_v14, %v6105_v45  ;;  %v9966_v17 = vunpack.i.h.bf16 %v9964_v36 }
 0x858   : > { %v5866_v16 = vsel %vm5684_vm13, %v10025_v46, %v14536_v8  ;;  %v5867_v24 = vsel %vm5684_vm13, %v10026_v9, %v14532_v23  ;;  %v5780_v63 = vsel %vm5684_vm13, %v10060_v41, %v14750_v2 }
 0x859   : > { %v10062_v51 = vpack.i.bf16 %v5867_v24, %v5866_v16  ;;  %v6013_v30 = vmax.f32 %v14108_v62, %v9965_v1  ;;  %v10077_v33 = vpack.i.bf16 %v5780_v63, %v5777_v52  ;;  %v6014_v32 = vmax.f32 %v14360_v13, %v9966_v17 }
 0x85a   : > { %v10061_v1 = vunpack.i.h.bf16 %v10059_v42 }
 0x85b   : > { %10063 = vrot.lane.b32.xlu0 %v10062_v51, %s10743_s16  ;;  %v6045_v62 = vrot.slane %v6013_v30, 4  ;;  %v6107_v51 = vmax.f32 %v14789_v49, %v6093_v29 }
 0x85d   : > { %v10039_v44 = vpop.permute.xlu1 %10038  ;;  %v6092_v53 = vsel %vm4940_vm3, %v6044_v0, %v6045_v62 }
 0x85e   : > { %v10041_v31 = vunpack.i.h.bf16 %v10039_v44  ;;  %v10040_v22 = vunpack.i.l.bf16 %v10039_v44  ;;  %v9979_v9 = vpop.permute.xlu0 %9978  ;;  %v6108_v16 = vmax.f32 %v6012_v59, %v6092_v53  ;;  %v6046_v44 = vrot.slane %v6014_v32, 4 }
 0x85f   : > { %v6611_v26 = vpop.f32.mrf.mxu1  ;;  %v9980_v24 = vunpack.i.l.bf16 %v9979_v9 }
 0x860   : > { %v5868_v48 = vsel %vm5684_vm13, %v10040_v22, %v14563_v50  ;;  %v5869_v37 = vsel %vm5684_vm13, %v10041_v31, %v14557_v11  ;;  %v6136_v41 = vpack.c.bf16 %v6108_v16, %v6107_v51  ;;  %v6091_v13 = vsel %vm4940_vm3, %v6045_v62, %v6046_v44 }
 0x861   : > { %9202 = vmatmul.msk.bf16.gmra.mxu3 %vm6190_vm9, %v6135_v3  ;;  %9234 = vmatmul.msk.bf16.gmra.mxu0 %vm6190_vm9, %v6135_v3  ;;  %v10072_v58 = vpack.i.bf16 %v5869_v37, %v5868_v48  ;;  %v6015_v14 = vmax.f32 %v14356_v20, %v9980_v24  ;;  %v5872_v20 = vsel %vm5684_vm13, %v10061_v1, %v14606_v43  ;;  %v9981_v26 = vunpack.i.h.bf16 %v9979_v9 }
 0x862   : > { %9274 = vmatmul.msk.bf16.gmra.mxu1 %vm6190_vm9, %v6135_v3  ;;  %v6109_v22 = vmax.f32 %v6013_v30, %v6091_v13 }
 0x863   : > { %10073 = vrot.lane.b32.xlu2 %v10072_v58, %s10743_s16  ;;  %10078 = vrot.lane.b32.xlu0 %v10077_v33, %s10744_s15  ;;  %v6047_v39 = vrot.slane %v6015_v14, 4  ;;  %v6016_v37 = vmax.f32 %v14372_v57, %v9981_v26  ;;  %s8547_s15 = scalar_lea.sflag [#allocation4], %s10934_s28 }
 0x865   : > { %v10054_v40 = vpop.permute.xlu1 %10053  ;;  %v6090_v49 = vsel %vm4940_vm3, %v6046_v44, %v6047_v39  ;;  %v6048_v58 = vrot.slane %v6016_v37, 4 }
 0x866   : > { %v10056_v5 = vunpack.i.h.bf16 %v10054_v40  ;;  %v10055_v28 = vunpack.i.l.bf16 %v10054_v40  ;;  %v6110_v42 = vmax.f32 %v6014_v32, %v6090_v49  ;;  %v5934_v63 = vpop.permute.xlu0 %5933 }
 0x867   : > { %v6017_v48 = vmax.f32 %v14370_v10, %v5934_v63  ;;  %v6089_v30 = vsel %vm4940_vm3, %v6047_v39, %v6048_v58 }
 0x868   : > { %v5870_v47 = vsel %vm5684_vm13, %v10055_v28, %v14582_v21  ;;  %v5871_v56 = vsel %vm5684_vm13, %v10056_v5, %v14579_v6  ;;  %v6137_v3 = vpack.c.bf16 %v6110_v42, %v6109_v22  ;;  %v6111_v62 = vmax.f32 %v6015_v14, %v6089_v30 }
 0x869   : > { %v10082_v46 = vpack.i.bf16 %v5871_v56, %v5870_v47  ;;  %v6049_v52 = vrot.slane %v6017_v48, 4 }
 0x86b   : > { %10083 = vrot.lane.b32.xlu1 %v10082_v46, %s10743_s16  ;;  %v6088_v33 = vsel %vm4940_vm3, %v6048_v58, %v6049_v52 }
 0x86c   : > { %v6112_v59 = vmax.f32 %v6016_v37, %v6088_v33 }
 0x86e   : > { %v6138_v40 = vpack.c.bf16 %v6112_v59, %v6111_v62 }
 0x871   : > { %9203 = vmatmul.msk.bf16.gmra.mxu3 %vm6190_vm9, %v6136_v41  ;;  %9235 = vmatmul.msk.bf16.gmra.mxu0 %vm6190_vm9, %v6136_v41 }
 0x872   : > { %9275 = vmatmul.msk.bf16.gmra.mxu1 %vm6190_vm9, %v6136_v41 }
 0x875   : > { %v14841_v45 = vpop.permute.xlu1 %10068 }
 0x876   : > { %v10070_v38 = vunpack.i.l.bf16 %v14841_v45 }
 0x878   : > { %v5873_v36 = vsel %vm5684_vm13, %v10070_v38, %v14604_v7  ;;  %v6248_v38 = vpop.f32.mrf.mxu3 }
 0x879   : > { %v10097_v31 = vpack.i.bf16 %v5873_v36, %v5872_v20 }
 0x87b   : > { %10098 = vrot.lane.b32.xlu1 %v10097_v31, %s10743_s16  ;;  %v6613_v31 = vpop.f32.mrf.mxu1 }
 0x881   : > { %9204 = vmatmul.msk.bf16.gmra.mxu3 %vm6190_vm9, %v6137_v3  ;;  %9236 = vmatmul.msk.bf16.gmra.mxu0 %vm6190_vm9, %v6137_v3 }
 0x882   : > { %9276 = vmatmul.msk.bf16.gmra.mxu1 %vm6190_vm9, %v6137_v3  ;;  %v14890_v3 = vld [vmem:[%s15988_s8] ss:$0 sm:$0xff] }
 0x891   : > { %9205 = vmatmul.msk.bf16.gmra.mxu3 %vm6190_vm9, %v6138_v40  ;;  %9237 = vmatmul.msk.bf16.gmra.mxu0 %vm6190_vm9, %v6138_v40 }
 0x892   : > { %9277 = vmatmul.msk.bf16.gmra.mxu1 %vm6190_vm9, %v6138_v40 }
 0x8ad   : > { %v10004_v10 = vpop.permute.xlu0 %10003 }
 0x8ae   : > { %v10006_v57 = vunpack.i.h.bf16 %v10004_v10  ;;  %v10005_v0 = vunpack.i.l.bf16 %v10004_v10 }
 0x8b0   : > { %v6019_v5 = vmax.f32 %v14418_v34, %v10006_v57  ;;  %v6018_v28 = vmax.f32 %v14424_v18, %v10005_v0  ;;  %v6489_v18 = vpop.f32.mrf.mxu0 }
 0x8b1   : > { %v6819_v26 = vadd.f32 %v6613_v31, %v6489_v18 }
 0x8b2   : > { %v6051_v53 = vrot.slane %v6019_v5, 4  ;;  %v6050_v47 = vrot.slane %v6018_v28, 4 }
 0x8b3   : > { %v6855_v33 = vadd.f32 %v14890_v3, %v6819_v26 }
 0x8b4   : > { %v6086_v56 = vsel %vm4940_vm3, %v6050_v47, %v6051_v53  ;;  %v6087_v9 = vsel %vm4940_vm3, %v6049_v52, %v6050_v47 }
 0x8b5   : > { %v6114_v46 = vmax.f32 %v6018_v28, %v6086_v56  ;;  %v10019_v29 = vpop.permute.xlu0 %10018  ;;  %v6113_v16 = vmax.f32 %v6017_v48, %v6087_v9  ;;  %v6250_v48 = vpop.f32.mrf.mxu3 }
 0x8b6   : > { %v10021_v24 = vunpack.i.h.bf16 %v10019_v29  ;;  %v10020_v51 = vunpack.i.l.bf16 %v10019_v29 }
 0x8b7   : > { %v6139_v17 = vpack.c.bf16 %v6114_v46, %v6113_v16 }
 0x8b8   : > { %v6021_v41 = vmax.f32 %v14456_v15, %v10021_v24  ;;  %v6020_v34 = vmax.f32 %v14462_v27, %v10020_v51  ;;  %v6491_v36 = vpop.f32.mrf.mxu0 }
 0x8b9   : > { %9206 = vmatmul.msk.bf16.gmra.mxu3 %vm6190_vm9, %v6139_v17  ;;  %9238 = vmatmul.msk.bf16.gmra.mxu0 %vm6190_vm9, %v6139_v17  ;;  %v6492_v52 = vadd.f32 %v6491_v36, %v6248_v38  ;;  %v10071_v36 = vunpack.i.h.bf16 %v14841_v45 }
 0x8ba   : > { %9278 = vmatmul.msk.bf16.gmra.mxu1 %vm6190_vm9, %v6139_v17  ;;  %v6053_v14 = vrot.slane %v6021_v41, 4  ;;  %v6052_v32 = vrot.slane %v6020_v34, 4 }
 0x8bc   : > { %v6084_v39 = vsel %vm4940_vm3, %v6052_v32, %v6053_v14  ;;  %v6085_v44 = vsel %vm4940_vm3, %v6051_v53, %v6052_v32 }
 0x8bd   : > { %v10034_v1 = vpop.permute.xlu0 %10033  ;;  %v6116_v15 = vmax.f32 %v6020_v34, %v6084_v39  ;;  %v6115_v49 = vmax.f32 %v6019_v5, %v6085_v44  ;;  %v14899_v5 = vmax.f32 %v6855_v33, 0.0 }
 0x8be   : > { %v10036_v27 = vunpack.i.h.bf16 %v10034_v1  ;;  %v10035_v20 = vunpack.i.l.bf16 %v10034_v1 }
 0x8bf   : > { %v6140_v13 = vpack.c.bf16 %v6116_v15, %v6115_v49 }
 0x8c0   : > { %v14881_v42 = vmax.f32 %v14484_v19, %v10036_v27  ;;  %v6022_v22 = vmax.f32 %v14488_v4, %v10035_v20 }
 0x8c2   : > { %v6055_v37 = vrot.slane %v14881_v42, 4  ;;  %v6054_v19 = vrot.slane %v6022_v22, 4 }
 0x8c4   : > { %v6082_v30 = vsel %vm4940_vm3, %v6054_v19, %v6055_v37  ;;  %v6083_v59 = vsel %vm4940_vm3, %v6053_v14, %v6054_v19 }
 0x8c5   : > { %v10049_v63 = vpop.permute.xlu0 %10048  ;;  %v6118_v57 = vmax.f32 %v6022_v22, %v6082_v30  ;;  %v6117_v0 = vmax.f32 %v6021_v41, %v6083_v59 }
 0x8c6   : > { %v10051_v28 = vunpack.i.h.bf16 %v10049_v63  ;;  %v10050_v53 = vunpack.i.l.bf16 %v10049_v63 }
 0x8c7   : > { %v6141_v51 = vpack.c.bf16 %v6118_v57, %v6117_v0 }
 0x8c8   : > { %v14906_v17 = vmax.f32 %v14509_v12, %v10051_v28  ;;  %v6024_v41 = vmax.f32 %v14515_v60, %v10050_v53 }
 0x8c9   : > { %9207 = vmatmul.msk.bf16.gmra.mxu3 %vm6190_vm9, %v6140_v13  ;;  %9239 = vmatmul.msk.bf16.gmra.mxu0 %vm6190_vm9, %v6140_v13 }
 0x8ca   : > { %9279 = vmatmul.msk.bf16.gmra.mxu1 %vm6190_vm9, %v6140_v13  ;;  %v6057_v12 = vrot.slane %v14906_v17, 4  ;;  %v6056_v1 = vrot.slane %v6024_v41, 4 }
 0x8cc   : > { %v6080_v27 = vsel %vm4940_vm3, %v6056_v1, %v6057_v12  ;;  %v6081_v20 = vsel %vm4940_vm3, %v6055_v37, %v6056_v1 }
 0x8cd   : > { %v10064_v40 = vpop.permute.xlu0 %10063  ;;  %v6120_v13 = vmax.f32 %v6024_v41, %v6080_v27  ;;  %v6119_v63 = vmax.f32 %v14881_v42, %v6081_v20 }
 0x8ce   : > { %v6494_v58 = vpop.f32.mrf.mxu0  ;;  %v10066_v26 = vunpack.i.h.bf16 %v10064_v40 }
 0x8cf   : > { %v6616_v4 = vpop.f32.mrf.mxu1  ;;  %v6495_v9 = vadd.f32 %v6494_v58, %v6250_v48  ;;  %v10065_v48 = vunpack.i.l.bf16 %v10064_v40  ;;  %v6142_v37 = vpack.c.bf16 %v6120_v13, %v6119_v63 }
 0x8d0   : > { %v6820_v62 = vadd.f32 %v6616_v4, %v6492_v52  ;;  %v5874_v52 = vsel %vm5684_vm13, %v10071_v36, %v14615_v61  ;;  %v6027_v33 = vmax.f32 %v14532_v23, %v10066_v26 }
 0x8d1   : > { %v6026_v45 = vmax.f32 %v14536_v8, %v10065_v48 }
 0x8d2   : > { %v6856_v10 = vadd.f32 %v14890_v3, %v6820_v62  ;;  %v6059_v30 = vrot.slane %v6027_v33, 4 }
 0x8d3   : > { %v6058_v59 = vrot.slane %v6026_v45, 4 }
 0x8d4   : > { %v14901_v47 = vmax.f32 %v6856_v10, 0.0  ;;  %v6253_v56 = vpop.f32.mrf.mxu3 }
 0x8d5   : > { %v14918_v60 = vpop.permute.xlu0 %10078  ;;  %v6078_v23 = vsel %vm4940_vm3, %v6058_v59, %v6059_v30  ;;  %v6079_v8 = vsel %vm4940_vm3, %v6057_v12, %v6058_v59 }
 0x8d6   : > { %v6496_v46 = vpop.f32.mrf.mxu0  ;;  %v10087_v29 = vpack.i.bf16 %v14901_v47, %v14899_v5  ;;  %v10080_v15 = vunpack.i.l.bf16 %v14918_v60  ;;  %v10081_v1 = vunpack.i.h.bf16 %v14918_v60 }
 0x8d7   : > { %v6497_v16 = vadd.f32 %v6496_v46, %v6253_v56  ;;  %v6618_v24 = vpop.f32.mrf.mxu1  ;;  %v10074_v56 = vpop.permute.xlu2 %10073  ;;  %v6121_v46 = vmax.f32 %v14906_v17, %v6079_v8 }
 0x8d8   : > { %v6821_v34 = vadd.f32 %v6618_v24, %v6495_v9  ;;  %10088 = vrot.lane.b32.xlu2 %v10087_v29, %s10745_s19  ;;  %v5875_v22 = vsel %vm5684_vm13, %v10080_v15, %v14613_v54  ;;  %v6122_v9 = vmax.f32 %v6026_v45, %v6078_v23  ;;  %v10075_v41 = vunpack.i.l.bf16 %v10074_v56 }
 0x8d9   : > { %v6858_v18 = vadd.f32 %v14890_v3, %v6497_v16  ;;  %9208 = vmatmul.msk.bf16.gmra.mxu3 %vm6190_vm9, %v6141_v51  ;;  %9240 = vmatmul.msk.bf16.gmra.mxu0 %vm6190_vm9, %v6141_v51  ;;  %v10107_v58 = vpack.i.bf16 %v5875_v22, %v5874_v52  ;;  %v5876_v20 = vsel %vm5684_vm13, %v10081_v1, %v14750_v2 }
 0x8da   : > { %v6857_v14 = vadd.f32 %v14890_v3, %v6821_v34  ;;  %9280 = vmatmul.msk.bf16.gmra.mxu1 %vm6190_vm9, %v6141_v51  ;;  %v10076_v51 = vunpack.i.h.bf16 %v10074_v56  ;;  %v6028_v12 = vmax.f32 %v14563_v50, %v10075_v41 }
 0x8db   : > { %v14915_v32 = vmax.f32 %v6858_v18, 0.0 }
 0x8dc   : > { %v14920_v39 = vmax.f32 %v6857_v14, 0.0  ;;  %v6255_v44 = vpop.f32.mrf.mxu3  ;;  %v6143_v14 = vpack.c.bf16 %v6122_v9, %v6121_v46  ;;  %v6029_v17 = vmax.f32 %v14557_v11, %v10076_v51 }
 0x8dd   : > { %v10084_v11 = vpop.permute.xlu1 %10083 }
 0x8de   : > { %v10092_v38 = vpack.i.bf16 %v14915_v32, %v14920_v39  ;;  %v6499_v31 = vpop.f32.mrf.mxu0  ;;  %v6061_v15 = vrot.slane %v6029_v17, 4  ;;  %v10086_v13 = vunpack.i.h.bf16 %v10084_v11  ;;  %v10085_v60 = vunpack.i.l.bf16 %v10084_v11 }
 0x8df   : > { %v6621_v49 = vpop.f32.mrf.mxu1 }
 0x8e0   : > { %10093 = vrot.lane.b32.xlu0 %v10092_v38, %s10745_s19  ;;  %v6060_v49 = vrot.slane %v6028_v12, 4  ;;  %v6030_v52 = vmax.f32 %v14582_v21, %v10085_v60 }
 0x8e2   : > { %v6077_v36 = vsel %vm4940_vm3, %v6059_v30, %v6060_v49  ;;  %v6076_v50 = vsel %vm4940_vm3, %v6060_v49, %v6061_v15 }
 0x8e3   : > { %v6124_v63 = vmax.f32 %v6028_v12, %v6076_v50 }
 0x8e4   : > { %v6258_v19 = vpop.f32.mrf.mxu3 }
 0x8e6   : > { %v6501_v42 = vpop.f32.mrf.mxu0 }
 0x8e7   : > { %v6623_v4 = vpop.f32.mrf.mxu1  ;;  %v6502_v10 = vadd.f32 %v6501_v42, %v6258_v19  ;;  %v6031_v19 = vmax.f32 %v14579_v6, %v10086_v13 }
 0x8e8   : > { %10108 = vrot.lane.b32.xlu0 %v10107_v58, %s10743_s16  ;;  %v6823_v62 = vadd.f32 %v6623_v4, %v6499_v31  ;;  %v6123_v31 = vmax.f32 %v6027_v33, %v6077_v36  ;;  %v6062_v4 = vrot.slane %v6030_v52, 4 }
 0x8e9   : > { %9209 = vmatmul.msk.bf16.gmra.mxu3 %vm6190_vm9, %v6142_v37  ;;  %9241 = vmatmul.msk.bf16.gmra.mxu0 %vm6190_vm9, %v6142_v37  ;;  %v6063_v58 = vrot.slane %v6031_v19, 4 }
 0x8ea   : > { %9281 = vmatmul.msk.bf16.gmra.mxu1 %vm6190_vm9, %v6142_v37  ;;  %v6859_v0 = vadd.f32 %v14890_v3, %v6823_v62  ;;  %v6144_v48 = vpack.c.bf16 %v6124_v63, %v6123_v31  ;;  %v6075_v45 = vsel %vm4940_vm3, %v6061_v15, %v6062_v4 }
 0x8eb   : > { %v6074_v33 = vsel %vm4940_vm3, %v6062_v4, %v6063_v58  ;;  %v6125_v21 = vmax.f32 %v6029_v17, %v6075_v45 }
 0x8ec   : > { %v14942_v40 = vpop.f32.mrf.mxu3  ;;  %v14951_v29 = vmax.f32 %v6859_v0, 0.0  ;;  %v6126_v30 = vmax.f32 %v6030_v52, %v6074_v33 }
 0x8ed   : > { %v10099_v6 = vpop.permute.xlu1 %10098 }
 0x8ee   : > { %v6504_v44 = vpop.f32.mrf.mxu0  ;;  %v10101_v59 = vunpack.i.h.bf16 %v10099_v6  ;;  %v10100_v62 = vunpack.i.l.bf16 %v10099_v6 }
 0x8ef   : > { %v6626_v57 = vpop.f32.mrf.mxu1  ;;  %v6505_v17 = vadd.f32 %v6504_v44, %v14942_v40 }
 0x8f0   : > { %v6824_v28 = vadd.f32 %v6626_v57, %v6502_v10  ;;  %v6145_v57 = vpack.c.bf16 %v6126_v30, %v6125_v21  ;;  %v14991_v23 = vmax.f32 %v14604_v7, %v10101_v59  ;;  %v6032_v8 = vmax.f32 %v14606_v43, %v10100_v62 }
 0x8f2   : > { %v6860_v53 = vadd.f32 %v14890_v3, %v6824_v28  ;;  %v6064_v56 = vrot.slane %v6032_v8, 4 }
 0x8f4   : > { %v14953_v16 = vmax.f32 %v6860_v53, 0.0  ;;  %v14955_v24 = vpop.f32.mrf.mxu3  ;;  %v6065_v53 = vrot.slane %v14991_v23, 4  ;;  %v6073_v43 = vsel %vm4940_vm3, %v6063_v58, %v6064_v56 }
 0x8f5   : > { %v6127_v51 = vmax.f32 %v6031_v19, %v6073_v43 }
 0x8f6   : > { %v10102_v34 = vpack.i.bf16 %v14953_v16, %v14951_v29  ;;  %v6506_v26 = vpop.f32.mrf.mxu0  ;;  %v6072_v7 = vsel %vm4940_vm3, %v6064_v56, %v6065_v53 }
 0x8f7   : > { %v14959_v18 = vpop.f32.mrf.mxu1  ;;  %v6128_v46 = vmax.f32 %v6032_v8, %v6072_v7  ;;  %v6507_v36 = vadd.f32 %v6506_v26, %v14955_v24 }
 0x8f8   : > { %10103 = vrot.lane.b32.xlu2 %v10102_v34, %s10745_s19  ;;  %v6825_v12 = vadd.f32 %v14959_v18, %v6505_v17 }
 0x8f9   : > { %9210 = vmatmul.msk.bf16.gmra.mxu3 %vm6190_vm9, %v6143_v14  ;;  %9242 = vmatmul.msk.bf16.gmra.mxu0 %vm6190_vm9, %v6143_v14  ;;  %v6862_v13 = vadd.f32 %v14890_v3, %v6507_v36 }
 0x8fa   : > { %9282 = vmatmul.msk.bf16.gmra.mxu1 %vm6190_vm9, %v6143_v14  ;;  %v6146_v14 = vpack.c.bf16 %v6128_v46, %v6127_v51  ;;  %v6861_v15 = vadd.f32 %v14890_v3, %v6825_v12 }
 0x8fb   : > { %v15021_v63 = vmax.f32 %v6862_v13, 0.0 }
 0x8fc   : > { %v6265_v38 = vpop.f32.mrf.mxu3  ;;  %v15011_v11 = vmax.f32 %v6861_v15, 0.0 }
 0x8fe   : > { %v6509_v42 = vpop.f32.mrf.mxu0 }
 0x8ff   : > { %v6631_v27 = vpop.f32.mrf.mxu1 }
 0x900   : > { %5971 = vrot.lane.b32.xlu2 %v5876_v20, %s10743_s16 }
 0x904   : > { %v14975_v22 = vpop.f32.mrf.mxu3 }
 0x906   : > { %v6511_v0 = vpop.f32.mrf.mxu0 }
 0x907   : > { %v6633_v28 = vpop.f32.mrf.mxu1  ;;  %v6512_v8 = vadd.f32 %v6511_v0, %v14975_v22 }
 0x908   : > { %v6827_v49 = vadd.f32 %v6633_v28, %v6509_v42 }
 0x909   : > { %9211 = vmatmul.msk.bf16.gmra.mxu3 %vm6190_vm9, %v6144_v48  ;;  %9243 = vmatmul.msk.bf16.gmra.mxu0 %vm6190_vm9, %v6144_v48 }
 0x90a   : > { %9283 = vmatmul.msk.bf16.gmra.mxu1 %vm6190_vm9, %v6144_v48  ;;  %v6863_v40 = vadd.f32 %v14890_v3, %v6827_v49 }
 0x90c   : > { %v14982_v37 = vpop.f32.mrf.mxu3  ;;  %v15019_v60 = vmax.f32 %v6863_v40, 0.0 }
 0x90e   : > { %v6514_v41 = vpop.f32.mrf.mxu0  ;;  %v10122_v48 = vpack.i.bf16 %v15019_v60, %v15021_v63 }
 0x90f   : > { %v6636_v34 = vpop.f32.mrf.mxu1  ;;  %v6515_v59 = vadd.f32 %v6514_v41, %v14982_v37 }
 0x910   : > { %v6828_v51 = vadd.f32 %v6636_v34, %v6512_v8 }
 0x914   : > { %v14988_v10 = vpop.f32.mrf.mxu3 }
 0x916   : > { %v6516_v1 = vpop.f32.mrf.mxu0 }
 0x917   : > { %v6638_v38 = vpop.f32.mrf.mxu1  ;;  %v6517_v12 = vadd.f32 %v6516_v1, %v14988_v10 }
 0x918   : > { %v6829_v28 = vadd.f32 %v6638_v38, %v6515_v59 }
 0x919   : > { %9212 = vmatmul.msk.bf16.gmra.mxu3 %vm6190_vm9, %v6145_v57  ;;  %9244 = vmatmul.msk.bf16.gmra.mxu0 %vm6190_vm9, %v6145_v57 }
 0x91a   : > { %9284 = vmatmul.msk.bf16.gmra.mxu1 %vm6190_vm9, %v6145_v57  ;;  %v6865_v0 = vadd.f32 %v14890_v3, %v6829_v28 }
 0x91c   : > { %v6275_v9 = vpop.f32.mrf.mxu3  ;;  %v15056_v36 = vmax.f32 %v6865_v0, 0.0 }
 0x929   : > { %9213 = vmatmul.msk.bf16.gmra.mxu3 %vm6190_vm9, %v6146_v14  ;;  %9245 = vmatmul.msk.bf16.gmra.mxu0 %vm6190_vm9, %v6146_v14 }
 0x92a   : > { %9285 = vmatmul.msk.bf16.gmra.mxu1 %vm6190_vm9, %v6146_v14 }
 0x932   : > { %v10089_v27 = vpop.permute.xlu2 %10088 }
 0x933   : > { %v10090_v20 = vunpack.i.l.bf16 %v10089_v27  ;;  %v10091_v57 = vunpack.i.h.bf16 %v10089_v27  ;;  %v6864_v27 = vadd.f32 %v14890_v3, %v6828_v51 }
 0x935   : > { %v6922_v50 = vsel %vm6919_vm10, %v10090_v20, %v14899_v5  ;;  %v6925_v37 = vsel %vm6919_vm10, %v10091_v57, %v14901_v47  ;;  %v6866_v20 = vadd.f32 %v14890_v3, %v6517_v12 }
 0x936   : > { %v6519_v44 = vpop.f32.mrf.mxu0  ;;  %v10112_v18 = vpack.i.bf16 %v6922_v50, %v15011_v11 }
 0x937   : > { %v6641_v31 = vpop.f32.mrf.mxu1 }
 0x938   : > { %10113 = vrot.lane.b32.xlu1 %v10112_v18, %s10745_s19  ;;  %v15060_v31 = vmax.f32 %v6864_v27, 0.0 }
 0x93c   : > { %v6278_v24 = vpop.f32.mrf.mxu3 }
 0x93e   : > { %v6521_v26 = vpop.f32.mrf.mxu0 }
 0x93f   : > { %v6643_v19 = vpop.f32.mrf.mxu1  ;;  %v6522_v58 = vadd.f32 %v6521_v26, %v6278_v24  ;;  %v15062_v24 = vmax.f32 %v6866_v20, 0.0 }
 0x940   : > { %10123 = vrot.lane.b32.xlu1 %v10122_v48, %s10745_s19  ;;  %v6831_v7 = vadd.f32 %v6643_v19, %v6519_v44 }
 0x942   : > { %v6867_v49 = vadd.f32 %v14890_v3, %v6831_v7 }
 0x944   : > { %v6280_v52 = vpop.f32.mrf.mxu3  ;;  %v15058_v40 = vmax.f32 %v6867_v49, 0.0 }
 0x946   : > { %v6524_v4 = vpop.f32.mrf.mxu0 }
 0x947   : > { %v6646_v33 = vpop.f32.mrf.mxu1  ;;  %v6525_v6 = vadd.f32 %v6524_v4, %v6280_v52  ;;  %v10132_v52 = vpack.i.bf16 %v15056_v36, %v15060_v31 }
 0x948   : > { %v15026_v45 = vadd.f32 %v6646_v33, %v6522_v58 }
 0x94c   : > { %v15028_v42 = vpop.f32.mrf.mxu3 }
 0x94e   : > { %v15030_v30 = vpop.f32.mrf.mxu0 }
 0x94f   : > { %v6648_v21 = vpop.f32.mrf.mxu1 }
 0x950   : > { %v15033_v62 = vadd.f32 %v6648_v21, %v6525_v6  ;;  %v10137_v6 = vpack.i.bf16 %v15058_v40, %v15062_v24 }
 0x952   : > { %v10094_v56 = vpop.permute.xlu0 %10093  ;;  %v15036_v9 = vpop.permute.xlu2 %10103 }
 0x953   : > { %v10096_v43 = vunpack.i.h.bf16 %v10094_v56  ;;  %v10095_v46 = vunpack.i.l.bf16 %v10094_v56  ;;  %v10105_v14 = vunpack.i.l.bf16 %v15036_v9 }
 0x954   : > { %v6285_v17 = vpop.f32.mrf.mxu3 }
 0x955   : > { %v6928_v41 = vsel %vm6919_vm10, %v10095_v46, %v14920_v39  ;;  %v6931_v22 = vsel %vm6919_vm10, %v10096_v43, %v14915_v32  ;;  %v6934_v34 = vsel %vm6919_vm10, %v10105_v14, %v14951_v29 }
 0x956   : > { %v15047_v38 = vpop.f32.mrf.mxu0  ;;  %v10117_v15 = vpack.i.bf16 %v6928_v41, %v6925_v37  ;;  %v10127_v1 = vpack.i.bf16 %v6934_v34, %v6931_v22 }
 0x957   : > { %v6651_v10 = vpop.f32.mrf.mxu1 }
 0x958   : > { %10118 = vrot.lane.b32.xlu0 %v10117_v15, %s10745_s19  ;;  %10128 = vrot.lane.b32.xlu2 %v10127_v1, %s10745_s19 }
 0x95a   : > { %v10109_v50 = vpop.permute.xlu0 %10108  ;;  %v5972_v57 = vpop.permute.xlu2 %5971 }
 0x95b   : > { %v10111_v44 = vunpack.i.h.bf16 %v10109_v50  ;;  %v10110_v18 = vunpack.i.l.bf16 %v10109_v50  ;;  %v6036_v43 = vmax.f32 %v14750_v2, %v5972_v57 }
 0x95c   : > { %v6288_v13 = vpop.f32.mrf.mxu3 }
 0x95d   : > { %v6035_v26 = vmax.f32 %v14613_v54, %v10111_v44  ;;  %v6034_v48 = vmax.f32 %v14615_v61, %v10110_v18  ;;  %v6068_v51 = vrot.slane %v6036_v43, 4 }
 0x95e   : > { %v6531_v19 = vpop.f32.mrf.mxu0 }
 0x95f   : > { %v6067_v58 = vrot.slane %v6035_v26, 4  ;;  %v6066_v4 = vrot.slane %v6034_v48, 4  ;;  %v15068_v33 = vpop.f32.mrf.mxu1  ;;  %v6532_v56 = vadd.f32 %v6531_v19, %v6288_v13  ;;  %v6100_v17 = vsel %vm4940_vm3, %v6068_v51, %v6037_v25 }
 0x960   : > { %10133 = vrot.lane.b32.xlu0 %v10132_v52, %s10745_s19  ;;  %10138 = vrot.lane.b32.xlu2 %v10137_v6, %s10745_s19  ;;  %v6132_v41 = vmax.f32 %v6036_v43, %v6100_v17 }
 0x961   : > { %v6070_v21 = vsel %vm4940_vm3, %v6066_v4, %v6067_v58  ;;  %v6071_v54 = vsel %vm4940_vm3, %v6065_v53, %v6066_v4  ;;  %v6069_v14 = vsel %vm4940_vm3, %v6067_v58, %v6068_v51  ;;  %vm7341_vm3 = vcmask 261120  }
 0x962   : > { %v6130_v61 = vmax.f32 %v6034_v48, %v6070_v21  ;;  %v6129_v59 = vmax.f32 %v14991_v23, %v6071_v54  ;;  %v6131_v2 = vmax.f32 %v6035_v26, %v6069_v14  ;;  %v10106_v48 = vunpack.i.h.bf16 %v15036_v9 }
 0x964   : > { %v15081_v8 = vpop.f32.mrf.mxu3  ;;  %v6147_v28 = vpack.c.bf16 %v6130_v61, %v6129_v59  ;;  %v6148_v22 = vpack.c.bf16 %v6132_v41, %v6131_v2  ;;  %v6937_v4 = vsel %vm6919_vm10, %v10106_v48, %v14953_v16 }
 0x966   : > { %9214 = vmatmul.msk.bf16.gmra.mxu3 %vm6190_vm9, %v6147_v28  ;;  %9246 = vmatmul.msk.bf16.gmra.mxu0 %vm6190_vm9, %v6147_v28  ;;  %v15085_v7 = vpop.f32.mrf.mxu0 }
 0x967   : > { %9286 = vmatmul.msk.bf16.gmra.mxu1 %vm6190_vm9, %v6147_v28  ;;  %v6656_v53 = vpop.f32.mrf.mxu1 }
 0x968   : > { %v15089_v46 = vadd.f32 %v6656_v53, %v6532_v56 }
 0x96c   : > { %v15091_v23 = vpop.f32.mrf.mxu3 }
 0x96e   : > { %v15099_v12 = vpop.f32.mrf.mxu0 }
 0x96f   : > { %v15101_v37 = vpop.f32.mrf.mxu1 }
 0x974   : > { %v6295_v0 = vpop.f32.mrf.mxu3 }
 0x976   : > { %9215 = vmatmul.msk.bf16.gmra.mxu3 %vm6190_vm9, %v6148_v22  ;;  %9247 = vmatmul.msk.bf16.gmra.mxu0 %vm6190_vm9, %v6148_v22  ;;  %v15106_v34 = vpop.f32.mrf.mxu0 }
 0x977   : > { %9287 = vmatmul.msk.bf16.gmra.mxu1 %vm6190_vm9, %v6148_v22  ;;  %v6661_v15 = vpop.f32.mrf.mxu1 }
 0x97c   : > { %v6298_v35 = vpop.f32.mrf.mxu3 }
 0x97e   : > { %v6541_v25 = vpop.f32.mrf.mxu0 }
 0x97f   : > { %v15108_v55 = vpop.f32.mrf.mxu1  ;;  %v6542_v10 = vadd.f32 %v6541_v25, %v6298_v35 }
 0x984   : > { %v15110_v49 = vpop.f32.mrf.mxu3 }
 0x986   : > { %v15134_v43 = vpop.f32.mrf.mxu0 }
 0x987   : > { %v6666_v1 = vpop.f32.mrf.mxu1 }
 0x988   : > { %v15112_v27 = vadd.f32 %v6666_v1, %v6542_v10 }
 0x98c   : > { %v15114_v20 = vpop.f32.mrf.mxu3 }
 0x98e   : > { %v15137_v53 = vpop.f32.mrf.mxu0 }
 0x98f   : > { %v15116_v50 = vpop.f32.mrf.mxu1 }
 0x994   : > { %v6305_v44 = vpop.f32.mrf.mxu3 }
 0x995   : > { %v6869_v44 = vadd.f32 %v14890_v3, %v15033_v62 }
 0x996   : > { %v15144_v22 = vpop.f32.mrf.mxu0 }
 0x997   : > { %v6671_v18 = vpop.f32.mrf.mxu1 }
 0x99c   : > { %v15118_v13 = vpop.f32.mrf.mxu3 }
 0x99f   : > { %v15141_v14 = vpop.f32.mrf.mxu1 }
 0x9a4   : > { %v15120_v26 = vpop.f32.mrf.mxu3 }
 0x9aa   : > { %v10114_v19 = vpop.permute.xlu1 %10113 }
 0x9ab   : > { %v10115_v52 = vunpack.i.l.bf16 %v10114_v19  ;;  %v10116_v17 = vunpack.i.h.bf16 %v10114_v19  ;;  %v6868_v19 = vadd.f32 %v14890_v3, %v15026_v45 }
 0x9ac   : > { %v15123_v58 = vpop.f32.mrf.mxu3 }
 0x9ad   : > { %v6940_v6 = vsel %vm6919_vm10, %v10115_v52, %v15011_v11  ;;  %v7080_v10 = vsel %vm6919_vm10, %v10116_v17, %v14899_v5  ;;  %v15160_v52 = vmax.f32 %v6869_v44, 0.0  ;;  %v15166_v62 = vmax.f32 %v6868_v19, 0.0 }
 0x9ae   : > { %v10142_v21 = vpack.i.bf16 %v6940_v6, %v6937_v4  ;;  %v6835_v4 = vadd.f32 %v15068_v33, %v15047_v38  ;;  %v15164_v6 = vpop.f32.mrf.mxu1 }
 0x9b0   : > { %10143 = vrot.lane.b32.xlu1 %v10142_v21, %s10745_s19  ;;  %v6871_v38 = vadd.f32 %v14890_v3, %v6835_v4  ;;  %v6537_v4 = vadd.f32 %v15099_v12, %v15091_v23 }
 0x9b2   : > { %v10124_v54 = vpop.permute.xlu1 %10123  ;;  %v15139_v51 = vpop.permute.xlu2 %10128 }
 0x9b3   : > { %v10126_v61 = vunpack.i.h.bf16 %v10124_v54  ;;  %v10125_v59 = vunpack.i.l.bf16 %v10124_v54  ;;  %v10130_v2 = vunpack.i.l.bf16 %v15139_v51 }
 0x9b4   : > { %v6315_v57 = vpop.f32.mrf.mxu3 }
 0x9b5   : > { %v6943_v9 = vsel %vm6919_vm10, %v10125_v59, %v15021_v63  ;;  %v6946_v28 = vsel %vm6919_vm10, %v10126_v61, %v15019_v60  ;;  %v7083_v25 = vsel %vm6919_vm10, %v10130_v2, %v14915_v32  ;;  %v6527_v59 = vadd.f32 %v15030_v30, %v15028_v42  ;;  %v6551_v57 = vpop.f32.mrf.mxu0 }
 0x9b6   : > { %v10157_v56 = vpack.i.bf16 %v6946_v28, %v6943_v9  ;;  %v6535_v42 = vadd.f32 %v15085_v7, %v15081_v8  ;;  %v15182_v30 = vmax.f32 %v6871_v38, 0.0  ;;  %v6876_v38 = vadd.f32 %v14890_v3, %v15112_v27 }
 0x9b8   : > { %10158 = vrot.lane.b32.xlu2 %v10157_v56, %s10745_s19  ;;  %v10162_v56 = vpack.i.bf16 %v15160_v52, %v15166_v62 }
 0x9ba   : > { %v10139_v45 = vpop.permute.xlu2 %10138 }
 0x9bb   : > { %v10141_v17 = vunpack.i.h.bf16 %v10139_v45  ;;  %v10140_v2 = vunpack.i.l.bf16 %v10139_v45 }
 0x9bd   : > { %v6554_v44 = vpop.f32.mrf.mxu0 }
 0x9c5   : > { %v6556_v45 = vpop.f32.mrf.mxu0 }
 0x9ca   : > { %v10119_v41 = vpop.permute.xlu0 %10118 }
 0x9cb   : > { %v10121_v0 = vunpack.i.h.bf16 %v10119_v41  ;;  %v10120_v15 = vunpack.i.l.bf16 %v10119_v41  ;;  %v6870_v41 = vadd.f32 %v14890_v3, %v6527_v59  ;;  %v6545_v59 = vadd.f32 %v15134_v43, %v15110_v49 }
 0x9cd   : > { %v7082_v35 = vsel %vm6919_vm10, %v10121_v0, %v14920_v39  ;;  %v7081_v1 = vsel %vm6919_vm10, %v10120_v15, %v14901_v47  ;;  %v6837_v0 = vadd.f32 %v15101_v37, %v6535_v42  ;;  %v6955_v15 = vsel %vm6919_vm10, %v10140_v2, %v15062_v24 }
 0x9ce   : > { %v10152_v18 = vpack.i.bf16 %v7083_v25, %v7082_v35  ;;  %v10147_v48 = vpack.i.bf16 %v7081_v1, %v7080_v10  ;;  %v6958_v35 = vsel %vm6919_vm10, %v10141_v17, %v15058_v40  ;;  %v15189_v25 = vmax.f32 %v6870_v41, 0.0  ;;  %v6678_v10 = vpop.f32.mrf.mxu1 }
 0x9cf   : > { %v6873_v1 = vadd.f32 %v14890_v3, %v6837_v0  ;;  %v10187_v8 = vpack.i.bf16 %v6958_v35, %v6955_v15  ;;  %v15228_v17 = vmax.f32 %v6876_v38, 0.0  ;;  %v6547_v2 = vadd.f32 %v15137_v53, %v15114_v20 }
 0x9d0   : > { %10153 = vrot.lane.b32.xlu1 %v10152_v18, %s10743_s16  ;;  %10148 = vrot.lane.b32.xlu0 %v10147_v48, %s10743_s16  ;;  %v10177_v7 = vpack.i.bf16 %v15182_v30, %v15189_v25  ;;  %v6872_v18 = vadd.f32 %v14890_v3, %v15089_v46  ;;  %v6839_v48 = vadd.f32 %v15108_v55, %v15106_v34 }
 0x9d1   : > { %v15198_v37 = vmax.f32 %v6873_v1, 0.0  ;;  %v6878_v42 = vadd.f32 %v14890_v3, %v6547_v2  ;;  %v6555_v0 = vadd.f32 %v6554_v44, %v15120_v26 }
 0x9d2   : > { %v10134_v21 = vpop.permute.xlu0 %10133  ;;  %v15202_v19 = vmax.f32 %v6872_v18, 0.0 }
 0x9d3   : > { %v10136_v54 = vunpack.i.h.bf16 %v10134_v21  ;;  %v10135_v61 = vunpack.i.l.bf16 %v10134_v21  ;;  %v6845_v35 = vadd.f32 %v6678_v10, %v6555_v0 }
 0x9d4   : > { %v10192_v46 = vpack.i.bf16 %v15198_v37, %v15202_v19 }
 0x9d5   : > { %v6949_v9 = vsel %vm6919_vm10, %v10135_v61, %v15060_v31  ;;  %v6952_v28 = vsel %vm6919_vm10, %v10136_v54, %v15056_v36  ;;  %v6875_v54 = vadd.f32 %v14890_v3, %v6839_v48  ;;  %v6874_v61 = vadd.f32 %v14890_v3, %v6537_v4 }
 0x9d6   : > { %v10172_v33 = vpack.i.bf16 %v6952_v28, %v6949_v9  ;;  %v6841_v9 = vadd.f32 %v15116_v50, %v6545_v59  ;;  %v6557_v48 = vadd.f32 %v6556_v45, %v15123_v58 }
 0x9d7   : > { %v15213_v55 = vmax.f32 %v6875_v54, 0.0  ;;  %v15216_v23 = vmax.f32 %v6874_v61, 0.0 }
 0x9d8   : > { %10173 = vrot.lane.b32.xlu2 %v10172_v33, %s10745_s19  ;;  %10163 = vrot.lane.b32.xlu0 %v10162_v56, %s10745_s19  ;;  %v6877_v12 = vadd.f32 %v14890_v3, %v6841_v9  ;;  %v6843_v56 = vadd.f32 %v15141_v14, %v15144_v22  ;;  %v6552_v14 = vadd.f32 %v6551_v57, %v15118_v13 }
 0x9d9   : > { %v10202_v28 = vpack.i.bf16 %v15213_v55, %v15216_v23 }
 0x9da   : > { %v15224_v33 = vmax.f32 %v6877_v12, 0.0  ;;  %v6879_v41 = vadd.f32 %v14890_v3, %v6843_v56  ;;  %v6844_v20 = vadd.f32 %v15164_v6, %v6552_v14 }
 0x9dc   : > { %v10217_v27 = vpack.i.bf16 %v15224_v33, %v15228_v17  ;;  %v15239_v22 = vmax.f32 %v6879_v41, 0.0  ;;  %v6880_v26 = vadd.f32 %v14890_v3, %v6844_v20 }
 0x9de   : > { %v15251_v10 = vmax.f32 %v6880_v26, 0.0 }
 0x9e0   : > { %10188 = vrot.lane.b32.xlu2 %v10187_v8, %s10745_s19  ;;  %10178 = vrot.lane.b32.xlu0 %v10177_v7, %s10745_s19  ;;  %v15241_v8 = vmax.f32 %v6878_v42, 0.0  ;;  %v6881_v7 = vadd.f32 %v14890_v3, %v6845_v35  ;;  %v10131_v42 = vunpack.i.h.bf16 %v15139_v51  ;;  %v9520_v51 = vld [vmem:[%s15989_s9 + $0x18] sm:$0xff] }
 0x9e1   : > { %7625 = vmatpush.bf16.msrb.mxu3 %v9520_v51 }
 0x9e2   : > { %v10232_v18 = vpack.i.bf16 %v15239_v22, %v15241_v8  ;;  %v15249_v13 = vmax.f32 %v6881_v7, 0.0  ;;  %v7084_v35 = vsel %vm6919_vm10, %v10131_v42, %v14951_v29  ;;  %v9522_v7 = vld [vmem:[%s15989_s9 + $0x8] sm:$0xff] }
 0x9e3   : > { %v6559_v49 = vpop.f32.mrf.mxu0  ;;  %7396 = vmatpush.bf16.msrb.mxu2 %v9522_v7 }
 0x9e4   : > { %v6681_v21 = vpop.f32.mrf.mxu1 }
 0x9e5   : > { %v10247_v21 = vpack.i.bf16 %v15249_v13, %v15251_v10 }
 0x9e8   : > { %10193 = vrot.lane.b32.xlu0 %v10192_v46, %s10745_s19  ;;  %v6882_v46 = vadd.f32 %v14890_v3, %v6557_v48  ;;  %v9523_v48 = vld [vmem:[%s15989_s9 + $0x20] sm:$0xff] }
 0x9e9   : > { %v6318_v34 = vpop.f32.mrf.mxu3 }
 0x9eb   : > { %v6561_v1 = vpop.f32.mrf.mxu0 }
 0x9ec   : > { %v6683_v50 = vpop.f32.mrf.mxu1  ;;  %v6562_v59 = vadd.f32 %v6561_v1, %v6318_v34 }
 0x9ed   : > { %v6847_v57 = vadd.f32 %v6683_v50, %v6559_v49 }
 0x9ef   : > { %v6883_v6 = vadd.f32 %v14890_v3, %v6847_v57  ;;  %v9519_v57 = vld [vmem:[%s15989_s9 + $0x10] sm:$0xff] }
 0x9f0   : > { %10203 = vrot.lane.b32.xlu0 %v10202_v28, %s10745_s19  ;;  %v15261_v28 = vmax.f32 %v6882_v46, 0.0  ;;  %7626 = vmatpush.bf16.msrb.mxu3 %v9519_v57 }
 0x9f1   : > { %v6320_v43 = vpop.f32.mrf.mxu3  ;;  %v15259_v9 = vmax.f32 %v6883_v6, 0.0 }
 0x9f3   : > { %v6564_v4 = vpop.f32.mrf.mxu0  ;;  %v10262_v45 = vpack.i.bf16 %v15259_v9, %v15261_v28 }
 0x9f4   : > { %v6686_v53 = vpop.f32.mrf.mxu1  ;;  %v6565_v61 = vadd.f32 %v6564_v4, %v6320_v43 }
 0x9f5   : > { %v6848_v38 = vadd.f32 %v6686_v53, %v6562_v59 }
 0x9f7   : > { %v6884_v49 = vadd.f32 %v14890_v3, %v6848_v38 }
 0x9f8   : > { %10218 = vrot.lane.b32.xlu0 %v10217_v27, %s10745_s19 }
 0x9f9   : > { %v6323_v15 = vpop.f32.mrf.mxu3  ;;  %v15270_v50 = vmax.f32 %v6884_v49, 0.0 }
 0x9fb   : > { %v6566_v43 = vpop.f32.mrf.mxu0 }
 0x9fc   : > { %v6688_v54 = vpop.f32.mrf.mxu1  ;;  %v6567_v34 = vadd.f32 %v6566_v43, %v6323_v15 }
 0x9fd   : > { %v6849_v12 = vadd.f32 %v6688_v54, %v6565_v61 }
 0x9fe   : > { %v6886_v41 = vadd.f32 %v14890_v3, %v6567_v34 }
 0x9ff   : > { %v6885_v58 = vadd.f32 %v14890_v3, %v6849_v12 }
 0xa00   : > { %10233 = vrot.lane.b32.xlu0 %v10232_v18, %s10745_s19  ;;  %v15276_v27 = vmax.f32 %v6886_v41, 0.0  ;;  %v9524_v18 = vld [vmem:[%s15989_s9 + $0x28] sm:$0xff] }
 0xa01   : > { %v6325_v44 = vpop.f32.mrf.mxu3  ;;  %v15268_v56 = vmax.f32 %v6885_v58, 0.0  ;;  %7731 = vmatpush.bf16.msrb.mxu0 %v9524_v18 }
 0xa02   : > { %v9521_v44 = vld [vmem:[%s15989_s9] sm:$0xff] }
 0xa03   : > { %v10277_v2 = vpack.i.bf16 %v15268_v56, %v15270_v50  ;;  %7397 = vmatpush.bf16.msrb.mxu2 %v9521_v44 }
 0xa05   : > { %7732 = vmatpush.bf16.msrb.mxu0 %v9523_v48 }
 0xa08   : > { %10248 = vrot.lane.b32.xlu0 %v10247_v21, %s10745_s19 }
 0xa10   : > { %10263 = vrot.lane.b32.xlu0 %v10262_v45, %s10745_s19 }
 0xa12   : > { %v10159_v1 = vpop.permute.xlu2 %10158 }
 0xa13   : > { %v10160_v3 = vunpack.i.l.bf16 %v10159_v1  ;;  %v10161_v54 = vunpack.i.h.bf16 %v10159_v1 }
 0xa15   : > { %v7087_v4 = vsel %vm6919_vm10, %v10160_v3, %v15021_v63  ;;  %v7088_v59 = vsel %vm6919_vm10, %v10161_v54, %v15019_v60 }
 0xa18   : > { %10278 = vrot.lane.b32.xlu0 %v10277_v2, %s10745_s19 }
 0xa20   : > { %7013 = vrot.lane.b32.xlu0 %v15276_v27, %s10745_s19 }
 0xa22   : > { %v10144_v0 = vpop.permute.xlu1 %10143 }
 0xa23   : > { %v10145_v14 = vunpack.i.l.bf16 %v10144_v0  ;;  %v10146_v53 = vunpack.i.h.bf16 %v10144_v0 }
 0xa25   : > { %v7085_v15 = vsel %vm6919_vm10, %v10145_v14, %v14953_v16  ;;  %v7086_v26 = vsel %vm6919_vm10, %v10146_v53, %v15011_v11 }
 0xa26   : > { %v10167_v20 = vpack.i.bf16 %v7085_v15, %v7084_v35  ;;  %v10182_v6 = vpack.i.bf16 %v7087_v4, %v7086_v26 }
 0xa28   : > { %10168 = vrot.lane.b32.xlu1 %v10167_v20, %s10743_s16 }
 0xa30   : > { %10183 = vrot.lane.b32.xlu1 %v10182_v6, %s10743_s16 }
 0xa32   : > { %v10174_v21 = vpop.permute.xlu2 %10173 }
 0xa33   : > { %v10176_v46 = vunpack.i.h.bf16 %v10174_v21  ;;  %v10175_v61 = vunpack.i.l.bf16 %v10174_v21 }
 0xa35   : > { %v7089_v38 = vsel %vm6919_vm10, %v10175_v61, %v15060_v31  ;;  %v7090_v58 = vsel %vm6919_vm10, %v10176_v46, %v15056_v36 }
 0xa36   : > { %v10207_v49 = vpack.i.bf16 %v7090_v58, %v7089_v38 }
 0xa38   : > { %7160 = vrot.lane.b32.xlu1 %v7088_v59, %s10743_s16 }
 0xa3a   : > { %v10189_v12 = vpop.permute.xlu2 %10188 }
 0xa3b   : > { %v10190_v45 = vunpack.i.l.bf16 %v10189_v12  ;;  %v10191_v43 = vunpack.i.h.bf16 %v10189_v12 }
 0xa3d   : > { %v7091_v41 = vsel %vm6919_vm10, %v10190_v45, %v15062_v24  ;;  %v7092_v35 = vsel %vm6919_vm10, %v10191_v43, %v15058_v40 }
 0xa3e   : > { %v10222_v53 = vpack.i.bf16 %v7092_v35, %v7091_v41 }
 0xa40   : > { %10208 = vrot.lane.b32.xlu1 %v10207_v49, %s10743_s16 }
 0xa42   : > { %v15317_v34 = vpop.permute.xlu1 %10153  ;;  %v10149_v2 = vpop.permute.xlu0 %10148 }
 0xa43   : > { %v10155_v42 = vunpack.i.l.bf16 %v15317_v34  ;;  %v10151_v0 = vunpack.i.h.bf16 %v10149_v2  ;;  %v10150_v14 = vunpack.i.l.bf16 %v10149_v2 }
 0xa45   : > { %v15325_v15 = vmax.f32 %v14920_v39, %v10155_v42  ;;  %v7241_v1 = vmax.f32 %v14901_v47, %v10151_v0  ;;  %v15329_v20 = vmax.f32 %v14899_v5, %v10150_v14 }
 0xa47   : > { %v7273_v3 = vmax.f32 %v7241_v1, %v15325_v15  ;;  %v7272_v7 = vmax.f32 %v15329_v20, %v7241_v1 }
 0xa48   : > { %10223 = vrot.lane.b32.xlu1 %v10222_v53, %s10743_s16 }
 0xa49   : > { %v7304_v51 = vpack.c.bf16 %v7273_v3, %v7272_v7 }
 0xa4a   : > { %v10164_v18 = vpop.permute.xlu0 %10163 }
 0xa4b   : > { %v10166_v26 = vunpack.i.h.bf16 %v10164_v18  ;;  %v10165_v44 = vunpack.i.l.bf16 %v10164_v18  ;;  %9300 = vmatmul.msk.bf16.vlgmr.msrb.gmra.mxu2 %vm7341_vm3, %v7304_v51  ;;  %9324 = vmatmul.msk.bf16.vlgmr.msrb.gmra.mxu3 %vm7341_vm3, %v7304_v51 }
 0xa4c   : > { %9352 = vmatmul.msk.bf16.vlgmr.msrb.gmra.mxu0 %vm7341_vm3, %v7304_v51 }
 0xa4d   : > { %v6961_v5 = vsel %vm6919_vm10, %v10165_v44, %v15166_v62  ;;  %v6964_v47 = vsel %vm6919_vm10, %v10166_v26, %v15160_v52 }
 0xa4e   : > { %v10197_v39 = vpack.i.bf16 %v6964_v47, %v6961_v5 }
 0xa50   : > { %10198 = vrot.lane.b32.xlu2 %v10197_v39, %s10745_s19 }
 0xa52   : > { %v10179_v57 = vpop.permute.xlu0 %10178 }
 0xa53   : > { %v10181_v48 = vunpack.i.h.bf16 %v10179_v57  ;;  %v10180_v4 = vunpack.i.l.bf16 %v10179_v57 }
 0xa55   : > { %v6967_v6 = vsel %vm6919_vm10, %v10180_v4, %v15189_v25  ;;  %v6970_v21 = vsel %vm6919_vm10, %v10181_v48, %v15182_v30 }
 0xa56   : > { %v10212_v54 = vpack.i.bf16 %v6970_v21, %v6967_v6 }
 0xa58   : > { %10213 = vrot.lane.b32.xlu2 %v10212_v54, %s10745_s19 }
 0xa5a   : > { %v10194_v46 = vpop.permute.xlu0 %10193 }
 0xa5b   : > { %v10196_v61 = vunpack.i.h.bf16 %v10194_v46  ;;  %v10195_v59 = vunpack.i.l.bf16 %v10194_v46 }
 0xa5d   : > { %v6973_v12 = vsel %vm6919_vm10, %v10195_v59, %v15202_v19  ;;  %v6976_v38 = vsel %vm6919_vm10, %v10196_v61, %v15198_v37 }
 0xa5e   : > { %v10227_v58 = vpack.i.bf16 %v6976_v38, %v6973_v12  ;;  %v10156_v38 = vunpack.i.h.bf16 %v15317_v34 }
 0xa60   : > { %10228 = vrot.lane.b32.xlu2 %v10227_v58, %s10745_s19 }
 0xa62   : > { %v10204_v45 = vpop.permute.xlu0 %10203 }
 0xa63   : > { %v10206_v49 = vunpack.i.h.bf16 %v10204_v45  ;;  %v10205_v43 = vunpack.i.l.bf16 %v10204_v45  ;;  %v7243_v45 = vmax.f32 %v14915_v32, %v10156_v38 }
 0xa65   : > { %v6979_v2 = vsel %vm6919_vm10, %v10205_v43, %v15216_v23  ;;  %v6982_v41 = vsel %vm6919_vm10, %v10206_v49, %v15213_v55 }
 0xa66   : > { %v10242_v42 = vpack.i.bf16 %v6982_v41, %v6979_v2  ;;  %v7274_v2 = vmax.f32 %v15325_v15, %v7243_v45 }
 0xa68   : > { %10243 = vrot.lane.b32.xlu2 %v10242_v42, %s10745_s19 }
 0xa6a   : > { %v10219_v0 = vpop.permute.xlu0 %10218 }
 0xa6b   : > { %v10221_v14 = vunpack.i.h.bf16 %v10219_v0  ;;  %v10220_v35 = vunpack.i.l.bf16 %v10219_v0 }
 0xa6d   : > { %v6985_v1 = vsel %vm6919_vm10, %v10220_v35, %v15228_v17  ;;  %v6988_v53 = vsel %vm6919_vm10, %v10221_v14, %v15224_v33 }
 0xa6e   : > { %v10257_v3 = vpack.i.bf16 %v6988_v53, %v6985_v1 }
 0xa70   : > { %10258 = vrot.lane.b32.xlu2 %v10257_v3, %s10745_s19 }
 0xa72   : > { %v10234_v7 = vpop.permute.xlu0 %10233 }
 0xa73   : > { %v10236_v51 = vunpack.i.h.bf16 %v10234_v7  ;;  %v10235_v18 = vunpack.i.l.bf16 %v10234_v7 }
 0xa75   : > { %v6991_v26 = vsel %vm6919_vm10, %v10235_v18, %v15241_v8  ;;  %v6994_v44 = vsel %vm6919_vm10, %v10236_v51, %v15239_v22 }
 0xa76   : > { %v10272_v5 = vpack.i.bf16 %v6994_v44, %v6991_v26 }
 0xa78   : > { %10273 = vrot.lane.b32.xlu2 %v10272_v5, %s10745_s19 }
 0xa7a   : > { %v10249_v47 = vpop.permute.xlu0 %10248 }
 0xa7b   : > { %v10251_v39 = vunpack.i.h.bf16 %v10249_v47  ;;  %v10250_v57 = vunpack.i.l.bf16 %v10249_v47 }
 0xa7d   : > { %v6997_v48 = vsel %vm6919_vm10, %v10250_v57, %v15251_v10  ;;  %v7000_v4 = vsel %vm6919_vm10, %v10251_v39, %v15249_v13 }
 0xa7e   : > { %v10287_v6 = vpack.i.bf16 %v7000_v4, %v6997_v48 }
 0xa80   : > { %10288 = vrot.lane.b32.xlu2 %v10287_v6, %s10745_s19 }
 0xa82   : > { %v10264_v21 = vpop.permute.xlu0 %10263 }
 0xa83   : > { %v10266_v54 = vunpack.i.h.bf16 %v10264_v21  ;;  %v10265_v46 = vunpack.i.l.bf16 %v10264_v21 }
 0xa85   : > { %v7003_v61 = vsel %vm6919_vm10, %v10265_v46, %v15261_v28  ;;  %v7006_v59 = vsel %vm6919_vm10, %v10266_v54, %v15259_v9 }
 0xa86   : > { %v10297_v12 = vpack.i.bf16 %v7006_v59, %v7003_v61 }
 0xa88   : > { %10298 = vrot.lane.b32.xlu2 %v10297_v12, %s10745_s19 }
 0xa9a   : > { %v10169_v58 = vpop.permute.xlu1 %10168 }
 0xa9b   : > { %v10170_v49 = vunpack.i.l.bf16 %v10169_v58  ;;  %v10171_v35 = vunpack.i.h.bf16 %v10169_v58 }
 0xa9d   : > { %v7244_v43 = vmax.f32 %v14951_v29, %v10170_v49  ;;  %v7245_v32 = vmax.f32 %v14953_v16, %v10171_v35 }
 0xa9f   : > { %v7275_v41 = vmax.f32 %v7243_v45, %v7244_v43  ;;  %v7276_v18 = vmax.f32 %v7244_v43, %v7245_v32 }
 0xaa1   : > { %v7305_v42 = vpack.c.bf16 %v7275_v41, %v7274_v2 }
 0xaa2   : > { %v10184_v0 = vpop.permute.xlu1 %10183 }
 0xaa3   : > { %9301 = vmatmul.msk.bf16.gmra.mxu2 %vm7341_vm3, %v7305_v42  ;;  %9325 = vmatmul.msk.bf16.gmra.mxu3 %vm7341_vm3, %v7305_v42  ;;  %v10185_v14 = vunpack.i.l.bf16 %v10184_v0  ;;  %v10186_v48 = vunpack.i.h.bf16 %v10184_v0 }
 0xaa4   : > { %9353 = vmatmul.msk.bf16.gmra.mxu0 %vm7341_vm3, %v7305_v42 }
 0xaa5   : > { %v7246_v34 = vmax.f32 %v15011_v11, %v10185_v14  ;;  %v7247_v21 = vmax.f32 %v15021_v63, %v10186_v48 }
 0xaa7   : > { %v7277_v3 = vmax.f32 %v7245_v32, %v7246_v34  ;;  %v7278_v58 = vmax.f32 %v7246_v34, %v7247_v21 }
 0xaa9   : > { %v7306_v26 = vpack.c.bf16 %v7277_v3, %v7276_v18  ;;  %v10279_v3 = vpop.permute.xlu0 %10278 }
 0xaaa   : > { %v10199_v1 = vpop.permute.xlu2 %10198  ;;  %v7161_v39 = vpop.permute.xlu1 %7160 }
 0xaab   : > { %v10201_v53 = vunpack.i.h.bf16 %v10199_v1  ;;  %v10200_v29 = vunpack.i.l.bf16 %v10199_v1  ;;  %v7248_v4 = vmax.f32 %v15019_v60, %v7161_v39 }
 0xaad   : > { %v7093_v15 = vsel %vm6919_vm10, %v10200_v29, %v15166_v62  ;;  %v7094_v7 = vsel %vm6919_vm10, %v10201_v53, %v15160_v52  ;;  %v7279_v61 = vmax.f32 %v7247_v21, %v7248_v4 }
 0xaae   : > { %v10237_v51 = vpack.i.bf16 %v7094_v7, %v7093_v15 }
 0xaaf   : > { %v7307_v45 = vpack.c.bf16 %v7279_v61, %v7278_v58 }
 0xab0   : > { %10238 = vrot.lane.b32.xlu1 %v10237_v51, %s10743_s16 }
 0xab2   : > { %v10214_v44 = vpop.permute.xlu2 %10213  ;;  %v10209_v49 = vpop.permute.xlu1 %10208 }
 0xab3   : > { %v10216_v5 = vunpack.i.h.bf16 %v10214_v44  ;;  %v10215_v11 = vunpack.i.l.bf16 %v10214_v44  ;;  %9302 = vmatmul.msk.bf16.gmra.mxu2 %vm7341_vm3, %v7306_v26  ;;  %9326 = vmatmul.msk.bf16.gmra.mxu3 %vm7341_vm3, %v7306_v26  ;;  %v10211_v63 = vunpack.i.h.bf16 %v10209_v49  ;;  %v10210_v41 = vunpack.i.l.bf16 %v10209_v49  ;;  %v7014_v49 = vpop.permute.xlu0 %7013 }
 0xab4   : > { %9354 = vmatmul.msk.bf16.gmra.mxu0 %vm7341_vm3, %v7306_v26  ;;  %v10281_v44 = vunpack.i.h.bf16 %v10279_v3 }
 0xab5   : > { %v7095_v16 = vsel %vm6919_vm10, %v10215_v11, %v15189_v25  ;;  %v7096_v47 = vsel %vm6919_vm10, %v10216_v5, %v15182_v30  ;;  %v7250_v35 = vmax.f32 %v15056_v36, %v10211_v63  ;;  %v7249_v34 = vmax.f32 %v15060_v31, %v10210_v41 }
 0xab6   : > { %v10252_v57 = vpack.i.bf16 %v7096_v47, %v7095_v16  ;;  %v10280_v5 = vunpack.i.l.bf16 %v10279_v3  ;;  %v7012_v48 = vsel %vm6919_vm10, %v10281_v44, %v15268_v56 }
 0xab7   : > { %v7280_v15 = vmax.f32 %v7248_v4, %v7249_v34  ;;  %v7281_v7 = vmax.f32 %v7249_v34, %v7250_v35 }
 0xab8   : > { %10253 = vrot.lane.b32.xlu1 %v10252_v57, %s10743_s16  ;;  %v7009_v57 = vsel %vm6919_vm10, %v10280_v5, %v15270_v50 }
 0xab9   : > { %v7308_v31 = vpack.c.bf16 %v7281_v7, %v7280_v15 }
 0xaba   : > { %v10229_v6 = vpop.permute.xlu2 %10228  ;;  %v10224_v11 = vpop.permute.xlu1 %10223 }
 0xabb   : > { %v10231_v54 = vunpack.i.h.bf16 %v10229_v6  ;;  %v10230_v46 = vunpack.i.l.bf16 %v10229_v6  ;;  %v10226_v4 = vunpack.i.h.bf16 %v10224_v11  ;;  %v10225_v6 = vunpack.i.l.bf16 %v10224_v11 }
 0xabd   : > { %v7097_v59 = vsel %vm6919_vm10, %v10230_v46, %v15202_v19  ;;  %v7098_v12 = vsel %vm6919_vm10, %v10231_v54, %v15198_v37  ;;  %v10307_v46 = vpack.i.bf16 %v7012_v48, %v7009_v57 }
 0xabe   : > { %v10267_v38 = vpack.i.bf16 %v7098_v12, %v7097_v59  ;;  %v7252_v59 = vmax.f32 %v15058_v40, %v10226_v4  ;;  %v7251_v12 = vmax.f32 %v15062_v24, %v10225_v6 }
 0xac0   : > { %10268 = vrot.lane.b32.xlu1 %v10267_v38, %s10743_s16 }
 0xac2   : > { %v10244_v43 = vpop.permute.xlu2 %10243 }
 0xac3   : > { %v10246_v60 = vunpack.i.h.bf16 %v10244_v43  ;;  %v10245_v2 = vunpack.i.l.bf16 %v10244_v43  ;;  %9303 = vmatmul.msk.bf16.gmra.mxu2 %vm7341_vm3, %v7307_v45  ;;  %9327 = vmatmul.msk.bf16.gmra.mxu3 %vm7341_vm3, %v7307_v45  ;;  %v7282_v43 = vmax.f32 %v7250_v35, %v7251_v12 }
 0xac4   : > { %9355 = vmatmul.msk.bf16.gmra.mxu0 %vm7341_vm3, %v7307_v45 }
 0xac5   : > { %v7099_v42 = vsel %vm6919_vm10, %v10245_v2, %v15216_v23  ;;  %v7100_v0 = vsel %vm6919_vm10, %v10246_v60, %v15213_v55  ;;  %v7283_v60 = vmax.f32 %v7251_v12, %v7252_v59 }
 0xac6   : > { %v10282_v14 = vpack.i.bf16 %v7100_v0, %v7099_v42  ;;  %v7015_v42 = vsel %vm6919_vm10, %v7014_v49, %v15276_v27 }
 0xac7   : > { %v7309_v40 = vpack.c.bf16 %v7283_v60, %v7282_v43 }
 0xac8   : > { %10283 = vrot.lane.b32.xlu1 %v10282_v14, %s10743_s16 }
 0xac9   : > { %v7734_v1 = vpop.f32.mrf.mxu0 }
 0xaca   : > { %v10259_v32 = vpop.permute.xlu2 %10258 }
 0xacb   : > { %v10261_v53 = vunpack.i.h.bf16 %v10259_v32  ;;  %v10260_v29 = vunpack.i.l.bf16 %v10259_v32 }
 0xacd   : > { %v7101_v51 = vsel %vm6919_vm10, %v10260_v29, %v15228_v17  ;;  %v7102_v18 = vsel %vm6919_vm10, %v10261_v53, %v15224_v33 }
 0xace   : > { %v10292_v26 = vpack.i.bf16 %v7102_v18, %v7101_v51  ;;  %v15452_v32 = vpop.f32.mrf.mxu2  ;;  %v7628_v53 = vpop.f32.mrf.mxu3 }
 0xad0   : > { %10293 = vrot.lane.b32.xlu1 %v10292_v26, %s10743_s16 }
 0xad1   : > { %v7736_v36 = vpop.f32.mrf.mxu0 }
 0xad2   : > { %v10274_v16 = vpop.permute.xlu2 %10273  ;;  %v15461_v36 = vld [vmem:[%s15990_s10] ss:$0 sm:$0xff] }
 0xad3   : > { %v10276_v47 = vunpack.i.h.bf16 %v10274_v16  ;;  %v10275_v39 = vunpack.i.l.bf16 %v10274_v16  ;;  %9304 = vmatmul.msk.bf16.gmra.mxu2 %vm7341_vm3, %v7308_v31  ;;  %9328 = vmatmul.msk.bf16.gmra.mxu3 %vm7341_vm3, %v7308_v31 }
 0xad4   : > { %9356 = vmatmul.msk.bf16.gmra.mxu0 %vm7341_vm3, %v7308_v31 }
 0xad5   : > { %v7103_v21 = vsel %vm6919_vm10, %v10275_v39, %v15241_v8  ;;  %v7104_v54 = vsel %vm6919_vm10, %v10276_v47, %v15239_v22 }
 0xad6   : > { %v10302_v61 = vpack.i.bf16 %v7104_v54, %v7103_v21  ;;  %v15454_v29 = vpop.f32.mrf.mxu2  ;;  %v7630_v3 = vpop.f32.mrf.mxu3 }
 0xad8   : > { %10308 = vrot.lane.b32.xlu1 %v10307_v46, %s10745_s19  ;;  %10303 = vrot.lane.b32.xlu0 %v10302_v61, %s10743_s16 }
 0xada   : > { %v10289_v38 = vpop.permute.xlu2 %10288 }
 0xadb   : > { %v10291_v58 = vunpack.i.h.bf16 %v10289_v38  ;;  %v10290_v45 = vunpack.i.l.bf16 %v10289_v38 }
 0xadd   : > { %v7105_v2 = vsel %vm6919_vm10, %v10290_v45, %v15251_v10  ;;  %v7106_v63 = vsel %vm6919_vm10, %v10291_v58, %v15249_v13 }
 0xade   : > { %v10312_v41 = vpack.i.bf16 %v7106_v63, %v7105_v2 }
 0xae0   : > { %10313 = vrot.lane.b32.xlu2 %v10312_v41, %s10743_s16  ;;  %7078 = vrot.lane.b32.xlu0 %v7015_v42, %s10745_s19  ;;  %s8663_s19 = sshll.u32 %s10934_s28, 3 }
 0xae1   : > { %s574_s17 = scalar_lea.vmem [#allocation8], %s8663_s19 }
 0xae2   : > { %v10299_v24 = vpop.permute.xlu2 %10298  ;;  %s8559_s30 = sshll.u32 %s574_s17, 4  ;;  %s8560_s30 = int_to_ptr.vmem [resolvable:$true] %s8559_s30 }
 0xae3   : > { %v10301_v0 = vunpack.i.h.bf16 %v10299_v24  ;;  %v10300_v14 = vunpack.i.l.bf16 %v10299_v24  ;;  %9305 = vmatmul.msk.bf16.gmra.mxu2 %vm7341_vm3, %v7309_v40  ;;  %9329 = vmatmul.msk.bf16.gmra.mxu3 %vm7341_vm3, %v7309_v40 }
 0xae4   : > { %9357 = vmatmul.msk.bf16.gmra.mxu0 %vm7341_vm3, %v7309_v40 }
 0xae5   : > { %v7107_v35 = vsel %vm6919_vm10, %v10300_v14, %v15261_v28  ;;  %v7108_v34 = vsel %vm6919_vm10, %v10301_v0, %v15259_v9 }
 0xae6   : > { %v10317_v1 = vpack.i.bf16 %v7108_v34, %v7107_v35 }
 0xae8   : > { %10318 = vrot.lane.b32.xlu1 %v10317_v1, %s10743_s16 }
 0xb21   : > { %v7739_v15 = vpop.f32.mrf.mxu0 }
 0xb22   : > { %v10239_v7 = vpop.permute.xlu1 %10238  ;;  %v7942_v5 = vadd.f32 %v7739_v15, %v7628_v53 }
 0xb23   : > { %v10241_v51 = vunpack.i.h.bf16 %v10239_v7  ;;  %v10240_v18 = vunpack.i.l.bf16 %v10239_v7 }
 0xb24   : > { %v7978_v48 = vadd.f32 %v15461_v36, %v7942_v5 }
 0xb25   : > { %v7254_v26 = vmax.f32 %v15160_v52, %v10241_v51  ;;  %v7253_v44 = vmax.f32 %v15166_v62, %v10240_v18 }
 0xb26   : > { %v7404_v31 = vpop.f32.mrf.mxu2  ;;  %v15463_v11 = vpop.f32.mrf.mxu3  ;;  %v15470_v54 = vmax.f32 %v7978_v48, 0.0 }
 0xb27   : > { %v7284_v16 = vmax.f32 %v7252_v59, %v7253_v44  ;;  %v7285_v47 = vmax.f32 %v7253_v44, %v7254_v26 }
 0xb29   : > { %v7741_v39 = vpop.f32.mrf.mxu0  ;;  %v7310_v57 = vpack.c.bf16 %v7285_v47, %v7284_v16 }
 0xb2a   : > { %v7943_v4 = vadd.f32 %v7741_v39, %v7630_v3  ;;  %v10254_v6 = vpop.permute.xlu1 %10253 }
 0xb2b   : > { %9306 = vmatmul.msk.bf16.gmra.mxu2 %vm7341_vm3, %v7310_v57  ;;  %9330 = vmatmul.msk.bf16.gmra.mxu3 %vm7341_vm3, %v7310_v57  ;;  %v10256_v62 = vunpack.i.h.bf16 %v10254_v6  ;;  %v10255_v21 = vunpack.i.l.bf16 %v10254_v6 }
 0xb2c   : > { %v7979_v52 = vadd.f32 %v15461_v36, %v7943_v4  ;;  %9358 = vmatmul.msk.bf16.gmra.mxu0 %vm7341_vm3, %v7310_v57 }
 0xb2d   : > { %v7256_v38 = vmax.f32 %v15182_v30, %v10256_v62  ;;  %v7255_v58 = vmax.f32 %v15189_v25, %v10255_v21 }
 0xb2e   : > { %v15472_v46 = vmax.f32 %v7979_v52, 0.0  ;;  %v7406_v61 = vpop.f32.mrf.mxu2  ;;  %v15474_v59 = vpop.f32.mrf.mxu3 }
 0xb2f   : > { %v7286_v43 = vmax.f32 %v7254_v26, %v7255_v58  ;;  %v7287_v60 = vmax.f32 %v7255_v58, %v7256_v38 }
 0xb30   : > { %v10327_v12 = vpack.i.bf16 %v15472_v46, %v15470_v54 }
 0xb31   : > { %v7744_v45 = vpop.f32.mrf.mxu0  ;;  %v7311_v42 = vpack.c.bf16 %v7287_v60, %v7286_v43 }
 0xb32   : > { %10328 = vrot.lane.b32.xlu1 %v10327_v12, %s10746_s0  ;;  %v10269_v49 = vpop.permute.xlu1 %10268 }
 0xb33   : > { %v10271_v30 = vunpack.i.h.bf16 %v10269_v49  ;;  %v10270_v25 = vunpack.i.l.bf16 %v10269_v49 }
 0xb35   : > { %v7258_v14 = vmax.f32 %v15198_v37, %v10271_v30  ;;  %v7257_v35 = vmax.f32 %v15202_v19, %v10270_v25 }
 0xb36   : > { %v7409_v2 = vpop.f32.mrf.mxu2  ;;  %v7638_v63 = vpop.f32.mrf.mxu3 }
 0xb37   : > { %v7288_v3 = vmax.f32 %v7256_v38, %v7257_v35  ;;  %v7289_v15 = vmax.f32 %v7257_v35, %v7258_v14 }
 0xb39   : > { %v7746_v41 = vpop.f32.mrf.mxu0  ;;  %v7312_v44 = vpack.c.bf16 %v7289_v15, %v7288_v3 }
 0xb3a   : > { %v10284_v40 = vpop.permute.xlu1 %10283 }
 0xb3b   : > { %9307 = vmatmul.msk.bf16.gmra.mxu2 %vm7341_vm3, %v7311_v42  ;;  %9331 = vmatmul.msk.bf16.gmra.mxu3 %vm7341_vm3, %v7311_v42  ;;  %v10286_v37 = vunpack.i.h.bf16 %v10284_v40  ;;  %v10285_v19 = vunpack.i.l.bf16 %v10284_v40 }
 0xb3c   : > { %9359 = vmatmul.msk.bf16.gmra.mxu0 %vm7341_vm3, %v7311_v42 }
 0xb3d   : > { %v7260_v52 = vmax.f32 %v15213_v55, %v10286_v37  ;;  %v7259_v62 = vmax.f32 %v15216_v23, %v10285_v19 }
 0xb3e   : > { %v15484_v24 = vpop.f32.mrf.mxu2  ;;  %v15486_v0 = vpop.f32.mrf.mxu3 }
 0xb3f   : > { %v7290_v38 = vmax.f32 %v7258_v14, %v7259_v62  ;;  %v7291_v58 = vmax.f32 %v7259_v62, %v7260_v52 }
 0xb41   : > { %v7749_v34 = vpop.f32.mrf.mxu0  ;;  %v7313_v60 = vpack.c.bf16 %v7291_v58, %v7290_v38 }
 0xb42   : > { %v15490_v1 = vadd.f32 %v7749_v34, %v7638_v63  ;;  %v10294_v53 = vpop.permute.xlu1 %10293 }
 0xb43   : > { %v10296_v55 = vunpack.i.h.bf16 %v10294_v53  ;;  %v10295_v23 = vunpack.i.l.bf16 %v10294_v53 }
 0xb45   : > { %v7262_v41 = vmax.f32 %v15224_v33, %v10296_v55  ;;  %v7261_v42 = vmax.f32 %v15228_v17, %v10295_v23 }
 0xb46   : > { %v7414_v7 = vpop.f32.mrf.mxu2  ;;  %v7643_v51 = vpop.f32.mrf.mxu3 }
 0xb47   : > { %v15492_v18 = vadd.f32 %v7643_v51, %v7409_v2  ;;  %v7292_v25 = vmax.f32 %v7260_v52, %v7261_v42  ;;  %v7293_v14 = vmax.f32 %v7261_v42, %v7262_v41 }
 0xb49   : > { %v15494_v26 = vpop.f32.mrf.mxu0  ;;  %v7314_v15 = vpack.c.bf16 %v7293_v14, %v7292_v25 }
 0xb4a   : > { %v10309_v5 = vpop.permute.xlu1 %10308  ;;  %v10304_v31 = vpop.permute.xlu0 %10303 }
 0xb4b   : > { %v10311_v16 = vunpack.i.h.bf16 %v10309_v5  ;;  %v10310_v47 = vunpack.i.l.bf16 %v10309_v5  ;;  %9308 = vmatmul.msk.bf16.gmra.mxu2 %vm7341_vm3, %v7312_v44  ;;  %9332 = vmatmul.msk.bf16.gmra.mxu3 %vm7341_vm3, %v7312_v44  ;;  %v10306_v53 = vunpack.i.h.bf16 %v10304_v31  ;;  %v10305_v33 = vunpack.i.l.bf16 %v10304_v31 }
 0xb4c   : > { %9360 = vmatmul.msk.bf16.gmra.mxu0 %vm7341_vm3, %v7312_v44 }
 0xb4d   : > { %v7109_v39 = vsel %vm6919_vm10, %v10310_v47, %v15270_v50  ;;  %v7110_v57 = vsel %vm6919_vm10, %v10311_v16, %v15268_v56  ;;  %v7264_v17 = vmax.f32 %v15239_v22, %v10306_v53  ;;  %v7263_v51 = vmax.f32 %v15241_v8, %v10305_v33  ;;  %v10314_v47 = vpop.permute.xlu2 %10313 }
 0xb4e   : > { %v7416_v48 = vpop.f32.mrf.mxu2  ;;  %v15503_v4 = vpop.f32.mrf.mxu3  ;;  %v10322_v6 = vpack.i.bf16 %v7110_v57, %v7109_v39  ;;  %v10316_v37 = vunpack.i.h.bf16 %v10314_v47  ;;  %v10315_v19 = vunpack.i.l.bf16 %v10314_v47 }
 0xb4f   : > { %v7294_v44 = vmax.f32 %v7262_v41, %v7263_v51  ;;  %v7295_v5 = vmax.f32 %v7263_v51, %v7264_v17 }
 0xb50   : > { %10323 = vrot.lane.b32.xlu2 %v10322_v6, %s10743_s16  ;;  %v7266_v39 = vmax.f32 %v15249_v13, %v10316_v37  ;;  %v7265_v31 = vmax.f32 %v15251_v10, %v10315_v19 }
 0xb51   : > { %v7754_v21 = vpop.f32.mrf.mxu0  ;;  %v7315_v16 = vpack.c.bf16 %v7295_v5, %v7294_v44 }
 0xb52   : > { %v7079_v61 = vpop.permute.xlu0 %7078  ;;  %v7296_v57 = vmax.f32 %v7264_v17, %v7265_v31  ;;  %v7297_v22 = vmax.f32 %v7265_v31, %v7266_v39 }
 0xb53   : > { %v7111_v12 = vsel %vm6919_vm10, %v7079_v61, %v15276_v27 }
 0xb54   : > { %7206 = vrot.lane.b32.xlu0 %v7111_v12, %s10743_s16  ;;  %v7316_v48 = vpack.c.bf16 %v7297_v22, %v7296_v57 }
 0xb56   : > { %v7419_v45 = vpop.f32.mrf.mxu2  ;;  %v7648_v49 = vpop.f32.mrf.mxu3 }
 0xb59   : > { %v7756_v43 = vpop.f32.mrf.mxu0 }
 0xb5a   : > { %v10319_v8 = vpop.permute.xlu1 %10318 }
 0xb5b   : > { %9309 = vmatmul.msk.bf16.gmra.mxu2 %vm7341_vm3, %v7313_v60  ;;  %9333 = vmatmul.msk.bf16.gmra.mxu3 %vm7341_vm3, %v7313_v60  ;;  %v10321_v6 = vunpack.i.h.bf16 %v10319_v8  ;;  %v10320_v52 = vunpack.i.l.bf16 %v10319_v8 }
 0xb5c   : > { %9361 = vmatmul.msk.bf16.gmra.mxu0 %vm7341_vm3, %v7313_v60 }
 0xb5d   : > { %v7268_v62 = vmax.f32 %v15259_v9, %v10321_v6  ;;  %v7267_v21 = vmax.f32 %v15261_v28, %v10320_v52 }
 0xb5e   : > { %v15514_v2 = vpop.f32.mrf.mxu2  ;;  %v15516_v63 = vpop.f32.mrf.mxu3 }
 0xb5f   : > { %v7298_v61 = vmax.f32 %v7266_v39, %v7267_v21  ;;  %v7299_v13 = vmax.f32 %v7267_v21, %v7268_v62 }
 0xb61   : > { %v7759_v40 = vpop.f32.mrf.mxu0  ;;  %v7317_v12 = vpack.c.bf16 %v7299_v13, %v7298_v61 }
 0xb62   : > { %v15520_v30 = vadd.f32 %v7759_v40, %v7648_v49 }
 0xb66   : > { %v7424_v35 = vpop.f32.mrf.mxu2  ;;  %v7653_v34 = vpop.f32.mrf.mxu3 }
 0xb67   : > { %v15522_v3 = vadd.f32 %v7653_v34, %v7419_v45 }
 0xb69   : > { %v15542_v10 = vpop.f32.mrf.mxu0 }
 0xb6b   : > { %9310 = vmatmul.msk.bf16.gmra.mxu2 %vm7341_vm3, %v7314_v15  ;;  %9334 = vmatmul.msk.bf16.gmra.mxu3 %vm7341_vm3, %v7314_v15 }
 0xb6c   : > { %9362 = vmatmul.msk.bf16.gmra.mxu0 %vm7341_vm3, %v7314_v15 }
 0xb6e   : > { %v7426_v7 = vpop.f32.mrf.mxu2  ;;  %v15544_v38 = vpop.f32.mrf.mxu3 }
 0xb7b   : > { %9311 = vmatmul.msk.bf16.gmra.mxu2 %vm7341_vm3, %v7315_v16  ;;  %9335 = vmatmul.msk.bf16.gmra.mxu3 %vm7341_vm3, %v7315_v16 }
 0xb7c   : > { %9363 = vmatmul.msk.bf16.gmra.mxu0 %vm7341_vm3, %v7315_v16 }
 0xb8b   : > { %9312 = vmatmul.msk.bf16.gmra.mxu2 %vm7341_vm3, %v7316_v48  ;;  %9336 = vmatmul.msk.bf16.gmra.mxu3 %vm7341_vm3, %v7316_v48 }
 0xb8c   : > { %9364 = vmatmul.msk.bf16.gmra.mxu0 %vm7341_vm3, %v7316_v48 }
 0xb9b   : > { %9313 = vmatmul.msk.bf16.gmra.mxu2 %vm7341_vm3, %v7317_v12  ;;  %9337 = vmatmul.msk.bf16.gmra.mxu3 %vm7341_vm3, %v7317_v12 }
 0xb9c   : > { %9365 = vmatmul.msk.bf16.gmra.mxu0 %vm7341_vm3, %v7317_v12 }
 0xba9   : > { %v7764_v58 = vpop.f32.mrf.mxu0 }
 0xbaa   : > { %v10324_v45 = vpop.permute.xlu2 %10323 }
 0xbab   : > { %v10326_v49 = vunpack.i.h.bf16 %v10324_v45  ;;  %v10325_v43 = vunpack.i.l.bf16 %v10324_v45 }
 0xbad   : > { %v7270_v9 = vmax.f32 %v15268_v56, %v10326_v49  ;;  %v7269_v28 = vmax.f32 %v15270_v50, %v10325_v43 }
 0xbae   : > { %v7429_v60 = vpop.f32.mrf.mxu2  ;;  %v7658_v55 = vpop.f32.mrf.mxu3 }
 0xbaf   : > { %v7300_v23 = vmax.f32 %v7268_v62, %v7269_v28  ;;  %v7301_v41 = vmax.f32 %v7269_v28, %v7270_v9 }
 0xbb1   : > { %v7766_v42 = vpop.f32.mrf.mxu0  ;;  %v7318_v40 = vpack.c.bf16 %v7301_v41, %v7300_v23 }
 0xbb3   : > { %9314 = vmatmul.msk.bf16.gmra.mxu2 %vm7341_vm3, %v7318_v40  ;;  %9338 = vmatmul.msk.bf16.gmra.mxu3 %vm7341_vm3, %v7318_v40 }
 0xbb4   : > { %9366 = vmatmul.msk.bf16.gmra.mxu0 %vm7341_vm3, %v7318_v40 }
 0xbb6   : > { %v7431_v25 = vpop.f32.mrf.mxu2  ;;  %v7660_v14 = vpop.f32.mrf.mxu3 }
 0xbb9   : > { %v7769_v35 = vpop.f32.mrf.mxu0 }
 0xbba   : > { %v7954_v34 = vadd.f32 %v7769_v35, %v7658_v55 }
 0xbbc   : > { %v7990_v50 = vadd.f32 %v15461_v36, %v7954_v34 }
 0xbbe   : > { %v7434_v15 = vpop.f32.mrf.mxu2  ;;  %v7663_v56 = vpop.f32.mrf.mxu3  ;;  %v15553_v17 = vmax.f32 %v7990_v50, 0.0 }
 0xbbf   : > { %v7664_v51 = vadd.f32 %v7663_v56, %v7429_v60 }
 0xbc1   : > { %v7771_v53 = vpop.f32.mrf.mxu0  ;;  %v7992_v48 = vadd.f32 %v15461_v36, %v7664_v51 }
 0xbc2   : > { %v7955_v33 = vadd.f32 %v7771_v53, %v7660_v14 }
 0xbc4   : > { %v7991_v7 = vadd.f32 %v15461_v36, %v7955_v33 }
 0xbc6   : > { %v15555_v44 = vmax.f32 %v7991_v7, 0.0  ;;  %v7436_v5 = vpop.f32.mrf.mxu2  ;;  %v7207_v16 = vpop.permute.xlu0 %7206 }
 0xbc7   : > { %v7271_v47 = vmax.f32 %v15276_v27, %v7207_v16  ;;  %v7665_v37 = vpop.f32.mrf.mxu3  ;;  %v15568_v27 = vmax.f32 %v7992_v48, 0.0 }
 0xbc8   : > { %v7666_v19 = vadd.f32 %v7665_v37, %v7431_v25  ;;  %v10332_v39 = vpack.i.bf16 %v15555_v44, %v15553_v17 }
 0xbc9   : > { %v7302_v31 = vmax.f32 %v7270_v9, %v7271_v47  ;;  %v7303_v57 = vmax.f32 %v7271_v47, %v15329_v20  ;;  %v7774_v22 = vpop.f32.mrf.mxu0 }
 0xbca   : > { %v7993_v8 = vadd.f32 %v15461_v36, %v7666_v19  ;;  %10333 = vrot.lane.b32.xlu1 %v10332_v39, %s10746_s0 }
 0xbcb   : > { %v7319_v6 = vpack.c.bf16 %v7303_v57, %v7302_v31 }
 0xbcc   : > { %v15564_v52 = vmax.f32 %v7993_v8, 0.0  ;;  %v7646_v8 = vadd.f32 %v15503_v4, %v15484_v24  ;;  %v7636_v24 = vadd.f32 %v15474_v59, %v15454_v29 }
 0xbcd   : > { %9315 = vmatmul.msk.bf16.gmra.mxu2 %vm7341_vm3, %v7319_v6  ;;  %9339 = vmatmul.msk.bf16.gmra.mxu3 %vm7341_vm3, %v7319_v6 }
 0xbce   : > { %9367 = vmatmul.msk.bf16.gmra.mxu0 %vm7341_vm3, %v7319_v6  ;;  %v7439_v62 = vpop.f32.mrf.mxu2  ;;  %v10337_v21 = vpack.i.bf16 %v15564_v52, %v15568_v27 }
 0xbcf   : > { %v7668_v20 = vpop.f32.mrf.mxu3 }
 0xbd1   : > { %v7776_v61 = vpop.f32.mrf.mxu0 }
 0xbd2   : > { %10338 = vrot.lane.b32.xlu1 %v10337_v21, %s10746_s0  ;;  %v7985_v21 = vadd.f32 %v15461_v36, %v7646_v8 }
 0xbd4   : > { %v15607_v4 = vmax.f32 %v7985_v21, 0.0 }
 0xbd6   : > { %v7441_v13 = vpop.f32.mrf.mxu2 }
 0xbd7   : > { %v7670_v12 = vpop.f32.mrf.mxu3 }
 0xbd9   : > { %v7779_v58 = vpop.f32.mrf.mxu0 }
 0xbda   : > { %v7958_v45 = vadd.f32 %v7779_v58, %v7668_v20  ;;  %v7984_v58 = vadd.f32 %v15461_v36, %v15492_v18 }
 0xbdc   : > { %v7994_v60 = vadd.f32 %v15461_v36, %v7958_v45 }
 0xbde   : > { %v7444_v49 = vpop.f32.mrf.mxu2  ;;  %v15578_v41 = vmax.f32 %v7994_v60, 0.0 }
 0xbdf   : > { %v7673_v43 = vpop.f32.mrf.mxu3  ;;  %v7634_v49 = vadd.f32 %v15463_v11, %v15452_v32 }
 0xbe0   : > { %v15574_v9 = vadd.f32 %v7673_v43, %v7439_v62  ;;  %v15611_v43 = vmax.f32 %v7984_v58, 0.0 }
 0xbe1   : > { %v7781_v28 = vpop.f32.mrf.mxu0 }
 0xbe2   : > { %v7959_v55 = vadd.f32 %v7781_v28, %v7670_v12  ;;  %v7981_v28 = vadd.f32 %v15461_v36, %v7636_v24  ;;  %v7656_v24 = vadd.f32 %v15544_v38, %v15514_v2  ;;  %v7988_v2 = vadd.f32 %v15461_v36, %v15522_v3 }
 0xbe4   : > { %v7995_v23 = vadd.f32 %v15461_v36, %v7959_v55  ;;  %v10387_v55 = vpack.i.bf16 %v15607_v4, %v15611_v43 }
 0xbe6   : > { %v15580_v42 = vmax.f32 %v7995_v23, 0.0  ;;  %v7446_v40 = vpop.f32.mrf.mxu2  ;;  %v7980_v23 = vadd.f32 %v15461_v36, %v7634_v49 }
 0xbe7   : > { %v7675_v25 = vpop.f32.mrf.mxu3  ;;  %v15618_v40 = vmax.f32 %v7981_v28, 0.0 }
 0xbe8   : > { %v15582_v14 = vadd.f32 %v7675_v25, %v7441_v13  ;;  %v10342_v35 = vpack.i.bf16 %v15580_v42, %v15578_v41  ;;  %v15620_v29 = vmax.f32 %v7980_v23, 0.0 }
 0xbe9   : > { %v7784_v34 = vpop.f32.mrf.mxu0 }
 0xbea   : > { %10343 = vrot.lane.b32.xlu2 %v10342_v35, %s10746_s0  ;;  %v10402_v32 = vpack.i.bf16 %v15618_v40, %v15620_v29 }
 0xbee   : > { %v7449_v15 = vpop.f32.mrf.mxu2 }
 0xbef   : > { %v7678_v56 = vpop.f32.mrf.mxu3 }
 0xbf1   : > { %v7786_v53 = vpop.f32.mrf.mxu0 }
 0xbf6   : > { %v7451_v50 = vpop.f32.mrf.mxu2 }
 0xbf7   : > { %v7680_v33 = vpop.f32.mrf.mxu3 }
 0xbf9   : > { %v7789_v7 = vpop.f32.mrf.mxu0 }
 0xbfa   : > { %v15587_v51 = vadd.f32 %v7789_v7, %v7678_v56 }
 0xbfe   : > { %v7454_v5 = vpop.f32.mrf.mxu2 }
 0xbff   : > { %v7683_v16 = vpop.f32.mrf.mxu3 }
 0xc00   : > { %v7684_v19 = vadd.f32 %v7683_v16, %v7449_v15 }
 0xc01   : > { %v7791_v47 = vpop.f32.mrf.mxu0 }
 0xc02   : > { %v15589_v37 = vadd.f32 %v7791_v47, %v7680_v33  ;;  %v8000_v57 = vadd.f32 %v15461_v36, %v7684_v19 }
 0xc04   : > { %v15595_v62 = vmax.f32 %v8000_v57, 0.0  ;;  %v7999_v3 = vadd.f32 %v15461_v36, %v15589_v37 }
 0xc06   : > { %v7456_v39 = vpop.f32.mrf.mxu2 }
 0xc07   : > { %v7685_v31 = vpop.f32.mrf.mxu3 }
 0xc08   : > { %v7686_v22 = vadd.f32 %v7685_v31, %v7451_v50 }
 0xc09   : > { %v7794_v48 = vpop.f32.mrf.mxu0 }
 0xc0a   : > { %v8001_v6 = vadd.f32 %v15461_v36, %v7686_v22 }
 0xc0c   : > { %v15597_v20 = vmax.f32 %v8001_v6, 0.0 }
 0xc0e   : > { %v7459_v61 = vpop.f32.mrf.mxu2  ;;  %v10372_v13 = vpack.i.bf16 %v15597_v20, %v15595_v62 }
 0xc0f   : > { %v7688_v12 = vpop.f32.mrf.mxu3 }
 0xc10   : > { %10373 = vrot.lane.b32.xlu1 %v10372_v13, %s10746_s0 }
 0xc11   : > { %v7796_v45 = vpop.f32.mrf.mxu0 }
 0xc16   : > { %v7461_v60 = vpop.f32.mrf.mxu2 }
 0xc17   : > { %v7690_v18 = vpop.f32.mrf.mxu3 }
 0xc18   : > { %10388 = vrot.lane.b32.xlu1 %v10387_v55, %s10746_s0 }
 0xc19   : > { %v7799_v11 = vpop.f32.mrf.mxu0 }
 0xc1a   : > { %v7966_v38 = vadd.f32 %v7799_v11, %v7688_v12  ;;  %v7951_v11 = vadd.f32 %v15542_v10, %v15516_v63  ;;  %v7986_v10 = vadd.f32 %v15461_v36, %v15520_v30  ;;  %v7997_v30 = vadd.f32 %v15461_v36, %v15582_v14 }
 0xc1c   : > { %v7987_v37 = vadd.f32 %v15461_v36, %v7951_v11 }
 0xc1e   : > { %v7464_v59 = vpop.f32.mrf.mxu2 }
 0xc1f   : > { %v7693_v25 = vpop.f32.mrf.mxu3 }
 0xc20   : > { %10403 = vrot.lane.b32.xlu1 %v10402_v32, %s10746_s0  ;;  %v7694_v35 = vadd.f32 %v7693_v25, %v7459_v61  ;;  %v7989_v25 = vadd.f32 %v15461_v36, %v7656_v24  ;;  %v7996_v24 = vadd.f32 %v15461_v36, %v15574_v9 }
 0xc21   : > { %v7801_v50 = vpop.f32.mrf.mxu0 }
 0xc22   : > { %v8004_v56 = vadd.f32 %v15461_v36, %v7694_v35  ;;  %v15714_v14 = vmax.f32 %v7996_v24, 0.0 }
 0xc24   : > { %v15627_v7 = vmax.f32 %v8004_v56, 0.0 }
 0xc26   : > { %v7466_v34 = vpop.f32.mrf.mxu2 }
 0xc27   : > { %v7695_v15 = vpop.f32.mrf.mxu3  ;;  %v7967_v34 = vadd.f32 %v7801_v50, %v7690_v18  ;;  %v15659_v18 = vmax.f32 %v7988_v2, 0.0  ;;  %v8002_v50 = vadd.f32 %v15461_v36, %v7966_v38 }
 0xc28   : > { %v7696_v53 = vadd.f32 %v7695_v15, %v7461_v60 }
 0xc2a   : > { %v8005_v33 = vadd.f32 %v15461_v36, %v7696_v53 }
 0xc2c   : > { %v15629_v5 = vmax.f32 %v8005_v33, 0.0  ;;  %v15654_v33 = vmax.f32 %v7989_v25, 0.0 }
 0xc2e   : > { %v10347_v16 = vpack.i.bf16 %v15629_v5, %v15627_v7  ;;  %v10367_v12 = vpack.i.bf16 %v15654_v33, %v15659_v18 }
 0xc30   : > { %10348 = vrot.lane.b32.xlu0 %v10347_v16, %s10746_s0  ;;  %v8003_v16 = vadd.f32 %v15461_v36, %v7967_v34 }
 0xc31   : > { %v7804_v47 = vpop.f32.mrf.mxu0 }
 0xc36   : > { %v7469_v39 = vpop.f32.mrf.mxu2  ;;  %v7698_v31 = vpop.f32.mrf.mxu3 }
 0xc39   : > { %v7806_v19 = vpop.f32.mrf.mxu0 }
 0xc3a   : > { %v15669_v19 = vmax.f32 %v8003_v16, 0.0 }
 0xc3e   : > { %v7471_v57 = vpop.f32.mrf.mxu2  ;;  %v7700_v22 = vpop.f32.mrf.mxu3 }
 0xc4b   : > { %v7809_v48 = vpop.f32.mrf.mxu0 }
 0xc4c   : > { %v7970_v8 = vadd.f32 %v7809_v48, %v7698_v31  ;;  %v15674_v31 = vmax.f32 %v8002_v50, 0.0 }
 0xc4e   : > { %v8006_v13 = vadd.f32 %v15461_v36, %v7970_v8  ;;  %v10362_v48 = vpack.i.bf16 %v15669_v19, %v15674_v31 }
 0xc50   : > { %v7474_v6 = vpop.f32.mrf.mxu2  ;;  %v7703_v21 = vpop.f32.mrf.mxu3  ;;  %v15638_v28 = vmax.f32 %v8006_v13, 0.0 }
 0xc51   : > { %v7704_v45 = vadd.f32 %v7703_v21, %v7469_v39  ;;  %v7998_v39 = vadd.f32 %v15461_v36, %v15587_v51  ;;  %v7982_v6 = vadd.f32 %v15461_v36, %v15490_v1  ;;  %v15696_v21 = vmax.f32 %v7986_v10, 0.0 }
 0xc53   : > { %v7811_v61 = vpop.f32.mrf.mxu0  ;;  %v8008_v59 = vadd.f32 %v15461_v36, %v7704_v45  ;;  %v15683_v63 = vmax.f32 %v7998_v39, 0.0  ;;  %v10344_v45 = vpop.permute.xlu2 %10343 }
 0xc54   : > { %v7971_v58 = vadd.f32 %v7811_v61, %v7700_v22  ;;  %v15678_v22 = vmax.f32 %v7999_v3, 0.0 }
 0xc55   : > { %v15650_v56 = vmax.f32 %v8008_v59, 0.0  ;;  %v10345_v59 = vunpack.i.l.bf16 %v10344_v45 }
 0xc56   : > { %v8007_v49 = vadd.f32 %v15461_v36, %v7971_v58  ;;  %v10382_v8 = vpack.i.bf16 %v15678_v22, %v15683_v63  ;;  %v15704_v58 = vmax.f32 %v7982_v6, 0.0 }
 0xc58   : > { %v15640_v60 = vmax.f32 %v8007_v49, 0.0  ;;  %v7476_v55 = vpop.f32.mrf.mxu2  ;;  %v7705_v23 = vpop.f32.mrf.mxu3  ;;  %v15711_v49 = vmax.f32 %v7997_v30, 0.0 }
 0xc59   : > { %v7706_v32 = vadd.f32 %v7705_v23, %v7471_v57  ;;  %v7947_v57 = vadd.f32 %v15494_v26, %v15486_v0  ;;  %v15691_v0 = vmax.f32 %v7987_v37, 0.0  ;;  %v10329_v26 = vpop.permute.xlu1 %10328  ;;  %v10346_v23 = vunpack.i.h.bf16 %v10344_v45 }
 0xc5a   : > { %v10352_v35 = vpack.i.bf16 %v15640_v60, %v15638_v28  ;;  %v10392_v9 = vpack.i.bf16 %v15711_v49, %v15714_v14  ;;  %v10331_v25 = vunpack.i.h.bf16 %v10329_v26 }
 0xc5b   : > { %v8009_v15 = vadd.f32 %v15461_v36, %v7706_v32  ;;  %v7983_v51 = vadd.f32 %v15461_v36, %v7947_v57  ;;  %v10377_v13 = vpack.i.bf16 %v15691_v0, %v15696_v21  ;;  %v8096_v32 = vsel %vm8042_vm6, %v10346_v23, %v15580_v42 }
 0xc5c   : > { %10353 = vrot.lane.b32.xlu0 %v10352_v35, %s10746_s0  ;;  %v8093_v36 = vsel %vm8042_vm6, %v10345_v59, %v15578_v41  ;;  %v10330_v35 = vunpack.i.l.bf16 %v10329_v26 }
 0xc5d   : > { %v15652_v53 = vmax.f32 %v8009_v15, 0.0  ;;  %v15698_v61 = vmax.f32 %v7983_v51, 0.0  ;;  %v10422_v34 = vpack.i.bf16 %v8096_v32, %v8093_v36  ;;  %v8048_v15 = vsel %vm8042_vm6, %v10331_v25, %v15472_v46 }
 0xc5e   : > { %v8045_v2 = vsel %vm8042_vm6, %v10330_v35, %v15470_v54 }
 0xc5f   : > { %v10357_v47 = vpack.i.bf16 %v15652_v53, %v15650_v56  ;;  %v10397_v1 = vpack.i.bf16 %v15698_v61, %v15704_v58  ;;  %v10407_v16 = vpack.i.bf16 %v8048_v15, %v8045_v2 }
 0xc61   : > { %10358 = vrot.lane.b32.xlu2 %v10357_v47, %s10746_s0  ;;  %v10334_v55 = vpop.permute.xlu1 %10333 }
 0xc62   : > { %v10336_v39 = vunpack.i.h.bf16 %v10334_v55  ;;  %v10335_v57 = vunpack.i.l.bf16 %v10334_v55 }
 0xc64   : > { %10368 = vrot.lane.b32.xlu0 %v10367_v12, %s10746_s0  ;;  %v8081_v10 = vsel %vm8042_vm6, %v10335_v57, %v15553_v17 }
 0xc69   : > { %10363 = vrot.lane.b32.xlu2 %v10362_v48, %s10746_s0  ;;  %v10339_v38 = vpop.permute.xlu1 %10338  ;;  %v8084_v48 = vsel %vm8042_vm6, %v10336_v39, %v15555_v44 }
 0xc6a   : > { %v10341_v47 = vunpack.i.h.bf16 %v10339_v38  ;;  %v10340_v50 = vunpack.i.l.bf16 %v10339_v38  ;;  %v10417_v51 = vpack.i.bf16 %v8084_v48, %v8081_v10 }
 0xc6c   : > { %10383 = vrot.lane.b32.xlu0 %v10382_v8, %s10746_s0  ;;  %v8090_v3 = vsel %vm8042_vm6, %v10341_v47, %v15564_v52  ;;  %v8087_v12 = vsel %vm8042_vm6, %v10340_v50, %v15568_v27 }
 0xc6d   : > { %v10412_v11 = vpack.i.bf16 %v8090_v3, %v8087_v12 }
 0xc71   : > { %10378 = vrot.lane.b32.xlu2 %v10377_v13, %s10746_s0 }
 0xc74   : > { %10398 = vrot.lane.b32.xlu0 %v10397_v1, %s10746_s0 }
 0xc79   : > { %10393 = vrot.lane.b32.xlu2 %v10392_v9, %s10746_s0 }
 0xc7c   : > { %10423 = vrot.lane.b32.xlu0 %v10422_v34, %s10746_s0 }
 0xc81   : > { %10408 = vrot.lane.b32.xlu2 %v10407_v16, %s10746_s0 }
 0xc82   : > { %v10374_v37 = vpop.permute.xlu1 %10373 }
 0xc83   : > { %v10376_v8 = vunpack.i.h.bf16 %v10374_v37  ;;  %v10375_v26 = vunpack.i.l.bf16 %v10374_v37 }
 0xc85   : > { %v8114_v30 = vsel %vm8042_vm6, %v10376_v8, %v15597_v20  ;;  %v8111_v13 = vsel %vm8042_vm6, %v10375_v26, %v15595_v62 }
 0xc86   : > { %v10452_v45 = vpack.i.bf16 %v8114_v30, %v8111_v13 }
 0xc89   : > { %10413 = vrot.lane.b32.xlu2 %v10412_v11, %s10746_s0 }
 0xc8a   : > { %v10389_v6 = vpop.permute.xlu1 %10388 }
 0xc8b   : > { %v10391_v24 = vunpack.i.h.bf16 %v10389_v6  ;;  %v10390_v1 = vunpack.i.l.bf16 %v10389_v6 }
 0xc8d   : > { %v8066_v55 = vsel %vm8042_vm6, %v10391_v24, %v15607_v4  ;;  %v8063_v23 = vsel %vm8042_vm6, %v10390_v1, %v15611_v43 }
 0xc8e   : > { %v10467_v32 = vpack.i.bf16 %v8066_v55, %v8063_v23 }
 0xc91   : > { %10418 = vrot.lane.b32.xlu2 %v10417_v51, %s10746_s0 }
 0xc92   : > { %v10404_v59 = vpop.permute.xlu1 %10403 }
 0xc93   : > { %v10406_v36 = vunpack.i.h.bf16 %v10404_v59  ;;  %v10405_v9 = vunpack.i.l.bf16 %v10404_v59 }
 0xc95   : > { %v8054_v15 = vsel %vm8042_vm6, %v10406_v36, %v15618_v40  ;;  %v8051_v2 = vsel %vm8042_vm6, %v10405_v9, %v15620_v29 }
 0xc96   : > { %v10482_v50 = vpack.i.bf16 %v8054_v15, %v8051_v2 }
 0xc99   : > { %10453 = vrot.lane.b32.xlu2 %v10452_v45, %s10746_s0 }
 0xca1   : > { %10468 = vrot.lane.b32.xlu2 %v10467_v32, %s10746_s0 }
 0xca2   : > { %v10349_v25 = vpop.permute.xlu0 %10348 }
 0xca3   : > { %v10351_v35 = vunpack.i.h.bf16 %v10349_v25  ;;  %v10350_v34 = vunpack.i.l.bf16 %v10349_v25 }
 0xca5   : > { %v8126_v38 = vsel %vm8042_vm6, %v10351_v35, %v15629_v5  ;;  %v8123_v16 = vsel %vm8042_vm6, %v10350_v34, %v15627_v7 }
 0xca6   : > { %v10427_v47 = vpack.i.bf16 %v8126_v38, %v8123_v16 }
 0xca8   : > { %10428 = vrot.lane.b32.xlu1 %v10427_v47, %s10746_s0 }
 0xca9   : > { %10483 = vrot.lane.b32.xlu2 %v10482_v50, %s10746_s0 }
 0xcbb   : > { %v10359_v3 = vpop.permute.xlu2 %10358 }
 0xcbc   : > { %v10361_v12 = vunpack.i.h.bf16 %v10359_v3  ;;  %v10360_v11 = vunpack.i.l.bf16 %v10359_v3 }
 0xcbe   : > { %v8138_v39 = vsel %vm8042_vm6, %v10361_v12, %v15652_v53  ;;  %v8135_v57 = vsel %vm8042_vm6, %v10360_v11, %v15650_v56 }
 0xcbf   : > { %v10437_v37 = vpack.i.bf16 %v8138_v39, %v8135_v57 }
 0xcc1   : > { %10438 = vrot.lane.b32.xlu0 %v10437_v37, %s10746_s0 }
 0xcc3   : > { %v10364_v48 = vpop.permute.xlu2 %10363 }
 0xcc4   : > { %v10366_v10 = vunpack.i.h.bf16 %v10364_v48  ;;  %v10365_v51 = vunpack.i.l.bf16 %v10364_v48 }
 0xcc6   : > { %v8120_v8 = vsel %vm8042_vm6, %v10366_v10, %v15669_v19  ;;  %v8117_v26 = vsel %vm8042_vm6, %v10365_v51, %v15674_v31 }
 0xcc7   : > { %v10442_v6 = vpack.i.bf16 %v8120_v8, %v8117_v26 }
 0xcc9   : > { %10443 = vrot.lane.b32.xlu0 %v10442_v6, %s10746_s0 }
 0xccb   : > { %v10379_v30 = vpop.permute.xlu2 %10378 }
 0xccc   : > { %v10381_v13 = vunpack.i.h.bf16 %v10379_v30  ;;  %v10380_v45 = vunpack.i.l.bf16 %v10379_v30 }
 0xcce   : > { %v8072_v24 = vsel %vm8042_vm6, %v10381_v13, %v15691_v0  ;;  %v8069_v1 = vsel %vm8042_vm6, %v10380_v45, %v15696_v21  ;;  %v10354_v55 = vpop.permute.xlu0 %10353 }
 0xccf   : > { %v10457_v23 = vpack.i.bf16 %v8072_v24, %v8069_v1  ;;  %v10356_v59 = vunpack.i.h.bf16 %v10354_v55  ;;  %v10355_v32 = vunpack.i.l.bf16 %v10354_v55 }
 0xcd1   : > { %v8132_v36 = vsel %vm8042_vm6, %v10356_v59, %v15640_v60  ;;  %v8129_v9 = vsel %vm8042_vm6, %v10355_v32, %v15638_v28  ;;  %10458 = vrot.lane.b32.xlu0 %v10457_v23, %s10746_s0 }
 0xcd2   : > { %v10432_v25 = vpack.i.bf16 %v8132_v36, %v8129_v9 }
 0xcd3   : > { %v10394_v35 = vpop.permute.xlu2 %10393 }
 0xcd4   : > { %v10396_v34 = vunpack.i.h.bf16 %v10394_v35  ;;  %v10395_v15 = vunpack.i.l.bf16 %v10394_v35  ;;  %10433 = vrot.lane.b32.xlu1 %v10432_v25, %s10746_s0 }
 0xcd6   : > { %v8102_v2 = vsel %vm8042_vm6, %v10396_v34, %v15711_v49  ;;  %v8099_v38 = vsel %vm8042_vm6, %v10395_v15, %v15714_v14  ;;  %v10369_v16 = vpop.permute.xlu0 %10368 }
 0xcd7   : > { %v10472_v47 = vpack.i.bf16 %v8102_v2, %v8099_v38  ;;  %v10371_v50 = vunpack.i.h.bf16 %v10369_v16  ;;  %v10370_v3 = vunpack.i.l.bf16 %v10369_v16 }
 0xcd9   : > { %v8078_v12 = vsel %vm8042_vm6, %v10371_v50, %v15654_v33  ;;  %v8075_v11 = vsel %vm8042_vm6, %v10370_v3, %v15659_v18  ;;  %10473 = vrot.lane.b32.xlu0 %v10472_v47, %s10746_s0 }
 0xcda   : > { %v10447_v39 = vpack.i.bf16 %v8078_v12, %v8075_v11 }
 0xcdb   : > { %v10409_v57 = vpop.permute.xlu2 %10408 }
 0xcdc   : > { %v10411_v37 = vunpack.i.h.bf16 %v10409_v57  ;;  %v10410_v48 = vunpack.i.l.bf16 %v10409_v57  ;;  %10448 = vrot.lane.b32.xlu1 %v10447_v39, %s10746_s0 }
 0xcde   : > { %v8204_v10 = vsel %vm8042_vm6, %v10411_v37, %v15472_v46  ;;  %v8203_v51 = vsel %vm8042_vm6, %v10410_v48, %v15470_v54  ;;  %v10384_v8 = vpop.permute.xlu0 %10383 }
 0xcdf   : > { %v10487_v26 = vpack.i.bf16 %v8204_v10, %v8203_v51  ;;  %v10386_v6 = vunpack.i.h.bf16 %v10384_v8  ;;  %v10385_v30 = vunpack.i.l.bf16 %v10384_v8 }
 0xce1   : > { %v8108_v13 = vsel %vm8042_vm6, %v10386_v6, %v15678_v22  ;;  %v8105_v45 = vsel %vm8042_vm6, %v10385_v30, %v15683_v63  ;;  %10488 = vrot.lane.b32.xlu0 %v10487_v26, %s10743_s16 }
 0xce2   : > { %v10462_v24 = vpack.i.bf16 %v8108_v13, %v8105_v45 }
 0xce3   : > { %v10414_v1 = vpop.permute.xlu2 %10413 }
 0xce4   : > { %v10416_v55 = vunpack.i.h.bf16 %v10414_v1  ;;  %v10415_v23 = vunpack.i.l.bf16 %v10414_v1  ;;  %10463 = vrot.lane.b32.xlu1 %v10462_v24, %s10746_s0 }
 0xce6   : > { %v8218_v59 = vsel %vm8042_vm6, %v10416_v55, %v15564_v52  ;;  %v8217_v32 = vsel %vm8042_vm6, %v10415_v23, %v15568_v27  ;;  %v10399_v36 = vpop.permute.xlu0 %10398 }
 0xce7   : > { %v10492_v9 = vpack.i.bf16 %v8218_v59, %v8217_v32  ;;  %v10401_v25 = vunpack.i.h.bf16 %v10399_v36  ;;  %v10400_v35 = vunpack.i.l.bf16 %v10399_v36 }
 0xce9   : > { %v8060_v34 = vsel %vm8042_vm6, %v10401_v25, %v15698_v61  ;;  %v8057_v15 = vsel %vm8042_vm6, %v10400_v35, %v15704_v58  ;;  %10493 = vrot.lane.b32.xlu0 %v10492_v9, %s10743_s16 }
 0xcea   : > { %v10477_v2 = vpack.i.bf16 %v8060_v34, %v8057_v15 }
 0xceb   : > { %v10419_v38 = vpop.permute.xlu2 %10418 }
 0xcec   : > { %v10421_v16 = vunpack.i.h.bf16 %v10419_v38  ;;  %v10420_v47 = vunpack.i.l.bf16 %v10419_v38  ;;  %10478 = vrot.lane.b32.xlu1 %v10477_v2, %s10746_s0 }
 0xcee   : > { %v8216_v50 = vsel %vm8042_vm6, %v10421_v16, %v15555_v44  ;;  %v8215_v3 = vsel %vm8042_vm6, %v10420_v47, %v15553_v17  ;;  %v10424_v12 = vpop.permute.xlu0 %10423 }
 0xcef   : > { %v10497_v11 = vpack.i.bf16 %v8216_v50, %v8215_v3  ;;  %v10426_v39 = vunpack.i.h.bf16 %v10424_v12  ;;  %v10425_v57 = vunpack.i.l.bf16 %v10424_v12 }
 0xcf1   : > { %v8220_v37 = vsel %vm8042_vm6, %v10426_v39, %v15580_v42  ;;  %v8219_v48 = vsel %vm8042_vm6, %v10425_v57, %v15578_v41  ;;  %10498 = vrot.lane.b32.xlu0 %v10497_v11, %s10743_s16 }
 0xcf2   : > { %v10502_v10 = vpack.i.bf16 %v8220_v37, %v8219_v48 }
 0xcf3   : > { %v10454_v51 = vpop.permute.xlu2 %10453 }
 0xcf4   : > { %v10456_v8 = vunpack.i.h.bf16 %v10454_v51  ;;  %v10455_v26 = vunpack.i.l.bf16 %v10454_v51  ;;  %10503 = vrot.lane.b32.xlu1 %v10502_v10, %s10743_s16 }
 0xcf6   : > { %v8226_v6 = vsel %vm8042_vm6, %v10456_v8, %v15597_v20  ;;  %v8225_v30 = vsel %vm8042_vm6, %v10455_v26, %v15595_v62 }
 0xcf7   : > { %v10532_v13 = vpack.i.bf16 %v8226_v6, %v8225_v30 }
 0xcf9   : > { %10533 = vrot.lane.b32.xlu0 %v10532_v13, %s10743_s16 }
 0xcfb   : > { %v10469_v45 = vpop.permute.xlu2 %10468 }
 0xcfc   : > { %v10471_v24 = vunpack.i.h.bf16 %v10469_v45  ;;  %v10470_v1 = vunpack.i.l.bf16 %v10469_v45 }
 0xcfe   : > { %v8210_v55 = vsel %vm8042_vm6, %v10471_v24, %v15607_v4  ;;  %v8209_v23 = vsel %vm8042_vm6, %v10470_v1, %v15611_v43 }
 0xcff   : > { %v10547_v59 = vpack.i.bf16 %v8210_v55, %v8209_v23 }
 0xd01   : > { %10548 = vrot.lane.b32.xlu0 %v10547_v59, %s10743_s16 }
 0xd03   : > { %v10484_v32 = vpop.permute.xlu2 %10483 }
 0xd04   : > { %v10486_v36 = vunpack.i.h.bf16 %v10484_v32  ;;  %v10485_v9 = vunpack.i.l.bf16 %v10484_v32 }
 0xd06   : > { %v8206_v25 = vsel %vm8042_vm6, %v10486_v36, %v15618_v40  ;;  %v8205_v35 = vsel %vm8042_vm6, %v10485_v9, %v15620_v29 }
 0xd07   : > { %v10562_v34 = vpack.i.bf16 %v8206_v25, %v8205_v35 }
 0xd09   : > { %10563 = vrot.lane.b32.xlu0 %v10562_v34, %s10743_s16 }
 0xd1a   : > { %v10429_v15 = vpop.permute.xlu1 %10428 }
 0xd1b   : > { %v10431_v2 = vunpack.i.h.bf16 %v10429_v15  ;;  %v10430_v38 = vunpack.i.l.bf16 %v10429_v15 }
 0xd1d   : > { %v8230_v16 = vsel %vm8042_vm6, %v10431_v2, %v15629_v5  ;;  %v8229_v47 = vsel %vm8042_vm6, %v10430_v38, %v15627_v7 }
 0xd1e   : > { %v10507_v50 = vpack.i.bf16 %v8230_v16, %v8229_v47 }
 0xd20   : > { %10508 = vrot.lane.b32.xlu2 %v10507_v50, %s10743_s16 }
 0xd33   : > { %v10439_v3 = vpop.permute.xlu0 %10438 }
 0xd34   : > { %v10441_v12 = vunpack.i.h.bf16 %v10439_v3  ;;  %v10440_v11 = vunpack.i.l.bf16 %v10439_v3 }
 0xd36   : > { %v8234_v39 = vsel %vm8042_vm6, %v10441_v12, %v15652_v53  ;;  %v8233_v57 = vsel %vm8042_vm6, %v10440_v11, %v15650_v56 }
 0xd37   : > { %v10517_v37 = vpack.i.bf16 %v8234_v39, %v8233_v57 }
 0xd39   : > { %10518 = vrot.lane.b32.xlu1 %v10517_v37, %s10743_s16 }
 0xd3b   : > { %v10444_v48 = vpop.permute.xlu0 %10443 }
 0xd3c   : > { %v10446_v10 = vunpack.i.h.bf16 %v10444_v48  ;;  %v10445_v51 = vunpack.i.l.bf16 %v10444_v48 }
 0xd3e   : > { %v8228_v8 = vsel %vm8042_vm6, %v10446_v10, %v15669_v19  ;;  %v8227_v26 = vsel %vm8042_vm6, %v10445_v51, %v15674_v31 }
 0xd3f   : > { %v10522_v6 = vpack.i.bf16 %v8228_v8, %v8227_v26 }
 0xd41   : > { %10523 = vrot.lane.b32.xlu1 %v10522_v6, %s10743_s16 }
 0xd43   : > { %v10459_v30 = vpop.permute.xlu0 %10458 }
 0xd44   : > { %v10461_v13 = vunpack.i.h.bf16 %v10459_v30  ;;  %v10460_v45 = vunpack.i.l.bf16 %v10459_v30 }
 0xd46   : > { %v8212_v24 = vsel %vm8042_vm6, %v10461_v13, %v15691_v0  ;;  %v8211_v1 = vsel %vm8042_vm6, %v10460_v45, %v15696_v21  ;;  %v10434_v55 = vpop.permute.xlu1 %10433 }
 0xd47   : > { %v10537_v23 = vpack.i.bf16 %v8212_v24, %v8211_v1  ;;  %v10436_v59 = vunpack.i.h.bf16 %v10434_v55  ;;  %v10435_v32 = vunpack.i.l.bf16 %v10434_v55 }
 0xd49   : > { %v8232_v36 = vsel %vm8042_vm6, %v10436_v59, %v15640_v60  ;;  %v8231_v9 = vsel %vm8042_vm6, %v10435_v32, %v15638_v28  ;;  %10538 = vrot.lane.b32.xlu1 %v10537_v23, %s10743_s16 }
 0xd4a   : > { %v10512_v25 = vpack.i.bf16 %v8232_v36, %v8231_v9 }
 0xd4b   : > { %v10474_v35 = vpop.permute.xlu0 %10473 }
 0xd4c   : > { %v10476_v34 = vunpack.i.h.bf16 %v10474_v35  ;;  %v10475_v15 = vunpack.i.l.bf16 %v10474_v35  ;;  %10513 = vrot.lane.b32.xlu2 %v10512_v25, %s10743_s16 }
 0xd4e   : > { %v8222_v2 = vsel %vm8042_vm6, %v10476_v34, %v15711_v49  ;;  %v8221_v38 = vsel %vm8042_vm6, %v10475_v15, %v15714_v14  ;;  %v10449_v16 = vpop.permute.xlu1 %10448 }
 0xd4f   : > { %v10552_v47 = vpack.i.bf16 %v8222_v2, %v8221_v38  ;;  %v10451_v50 = vunpack.i.h.bf16 %v10449_v16  ;;  %v10450_v3 = vunpack.i.l.bf16 %v10449_v16 }
 0xd51   : > { %v8214_v12 = vsel %vm8042_vm6, %v10451_v50, %v15654_v33  ;;  %v8213_v11 = vsel %vm8042_vm6, %v10450_v3, %v15659_v18  ;;  %10553 = vrot.lane.b32.xlu1 %v10552_v47, %s10743_s16 }
 0xd52   : > { %v10527_v39 = vpack.i.bf16 %v8214_v12, %v8213_v11 }
 0xd53   : > { %v10489_v57 = vpop.permute.xlu0 %10488 }
 0xd54   : > { %10528 = vrot.lane.b32.xlu2 %v10527_v39, %s10743_s16 }
 0xd56   : > { %v10464_v37 = vpop.permute.xlu1 %10463 }
 0xd57   : > { %v10466_v48 = vunpack.i.h.bf16 %v10464_v37  ;;  %v10465_v10 = vunpack.i.l.bf16 %v10464_v37 }
 0xd59   : > { %v8224_v51 = vsel %vm8042_vm6, %v10466_v48, %v15678_v22  ;;  %v8223_v8 = vsel %vm8042_vm6, %v10465_v10, %v15683_v63  ;;  %v10491_v48 = vunpack.i.h.bf16 %v10489_v57 }
 0xd5a   : > { %v10542_v26 = vpack.i.bf16 %v8224_v51, %v8223_v8 }
 0xd5b   : > { %v10494_v6 = vpop.permute.xlu0 %10493 }
 0xd5c   : > { %10543 = vrot.lane.b32.xlu2 %v10542_v26, %s10743_s16  ;;  %v10496_v59 = vunpack.i.h.bf16 %v10494_v6  ;;  %v10495_v32 = vunpack.i.l.bf16 %v10494_v6  ;;  %v15892_v6 = vmax.f32 %v15472_v46, %v10491_v48 }
 0xd5e   : > { %v10479_v30 = vpop.permute.xlu1 %10478  ;;  %v8378_v15 = vmax.f32 %v15564_v52, %v10496_v59  ;;  %v8377_v2 = vmax.f32 %v15568_v27, %v10495_v32 }
 0xd5f   : > { %v10481_v13 = vunpack.i.h.bf16 %v10479_v30  ;;  %v10480_v45 = vunpack.i.l.bf16 %v10479_v30 }
 0xd61   : > { %v8208_v24 = vsel %vm8042_vm6, %v10481_v13, %v15698_v61  ;;  %v8207_v1 = vsel %vm8042_vm6, %v10480_v45, %v15704_v58 }
 0xd62   : > { %v10557_v55 = vpack.i.bf16 %v8208_v24, %v8207_v1 }
 0xd63   : > { %v10499_v23 = vpop.permute.xlu0 %10498 }
 0xd64   : > { %10558 = vrot.lane.b32.xlu2 %v10557_v55, %s10743_s16  ;;  %v10501_v36 = vunpack.i.h.bf16 %v10499_v23  ;;  %v10500_v9 = vunpack.i.l.bf16 %v10499_v23  ;;  %s16639_s16 = sld [smem:[#allocation81_spill]] }
 0xd66   : > { %v10504_v25 = vpop.permute.xlu1 %10503  ;;  %v8376_v38 = vmax.f32 %v15555_v44, %v10501_v36  ;;  %v8375_v16 = vmax.f32 %v15553_v17, %v10500_v9  ;;  %v10490_v17 = vunpack.i.l.bf16 %v10489_v57 }
 0xd67   : > { %v10506_v35 = vunpack.i.h.bf16 %v10504_v25  ;;  %v10505_v34 = vunpack.i.l.bf16 %v10504_v25 }
 0xd68   : > { %v8407_v11 = vmax.f32 %v8375_v16, %v8377_v2  ;;  %v8408_v39 = vmax.f32 %v8376_v38, %v8378_v15  ;;  %v15895_v30 = vmax.f32 %v15470_v54, %v10490_v17 }
 0xd69   : > { %v15884_v47 = vmax.f32 %v15580_v42, %v10506_v35  ;;  %v15887_v50 = vmax.f32 %v15578_v41, %v10505_v34 }
 0xd6a   : > { %v8433_v52 = vpack.c.bf16 %v8408_v39, %v8407_v11  ;;  %s8557_s18 = scalar_lea.hbm %s16639_s16, %s9383_s20  ;;  %s10685_s0 = scalar_lea.hbm %s16639_s16, 16 }
 0xd6b   : > { %v8410_v3 = vmax.f32 %v8378_v15, %v15884_v47  ;;  %v8409_v12 = vmax.f32 %v8377_v2, %v15887_v50  ;;  %v10534_v42 = vpop.permute.xlu0 %10533  ;;  %s8561_s29 = sshll.u32 %s8557_s18, 4  ;;  %s8562_s29 = int_to_ptr.hbm [resolvable:$true] %s8561_s29 }
 0xd6c   : > { %s10679_s25 = sshra.s32 %s8562_s29, 4  ;;  %s10680_s25 = int_to_ptr.hbm [resolvable:$true] %s10679_s25 }
 0xd6d   : > { %v8434_v37 = vpack.c.bf16 %v8410_v3, %v8409_v12  ;;  %v9525_v12 = vld [vmem:[%s15992_s12] sm:$0xff]  ;;  %s10681_s2 = scalar_lea.hbm %s10680_s25, 8  ;;  %p10686_p11 = scmp.lt.s32.totalorder %s10680_s25, %s16639_s16 }
 0xd6e   : > { %8501 = vmatpush.bf16.msra.mxu3 %v9525_v12  ;;  %p10682_p1 = scmp.ne.s32.totalorder %s10680_s25, %s10681_s2  ;;  %p10687_p9 = scmp.lt.s32.totalorder %s10685_s0, %s10681_s2 }
 0xd6f   : > { %8451 = vmatpush.bf16.msra.mxu1 %v8434_v37 }
 0xd70   : > { %p10683_p4 = pnand %p10682_p1, %p10904_p5  ;;  %p10688_p2 = por %p10687_p9, %p10686_p11 }
 0xd72   : > { %p10684_p8 = pneg %p10683_p4 }
 0xd73   : > { %8452 = vmatpush.bf16.msra.mxu1 %v8433_v52  ;;  %v10536_v52 = vunpack.i.h.bf16 %v10534_v42 }
 0xd74   : > { %p10689_p10 = pnand %p10688_p2, %p10684_p8 }
 0xd7a   : > { %v10509_v27 = vpop.permute.xlu2 %10508 }
 0xd7b   : > { %v10511_v1 = vunpack.i.h.bf16 %v10509_v27  ;;  %v10510_v55 = vunpack.i.l.bf16 %v10509_v27 }
 0xd7d   : > { %v8389_v35 = vmax.f32 %v15627_v7, %v10510_v55 }
 0xda6   : > { %v10514_v44 = vpop.permute.xlu2 %10513 }
 0xda7   : > { %v10516_v51 = vunpack.i.h.bf16 %v10514_v44  ;;  %v10515_v8 = vunpack.i.l.bf16 %v10514_v44 }
 0xda9   : > { %v8392_v59 = vmax.f32 %v15640_v60, %v10516_v51  ;;  %v8391_v32 = vmax.f32 %v15638_v28, %v10515_v8  ;;  %v8390_v60 = vmax.f32 %v15629_v5, %v10511_v1  ;;  %v10535_v5 = vunpack.i.l.bf16 %v10534_v42 }
 0xdaa   : > { %v8386_v51 = vmax.f32 %v15597_v20, %v10536_v52 }
 0xdab   : > { %v10519_v10 = vpop.permute.xlu1 %10518  ;;  %v8422_v39 = vmax.f32 %v8390_v60, %v8392_v59 }
 0xdac   : > { %v10521_v41 = vunpack.i.h.bf16 %v10519_v10  ;;  %v10520_v26 = vunpack.i.l.bf16 %v10519_v10 }
 0xdae   : > { %v8394_v13 = vmax.f32 %v15652_v53, %v10521_v41  ;;  %v8393_v45 = vmax.f32 %v15650_v56, %v10520_v26  ;;  %v10529_v24 = vpop.permute.xlu2 %10528 }
 0xdaf   : > { %v10531_v57 = vunpack.i.h.bf16 %v10529_v24  ;;  %v10530_v23 = vunpack.i.l.bf16 %v10529_v24 }
 0xdb0   : > { %v8426_v36 = vmax.f32 %v8394_v13, %v15892_v6  ;;  %v8425_v46 = vmax.f32 %v8393_v45, %v15895_v30  ;;  %v8423_v53 = vmax.f32 %v8391_v32, %v8393_v45  ;;  %v8424_v25 = vmax.f32 %v8392_v59, %v8394_v13 }
 0xdb1   : > { %v8374_v54 = vmax.f32 %v15654_v33, %v10531_v57  ;;  %v8373_v9 = vmax.f32 %v15659_v18, %v10530_v23  ;;  %v8421_v33 = vmax.f32 %v8389_v35, %v8391_v32  ;;  %v10549_v18 = vpop.permute.xlu0 %10548 }
 0xdb2   : > { %v8442_v56 = vpack.c.bf16 %v8426_v36, %v8425_v46  ;;  %v10551_v27 = vunpack.i.h.bf16 %v10549_v18  ;;  %v10550_v44 = vunpack.i.l.bf16 %v10549_v18 }
 0xdb3   : > { %v8406_v34 = vmax.f32 %v8374_v54, %v8376_v38  ;;  %v8405_v15 = vmax.f32 %v8373_v9, %v8375_v16  ;;  %v10524_v2 = vpop.permute.xlu1 %10523  ;;  %v8441_v16 = vpack.c.bf16 %v8424_v25, %v8423_v53  ;;  %v8440_v10 = vpack.c.bf16 %v8422_v39, %v8421_v33 }
 0xdb4   : > { %v10526_v3 = vunpack.i.h.bf16 %v10524_v2  ;;  %v10525_v28 = vunpack.i.l.bf16 %v10524_v2  ;;  %8464 = vmatpush.bf16.msra.mxu2 %v8442_v56  ;;  %v8370_v45 = vmax.f32 %v15607_v4, %v10551_v27  ;;  %v8369_v42 = vmax.f32 %v15611_v43, %v10550_v44 }
 0xdb5   : > { %v8432_v11 = vpack.c.bf16 %v8406_v34, %v8405_v15 }
 0xdb6   : > { %v8388_v37 = vmax.f32 %v15669_v19, %v10526_v3  ;;  %v8387_v7 = vmax.f32 %v15674_v31, %v10525_v28  ;;  %v10544_v38 = vpop.permute.xlu2 %10543  ;;  %v8385_v19 = vmax.f32 %v15595_v62, %v10535_v5 }
 0xdb7   : > { %8453 = vmatpush.bf16.msra.mxu1 %v8432_v11  ;;  %v10546_v8 = vunpack.i.h.bf16 %v10544_v38  ;;  %v10545_v41 = vunpack.i.l.bf16 %v10544_v38 }
 0xdb8   : > { %8465 = vmatpush.bf16.msra.mxu2 %v8441_v16  ;;  %v8419_v48 = vmax.f32 %v8387_v7, %v8389_v35  ;;  %v8420_v17 = vmax.f32 %v8388_v37, %v8390_v60  ;;  %v8418_v24 = vmax.f32 %v8386_v51, %v8388_v37  ;;  %v8417_v1 = vmax.f32 %v8385_v19, %v8387_v7  ;;  %v8443_v37 = vld [vmem:[%s15991_s11] sm:$0xff] }
 0xdb9   : > { %v8384_v59 = vmax.f32 %v15678_v22, %v10546_v8  ;;  %v8383_v32 = vmax.f32 %v15683_v63, %v10545_v41  ;;  %v10564_v4 = vpop.permute.xlu0 %10563 }
 0xdba   : > { %v8439_v20 = vpack.c.bf16 %v8420_v17, %v8419_v48  ;;  %v10566_v22 = vunpack.i.h.bf16 %v10564_v4  ;;  %v10565_v60 = vunpack.i.l.bf16 %v10564_v4  ;;  %v8445_v48 = vunpack.c.l.b16 %v8443_v37 }
 0xdbb   : > { %v10539_v26 = vpop.permute.xlu1 %10538  ;;  %v8416_v34 = vmax.f32 %v8384_v59, %v8386_v51  ;;  %v8415_v15 = vmax.f32 %v8383_v32, %v8385_v19  ;;  %v9526_v19 = vld [vmem:[%s15994_s14] sm:$0xff] }
 0xdbc   : > { %v10541_v31 = vunpack.i.h.bf16 %v10539_v26  ;;  %v10540_v13 = vunpack.i.l.bf16 %v10539_v26  ;;  %8466 = vmatpush.bf16.msra.mxu2 %v8440_v10  ;;  %v8365_v11 = vmax.f32 %v15620_v29, %v10565_v60  ;;  %v8447_v51 = vpack.c.b16 %v8445_v48, %v8445_v48 }
 0xdbd   : > { %v8437_v33 = vpack.c.bf16 %v8416_v34, %v8415_v15 }
 0xdbe   : > { %v8372_v55 = vmax.f32 %v15691_v0, %v10541_v31  ;;  %v8371_v57 = vmax.f32 %v15696_v21, %v10540_v13  ;;  %v10559_v23 = vpop.permute.xlu2 %10558  ;;  %v8438_v21 = vpack.c.bf16 %v8418_v24, %v8417_v1  ;;  %v8395_v5 = vmax.f32 %v15895_v30, %v8365_v11  ;;  %v10571_v31 = vld [vmem:[%s15993_s13] ss:$0 sm:$0xff] }
 0xdbf   : > { %v10561_v62 = vunpack.i.h.bf16 %v10559_v23  ;;  %v10560_v36 = vunpack.i.l.bf16 %v10559_v23 }
 0xdc0   : > { %v8403_v46 = vmax.f32 %v8371_v57, %v8373_v9  ;;  %v8404_v53 = vmax.f32 %v8372_v55, %v8374_v54  ;;  %8467 = vmatpush.bf16.msra.mxu2 %v8439_v20  ;;  %v8402_v25 = vmax.f32 %v8370_v45, %v8372_v55  ;;  %v8401_v43 = vmax.f32 %v8369_v42, %v8371_v57  ;;  %v10572_v55 = vld [vmem:[%s16641_s27] ss:$0 sm:$0xff] }
 0xdc1   : > { %v8368_v56 = vmax.f32 %v15698_v61, %v10561_v62  ;;  %v8367_v0 = vmax.f32 %v15704_v58, %v10560_v36  ;;  %v8366_v58 = vmax.f32 %v15618_v40, %v10566_v22  ;;  %v8446_v40 = vunpack.c.h.b16 %v8443_v37 }
 0xdc2   : > { %v8431_v35 = vpack.c.bf16 %v8404_v53, %v8403_v46  ;;  %v8430_v54 = vpack.c.bf16 %v8402_v25, %v8401_v43 }
 0xdc3   : > { %v10554_v2 = vpop.permute.xlu1 %10553  ;;  %v8400_v9 = vmax.f32 %v8368_v56, %v8370_v45  ;;  %v8399_v28 = vmax.f32 %v8367_v0, %v8369_v42  ;;  %v8397_v7 = vmax.f32 %v8365_v11, %v8367_v0  ;;  %v8398_v38 = vmax.f32 %v8366_v58, %v8368_v56 }
 0xdc4   : > { %v10556_v63 = vunpack.i.h.bf16 %v10554_v2  ;;  %v10555_v3 = vunpack.i.l.bf16 %v10554_v2  ;;  %8454 = vmatpush.bf16.msra.mxu1 %v8431_v35  ;;  %8468 = vmatpush.bf16.msra.mxu2 %v8438_v21  ;;  %v8396_v29 = vmax.f32 %v15892_v6, %v8366_v58  ;;  %v8448_v17 = vpack.c.b16 %v8446_v40, %v8446_v40 }
 0xdc5   : > { %v8429_v16 = vpack.c.bf16 %v8400_v9, %v8399_v28  ;;  %v8428_v27 = vpack.c.bf16 %v8398_v38, %v8397_v7 }
 0xdc6   : > { %v8382_v12 = vmax.f32 %v15711_v49, %v10556_v63  ;;  %v8381_v61 = vmax.f32 %v15714_v14, %v10555_v3  ;;  %v8427_v10 = vpack.c.bf16 %v8396_v29, %v8395_v5 }
 0xdc8   : > { %v8413_v18 = vmax.f32 %v8381_v61, %v8383_v32  ;;  %v8414_v39 = vmax.f32 %v8382_v12, %v8384_v59  ;;  %8455 = vmatpush.bf16.msra.mxu1 %v8430_v54  ;;  %8469 = vmatpush.bf16.msra.mxu2 %v8437_v33  ;;  %v8411_v49 = vmax.f32 %v15887_v50, %v8381_v61 }
 0xdc9   : > { %v8412_v14 = vmax.f32 %v15884_v47, %v8382_v12  ;;  %v9527_v47 = vld [vmem:[%s15994_s14 + $0x8] sm:$0xff] }
 0xdca   : > { %v8436_v52 = vpack.c.bf16 %v8414_v39, %v8413_v18 }
 0xdcb   : > { %v8435_v44 = vpack.c.bf16 %v8412_v14, %v8411_v49 }
 0xdcc   : > { %8456 = vmatpush.bf16.msra.mxu1 %v8429_v16  ;;  %8470 = vmatpush.bf16.msra.mxu2 %v8436_v52 }
 0xdd0   : > { %8457 = vmatpush.bf16.msra.mxu1 %v8428_v27  ;;  %8471 = vmatpush.bf16.msra.mxu2 %v8435_v44 }
 0xdd3   : > { %8472 = vmatmul.bf16.vlgmr.msra.gmra.mxu2 %v8448_v17 }
 0xdd4   : > { %8458 = vmatpush.bf16.msra.mxu1 %v8427_v10 }
 0xdd7   : > { %8459 = vmatmul.bf16.vlgmr.msra.gmra.mxu1 %v8447_v51 }
 0xdd8   : > { %8538 = vmatpush.bf16.msrb.mxu1 %v9527_v47 }
 0xddc   : > { %8539 = vmatpush.bf16.msrb.mxu1 %v9526_v19 }
 0xe54   : > { %v8460_v50 = vpop.f32.mrf.mxu1 }
 0xe56   : > { %v8473_v6 = vpop.f32.mrf.mxu2 }
 0xe57   : > { %v8474_v30 = vadd.f32 %v8473_v6, %v8460_v50 }
 0xe59   : > { %v8477_v8 = vpack.c.bf16 %v8474_v30, %v8474_v30 }
 0xe5b   : > { %9372 = vmatmul.msk.bf16.vlgmr.msra.gmra.mxu3 %vm8490_vm11, %v8477_v8 }
 0xe5c   : > { %v8462_v41 = vpop.f32.mrf.mxu1 }
 0xe5e   : > { %v8475_v26 = vpop.f32.mrf.mxu2 }
 0xede   : > { %v8503_v13 = vpop.f32.mrf.mxu3 }
 0xedf   : > { %v8504_v45 = vadd.f32 %v10571_v31, %v8503_v13 }
 0xee1   : > { %v8507_v42 = vmax.f32 %v8504_v45, 0.0 }
 0xee3   : > { %v8508_v24 = vpack.c.bf16 %v8507_v42, %v8507_v42 }
 0xee5   : > { %9381 = vmatmul.msk.bf16.vlgmr.msrb.gmra.mxu1 %vm7341_vm3, %v8508_v24 }
 0xee6   : > { %v8505_v1 = vpop.f32.mrf.mxu3 }
 0xf62   : > { %v8541_v57 = vpop.f32.mrf.mxu1 }
 0xf63   : > { %v8542_v23 = vadd.f32 %v10572_v55, %v8541_v57 }
 0xf65   : > { %8545 = vst [vmem:[%s574_s17] sm:$0xff] %v8542_v23 }
 0xf66   : > { %10692 = shalt.err (!%p10689_p10)
}
 0xf67   : > { %9562 = dma.vmem_to_hbm [thread:$0]  (%p10904_p5), %s8560_s30, 128, %s8562_s29, %s8547_s15  }
 0xf6a   : > { %v8543_v20 = vpop.f32.mrf.mxu1 }
 0xf6b PF: > { %s16642_s28 = sld [smem:[#allocation12_spill]]  ;;  %p16644_p12 = scmp.ge.s32.totalorder %s10735_s24, 2 }
 0xf6d   : > { %p9576_p13 = pnand %p16644_p12, %p10867_p6 }
 0xf6f   : > { %p9577_p0 = pneg %p9576_p13 }
 0xf71   : > { %s8573_s3 = sand.u32 1, %s16642_s28  }
 0xf72   : > { %s8574_s27 = scalar_lea.sflag [#allocation4], %s8573_s3 }
 0xf73   : > { %10718 = dma.done.wait (%p9577_p0), %s8574_s27, 128  }
 0xf74   : > { %10720 = vsyncadd (%p9577_p0), %s8574_s27, 4294967168  ;;  %s16645_s24 = sld [smem:[#allocation15_spill]]  ;;  %s16648_s21 = smov %s10727_s22 }
 0xf75   : > { %s16646_s2 = sld [smem:[#allocation13_spill]] }
 0xf76   : > { %s16647_s23 = sld [smem:[#allocation16_spill]] }
 0xf7a   : > { %p30_p3 = scmp.ge.s32.totalorder %s16645_s24, 4  }
 0xf7b   : > { %s16649_s22 = smov %s16646_s2 }
 0xf7c   :  { %32 = sbr.rel (!%p30_p3) target bundleno = 13 (0xd), region = 147 }
 0xf81   :  { %8580 = vsyncpa [#allocation3], 1 }
 0xf82   :  { %8582 = vsyncpa [#allocation3 + $0x1], 1 }
 0xf83   :  { %8583 = vsyncpa [#allocation6], 1 }
 0xf84   :  { %8584 = vsyncpa [#allocation4], 1 }
 0xf85   :  { %8586 = vsyncpa [#allocation4 + $0x1], 1 }

</bundles_post_ra>
